<compile_context>
chip_gen: v6e
topology: v6e:2x2x1
jax: 0.10.0
libtpu: 0.0.40
codegen_flags: <defaults>
</compile_context>

<pallas_src>
import functools

import jax
import jax.numpy as jnp
from jax import lax
from jax.experimental import pallas as pl
from jax.experimental.pallas import tpu as pltpu


# ----------------------------------------------------------------------------
# Fused Pallas kernel: full Transformer forward for one folded batch block.
# x_ref block: (1, bb*N, D); all weights VMEM-resident.
# ----------------------------------------------------------------------------
def _transformer_kernel(
    x_ref,
    attn_g_ref, attn_b_ref, w_qkv_ref, w_out_ref, b_out_ref,
    ff_g_ref, ff_b_ref, w1_ref, b1_ref, w2_ref, b2_ref,
    fin_g_ref, fin_b_ref,
    o_ref,
    *, depth, heads, dim_head, seq_len, eps):

    x = x_ref[0]                                  # (rows, D) f32, rows = bb * seq_len
    rows, d = x.shape
    bb = rows // seq_len
    inner = heads * dim_head
    scale = dim_head ** -0.5
    bf16 = jnp.bfloat16

    def layer_norm(t, g, b):                      # f32 throughout (v5e-safe)
        mu = jnp.mean(t, axis=-1, keepdims=True)
        var = jnp.mean((t - mu) ** 2, axis=-1, keepdims=True)
        return (t - mu) * lax.rsqrt(var + eps) * g + b

    def mm(a_bf16, b_bf16):                       # bf16 operands, f32 MXU accumulation
        return lax.dot_general(a_bf16, b_bf16, (((1,), (0,)), ((), ())),
                               preferred_element_type=jnp.float32)

    def mm_nt(a_bf16, b_bf16):                    # a @ b.T without materializing b.T
        return lax.dot_general(a_bf16, b_bf16, (((1,), (1,)), ((), ())),
                               preferred_element_type=jnp.float32)

    for l in range(depth):                        # static unroll (depth is small)
        # ------------------------- attention block -------------------------
        y = layer_norm(x, attn_g_ref[l], attn_b_ref[l])
        qkv = mm(y.astype(bf16), w_qkv_ref[l])    # (rows, 3*inner) f32, one big matmul

        # Hoisted out of the head loop: slice Q/K/V blocks once, fold `scale`
        # into the whole Q block in f32, cast each block to bf16 exactly once.
        q = (qkv[:, 0 * inner:1 * inner] * scale).astype(bf16)
        k = qkv[:, 1 * inner:2 * inner].astype(bf16)
        v = qkv[:, 2 * inner:3 * inner].astype(bf16)

        batch_outs = []
        for b in range(bb):                       # per-batch (N,N) attention
            r0 = b * seq_len
            qb = q[r0:r0 + seq_len]
            kb = k[r0:r0 + seq_len]
            vb = v[r0:r0 + seq_len]
            head_outs = []
            for h in range(heads):                # static unroll over heads
                lo = h * dim_head
                hi = lo + dim_head
                s = mm_nt(qb[:, lo:hi], kb[:, lo:hi])          # (N, N) f32 scores
                e = jnp.exp(s - jnp.max(s, axis=-1, keepdims=True))
                denom = jnp.sum(e, axis=-1, keepdims=True)
                oh = mm(e.astype(bf16), vb[:, lo:hi])          # (N, Dh) unnormalized
                # Normalize AFTER PV (N*Dh elems, not N*N) with EUP approx recip.
                oh = oh * pl.reciprocal(denom, approx=True)
                head_outs.append(oh.astype(bf16))
            batch_outs.append(jnp.concatenate(head_outs, axis=-1))   # (N, inner)
        attn_out = jnp.concatenate(batch_outs, axis=0)               # (rows, inner) bf16

        # Single merged output projection (K = inner = 64) + bias + residual.
        x = x + mm(attn_out, w_out_ref[l]) + b_out_ref[l]

        # ------------------------- feed-forward block ----------------------
        y = layer_norm(x, ff_g_ref[l], ff_b_ref[l])
        h1 = jnp.maximum(mm(y.astype(bf16), w1_ref[l]) + b1_ref[l], 0.0)
        x = x + mm(h1.astype(bf16), w2_ref[l]) + b2_ref[l]

    # Final LayerNorm.
    o_ref[0] = layer_norm(x, fin_g_ref[...], fin_b_ref[...]).astype(o_ref.dtype)


# ----------------------------------------------------------------------------
# Wrapper: one pallas_call for the whole forward, grid over folded batch blocks.
# ----------------------------------------------------------------------------
_WEIGHT_ORDER = (
    "attn_ln_g", "attn_ln_b", "w_qkv", "w_out", "b_out",
    "ff_ln_g", "ff_ln_b", "w1", "b1", "w2", "b2",
    "final_g", "final_b",
)
_BF16_WEIGHTS = frozenset({"w_qkv", "w_out", "w1", "w2"})   # MXU operands only


def transformer_forward(x, params, *, depth, heads, dim_head, eps=1e-5,
                        batch_block=2, global_attention=False):
    if global_attention:
        # TODO(synk): global_attention=True (nn.MultiheadAttention) path not implemented.
        raise NotImplementedError("global_attention=True is not supported by this kernel")

    B, N, D = x.shape
    # Largest divisor of B that is <= batch_block (keeps >= 1 grid step, exact tiling).
    bb = max(1, min(batch_block, B))
    while B % bb:
        bb -= 1
    num_blocks = B // bb
    rows = bb * N

    # Fold `bb` batch elements into the row dimension (free, contiguous reshape) so
    # every row-wise matmul inside the kernel sees M = bb*N rows.
    x_folded = x.reshape(num_blocks, rows, D)

    def prep(name):
        w = params[name]
        return w.astype(jnp.bfloat16) if name in _BF16_WEIGHTS else w
    weights = [prep(name) for name in _WEIGHT_ORDER]

    def full_spec(arr):
        nd = arr.ndim
        return pl.BlockSpec(arr.shape, lambda i, _nd=nd: (0,) * _nd)

    in_specs = [pl.BlockSpec((1, rows, D), lambda i: (i, 0, 0))]
    in_specs += [full_spec(w) for w in weights]

    out = pl.pallas_call(
        functools.partial(_transformer_kernel, depth=depth, heads=heads,
                          dim_head=dim_head, seq_len=N, eps=eps),
        out_shape=jax.ShapeDtypeStruct((num_blocks, rows, D), jnp.float32),
        grid=(num_blocks,),
        in_specs=in_specs,
        out_specs=pl.BlockSpec((1, rows, D), lambda i: (i, 0, 0)),
        compiler_params=pltpu.CompilerParams(
            dimension_semantics=("parallel",),          # megacore / v7x 2-TC sharding
            vmem_limit_bytes=32 * 1024 * 1024),
    )(x_folded, *weights)

    return out.reshape(B, N, D)


# ----------------------------------------------------------------------------
# Pure-JAX references mirroring the PyTorch module structure.
#   bf16_matmuls=False : true fp32 reference (Precision.HIGHEST) -> PyTorch semantics.
#   bf16_matmuls=True  : same bf16-operand / f32-accumulate convention as the kernel.
# ----------------------------------------------------------------------------
def reference_model(x, params, *, depth, heads, dim_head, eps=1e-5, bf16_matmuls=False):
    B, N, D = x.shape
    inner = heads * dim_head
    scale = dim_head ** -0.5

    if bf16_matmuls:
        def mm(a, b):
            return jnp.matmul(a.astype(jnp.bfloat16), b.astype(jnp.bfloat16),
                              preferred_element_type=jnp.float32)
    else:
        def mm(a, b):
            return jnp.matmul(a, b, precision=lax.Precision.HIGHEST)

    def ln(t, g, b):
        mu = jnp.mean(t, axis=-1, keepdims=True)
        var = jnp.mean((t - mu) ** 2, axis=-1, keepdims=True)
        return (t - mu) * lax.rsqrt(var + eps) * g + b

    for l in range(depth):
        # Attention (x = attn(x) + x)
        y = ln(x, params["attn_ln_g"][l], params["attn_ln_b"][l])
        qkv = mm(y, params["w_qkv"][l])                      # (B, N, 3*inner)
        q, k, v = jnp.split(qkv, 3, axis=-1)

        def split_heads(t):
            return t.reshape(B, N, heads, dim_head).transpose(0, 2, 1, 3)

        q, k, v = map(split_heads, (q, k, v))                # (B, H, N, Dh)
        dots = mm(q * scale, jnp.swapaxes(k, -1, -2))        # (B, H, N, N)
        attn = jax.nn.softmax(dots, axis=-1)
        out = mm(attn, v)                                    # (B, H, N, Dh)
        out = out.transpose(0, 2, 1, 3).reshape(B, N, inner)
        x = x + mm(out, params["w_out"][l]) + params["b_out"][l]

        # FeedForward (x = ff(x) + x)
        y = ln(x, params["ff_ln_g"][l], params["ff_ln_b"][l])
        h1 = jnp.maximum(mm(y, params["w1"][l]) + params["b1"][l], 0.0)
        x = x + mm(h1, params["w2"][l]) + params["b2"][l]

    return ln(x, params["final_g"], params["final_b"])


# ----------------------------------------------------------------------------
if __name__ == "__main__":
    # Small deterministic configuration consistent with the module's forward.
    # B=4 with batch_block=2 -> grid=(2,) parallel steps, 128-row folded matmuls.
    B, N = 4, 64
    dim, depth, heads, dim_head, mlp_dim = 32, 2, 4, 16, 64
    inner = heads * dim_head

    key = jax.random.PRNGKey(0)
    ks = jax.random.split(key, 12)

    x = jax.random.normal(ks[0], (B, N, dim), jnp.float32)

    params = {
        "attn_ln_g": 1.0 + 0.1 * jax.random.normal(ks[1], (depth, 1, dim), jnp.float32),
        "attn_ln_b": 0.05 * jax.random.normal(ks[2], (depth, 1, dim), jnp.float32),
        "w_qkv": 0.05 * jax.random.normal(ks[3], (depth, dim, 3 * inner), jnp.float32),
        "w_out": 0.05 * jax.random.normal(ks[4], (depth, inner, dim), jnp.float32),
        "b_out": 0.01 * jax.random.normal(ks[5], (depth, 1, dim), jnp.float32),
        "ff_ln_g": 1.0 + 0.1 * jax.random.normal(ks[6], (depth, 1, dim), jnp.float32),
        "ff_ln_b": 0.05 * jax.random.normal(ks[7], (depth, 1, dim), jnp.float32),
        "w1": 0.05 * jax.random.normal(ks[8], (depth, dim, mlp_dim), jnp.float32),
        "b1": 0.01 * jax.random.normal(ks[9], (depth, 1, mlp_dim), jnp.float32),
        "w2": 0.05 * jax.random.normal(ks[10], (depth, mlp_dim, dim), jnp.float32),
        "b2": 0.01 * jax.random.normal(ks[11], (depth, 1, dim), jnp.float32),
        "final_g": jnp.ones((1, dim), jnp.float32),
        "final_b": jnp.zeros((1, dim), jnp.float32),
    }

    out = transformer_forward(x, params, depth=depth, heads=heads,
                              dim_head=dim_head, batch_block=2)
    out = jax.block_until_ready(out)

    # Tight check against a reference using the same bf16-MXU convention (structure).
    ref_bf16 = reference_model(x, params, depth=depth, heads=heads,
                               dim_head=dim_head, bf16_matmuls=True)
    ref_bf16 = jax.block_until_ready(ref_bf16)
    err_bf16 = float(jnp.max(jnp.abs(out - ref_bf16)))
    assert err_bf16 < 3e-3, f"mismatch vs bf16-convention reference: {err_bf16}"

    # Loose check against the true fp32 (PyTorch-semantics) reference (numerics).
    ref_f32 = reference_model(x, params, depth=depth, heads=heads,
                              dim_head=dim_head, bf16_matmuls=False)
    ref_f32 = jax.block_until_ready(ref_f32)
    err_f32 = float(jnp.max(jnp.abs(out - ref_f32)))
    assert err_f32 < 2e-2, f"mismatch vs fp32 reference: {err_f32}"

    print("KERNEL_OK")
</pallas_src>

<mosaic_0001>
module attributes {stable_mosaic.version = 11 : i64} {
  func.func @_transformer_kernel(%arg0: i32, %arg1: memref<1x128x32xf32, #tpu.memory_space<vmem>>, %arg2: memref<2x1x32xf32, #tpu.memory_space<vmem>>, %arg3: memref<2x1x32xf32, #tpu.memory_space<vmem>>, %arg4: memref<2x32x192xbf16, #tpu.memory_space<vmem>>, %arg5: memref<2x64x32xbf16, #tpu.memory_space<vmem>>, %arg6: memref<2x1x32xf32, #tpu.memory_space<vmem>>, %arg7: memref<2x1x32xf32, #tpu.memory_space<vmem>>, %arg8: memref<2x1x32xf32, #tpu.memory_space<vmem>>, %arg9: memref<2x32x64xbf16, #tpu.memory_space<vmem>>, %arg10: memref<2x1x64xf32, #tpu.memory_space<vmem>>, %arg11: memref<2x64x32xbf16, #tpu.memory_space<vmem>>, %arg12: memref<2x1x32xf32, #tpu.memory_space<vmem>>, %arg13: memref<1x32xf32, #tpu.memory_space<vmem>>, %arg14: memref<1x32xf32, #tpu.memory_space<vmem>>, %arg15: memref<1x128x32xf32, #tpu.memory_space<vmem>>) attributes {dimension_semantics = [#tpu.dimension_semantics<parallel>], iteration_bounds = array<i64: 2>, scalar_prefetch = 0 : i64, scratch_operands = 0 : i64, tpu.core_type = #tpu.core_type<tc>, window_params = [{transform_indices = @transform_0, window_bounds = array<i64: 1, 128, 32>}, {pipeline_mode = #tpu.pipeline_mode<synchronous>, transform_indices = @transform_1, window_bounds = array<i64: 2, 1, 32>}, {pipeline_mode = #tpu.pipeline_mode<synchronous>, transform_indices = @transform_2, window_bounds = array<i64: 2, 1, 32>}, {pipeline_mode = #tpu.pipeline_mode<synchronous>, transform_indices = @transform_3, window_bounds = array<i64: 2, 32, 192>}, {pipeline_mode = #tpu.pipeline_mode<synchronous>, transform_indices = @transform_4, window_bounds = array<i64: 2, 64, 32>}, {pipeline_mode = #tpu.pipeline_mode<synchronous>, transform_indices = @transform_5, window_bounds = array<i64: 2, 1, 32>}, {pipeline_mode = #tpu.pipeline_mode<synchronous>, transform_indices = @transform_6, window_bounds = array<i64: 2, 1, 32>}, {pipeline_mode = #tpu.pipeline_mode<synchronous>, transform_indices = @transform_7, window_bounds = array<i64: 2, 1, 32>}, {pipeline_mode = #tpu.pipeline_mode<synchronous>, transform_indices = @transform_8, window_bounds = array<i64: 2, 32, 64>}, {pipeline_mode = #tpu.pipeline_mode<synchronous>, transform_indices = @transform_9, window_bounds = array<i64: 2, 1, 64>}, {pipeline_mode = #tpu.pipeline_mode<synchronous>, transform_indices = @transform_10, window_bounds = array<i64: 2, 64, 32>}, {pipeline_mode = #tpu.pipeline_mode<synchronous>, transform_indices = @transform_11, window_bounds = array<i64: 2, 1, 32>}, {pipeline_mode = #tpu.pipeline_mode<synchronous>, transform_indices = @transform_12, window_bounds = array<i64: 1, 32>}, {pipeline_mode = #tpu.pipeline_mode<synchronous>, transform_indices = @transform_13, window_bounds = array<i64: 1, 32>}, {transform_indices = @transform_14, window_bounds = array<i64: 1, 128, 32>}]} {
    %c0 = arith.constant 0 : index
    %c0_0 = arith.constant 0 : index
    %c0_1 = arith.constant 0 : index
    %0 = vector.load %arg1[%c0, %c0_0, %c0_1] : memref<1x128x32xf32, #tpu.memory_space<vmem>>, vector<1x128x32xf32>
    %1 = vector.shape_cast %0 : vector<1x128x32xf32> to vector<128x32xf32>
    %c0_2 = arith.constant 0 : index
    %c0_3 = arith.constant 0 : index
    %c0_4 = arith.constant 0 : index
    %2 = vector.load %arg2[%c0_2, %c0_3, %c0_4] : memref<2x1x32xf32, #tpu.memory_space<vmem>>, vector<1x1x32xf32>
    %3 = vector.shape_cast %2 : vector<1x1x32xf32> to vector<1x32xf32>
    %c0_5 = arith.constant 0 : index
    %c0_6 = arith.constant 0 : index
    %c0_7 = arith.constant 0 : index
    %4 = vector.load %arg3[%c0_5, %c0_6, %c0_7] : memref<2x1x32xf32, #tpu.memory_space<vmem>>, vector<1x1x32xf32>
    %5 = vector.shape_cast %4 : vector<1x1x32xf32> to vector<1x32xf32>
    %cst = arith.constant dense<0.000000e+00> : vector<128xf32>
    %6 = vector.multi_reduction <add>, %1, %cst [1] : vector<128x32xf32> to vector<128xf32>
    %7 = vector.shape_cast %6 : vector<128xf32> to vector<128x1xf32>
    %cst_8 = arith.constant 3.200000e+01 : f32
    %8 = vector.broadcast %cst_8 : f32 to vector<128x1xf32>
    %9 = arith.divf %7, %8 : vector<128x1xf32>
    %10 = vector.broadcast %9 : vector<128x1xf32> to vector<128x32xf32>
    %11 = arith.subf %1, %10 : vector<128x32xf32>
    %12 = arith.mulf %11, %11 : vector<128x32xf32>
    %cst_9 = arith.constant dense<0.000000e+00> : vector<128xf32>
    %13 = vector.multi_reduction <add>, %12, %cst_9 [1] : vector<128x32xf32> to vector<128xf32>
    %14 = vector.shape_cast %13 : vector<128xf32> to vector<128x1xf32>
    %cst_10 = arith.constant 3.200000e+01 : f32
    %15 = vector.broadcast %cst_10 : f32 to vector<128x1xf32>
    %16 = arith.divf %14, %15 : vector<128x1xf32>
    %17 = vector.broadcast %9 : vector<128x1xf32> to vector<128x32xf32>
    %18 = arith.subf %1, %17 : vector<128x32xf32>
    %cst_11 = arith.constant 9.99999974E-6 : f32
    %19 = vector.broadcast %cst_11 : f32 to vector<128x1xf32>
    %20 = arith.addf %16, %19 : vector<128x1xf32>
    %21 = math.rsqrt %20 : vector<128x1xf32>
    %22 = vector.broadcast %21 : vector<128x1xf32> to vector<128x32xf32>
    %23 = arith.mulf %18, %22 : vector<128x32xf32>
    %24 = vector.broadcast %3 : vector<1x32xf32> to vector<128x32xf32>
    %25 = arith.mulf %23, %24 : vector<128x32xf32>
    %26 = vector.broadcast %5 : vector<1x32xf32> to vector<128x32xf32>
    %27 = arith.addf %25, %26 : vector<128x32xf32>
    %28 = arith.truncf %27 : vector<128x32xf32> to vector<128x32xbf16>
    %c0_12 = arith.constant 0 : index
    %c0_13 = arith.constant 0 : index
    %c0_14 = arith.constant 0 : index
    %29 = vector.load %arg4[%c0_12, %c0_13, %c0_14] : memref<2x32x192xbf16, #tpu.memory_space<vmem>>, vector<1x32x192xbf16>
    %30 = vector.shape_cast %29 : vector<1x32x192xbf16> to vector<32x192xbf16>
    %cst_15 = arith.constant dense<0.000000e+00> : vector<128x192xf32>
    %31 = tpu.matmul %28, %30, %cst_15 {dimension_numbers = #tpu.dot_dimension_numbers<[1], [0], [0], [1], [0, 0, 1, 1], [], []>} : vector<128x32xbf16>, vector<32x192xbf16>, vector<128x192xf32> -> vector<128x192xf32>
    %32 = vector.extract_strided_slice %31 {offsets = [0, 0], sizes = [128, 64], strides = [1, 1]} : vector<128x192xf32> to vector<128x64xf32>
    %cst_16 = arith.constant 2.500000e-01 : f32
    %33 = vector.broadcast %cst_16 : f32 to vector<128x64xf32>
    %34 = arith.mulf %32, %33 : vector<128x64xf32>
    %35 = arith.truncf %34 : vector<128x64xf32> to vector<128x64xbf16>
    %36 = vector.extract_strided_slice %31 {offsets = [0, 64], sizes = [128, 64], strides = [1, 1]} : vector<128x192xf32> to vector<128x64xf32>
    %37 = arith.truncf %36 : vector<128x64xf32> to vector<128x64xbf16>
    %38 = vector.extract_strided_slice %31 {offsets = [0, 128], sizes = [128, 64], strides = [1, 1]} : vector<128x192xf32> to vector<128x64xf32>
    %39 = arith.truncf %38 : vector<128x64xf32> to vector<128x64xbf16>
    %40 = vector.extract_strided_slice %35 {offsets = [0, 0], sizes = [64, 64], strides = [1, 1]} : vector<128x64xbf16> to vector<64x64xbf16>
    %41 = vector.extract_strided_slice %37 {offsets = [0, 0], sizes = [64, 64], strides = [1, 1]} : vector<128x64xbf16> to vector<64x64xbf16>
    %42 = vector.extract_strided_slice %39 {offsets = [0, 0], sizes = [64, 64], strides = [1, 1]} : vector<128x64xbf16> to vector<64x64xbf16>
    %43 = vector.extract_strided_slice %40 {offsets = [0, 0], sizes = [64, 16], strides = [1, 1]} : vector<64x64xbf16> to vector<64x16xbf16>
    %44 = vector.extract_strided_slice %41 {offsets = [0, 0], sizes = [64, 16], strides = [1, 1]} : vector<64x64xbf16> to vector<64x16xbf16>
    %cst_17 = arith.constant dense<0.000000e+00> : vector<64x64xf32>
    %45 = tpu.matmul %43, %44, %cst_17 {dimension_numbers = #tpu.dot_dimension_numbers<[1], [1], [0], [0], [0, 0, 1, 0], [], []>} : vector<64x16xbf16>, vector<64x16xbf16>, vector<64x64xf32> -> vector<64x64xf32>
    %cst_18 = arith.constant dense<0xFF800000> : vector<64xf32>
    %46 = vector.multi_reduction <maximumf>, %45, %cst_18 [1] : vector<64x64xf32> to vector<64xf32>
    %47 = vector.shape_cast %46 : vector<64xf32> to vector<64x1xf32>
    %48 = vector.broadcast %47 : vector<64x1xf32> to vector<64x64xf32>
    %49 = arith.subf %45, %48 : vector<64x64xf32>
    %50 = math.exp %49 : vector<64x64xf32>
    %cst_19 = arith.constant dense<0.000000e+00> : vector<64xf32>
    %51 = vector.multi_reduction <add>, %50, %cst_19 [1] : vector<64x64xf32> to vector<64xf32>
    %52 = vector.shape_cast %51 : vector<64xf32> to vector<64x1xf32>
    %53 = arith.truncf %50 : vector<64x64xf32> to vector<64x64xbf16>
    %54 = vector.extract_strided_slice %42 {offsets = [0, 0], sizes = [64, 16], strides = [1, 1]} : vector<64x64xbf16> to vector<64x16xbf16>
    %cst_20 = arith.constant dense<0.000000e+00> : vector<64x16xf32>
    %55 = tpu.matmul %53, %54, %cst_20 {dimension_numbers = #tpu.dot_dimension_numbers<[1], [0], [0], [1], [0, 0, 1, 1], [], []>} : vector<64x64xbf16>, vector<64x16xbf16>, vector<64x16xf32> -> vector<64x16xf32>
    %56 = tpu.reciprocal %52 {approx = true} : vector<64x1xf32> -> vector<64x1xf32>
    %57 = vector.broadcast %56 : vector<64x1xf32> to vector<64x16xf32>
    %58 = arith.mulf %55, %57 : vector<64x16xf32>
    %59 = arith.truncf %58 : vector<64x16xf32> to vector<64x16xbf16>
    %60 = vector.extract_strided_slice %40 {offsets = [0, 16], sizes = [64, 16], strides = [1, 1]} : vector<64x64xbf16> to vector<64x16xbf16>
    %61 = vector.extract_strided_slice %41 {offsets = [0, 16], sizes = [64, 16], strides = [1, 1]} : vector<64x64xbf16> to vector<64x16xbf16>
    %cst_21 = arith.constant dense<0.000000e+00> : vector<64x64xf32>
    %62 = tpu.matmul %60, %61, %cst_21 {dimension_numbers = #tpu.dot_dimension_numbers<[1], [1], [0], [0], [0, 0, 1, 0], [], []>} : vector<64x16xbf16>, vector<64x16xbf16>, vector<64x64xf32> -> vector<64x64xf32>
    %cst_22 = arith.constant dense<0xFF800000> : vector<64xf32>
    %63 = vector.multi_reduction <maximumf>, %62, %cst_22 [1] : vector<64x64xf32> to vector<64xf32>
    %64 = vector.shape_cast %63 : vector<64xf32> to vector<64x1xf32>
    %65 = vector.broadcast %64 : vector<64x1xf32> to vector<64x64xf32>
    %66 = arith.subf %62, %65 : vector<64x64xf32>
    %67 = math.exp %66 : vector<64x64xf32>
    %cst_23 = arith.constant dense<0.000000e+00> : vector<64xf32>
    %68 = vector.multi_reduction <add>, %67, %cst_23 [1] : vector<64x64xf32> to vector<64xf32>
    %69 = vector.shape_cast %68 : vector<64xf32> to vector<64x1xf32>
    %70 = arith.truncf %67 : vector<64x64xf32> to vector<64x64xbf16>
    %71 = vector.extract_strided_slice %42 {offsets = [0, 16], sizes = [64, 16], strides = [1, 1]} : vector<64x64xbf16> to vector<64x16xbf16>
    %cst_24 = arith.constant dense<0.000000e+00> : vector<64x16xf32>
    %72 = tpu.matmul %70, %71, %cst_24 {dimension_numbers = #tpu.dot_dimension_numbers<[1], [0], [0], [1], [0, 0, 1, 1], [], []>} : vector<64x64xbf16>, vector<64x16xbf16>, vector<64x16xf32> -> vector<64x16xf32>
    %73 = tpu.reciprocal %69 {approx = true} : vector<64x1xf32> -> vector<64x1xf32>
    %74 = vector.broadcast %73 : vector<64x1xf32> to vector<64x16xf32>
    %75 = arith.mulf %72, %74 : vector<64x16xf32>
    %76 = arith.truncf %75 : vector<64x16xf32> to vector<64x16xbf16>
    %77 = vector.extract_strided_slice %40 {offsets = [0, 32], sizes = [64, 16], strides = [1, 1]} : vector<64x64xbf16> to vector<64x16xbf16>
    %78 = vector.extract_strided_slice %41 {offsets = [0, 32], sizes = [64, 16], strides = [1, 1]} : vector<64x64xbf16> to vector<64x16xbf16>
    %cst_25 = arith.constant dense<0.000000e+00> : vector<64x64xf32>
    %79 = tpu.matmul %77, %78, %cst_25 {dimension_numbers = #tpu.dot_dimension_numbers<[1], [1], [0], [0], [0, 0, 1, 0], [], []>} : vector<64x16xbf16>, vector<64x16xbf16>, vector<64x64xf32> -> vector<64x64xf32>
    %cst_26 = arith.constant dense<0xFF800000> : vector<64xf32>
    %80 = vector.multi_reduction <maximumf>, %79, %cst_26 [1] : vector<64x64xf32> to vector<64xf32>
    %81 = vector.shape_cast %80 : vector<64xf32> to vector<64x1xf32>
    %82 = vector.broadcast %81 : vector<64x1xf32> to vector<64x64xf32>
    %83 = arith.subf %79, %82 : vector<64x64xf32>
    %84 = math.exp %83 : vector<64x64xf32>
    %cst_27 = arith.constant dense<0.000000e+00> : vector<64xf32>
    %85 = vector.multi_reduction <add>, %84, %cst_27 [1] : vector<64x64xf32> to vector<64xf32>
    %86 = vector.shape_cast %85 : vector<64xf32> to vector<64x1xf32>
    %87 = arith.truncf %84 : vector<64x64xf32> to vector<64x64xbf16>
    %88 = vector.extract_strided_slice %42 {offsets = [0, 32], sizes = [64, 16], strides = [1, 1]} : vector<64x64xbf16> to vector<64x16xbf16>
    %cst_28 = arith.constant dense<0.000000e+00> : vector<64x16xf32>
    %89 = tpu.matmul %87, %88, %cst_28 {dimension_numbers = #tpu.dot_dimension_numbers<[1], [0], [0], [1], [0, 0, 1, 1], [], []>} : vector<64x64xbf16>, vector<64x16xbf16>, vector<64x16xf32> -> vector<64x16xf32>
    %90 = tpu.reciprocal %86 {approx = true} : vector<64x1xf32> -> vector<64x1xf32>
    %91 = vector.broadcast %90 : vector<64x1xf32> to vector<64x16xf32>
    %92 = arith.mulf %89, %91 : vector<64x16xf32>
    %93 = arith.truncf %92 : vector<64x16xf32> to vector<64x16xbf16>
    %94 = vector.extract_strided_slice %40 {offsets = [0, 48], sizes = [64, 16], strides = [1, 1]} : vector<64x64xbf16> to vector<64x16xbf16>
    %95 = vector.extract_strided_slice %41 {offsets = [0, 48], sizes = [64, 16], strides = [1, 1]} : vector<64x64xbf16> to vector<64x16xbf16>
    %cst_29 = arith.constant dense<0.000000e+00> : vector<64x64xf32>
    %96 = tpu.matmul %94, %95, %cst_29 {dimension_numbers = #tpu.dot_dimension_numbers<[1], [1], [0], [0], [0, 0, 1, 0], [], []>} : vector<64x16xbf16>, vector<64x16xbf16>, vector<64x64xf32> -> vector<64x64xf32>
    %cst_30 = arith.constant dense<0xFF800000> : vector<64xf32>
    %97 = vector.multi_reduction <maximumf>, %96, %cst_30 [1] : vector<64x64xf32> to vector<64xf32>
    %98 = vector.shape_cast %97 : vector<64xf32> to vector<64x1xf32>
    %99 = vector.broadcast %98 : vector<64x1xf32> to vector<64x64xf32>
    %100 = arith.subf %96, %99 : vector<64x64xf32>
    %101 = math.exp %100 : vector<64x64xf32>
    %cst_31 = arith.constant dense<0.000000e+00> : vector<64xf32>
    %102 = vector.multi_reduction <add>, %101, %cst_31 [1] : vector<64x64xf32> to vector<64xf32>
    %103 = vector.shape_cast %102 : vector<64xf32> to vector<64x1xf32>
    %104 = arith.truncf %101 : vector<64x64xf32> to vector<64x64xbf16>
    %105 = vector.extract_strided_slice %42 {offsets = [0, 48], sizes = [64, 16], strides = [1, 1]} : vector<64x64xbf16> to vector<64x16xbf16>
    %cst_32 = arith.constant dense<0.000000e+00> : vector<64x16xf32>
    %106 = tpu.matmul %104, %105, %cst_32 {dimension_numbers = #tpu.dot_dimension_numbers<[1], [0], [0], [1], [0, 0, 1, 1], [], []>} : vector<64x64xbf16>, vector<64x16xbf16>, vector<64x16xf32> -> vector<64x16xf32>
    %107 = tpu.reciprocal %103 {approx = true} : vector<64x1xf32> -> vector<64x1xf32>
    %108 = vector.broadcast %107 : vector<64x1xf32> to vector<64x16xf32>
    %109 = arith.mulf %106, %108 : vector<64x16xf32>
    %110 = arith.truncf %109 : vector<64x16xf32> to vector<64x16xbf16>
    %111 = tpu.concatenate %59, %76, %93, %110 in 1 : vector<64x16xbf16>, vector<64x16xbf16>, vector<64x16xbf16>, vector<64x16xbf16> -> vector<64x64xbf16>
    %112 = vector.extract_strided_slice %35 {offsets = [64, 0], sizes = [64, 64], strides = [1, 1]} : vector<128x64xbf16> to vector<64x64xbf16>
    %113 = vector.extract_strided_slice %37 {offsets = [64, 0], sizes = [64, 64], strides = [1, 1]} : vector<128x64xbf16> to vector<64x64xbf16>
    %114 = vector.extract_strided_slice %39 {offsets = [64, 0], sizes = [64, 64], strides = [1, 1]} : vector<128x64xbf16> to vector<64x64xbf16>
    %115 = vector.extract_strided_slice %112 {offsets = [0, 0], sizes = [64, 16], strides = [1, 1]} : vector<64x64xbf16> to vector<64x16xbf16>
    %116 = vector.extract_strided_slice %113 {offsets = [0, 0], sizes = [64, 16], strides = [1, 1]} : vector<64x64xbf16> to vector<64x16xbf16>
    %cst_33 = arith.constant dense<0.000000e+00> : vector<64x64xf32>
    %117 = tpu.matmul %115, %116, %cst_33 {dimension_numbers = #tpu.dot_dimension_numbers<[1], [1], [0], [0], [0, 0, 1, 0], [], []>} : vector<64x16xbf16>, vector<64x16xbf16>, vector<64x64xf32> -> vector<64x64xf32>
    %cst_34 = arith.constant dense<0xFF800000> : vector<64xf32>
    %118 = vector.multi_reduction <maximumf>, %117, %cst_34 [1] : vector<64x64xf32> to vector<64xf32>
    %119 = vector.shape_cast %118 : vector<64xf32> to vector<64x1xf32>
    %120 = vector.broadcast %119 : vector<64x1xf32> to vector<64x64xf32>
    %121 = arith.subf %117, %120 : vector<64x64xf32>
    %122 = math.exp %121 : vector<64x64xf32>
    %cst_35 = arith.constant dense<0.000000e+00> : vector<64xf32>
    %123 = vector.multi_reduction <add>, %122, %cst_35 [1] : vector<64x64xf32> to vector<64xf32>
    %124 = vector.shape_cast %123 : vector<64xf32> to vector<64x1xf32>
    %125 = arith.truncf %122 : vector<64x64xf32> to vector<64x64xbf16>
    %126 = vector.extract_strided_slice %114 {offsets = [0, 0], sizes = [64, 16], strides = [1, 1]} : vector<64x64xbf16> to vector<64x16xbf16>
    %cst_36 = arith.constant dense<0.000000e+00> : vector<64x16xf32>
    %127 = tpu.matmul %125, %126, %cst_36 {dimension_numbers = #tpu.dot_dimension_numbers<[1], [0], [0], [1], [0, 0, 1, 1], [], []>} : vector<64x64xbf16>, vector<64x16xbf16>, vector<64x16xf32> -> vector<64x16xf32>
    %128 = tpu.reciprocal %124 {approx = true} : vector<64x1xf32> -> vector<64x1xf32>
    %129 = vector.broadcast %128 : vector<64x1xf32> to vector<64x16xf32>
    %130 = arith.mulf %127, %129 : vector<64x16xf32>
    %131 = arith.truncf %130 : vector<64x16xf32> to vector<64x16xbf16>
    %132 = vector.extract_strided_slice %112 {offsets = [0, 16], sizes = [64, 16], strides = [1, 1]} : vector<64x64xbf16> to vector<64x16xbf16>
    %133 = vector.extract_strided_slice %113 {offsets = [0, 16], sizes = [64, 16], strides = [1, 1]} : vector<64x64xbf16> to vector<64x16xbf16>
    %cst_37 = arith.constant dense<0.000000e+00> : vector<64x64xf32>
    %134 = tpu.matmul %132, %133, %cst_37 {dimension_numbers = #tpu.dot_dimension_numbers<[1], [1], [0], [0], [0, 0, 1, 0], [], []>} : vector<64x16xbf16>, vector<64x16xbf16>, vector<64x64xf32> -> vector<64x64xf32>
    %cst_38 = arith.constant dense<0xFF800000> : vector<64xf32>
    %135 = vector.multi_reduction <maximumf>, %134, %cst_38 [1] : vector<64x64xf32> to vector<64xf32>
    %136 = vector.shape_cast %135 : vector<64xf32> to vector<64x1xf32>
    %137 = vector.broadcast %136 : vector<64x1xf32> to vector<64x64xf32>
    %138 = arith.subf %134, %137 : vector<64x64xf32>
    %139 = math.exp %138 : vector<64x64xf32>
    %cst_39 = arith.constant dense<0.000000e+00> : vector<64xf32>
    %140 = vector.multi_reduction <add>, %139, %cst_39 [1] : vector<64x64xf32> to vector<64xf32>
    %141 = vector.shape_cast %140 : vector<64xf32> to vector<64x1xf32>
    %142 = arith.truncf %139 : vector<64x64xf32> to vector<64x64xbf16>
    %143 = vector.extract_strided_slice %114 {offsets = [0, 16], sizes = [64, 16], strides = [1, 1]} : vector<64x64xbf16> to vector<64x16xbf16>
    %cst_40 = arith.constant dense<0.000000e+00> : vector<64x16xf32>
    %144 = tpu.matmul %142, %143, %cst_40 {dimension_numbers = #tpu.dot_dimension_numbers<[1], [0], [0], [1], [0, 0, 1, 1], [], []>} : vector<64x64xbf16>, vector<64x16xbf16>, vector<64x16xf32> -> vector<64x16xf32>
    %145 = tpu.reciprocal %141 {approx = true} : vector<64x1xf32> -> vector<64x1xf32>
    %146 = vector.broadcast %145 : vector<64x1xf32> to vector<64x16xf32>
    %147 = arith.mulf %144, %146 : vector<64x16xf32>
    %148 = arith.truncf %147 : vector<64x16xf32> to vector<64x16xbf16>
    %149 = vector.extract_strided_slice %112 {offsets = [0, 32], sizes = [64, 16], strides = [1, 1]} : vector<64x64xbf16> to vector<64x16xbf16>
    %150 = vector.extract_strided_slice %113 {offsets = [0, 32], sizes = [64, 16], strides = [1, 1]} : vector<64x64xbf16> to vector<64x16xbf16>
    %cst_41 = arith.constant dense<0.000000e+00> : vector<64x64xf32>
    %151 = tpu.matmul %149, %150, %cst_41 {dimension_numbers = #tpu.dot_dimension_numbers<[1], [1], [0], [0], [0, 0, 1, 0], [], []>} : vector<64x16xbf16>, vector<64x16xbf16>, vector<64x64xf32> -> vector<64x64xf32>
    %cst_42 = arith.constant dense<0xFF800000> : vector<64xf32>
    %152 = vector.multi_reduction <maximumf>, %151, %cst_42 [1] : vector<64x64xf32> to vector<64xf32>
    %153 = vector.shape_cast %152 : vector<64xf32> to vector<64x1xf32>
    %154 = vector.broadcast %153 : vector<64x1xf32> to vector<64x64xf32>
    %155 = arith.subf %151, %154 : vector<64x64xf32>
    %156 = math.exp %155 : vector<64x64xf32>
    %cst_43 = arith.constant dense<0.000000e+00> : vector<64xf32>
    %157 = vector.multi_reduction <add>, %156, %cst_43 [1] : vector<64x64xf32> to vector<64xf32>
    %158 = vector.shape_cast %157 : vector<64xf32> to vector<64x1xf32>
    %159 = arith.truncf %156 : vector<64x64xf32> to vector<64x64xbf16>
    %160 = vector.extract_strided_slice %114 {offsets = [0, 32], sizes = [64, 16], strides = [1, 1]} : vector<64x64xbf16> to vector<64x16xbf16>
    %cst_44 = arith.constant dense<0.000000e+00> : vector<64x16xf32>
    %161 = tpu.matmul %159, %160, %cst_44 {dimension_numbers = #tpu.dot_dimension_numbers<[1], [0], [0], [1], [0, 0, 1, 1], [], []>} : vector<64x64xbf16>, vector<64x16xbf16>, vector<64x16xf32> -> vector<64x16xf32>
    %162 = tpu.reciprocal %158 {approx = true} : vector<64x1xf32> -> vector<64x1xf32>
    %163 = vector.broadcast %162 : vector<64x1xf32> to vector<64x16xf32>
    %164 = arith.mulf %161, %163 : vector<64x16xf32>
    %165 = arith.truncf %164 : vector<64x16xf32> to vector<64x16xbf16>
    %166 = vector.extract_strided_slice %112 {offsets = [0, 48], sizes = [64, 16], strides = [1, 1]} : vector<64x64xbf16> to vector<64x16xbf16>
    %167 = vector.extract_strided_slice %113 {offsets = [0, 48], sizes = [64, 16], strides = [1, 1]} : vector<64x64xbf16> to vector<64x16xbf16>
    %cst_45 = arith.constant dense<0.000000e+00> : vector<64x64xf32>
    %168 = tpu.matmul %166, %167, %cst_45 {dimension_numbers = #tpu.dot_dimension_numbers<[1], [1], [0], [0], [0, 0, 1, 0], [], []>} : vector<64x16xbf16>, vector<64x16xbf16>, vector<64x64xf32> -> vector<64x64xf32>
    %cst_46 = arith.constant dense<0xFF800000> : vector<64xf32>
    %169 = vector.multi_reduction <maximumf>, %168, %cst_46 [1] : vector<64x64xf32> to vector<64xf32>
    %170 = vector.shape_cast %169 : vector<64xf32> to vector<64x1xf32>
    %171 = vector.broadcast %170 : vector<64x1xf32> to vector<64x64xf32>
    %172 = arith.subf %168, %171 : vector<64x64xf32>
    %173 = math.exp %172 : vector<64x64xf32>
    %cst_47 = arith.constant dense<0.000000e+00> : vector<64xf32>
    %174 = vector.multi_reduction <add>, %173, %cst_47 [1] : vector<64x64xf32> to vector<64xf32>
    %175 = vector.shape_cast %174 : vector<64xf32> to vector<64x1xf32>
    %176 = arith.truncf %173 : vector<64x64xf32> to vector<64x64xbf16>
    %177 = vector.extract_strided_slice %114 {offsets = [0, 48], sizes = [64, 16], strides = [1, 1]} : vector<64x64xbf16> to vector<64x16xbf16>
    %cst_48 = arith.constant dense<0.000000e+00> : vector<64x16xf32>
    %178 = tpu.matmul %176, %177, %cst_48 {dimension_numbers = #tpu.dot_dimension_numbers<[1], [0], [0], [1], [0, 0, 1, 1], [], []>} : vector<64x64xbf16>, vector<64x16xbf16>, vector<64x16xf32> -> vector<64x16xf32>
    %179 = tpu.reciprocal %175 {approx = true} : vector<64x1xf32> -> vector<64x1xf32>
    %180 = vector.broadcast %179 : vector<64x1xf32> to vector<64x16xf32>
    %181 = arith.mulf %178, %180 : vector<64x16xf32>
    %182 = arith.truncf %181 : vector<64x16xf32> to vector<64x16xbf16>
    %183 = tpu.concatenate %131, %148, %165, %182 in 1 : vector<64x16xbf16>, vector<64x16xbf16>, vector<64x16xbf16>, vector<64x16xbf16> -> vector<64x64xbf16>
    %184 = tpu.concatenate %111, %183 in 0 : vector<64x64xbf16>, vector<64x64xbf16> -> vector<128x64xbf16>
    %c0_49 = arith.constant 0 : index
    %c0_50 = arith.constant 0 : index
    %c0_51 = arith.constant 0 : index
    %185 = vector.load %arg5[%c0_49, %c0_50, %c0_51] : memref<2x64x32xbf16, #tpu.memory_space<vmem>>, vector<1x64x32xbf16>
    %186 = vector.shape_cast %185 : vector<1x64x32xbf16> to vector<64x32xbf16>
    %cst_52 = arith.constant dense<0.000000e+00> : vector<128x32xf32>
    %187 = tpu.matmul %184, %186, %cst_52 {dimension_numbers = #tpu.dot_dimension_numbers<[1], [0], [0], [1], [0, 0, 1, 1], [], []>} : vector<128x64xbf16>, vector<64x32xbf16>, vector<128x32xf32> -> vector<128x32xf32>
    %188 = arith.addf %1, %187 : vector<128x32xf32>
    %c0_53 = arith.constant 0 : index
    %c0_54 = arith.constant 0 : index
    %c0_55 = arith.constant 0 : index
    %189 = vector.load %arg6[%c0_53, %c0_54, %c0_55] : memref<2x1x32xf32, #tpu.memory_space<vmem>>, vector<1x1x32xf32>
    %190 = vector.shape_cast %189 : vector<1x1x32xf32> to vector<1x32xf32>
    %191 = vector.broadcast %190 : vector<1x32xf32> to vector<128x32xf32>
    %192 = arith.addf %188, %191 : vector<128x32xf32>
    %c0_56 = arith.constant 0 : index
    %c0_57 = arith.constant 0 : index
    %c0_58 = arith.constant 0 : index
    %193 = vector.load %arg7[%c0_56, %c0_57, %c0_58] : memref<2x1x32xf32, #tpu.memory_space<vmem>>, vector<1x1x32xf32>
    %194 = vector.shape_cast %193 : vector<1x1x32xf32> to vector<1x32xf32>
    %c0_59 = arith.constant 0 : index
    %c0_60 = arith.constant 0 : index
    %c0_61 = arith.constant 0 : index
    %195 = vector.load %arg8[%c0_59, %c0_60, %c0_61] : memref<2x1x32xf32, #tpu.memory_space<vmem>>, vector<1x1x32xf32>
    %196 = vector.shape_cast %195 : vector<1x1x32xf32> to vector<1x32xf32>
    %cst_62 = arith.constant dense<0.000000e+00> : vector<128xf32>
    %197 = vector.multi_reduction <add>, %192, %cst_62 [1] : vector<128x32xf32> to vector<128xf32>
    %198 = vector.shape_cast %197 : vector<128xf32> to vector<128x1xf32>
    %cst_63 = arith.constant 3.200000e+01 : f32
    %199 = vector.broadcast %cst_63 : f32 to vector<128x1xf32>
    %200 = arith.divf %198, %199 : vector<128x1xf32>
    %201 = vector.broadcast %200 : vector<128x1xf32> to vector<128x32xf32>
    %202 = arith.subf %192, %201 : vector<128x32xf32>
    %203 = arith.mulf %202, %202 : vector<128x32xf32>
    %cst_64 = arith.constant dense<0.000000e+00> : vector<128xf32>
    %204 = vector.multi_reduction <add>, %203, %cst_64 [1] : vector<128x32xf32> to vector<128xf32>
    %205 = vector.shape_cast %204 : vector<128xf32> to vector<128x1xf32>
    %cst_65 = arith.constant 3.200000e+01 : f32
    %206 = vector.broadcast %cst_65 : f32 to vector<128x1xf32>
    %207 = arith.divf %205, %206 : vector<128x1xf32>
    %208 = vector.broadcast %200 : vector<128x1xf32> to vector<128x32xf32>
    %209 = arith.subf %192, %208 : vector<128x32xf32>
    %cst_66 = arith.constant 9.99999974E-6 : f32
    %210 = vector.broadcast %cst_66 : f32 to vector<128x1xf32>
    %211 = arith.addf %207, %210 : vector<128x1xf32>
    %212 = math.rsqrt %211 : vector<128x1xf32>
    %213 = vector.broadcast %212 : vector<128x1xf32> to vector<128x32xf32>
    %214 = arith.mulf %209, %213 : vector<128x32xf32>
    %215 = vector.broadcast %194 : vector<1x32xf32> to vector<128x32xf32>
    %216 = arith.mulf %214, %215 : vector<128x32xf32>
    %217 = vector.broadcast %196 : vector<1x32xf32> to vector<128x32xf32>
    %218 = arith.addf %216, %217 : vector<128x32xf32>
    %219 = arith.truncf %218 : vector<128x32xf32> to vector<128x32xbf16>
    %c0_67 = arith.constant 0 : index
    %c0_68 = arith.constant 0 : index
    %c0_69 = arith.constant 0 : index
    %220 = vector.load %arg9[%c0_67, %c0_68, %c0_69] : memref<2x32x64xbf16, #tpu.memory_space<vmem>>, vector<1x32x64xbf16>
    %221 = vector.shape_cast %220 : vector<1x32x64xbf16> to vector<32x64xbf16>
    %cst_70 = arith.constant dense<0.000000e+00> : vector<128x64xf32>
    %222 = tpu.matmul %219, %221, %cst_70 {dimension_numbers = #tpu.dot_dimension_numbers<[1], [0], [0], [1], [0, 0, 1, 1], [], []>} : vector<128x32xbf16>, vector<32x64xbf16>, vector<128x64xf32> -> vector<128x64xf32>
    %c0_71 = arith.constant 0 : index
    %c0_72 = arith.constant 0 : index
    %c0_73 = arith.constant 0 : index
    %223 = vector.load %arg10[%c0_71, %c0_72, %c0_73] : memref<2x1x64xf32, #tpu.memory_space<vmem>>, vector<1x1x64xf32>
    %224 = vector.shape_cast %223 : vector<1x1x64xf32> to vector<1x64xf32>
    %225 = vector.broadcast %224 : vector<1x64xf32> to vector<128x64xf32>
    %226 = arith.addf %222, %225 : vector<128x64xf32>
    %cst_74 = arith.constant 0.000000e+00 : f32
    %227 = vector.broadcast %cst_74 : f32 to vector<128x64xf32>
    %228 = arith.maximumf %226, %227 : vector<128x64xf32>
    %229 = arith.truncf %228 : vector<128x64xf32> to vector<128x64xbf16>
    %c0_75 = arith.constant 0 : index
    %c0_76 = arith.constant 0 : index
    %c0_77 = arith.constant 0 : index
    %230 = vector.load %arg11[%c0_75, %c0_76, %c0_77] : memref<2x64x32xbf16, #tpu.memory_space<vmem>>, vector<1x64x32xbf16>
    %231 = vector.shape_cast %230 : vector<1x64x32xbf16> to vector<64x32xbf16>
    %cst_78 = arith.constant dense<0.000000e+00> : vector<128x32xf32>
    %232 = tpu.matmul %229, %231, %cst_78 {dimension_numbers = #tpu.dot_dimension_numbers<[1], [0], [0], [1], [0, 0, 1, 1], [], []>} : vector<128x64xbf16>, vector<64x32xbf16>, vector<128x32xf32> -> vector<128x32xf32>
    %233 = arith.addf %192, %232 : vector<128x32xf32>
    %c0_79 = arith.constant 0 : index
    %c0_80 = arith.constant 0 : index
    %c0_81 = arith.constant 0 : index
    %234 = vector.load %arg12[%c0_79, %c0_80, %c0_81] : memref<2x1x32xf32, #tpu.memory_space<vmem>>, vector<1x1x32xf32>
    %235 = vector.shape_cast %234 : vector<1x1x32xf32> to vector<1x32xf32>
    %236 = vector.broadcast %235 : vector<1x32xf32> to vector<128x32xf32>
    %237 = arith.addf %233, %236 : vector<128x32xf32>
    %c1 = arith.constant 1 : index
    %c0_82 = arith.constant 0 : index
    %c0_83 = arith.constant 0 : index
    %238 = vector.load %arg2[%c1, %c0_82, %c0_83] : memref<2x1x32xf32, #tpu.memory_space<vmem>>, vector<1x1x32xf32>
    %239 = vector.shape_cast %238 : vector<1x1x32xf32> to vector<1x32xf32>
    %c1_84 = arith.constant 1 : index
    %c0_85 = arith.constant 0 : index
    %c0_86 = arith.constant 0 : index
    %240 = vector.load %arg3[%c1_84, %c0_85, %c0_86] : memref<2x1x32xf32, #tpu.memory_space<vmem>>, vector<1x1x32xf32>
    %241 = vector.shape_cast %240 : vector<1x1x32xf32> to vector<1x32xf32>
    %cst_87 = arith.constant dense<0.000000e+00> : vector<128xf32>
    %242 = vector.multi_reduction <add>, %237, %cst_87 [1] : vector<128x32xf32> to vector<128xf32>
    %243 = vector.shape_cast %242 : vector<128xf32> to vector<128x1xf32>
    %cst_88 = arith.constant 3.200000e+01 : f32
    %244 = vector.broadcast %cst_88 : f32 to vector<128x1xf32>
    %245 = arith.divf %243, %244 : vector<128x1xf32>
    %246 = vector.broadcast %245 : vector<128x1xf32> to vector<128x32xf32>
    %247 = arith.subf %237, %246 : vector<128x32xf32>
    %248 = arith.mulf %247, %247 : vector<128x32xf32>
    %cst_89 = arith.constant dense<0.000000e+00> : vector<128xf32>
    %249 = vector.multi_reduction <add>, %248, %cst_89 [1] : vector<128x32xf32> to vector<128xf32>
    %250 = vector.shape_cast %249 : vector<128xf32> to vector<128x1xf32>
    %cst_90 = arith.constant 3.200000e+01 : f32
    %251 = vector.broadcast %cst_90 : f32 to vector<128x1xf32>
    %252 = arith.divf %250, %251 : vector<128x1xf32>
    %253 = vector.broadcast %245 : vector<128x1xf32> to vector<128x32xf32>
    %254 = arith.subf %237, %253 : vector<128x32xf32>
    %cst_91 = arith.constant 9.99999974E-6 : f32
    %255 = vector.broadcast %cst_91 : f32 to vector<128x1xf32>
    %256 = arith.addf %252, %255 : vector<128x1xf32>
    %257 = math.rsqrt %256 : vector<128x1xf32>
    %258 = vector.broadcast %257 : vector<128x1xf32> to vector<128x32xf32>
    %259 = arith.mulf %254, %258 : vector<128x32xf32>
    %260 = vector.broadcast %239 : vector<1x32xf32> to vector<128x32xf32>
    %261 = arith.mulf %259, %260 : vector<128x32xf32>
    %262 = vector.broadcast %241 : vector<1x32xf32> to vector<128x32xf32>
    %263 = arith.addf %261, %262 : vector<128x32xf32>
    %264 = arith.truncf %263 : vector<128x32xf32> to vector<128x32xbf16>
    %c1_92 = arith.constant 1 : index
    %c0_93 = arith.constant 0 : index
    %c0_94 = arith.constant 0 : index
    %265 = vector.load %arg4[%c1_92, %c0_93, %c0_94] : memref<2x32x192xbf16, #tpu.memory_space<vmem>>, vector<1x32x192xbf16>
    %266 = vector.shape_cast %265 : vector<1x32x192xbf16> to vector<32x192xbf16>
    %cst_95 = arith.constant dense<0.000000e+00> : vector<128x192xf32>
    %267 = tpu.matmul %264, %266, %cst_95 {dimension_numbers = #tpu.dot_dimension_numbers<[1], [0], [0], [1], [0, 0, 1, 1], [], []>} : vector<128x32xbf16>, vector<32x192xbf16>, vector<128x192xf32> -> vector<128x192xf32>
    %268 = vector.extract_strided_slice %267 {offsets = [0, 0], sizes = [128, 64], strides = [1, 1]} : vector<128x192xf32> to vector<128x64xf32>
    %cst_96 = arith.constant 2.500000e-01 : f32
    %269 = vector.broadcast %cst_96 : f32 to vector<128x64xf32>
    %270 = arith.mulf %268, %269 : vector<128x64xf32>
    %271 = arith.truncf %270 : vector<128x64xf32> to vector<128x64xbf16>
    %272 = vector.extract_strided_slice %267 {offsets = [0, 64], sizes = [128, 64], strides = [1, 1]} : vector<128x192xf32> to vector<128x64xf32>
    %273 = arith.truncf %272 : vector<128x64xf32> to vector<128x64xbf16>
    %274 = vector.extract_strided_slice %267 {offsets = [0, 128], sizes = [128, 64], strides = [1, 1]} : vector<128x192xf32> to vector<128x64xf32>
    %275 = arith.truncf %274 : vector<128x64xf32> to vector<128x64xbf16>
    %276 = vector.extract_strided_slice %271 {offsets = [0, 0], sizes = [64, 64], strides = [1, 1]} : vector<128x64xbf16> to vector<64x64xbf16>
    %277 = vector.extract_strided_slice %273 {offsets = [0, 0], sizes = [64, 64], strides = [1, 1]} : vector<128x64xbf16> to vector<64x64xbf16>
    %278 = vector.extract_strided_slice %275 {offsets = [0, 0], sizes = [64, 64], strides = [1, 1]} : vector<128x64xbf16> to vector<64x64xbf16>
    %279 = vector.extract_strided_slice %276 {offsets = [0, 0], sizes = [64, 16], strides = [1, 1]} : vector<64x64xbf16> to vector<64x16xbf16>
    %280 = vector.extract_strided_slice %277 {offsets = [0, 0], sizes = [64, 16], strides = [1, 1]} : vector<64x64xbf16> to vector<64x16xbf16>
    %cst_97 = arith.constant dense<0.000000e+00> : vector<64x64xf32>
    %281 = tpu.matmul %279, %280, %cst_97 {dimension_numbers = #tpu.dot_dimension_numbers<[1], [1], [0], [0], [0, 0, 1, 0], [], []>} : vector<64x16xbf16>, vector<64x16xbf16>, vector<64x64xf32> -> vector<64x64xf32>
    %cst_98 = arith.constant dense<0xFF800000> : vector<64xf32>
    %282 = vector.multi_reduction <maximumf>, %281, %cst_98 [1] : vector<64x64xf32> to vector<64xf32>
    %283 = vector.shape_cast %282 : vector<64xf32> to vector<64x1xf32>
    %284 = vector.broadcast %283 : vector<64x1xf32> to vector<64x64xf32>
    %285 = arith.subf %281, %284 : vector<64x64xf32>
    %286 = math.exp %285 : vector<64x64xf32>
    %cst_99 = arith.constant dense<0.000000e+00> : vector<64xf32>
    %287 = vector.multi_reduction <add>, %286, %cst_99 [1] : vector<64x64xf32> to vector<64xf32>
    %288 = vector.shape_cast %287 : vector<64xf32> to vector<64x1xf32>
    %289 = arith.truncf %286 : vector<64x64xf32> to vector<64x64xbf16>
    %290 = vector.extract_strided_slice %278 {offsets = [0, 0], sizes = [64, 16], strides = [1, 1]} : vector<64x64xbf16> to vector<64x16xbf16>
    %cst_100 = arith.constant dense<0.000000e+00> : vector<64x16xf32>
    %291 = tpu.matmul %289, %290, %cst_100 {dimension_numbers = #tpu.dot_dimension_numbers<[1], [0], [0], [1], [0, 0, 1, 1], [], []>} : vector<64x64xbf16>, vector<64x16xbf16>, vector<64x16xf32> -> vector<64x16xf32>
    %292 = tpu.reciprocal %288 {approx = true} : vector<64x1xf32> -> vector<64x1xf32>
    %293 = vector.broadcast %292 : vector<64x1xf32> to vector<64x16xf32>
    %294 = arith.mulf %291, %293 : vector<64x16xf32>
    %295 = arith.truncf %294 : vector<64x16xf32> to vector<64x16xbf16>
    %296 = vector.extract_strided_slice %276 {offsets = [0, 16], sizes = [64, 16], strides = [1, 1]} : vector<64x64xbf16> to vector<64x16xbf16>
    %297 = vector.extract_strided_slice %277 {offsets = [0, 16], sizes = [64, 16], strides = [1, 1]} : vector<64x64xbf16> to vector<64x16xbf16>
    %cst_101 = arith.constant dense<0.000000e+00> : vector<64x64xf32>
    %298 = tpu.matmul %296, %297, %cst_101 {dimension_numbers = #tpu.dot_dimension_numbers<[1], [1], [0], [0], [0, 0, 1, 0], [], []>} : vector<64x16xbf16>, vector<64x16xbf16>, vector<64x64xf32> -> vector<64x64xf32>
    %cst_102 = arith.constant dense<0xFF800000> : vector<64xf32>
    %299 = vector.multi_reduction <maximumf>, %298, %cst_102 [1] : vector<64x64xf32> to vector<64xf32>
    %300 = vector.shape_cast %299 : vector<64xf32> to vector<64x1xf32>
    %301 = vector.broadcast %300 : vector<64x1xf32> to vector<64x64xf32>
    %302 = arith.subf %298, %301 : vector<64x64xf32>
    %303 = math.exp %302 : vector<64x64xf32>
    %cst_103 = arith.constant dense<0.000000e+00> : vector<64xf32>
    %304 = vector.multi_reduction <add>, %303, %cst_103 [1] : vector<64x64xf32> to vector<64xf32>
    %305 = vector.shape_cast %304 : vector<64xf32> to vector<64x1xf32>
    %306 = arith.truncf %303 : vector<64x64xf32> to vector<64x64xbf16>
    %307 = vector.extract_strided_slice %278 {offsets = [0, 16], sizes = [64, 16], strides = [1, 1]} : vector<64x64xbf16> to vector<64x16xbf16>
    %cst_104 = arith.constant dense<0.000000e+00> : vector<64x16xf32>
    %308 = tpu.matmul %306, %307, %cst_104 {dimension_numbers = #tpu.dot_dimension_numbers<[1], [0], [0], [1], [0, 0, 1, 1], [], []>} : vector<64x64xbf16>, vector<64x16xbf16>, vector<64x16xf32> -> vector<64x16xf32>
    %309 = tpu.reciprocal %305 {approx = true} : vector<64x1xf32> -> vector<64x1xf32>
    %310 = vector.broadcast %309 : vector<64x1xf32> to vector<64x16xf32>
    %311 = arith.mulf %308, %310 : vector<64x16xf32>
    %312 = arith.truncf %311 : vector<64x16xf32> to vector<64x16xbf16>
    %313 = vector.extract_strided_slice %276 {offsets = [0, 32], sizes = [64, 16], strides = [1, 1]} : vector<64x64xbf16> to vector<64x16xbf16>
    %314 = vector.extract_strided_slice %277 {offsets = [0, 32], sizes = [64, 16], strides = [1, 1]} : vector<64x64xbf16> to vector<64x16xbf16>
    %cst_105 = arith.constant dense<0.000000e+00> : vector<64x64xf32>
    %315 = tpu.matmul %313, %314, %cst_105 {dimension_numbers = #tpu.dot_dimension_numbers<[1], [1], [0], [0], [0, 0, 1, 0], [], []>} : vector<64x16xbf16>, vector<64x16xbf16>, vector<64x64xf32> -> vector<64x64xf32>
    %cst_106 = arith.constant dense<0xFF800000> : vector<64xf32>
    %316 = vector.multi_reduction <maximumf>, %315, %cst_106 [1] : vector<64x64xf32> to vector<64xf32>
    %317 = vector.shape_cast %316 : vector<64xf32> to vector<64x1xf32>
    %318 = vector.broadcast %317 : vector<64x1xf32> to vector<64x64xf32>
    %319 = arith.subf %315, %318 : vector<64x64xf32>
    %320 = math.exp %319 : vector<64x64xf32>
    %cst_107 = arith.constant dense<0.000000e+00> : vector<64xf32>
    %321 = vector.multi_reduction <add>, %320, %cst_107 [1] : vector<64x64xf32> to vector<64xf32>
    %322 = vector.shape_cast %321 : vector<64xf32> to vector<64x1xf32>
    %323 = arith.truncf %320 : vector<64x64xf32> to vector<64x64xbf16>
    %324 = vector.extract_strided_slice %278 {offsets = [0, 32], sizes = [64, 16], strides = [1, 1]} : vector<64x64xbf16> to vector<64x16xbf16>
    %cst_108 = arith.constant dense<0.000000e+00> : vector<64x16xf32>
    %325 = tpu.matmul %323, %324, %cst_108 {dimension_numbers = #tpu.dot_dimension_numbers<[1], [0], [0], [1], [0, 0, 1, 1], [], []>} : vector<64x64xbf16>, vector<64x16xbf16>, vector<64x16xf32> -> vector<64x16xf32>
    %326 = tpu.reciprocal %322 {approx = true} : vector<64x1xf32> -> vector<64x1xf32>
    %327 = vector.broadcast %326 : vector<64x1xf32> to vector<64x16xf32>
    %328 = arith.mulf %325, %327 : vector<64x16xf32>
    %329 = arith.truncf %328 : vector<64x16xf32> to vector<64x16xbf16>
    %330 = vector.extract_strided_slice %276 {offsets = [0, 48], sizes = [64, 16], strides = [1, 1]} : vector<64x64xbf16> to vector<64x16xbf16>
    %331 = vector.extract_strided_slice %277 {offsets = [0, 48], sizes = [64, 16], strides = [1, 1]} : vector<64x64xbf16> to vector<64x16xbf16>
    %cst_109 = arith.constant dense<0.000000e+00> : vector<64x64xf32>
    %332 = tpu.matmul %330, %331, %cst_109 {dimension_numbers = #tpu.dot_dimension_numbers<[1], [1], [0], [0], [0, 0, 1, 0], [], []>} : vector<64x16xbf16>, vector<64x16xbf16>, vector<64x64xf32> -> vector<64x64xf32>
    %cst_110 = arith.constant dense<0xFF800000> : vector<64xf32>
    %333 = vector.multi_reduction <maximumf>, %332, %cst_110 [1] : vector<64x64xf32> to vector<64xf32>
    %334 = vector.shape_cast %333 : vector<64xf32> to vector<64x1xf32>
    %335 = vector.broadcast %334 : vector<64x1xf32> to vector<64x64xf32>
    %336 = arith.subf %332, %335 : vector<64x64xf32>
    %337 = math.exp %336 : vector<64x64xf32>
    %cst_111 = arith.constant dense<0.000000e+00> : vector<64xf32>
    %338 = vector.multi_reduction <add>, %337, %cst_111 [1] : vector<64x64xf32> to vector<64xf32>
    %339 = vector.shape_cast %338 : vector<64xf32> to vector<64x1xf32>
    %340 = arith.truncf %337 : vector<64x64xf32> to vector<64x64xbf16>
    %341 = vector.extract_strided_slice %278 {offsets = [0, 48], sizes = [64, 16], strides = [1, 1]} : vector<64x64xbf16> to vector<64x16xbf16>
    %cst_112 = arith.constant dense<0.000000e+00> : vector<64x16xf32>
    %342 = tpu.matmul %340, %341, %cst_112 {dimension_numbers = #tpu.dot_dimension_numbers<[1], [0], [0], [1], [0, 0, 1, 1], [], []>} : vector<64x64xbf16>, vector<64x16xbf16>, vector<64x16xf32> -> vector<64x16xf32>
    %343 = tpu.reciprocal %339 {approx = true} : vector<64x1xf32> -> vector<64x1xf32>
    %344 = vector.broadcast %343 : vector<64x1xf32> to vector<64x16xf32>
    %345 = arith.mulf %342, %344 : vector<64x16xf32>
    %346 = arith.truncf %345 : vector<64x16xf32> to vector<64x16xbf16>
    %347 = tpu.concatenate %295, %312, %329, %346 in 1 : vector<64x16xbf16>, vector<64x16xbf16>, vector<64x16xbf16>, vector<64x16xbf16> -> vector<64x64xbf16>
    %348 = vector.extract_strided_slice %271 {offsets = [64, 0], sizes = [64, 64], strides = [1, 1]} : vector<128x64xbf16> to vector<64x64xbf16>
    %349 = vector.extract_strided_slice %273 {offsets = [64, 0], sizes = [64, 64], strides = [1, 1]} : vector<128x64xbf16> to vector<64x64xbf16>
    %350 = vector.extract_strided_slice %275 {offsets = [64, 0], sizes = [64, 64], strides = [1, 1]} : vector<128x64xbf16> to vector<64x64xbf16>
    %351 = vector.extract_strided_slice %348 {offsets = [0, 0], sizes = [64, 16], strides = [1, 1]} : vector<64x64xbf16> to vector<64x16xbf16>
    %352 = vector.extract_strided_slice %349 {offsets = [0, 0], sizes = [64, 16], strides = [1, 1]} : vector<64x64xbf16> to vector<64x16xbf16>
    %cst_113 = arith.constant dense<0.000000e+00> : vector<64x64xf32>
    %353 = tpu.matmul %351, %352, %cst_113 {dimension_numbers = #tpu.dot_dimension_numbers<[1], [1], [0], [0], [0, 0, 1, 0], [], []>} : vector<64x16xbf16>, vector<64x16xbf16>, vector<64x64xf32> -> vector<64x64xf32>
    %cst_114 = arith.constant dense<0xFF800000> : vector<64xf32>
    %354 = vector.multi_reduction <maximumf>, %353, %cst_114 [1] : vector<64x64xf32> to vector<64xf32>
    %355 = vector.shape_cast %354 : vector<64xf32> to vector<64x1xf32>
    %356 = vector.broadcast %355 : vector<64x1xf32> to vector<64x64xf32>
    %357 = arith.subf %353, %356 : vector<64x64xf32>
    %358 = math.exp %357 : vector<64x64xf32>
    %cst_115 = arith.constant dense<0.000000e+00> : vector<64xf32>
    %359 = vector.multi_reduction <add>, %358, %cst_115 [1] : vector<64x64xf32> to vector<64xf32>
    %360 = vector.shape_cast %359 : vector<64xf32> to vector<64x1xf32>
    %361 = arith.truncf %358 : vector<64x64xf32> to vector<64x64xbf16>
    %362 = vector.extract_strided_slice %350 {offsets = [0, 0], sizes = [64, 16], strides = [1, 1]} : vector<64x64xbf16> to vector<64x16xbf16>
    %cst_116 = arith.constant dense<0.000000e+00> : vector<64x16xf32>
    %363 = tpu.matmul %361, %362, %cst_116 {dimension_numbers = #tpu.dot_dimension_numbers<[1], [0], [0], [1], [0, 0, 1, 1], [], []>} : vector<64x64xbf16>, vector<64x16xbf16>, vector<64x16xf32> -> vector<64x16xf32>
    %364 = tpu.reciprocal %360 {approx = true} : vector<64x1xf32> -> vector<64x1xf32>
    %365 = vector.broadcast %364 : vector<64x1xf32> to vector<64x16xf32>
    %366 = arith.mulf %363, %365 : vector<64x16xf32>
    %367 = arith.truncf %366 : vector<64x16xf32> to vector<64x16xbf16>
    %368 = vector.extract_strided_slice %348 {offsets = [0, 16], sizes = [64, 16], strides = [1, 1]} : vector<64x64xbf16> to vector<64x16xbf16>
    %369 = vector.extract_strided_slice %349 {offsets = [0, 16], sizes = [64, 16], strides = [1, 1]} : vector<64x64xbf16> to vector<64x16xbf16>
    %cst_117 = arith.constant dense<0.000000e+00> : vector<64x64xf32>
    %370 = tpu.matmul %368, %369, %cst_117 {dimension_numbers = #tpu.dot_dimension_numbers<[1], [1], [0], [0], [0, 0, 1, 0], [], []>} : vector<64x16xbf16>, vector<64x16xbf16>, vector<64x64xf32> -> vector<64x64xf32>
    %cst_118 = arith.constant dense<0xFF800000> : vector<64xf32>
    %371 = vector.multi_reduction <maximumf>, %370, %cst_118 [1] : vector<64x64xf32> to vector<64xf32>
    %372 = vector.shape_cast %371 : vector<64xf32> to vector<64x1xf32>
    %373 = vector.broadcast %372 : vector<64x1xf32> to vector<64x64xf32>
    %374 = arith.subf %370, %373 : vector<64x64xf32>
    %375 = math.exp %374 : vector<64x64xf32>
    %cst_119 = arith.constant dense<0.000000e+00> : vector<64xf32>
    %376 = vector.multi_reduction <add>, %375, %cst_119 [1] : vector<64x64xf32> to vector<64xf32>
    %377 = vector.shape_cast %376 : vector<64xf32> to vector<64x1xf32>
    %378 = arith.truncf %375 : vector<64x64xf32> to vector<64x64xbf16>
    %379 = vector.extract_strided_slice %350 {offsets = [0, 16], sizes = [64, 16], strides = [1, 1]} : vector<64x64xbf16> to vector<64x16xbf16>
    %cst_120 = arith.constant dense<0.000000e+00> : vector<64x16xf32>
    %380 = tpu.matmul %378, %379, %cst_120 {dimension_numbers = #tpu.dot_dimension_numbers<[1], [0], [0], [1], [0, 0, 1, 1], [], []>} : vector<64x64xbf16>, vector<64x16xbf16>, vector<64x16xf32> -> vector<64x16xf32>
    %381 = tpu.reciprocal %377 {approx = true} : vector<64x1xf32> -> vector<64x1xf32>
    %382 = vector.broadcast %381 : vector<64x1xf32> to vector<64x16xf32>
    %383 = arith.mulf %380, %382 : vector<64x16xf32>
    %384 = arith.truncf %383 : vector<64x16xf32> to vector<64x16xbf16>
    %385 = vector.extract_strided_slice %348 {offsets = [0, 32], sizes = [64, 16], strides = [1, 1]} : vector<64x64xbf16> to vector<64x16xbf16>
    %386 = vector.extract_strided_slice %349 {offsets = [0, 32], sizes = [64, 16], strides = [1, 1]} : vector<64x64xbf16> to vector<64x16xbf16>
    %cst_121 = arith.constant dense<0.000000e+00> : vector<64x64xf32>
    %387 = tpu.matmul %385, %386, %cst_121 {dimension_numbers = #tpu.dot_dimension_numbers<[1], [1], [0], [0], [0, 0, 1, 0], [], []>} : vector<64x16xbf16>, vector<64x16xbf16>, vector<64x64xf32> -> vector<64x64xf32>
    %cst_122 = arith.constant dense<0xFF800000> : vector<64xf32>
    %388 = vector.multi_reduction <maximumf>, %387, %cst_122 [1] : vector<64x64xf32> to vector<64xf32>
    %389 = vector.shape_cast %388 : vector<64xf32> to vector<64x1xf32>
    %390 = vector.broadcast %389 : vector<64x1xf32> to vector<64x64xf32>
    %391 = arith.subf %387, %390 : vector<64x64xf32>
    %392 = math.exp %391 : vector<64x64xf32>
    %cst_123 = arith.constant dense<0.000000e+00> : vector<64xf32>
    %393 = vector.multi_reduction <add>, %392, %cst_123 [1] : vector<64x64xf32> to vector<64xf32>
    %394 = vector.shape_cast %393 : vector<64xf32> to vector<64x1xf32>
    %395 = arith.truncf %392 : vector<64x64xf32> to vector<64x64xbf16>
    %396 = vector.extract_strided_slice %350 {offsets = [0, 32], sizes = [64, 16], strides = [1, 1]} : vector<64x64xbf16> to vector<64x16xbf16>
    %cst_124 = arith.constant dense<0.000000e+00> : vector<64x16xf32>
    %397 = tpu.matmul %395, %396, %cst_124 {dimension_numbers = #tpu.dot_dimension_numbers<[1], [0], [0], [1], [0, 0, 1, 1], [], []>} : vector<64x64xbf16>, vector<64x16xbf16>, vector<64x16xf32> -> vector<64x16xf32>
    %398 = tpu.reciprocal %394 {approx = true} : vector<64x1xf32> -> vector<64x1xf32>
    %399 = vector.broadcast %398 : vector<64x1xf32> to vector<64x16xf32>
    %400 = arith.mulf %397, %399 : vector<64x16xf32>
    %401 = arith.truncf %400 : vector<64x16xf32> to vector<64x16xbf16>
    %402 = vector.extract_strided_slice %348 {offsets = [0, 48], sizes = [64, 16], strides = [1, 1]} : vector<64x64xbf16> to vector<64x16xbf16>
    %403 = vector.extract_strided_slice %349 {offsets = [0, 48], sizes = [64, 16], strides = [1, 1]} : vector<64x64xbf16> to vector<64x16xbf16>
    %cst_125 = arith.constant dense<0.000000e+00> : vector<64x64xf32>
    %404 = tpu.matmul %402, %403, %cst_125 {dimension_numbers = #tpu.dot_dimension_numbers<[1], [1], [0], [0], [0, 0, 1, 0], [], []>} : vector<64x16xbf16>, vector<64x16xbf16>, vector<64x64xf32> -> vector<64x64xf32>
    %cst_126 = arith.constant dense<0xFF800000> : vector<64xf32>
    %405 = vector.multi_reduction <maximumf>, %404, %cst_126 [1] : vector<64x64xf32> to vector<64xf32>
    %406 = vector.shape_cast %405 : vector<64xf32> to vector<64x1xf32>
    %407 = vector.broadcast %406 : vector<64x1xf32> to vector<64x64xf32>
    %408 = arith.subf %404, %407 : vector<64x64xf32>
    %409 = math.exp %408 : vector<64x64xf32>
    %cst_127 = arith.constant dense<0.000000e+00> : vector<64xf32>
    %410 = vector.multi_reduction <add>, %409, %cst_127 [1] : vector<64x64xf32> to vector<64xf32>
    %411 = vector.shape_cast %410 : vector<64xf32> to vector<64x1xf32>
    %412 = arith.truncf %409 : vector<64x64xf32> to vector<64x64xbf16>
    %413 = vector.extract_strided_slice %350 {offsets = [0, 48], sizes = [64, 16], strides = [1, 1]} : vector<64x64xbf16> to vector<64x16xbf16>
    %cst_128 = arith.constant dense<0.000000e+00> : vector<64x16xf32>
    %414 = tpu.matmul %412, %413, %cst_128 {dimension_numbers = #tpu.dot_dimension_numbers<[1], [0], [0], [1], [0, 0, 1, 1], [], []>} : vector<64x64xbf16>, vector<64x16xbf16>, vector<64x16xf32> -> vector<64x16xf32>
    %415 = tpu.reciprocal %411 {approx = true} : vector<64x1xf32> -> vector<64x1xf32>
    %416 = vector.broadcast %415 : vector<64x1xf32> to vector<64x16xf32>
    %417 = arith.mulf %414, %416 : vector<64x16xf32>
    %418 = arith.truncf %417 : vector<64x16xf32> to vector<64x16xbf16>
    %419 = tpu.concatenate %367, %384, %401, %418 in 1 : vector<64x16xbf16>, vector<64x16xbf16>, vector<64x16xbf16>, vector<64x16xbf16> -> vector<64x64xbf16>
    %420 = tpu.concatenate %347, %419 in 0 : vector<64x64xbf16>, vector<64x64xbf16> -> vector<128x64xbf16>
    %c1_129 = arith.constant 1 : index
    %c0_130 = arith.constant 0 : index
    %c0_131 = arith.constant 0 : index
    %421 = vector.load %arg5[%c1_129, %c0_130, %c0_131] : memref<2x64x32xbf16, #tpu.memory_space<vmem>>, vector<1x64x32xbf16>
    %422 = vector.shape_cast %421 : vector<1x64x32xbf16> to vector<64x32xbf16>
    %cst_132 = arith.constant dense<0.000000e+00> : vector<128x32xf32>
    %423 = tpu.matmul %420, %422, %cst_132 {dimension_numbers = #tpu.dot_dimension_numbers<[1], [0], [0], [1], [0, 0, 1, 1], [], []>} : vector<128x64xbf16>, vector<64x32xbf16>, vector<128x32xf32> -> vector<128x32xf32>
    %424 = arith.addf %237, %423 : vector<128x32xf32>
    %c1_133 = arith.constant 1 : index
    %c0_134 = arith.constant 0 : index
    %c0_135 = arith.constant 0 : index
    %425 = vector.load %arg6[%c1_133, %c0_134, %c0_135] : memref<2x1x32xf32, #tpu.memory_space<vmem>>, vector<1x1x32xf32>
    %426 = vector.shape_cast %425 : vector<1x1x32xf32> to vector<1x32xf32>
    %427 = vector.broadcast %426 : vector<1x32xf32> to vector<128x32xf32>
    %428 = arith.addf %424, %427 : vector<128x32xf32>
    %c1_136 = arith.constant 1 : index
    %c0_137 = arith.constant 0 : index
    %c0_138 = arith.constant 0 : index
    %429 = vector.load %arg7[%c1_136, %c0_137, %c0_138] : memref<2x1x32xf32, #tpu.memory_space<vmem>>, vector<1x1x32xf32>
    %430 = vector.shape_cast %429 : vector<1x1x32xf32> to vector<1x32xf32>
    %c1_139 = arith.constant 1 : index
    %c0_140 = arith.constant 0 : index
    %c0_141 = arith.constant 0 : index
    %431 = vector.load %arg8[%c1_139, %c0_140, %c0_141] : memref<2x1x32xf32, #tpu.memory_space<vmem>>, vector<1x1x32xf32>
    %432 = vector.shape_cast %431 : vector<1x1x32xf32> to vector<1x32xf32>
    %cst_142 = arith.constant dense<0.000000e+00> : vector<128xf32>
    %433 = vector.multi_reduction <add>, %428, %cst_142 [1] : vector<128x32xf32> to vector<128xf32>
    %434 = vector.shape_cast %433 : vector<128xf32> to vector<128x1xf32>
    %cst_143 = arith.constant 3.200000e+01 : f32
    %435 = vector.broadcast %cst_143 : f32 to vector<128x1xf32>
    %436 = arith.divf %434, %435 : vector<128x1xf32>
    %437 = vector.broadcast %436 : vector<128x1xf32> to vector<128x32xf32>
    %438 = arith.subf %428, %437 : vector<128x32xf32>
    %439 = arith.mulf %438, %438 : vector<128x32xf32>
    %cst_144 = arith.constant dense<0.000000e+00> : vector<128xf32>
    %440 = vector.multi_reduction <add>, %439, %cst_144 [1] : vector<128x32xf32> to vector<128xf32>
    %441 = vector.shape_cast %440 : vector<128xf32> to vector<128x1xf32>
    %cst_145 = arith.constant 3.200000e+01 : f32
    %442 = vector.broadcast %cst_145 : f32 to vector<128x1xf32>
    %443 = arith.divf %441, %442 : vector<128x1xf32>
    %444 = vector.broadcast %436 : vector<128x1xf32> to vector<128x32xf32>
    %445 = arith.subf %428, %444 : vector<128x32xf32>
    %cst_146 = arith.constant 9.99999974E-6 : f32
    %446 = vector.broadcast %cst_146 : f32 to vector<128x1xf32>
    %447 = arith.addf %443, %446 : vector<128x1xf32>
    %448 = math.rsqrt %447 : vector<128x1xf32>
    %449 = vector.broadcast %448 : vector<128x1xf32> to vector<128x32xf32>
    %450 = arith.mulf %445, %449 : vector<128x32xf32>
    %451 = vector.broadcast %430 : vector<1x32xf32> to vector<128x32xf32>
    %452 = arith.mulf %450, %451 : vector<128x32xf32>
    %453 = vector.broadcast %432 : vector<1x32xf32> to vector<128x32xf32>
    %454 = arith.addf %452, %453 : vector<128x32xf32>
    %455 = arith.truncf %454 : vector<128x32xf32> to vector<128x32xbf16>
    %c1_147 = arith.constant 1 : index
    %c0_148 = arith.constant 0 : index
    %c0_149 = arith.constant 0 : index
    %456 = vector.load %arg9[%c1_147, %c0_148, %c0_149] : memref<2x32x64xbf16, #tpu.memory_space<vmem>>, vector<1x32x64xbf16>
    %457 = vector.shape_cast %456 : vector<1x32x64xbf16> to vector<32x64xbf16>
    %cst_150 = arith.constant dense<0.000000e+00> : vector<128x64xf32>
    %458 = tpu.matmul %455, %457, %cst_150 {dimension_numbers = #tpu.dot_dimension_numbers<[1], [0], [0], [1], [0, 0, 1, 1], [], []>} : vector<128x32xbf16>, vector<32x64xbf16>, vector<128x64xf32> -> vector<128x64xf32>
    %c1_151 = arith.constant 1 : index
    %c0_152 = arith.constant 0 : index
    %c0_153 = arith.constant 0 : index
    %459 = vector.load %arg10[%c1_151, %c0_152, %c0_153] : memref<2x1x64xf32, #tpu.memory_space<vmem>>, vector<1x1x64xf32>
    %460 = vector.shape_cast %459 : vector<1x1x64xf32> to vector<1x64xf32>
    %461 = vector.broadcast %460 : vector<1x64xf32> to vector<128x64xf32>
    %462 = arith.addf %458, %461 : vector<128x64xf32>
    %cst_154 = arith.constant 0.000000e+00 : f32
    %463 = vector.broadcast %cst_154 : f32 to vector<128x64xf32>
    %464 = arith.maximumf %462, %463 : vector<128x64xf32>
    %465 = arith.truncf %464 : vector<128x64xf32> to vector<128x64xbf16>
    %c1_155 = arith.constant 1 : index
    %c0_156 = arith.constant 0 : index
    %c0_157 = arith.constant 0 : index
    %466 = vector.load %arg11[%c1_155, %c0_156, %c0_157] : memref<2x64x32xbf16, #tpu.memory_space<vmem>>, vector<1x64x32xbf16>
    %467 = vector.shape_cast %466 : vector<1x64x32xbf16> to vector<64x32xbf16>
    %cst_158 = arith.constant dense<0.000000e+00> : vector<128x32xf32>
    %468 = tpu.matmul %465, %467, %cst_158 {dimension_numbers = #tpu.dot_dimension_numbers<[1], [0], [0], [1], [0, 0, 1, 1], [], []>} : vector<128x64xbf16>, vector<64x32xbf16>, vector<128x32xf32> -> vector<128x32xf32>
    %469 = arith.addf %428, %468 : vector<128x32xf32>
    %c1_159 = arith.constant 1 : index
    %c0_160 = arith.constant 0 : index
    %c0_161 = arith.constant 0 : index
    %470 = vector.load %arg12[%c1_159, %c0_160, %c0_161] : memref<2x1x32xf32, #tpu.memory_space<vmem>>, vector<1x1x32xf32>
    %471 = vector.shape_cast %470 : vector<1x1x32xf32> to vector<1x32xf32>
    %472 = vector.broadcast %471 : vector<1x32xf32> to vector<128x32xf32>
    %473 = arith.addf %469, %472 : vector<128x32xf32>
    %c0_162 = arith.constant 0 : index
    %c0_163 = arith.constant 0 : index
    %474 = vector.load %arg13[%c0_162, %c0_163] : memref<1x32xf32, #tpu.memory_space<vmem>>, vector<1x32xf32>
    %c0_164 = arith.constant 0 : index
    %c0_165 = arith.constant 0 : index
    %475 = vector.load %arg14[%c0_164, %c0_165] : memref<1x32xf32, #tpu.memory_space<vmem>>, vector<1x32xf32>
    %cst_166 = arith.constant dense<0.000000e+00> : vector<128xf32>
    %476 = vector.multi_reduction <add>, %473, %cst_166 [1] : vector<128x32xf32> to vector<128xf32>
    %477 = vector.shape_cast %476 : vector<128xf32> to vector<128x1xf32>
    %cst_167 = arith.constant 3.200000e+01 : f32
    %478 = vector.broadcast %cst_167 : f32 to vector<128x1xf32>
    %479 = arith.divf %477, %478 : vector<128x1xf32>
    %480 = vector.broadcast %479 : vector<128x1xf32> to vector<128x32xf32>
    %481 = arith.subf %473, %480 : vector<128x32xf32>
    %482 = arith.mulf %481, %481 : vector<128x32xf32>
    %cst_168 = arith.constant dense<0.000000e+00> : vector<128xf32>
    %483 = vector.multi_reduction <add>, %482, %cst_168 [1] : vector<128x32xf32> to vector<128xf32>
    %484 = vector.shape_cast %483 : vector<128xf32> to vector<128x1xf32>
    %cst_169 = arith.constant 3.200000e+01 : f32
    %485 = vector.broadcast %cst_169 : f32 to vector<128x1xf32>
    %486 = arith.divf %484, %485 : vector<128x1xf32>
    %487 = vector.broadcast %479 : vector<128x1xf32> to vector<128x32xf32>
    %488 = arith.subf %473, %487 : vector<128x32xf32>
    %cst_170 = arith.constant 9.99999974E-6 : f32
    %489 = vector.broadcast %cst_170 : f32 to vector<128x1xf32>
    %490 = arith.addf %486, %489 : vector<128x1xf32>
    %491 = math.rsqrt %490 : vector<128x1xf32>
    %492 = vector.broadcast %491 : vector<128x1xf32> to vector<128x32xf32>
    %493 = arith.mulf %488, %492 : vector<128x32xf32>
    %494 = vector.broadcast %474 : vector<1x32xf32> to vector<128x32xf32>
    %495 = arith.mulf %493, %494 : vector<128x32xf32>
    %496 = vector.broadcast %475 : vector<1x32xf32> to vector<128x32xf32>
    %497 = arith.addf %495, %496 : vector<128x32xf32>
    %c0_171 = arith.constant 0 : index
    %c0_172 = arith.constant 0 : index
    %c0_173 = arith.constant 0 : index
    %498 = vector.load %arg15[%c0_171, %c0_172, %c0_173] : memref<1x128x32xf32, #tpu.memory_space<vmem>>, vector<1x128x32xf32>
    %499 = vector.shape_cast %498 : vector<1x128x32xf32> to vector<128x32xf32>
    %500 = vector.shape_cast %497 : vector<128x32xf32> to vector<1x128x32xf32>
    tpu.vector_store %arg15[%c0_171, %c0_172, %c0_173], %500 {strides = array<i32>} : memref<1x128x32xf32, #tpu.memory_space<vmem>>, vector<1x128x32xf32>,
    return
  }
  func.func @transform_0(%arg0: i32) -> (i32, i32, i32) {
    %c0_i32 = arith.constant 0 : i32
    %c0_i32_0 = arith.constant 0 : i32
    %c0_i32_1 = arith.constant 0 : i32
    return %arg0, %c0_i32, %c0_i32_0 : i32, i32, i32
  }
  func.func @transform_1(%arg0: i32) -> (i32, i32, i32) {
    %c0_i32 = arith.constant 0 : i32
    %c0_i32_0 = arith.constant 0 : i32
    %c0_i32_1 = arith.constant 0 : i32
    %c0_i32_2 = arith.constant 0 : i32
    return %c0_i32, %c0_i32_0, %c0_i32_1 : i32, i32, i32
  }
  func.func @transform_2(%arg0: i32) -> (i32, i32, i32) {
    %c0_i32 = arith.constant 0 : i32
    %c0_i32_0 = arith.constant 0 : i32
    %c0_i32_1 = arith.constant 0 : i32
    %c0_i32_2 = arith.constant 0 : i32
    return %c0_i32, %c0_i32_0, %c0_i32_1 : i32, i32, i32
  }
  func.func @transform_3(%arg0: i32) -> (i32, i32, i32) {
    %c0_i32 = arith.constant 0 : i32
    %c0_i32_0 = arith.constant 0 : i32
    %c0_i32_1 = arith.constant 0 : i32
    %c0_i32_2 = arith.constant 0 : i32
    return %c0_i32, %c0_i32_0, %c0_i32_1 : i32, i32, i32
  }
  func.func @transform_4(%arg0: i32) -> (i32, i32, i32) {
    %c0_i32 = arith.constant 0 : i32
    %c0_i32_0 = arith.constant 0 : i32
    %c0_i32_1 = arith.constant 0 : i32
    %c0_i32_2 = arith.constant 0 : i32
    return %c0_i32, %c0_i32_0, %c0_i32_1 : i32, i32, i32
  }
  func.func @transform_5(%arg0: i32) -> (i32, i32, i32) {
    %c0_i32 = arith.constant 0 : i32
    %c0_i32_0 = arith.constant 0 : i32
    %c0_i32_1 = arith.constant 0 : i32
    %c0_i32_2 = arith.constant 0 : i32
    return %c0_i32, %c0_i32_0, %c0_i32_1 : i32, i32, i32
  }
  func.func @transform_6(%arg0: i32) -> (i32, i32, i32) {
    %c0_i32 = arith.constant 0 : i32
    %c0_i32_0 = arith.constant 0 : i32
    %c0_i32_1 = arith.constant 0 : i32
    %c0_i32_2 = arith.constant 0 : i32
    return %c0_i32, %c0_i32_0, %c0_i32_1 : i32, i32, i32
  }
  func.func @transform_7(%arg0: i32) -> (i32, i32, i32) {
    %c0_i32 = arith.constant 0 : i32
    %c0_i32_0 = arith.constant 0 : i32
    %c0_i32_1 = arith.constant 0 : i32
    %c0_i32_2 = arith.constant 0 : i32
    return %c0_i32, %c0_i32_0, %c0_i32_1 : i32, i32, i32
  }
  func.func @transform_8(%arg0: i32) -> (i32, i32, i32) {
    %c0_i32 = arith.constant 0 : i32
    %c0_i32_0 = arith.constant 0 : i32
    %c0_i32_1 = arith.constant 0 : i32
    %c0_i32_2 = arith.constant 0 : i32
    return %c0_i32, %c0_i32_0, %c0_i32_1 : i32, i32, i32
  }
  func.func @transform_9(%arg0: i32) -> (i32, i32, i32) {
    %c0_i32 = arith.constant 0 : i32
    %c0_i32_0 = arith.constant 0 : i32
    %c0_i32_1 = arith.constant 0 : i32
    %c0_i32_2 = arith.constant 0 : i32
    return %c0_i32, %c0_i32_0, %c0_i32_1 : i32, i32, i32
  }
  func.func @transform_10(%arg0: i32) -> (i32, i32, i32) {
    %c0_i32 = arith.constant 0 : i32
    %c0_i32_0 = arith.constant 0 : i32
    %c0_i32_1 = arith.constant 0 : i32
    %c0_i32_2 = arith.constant 0 : i32
    return %c0_i32, %c0_i32_0, %c0_i32_1 : i32, i32, i32
  }
  func.func @transform_11(%arg0: i32) -> (i32, i32, i32) {
    %c0_i32 = arith.constant 0 : i32
    %c0_i32_0 = arith.constant 0 : i32
    %c0_i32_1 = arith.constant 0 : i32
    %c0_i32_2 = arith.constant 0 : i32
    return %c0_i32, %c0_i32_0, %c0_i32_1 : i32, i32, i32
  }
  func.func @transform_12(%arg0: i32) -> (i32, i32) {
    %c0_i32 = arith.constant 0 : i32
    %c0_i32_0 = arith.constant 0 : i32
    %c0_i32_1 = arith.constant 0 : i32
    return %c0_i32, %c0_i32_0 : i32, i32
  }
  func.func @transform_13(%arg0: i32) -> (i32, i32) {
    %c0_i32 = arith.constant 0 : i32
    %c0_i32_0 = arith.constant 0 : i32
    %c0_i32_1 = arith.constant 0 : i32
    return %c0_i32, %c0_i32_0 : i32, i32
  }
  func.func @transform_14(%arg0: i32) -> (i32, i32, i32) {
    %c0_i32 = arith.constant 0 : i32
    %c0_i32_0 = arith.constant 0 : i32
    %c0_i32_1 = arith.constant 0 : i32
    return %arg0, %c0_i32, %c0_i32_0 : i32, i32, i32
  }
}

</mosaic_0001>

<bundles_post_ra>
// kernel: tpu_custom_call.1
= control target key start
LH: loop header
LB: loop body
LE: loop exit
PB: predicated region body
PF: predicated region fallthrough
CT: control target
= control target key end

     0   :  { %s10371_s29 = smov 0   ;;  %s14390_s0 = inlined_call_operand.vmem [shape: f32[2,128,32], index: 0, kind: input, shape index: {}]   ;;  %s14391_s1 = inlined_call_operand.vmem [shape: f32[2,1,32], index: 1, kind: input, shape index: {}]   ;;  %s14392_s2 = inlined_call_operand.vmem [shape: f32[2,1,32], index: 2, kind: input, shape index: {}]   ;;  %s14393_s3 = inlined_call_operand.vmem [shape: bf16[2,32,192], index: 3, kind: input, shape index: {}]   ;;  %s14394_s4 = inlined_call_operand.vmem [shape: bf16[2,64,32], index: 4, kind: input, shape index: {}]   ;;  %s14395_s5 = inlined_call_operand.vmem [shape: f32[2,1,32], index: 5, kind: input, shape index: {}]   ;;  %s14396_s6 = inlined_call_operand.vmem [shape: f32[2,1,32], index: 6, kind: input, shape index: {}]   ;;  %s14397_s7 = inlined_call_operand.vmem [shape: f32[2,1,32], index: 7, kind: input, shape index: {}]   ;;  %s14398_s8 = inlined_call_operand.vmem [shape: bf16[2,32,64], index: 8, kind: input, shape index: {}]   ;;  %s14399_s9 = inlined_call_operand.vmem [shape: f32[2,1,64], index: 9, kind: input, shape index: {}]   ;;  %s14400_s10 = inlined_call_operand.vmem [shape: bf16[2,64,32], index: 10, kind: input, shape index: {}]   ;;  %s14401_s11 = inlined_call_operand.vmem [shape: f32[2,1,32], index: 11, kind: input, shape index: {}]   ;;  %s14402_s12 = inlined_call_operand.vmem [shape: f32[1,32], index: 12, kind: input, shape index: {}]   ;;  %s14403_s13 = inlined_call_operand.vmem [shape: f32[1,32], index: 13, kind: input, shape index: {}]   ;;  %s14404_s14 = inlined_call_operand.vmem [shape: f32[2,128,32], index: 14, kind: output, shape index: {}]  }
   0x1 LB: > { %s8228_s30 = sadd.s32 4294967295, %s10286_s29   ;;  %p8232_p0 = scmp.ge.s32.totalorder %s10286_s29, 1  ;;  %s10286_s29 = sphi %s10371_s29, %s24_s29  }
   0x2   : > { %p412_p1 = scmp.lt.s32.totalorder %s10286_s29, 3 }
   0x4   : > { %p413_p2 = pnand %p8232_p0, %p412_p1 }
   0x6   : > { %416 = sbr.rel (%p413_p2) target bundleno = 10009 (0x2719), region = 76 }
   0xb   : > { %p458_p3 = scmp.lt.s32.totalorder %s8228_s30, 1  ;;  %vm487_vm0 = vcmask 261120   ;;  %v9560_v56 = vld [vmem:[%s14393_s3 + $0x14] ss:$8 sps:$4 sm:$0xff]   ;;  %v9562_v57 = vld [vmem:[%s14393_s3 + $0x10] ss:$8 sps:$4 sm:$0xff]  }
   0xc   : > { %v9563_v58 = vld [vmem:[%s14393_s3 + $0x4] ss:$8 sps:$4 sm:$0xff]   ;;  %809 = vmatprep.subr.bf16.mxu0 %v9560_v56  ;;  %v14405_v59 = vmov 0   ;;  %v9565_v60 = vld [vmem:[%s14393_s3] ss:$8 sps:$4 sm:$0xff]   ;;  %vm962_vm1 = vcmask 130048  }
   0xd   : > { %s14733_s30 = smov (!%p458_p3, %s8228_s30), 1  ;;  %829 = vmatprep.mubr.bf16.mxu0 %v14405_v59  ;;  %810 = vmatpush1.bf16.msra.mxu0 %v9562_v57  ;;  %s10289_s19 = smov 64   ;;  %vm1052_vm2 = vcmask 523264   ;;  %vm2160_vm3 = vcmask 392192  }
   0xe   : > { %s14418_s15 = sshll.u32 %s14733_s30, 7  ;;  %811 = vmatprep.subr.bf16.mxu0 %v9563_v58  ;;  %s10290_s20 = smov 48  }
   0xf   : > { %s10387_s18 = scalar_lea.vmem %s14390_s0, %s14418_s15  ;;  %s10291_s21 = smov 32  }
  0x10   : > { %v469_v0 = vld [vmem:[%s10387_s18] sm:$0xff]  ;;  %v471_v1 = vld [vmem:[%s10387_s18 + $0x10] sm:$0xff]  ;;  %v470_v2 = vld [vmem:[%s10387_s18 + $0x8] sm:$0xff]  ;;  %s10292_s22 = smov 112   ;;  %s10293_s23 = smov 96  }
  0x11   : > { %v488_v3 = vsel %vm487_vm0, %v469_v0, 0.0  ;;  %v494_v4 = vsel %vm487_vm0, %v471_v1, 0.0  ;;  %v472_v5 = vld [vmem:[%s10387_s18 + $0x18] sm:$0xff]  ;;  %v473_v6 = vld [vmem:[%s10387_s18 + $0x20] sm:$0xff]  ;;  %v474_v7 = vld [vmem:[%s10387_s18 + $0x28] sm:$0xff]  ;;  %v491_v8 = vsel %vm487_vm0, %v470_v2, 0.0  ;;  %812 = vmatpush1.bf16.msra.mxu0 %v9565_v60 }
  0x12   : > { %489 = vadd.xlane.f32.xlu0 %v488_v3  ;;  %495 = vadd.xlane.f32.xlu1 %v494_v4  ;;  %v497_v9 = vsel %vm487_vm0, %v472_v5, 0.0  ;;  %v500_v10 = vsel %vm487_vm0, %v473_v6, 0.0  ;;  %v503_v11 = vsel %vm487_vm0, %v474_v7, 0.0  ;;  %v475_v12 = vld [vmem:[%s10387_s18 + $0x30] sm:$0xff]  ;;  %v476_v14 = vld [vmem:[%s10387_s18 + $0x38] sm:$0xff]  ;;  %s10294_s24 = smov 16  }
  0x13   : > { %v506_v13 = vsel %vm487_vm0, %v475_v12, 0.0  ;;  %v509_v15 = vsel %vm487_vm0, %v476_v14, 0.0  ;;  %s14419_s25 = smov 80  }
  0x16   : > { %492 = vadd.xlane.f32.xlu0 %v491_v8  ;;  %498 = vadd.xlane.f32.xlu1 %v497_v9 }
  0x1a   : > { %501 = vadd.xlane.f32.xlu0 %v500_v10  ;;  %504 = vadd.xlane.f32.xlu1 %v503_v11 }
  0x1e   : > { %507 = vadd.xlane.f32.xlu0 %v506_v13  ;;  %510 = vadd.xlane.f32.xlu1 %v509_v15 }
  0x9b   : > { %v490_v16 = vpop.xlane.xlu0 %489  ;;  %v496_v17 = vpop.xlane.xlu1 %495 }
  0x9c   : > { %v537_v18 = vmul.f32 0.03125, %v490_v16  ;;  %v539_v19 = vmul.f32 0.03125, %v496_v17 }
  0x9e   : > { %v10405_v20 = vsub.f32 %v469_v0, %v537_v18  ;;  %v10407_v21 = vsub.f32 %v471_v1, %v539_v19 }
  0x9f   : > { %v493_v22 = vpop.xlane.xlu0 %492  ;;  %v499_v23 = vpop.xlane.xlu1 %498 }
  0xa0   : > { %v538_v24 = vmul.f32 0.03125, %v493_v22  ;;  %v540_v25 = vmul.f32 0.03125, %v499_v23  ;;  %v569_v26 = vmul.f32 %v10405_v20, %v10405_v20  ;;  %v571_v27 = vmul.f32 %v10407_v21, %v10407_v21  ;;  %v10462_v23 = vld [vmem:[%s14391_s1] ss:$0 sm:$0xff] }
  0xa2   : > { %v10413_v28 = vsub.f32 %v470_v2, %v538_v24  ;;  %v10415_v29 = vsub.f32 %v472_v5, %v540_v25  ;;  %v585_v30 = vsel %vm487_vm0, %v569_v26, 0.0  ;;  %v591_v33 = vsel %vm487_vm0, %v571_v27, 0.0 }
  0xa3   : > { %586 = vadd.xlane.f32.xlu0 %v585_v30  ;;  %v502_v31 = vpop.xlane.xlu0 %501  ;;  %v505_v32 = vpop.xlane.xlu1 %504 }
  0xa4   : > { %v541_v34 = vmul.f32 0.03125, %v502_v31  ;;  %v542_v35 = vmul.f32 0.03125, %v505_v32  ;;  %v570_v36 = vmul.f32 %v10413_v28, %v10413_v28  ;;  %v572_v37 = vmul.f32 %v10415_v29, %v10415_v29  ;;  %v10469_v32 = vld [vmem:[%s14392_s2] ss:$0 sm:$0xff] }
  0xa6   : > { %v10423_v38 = vsub.f32 %v473_v6, %v541_v34  ;;  %v10425_v39 = vsub.f32 %v474_v7, %v542_v35  ;;  %v588_v40 = vsel %vm487_vm0, %v570_v36, 0.0  ;;  %v594_v43 = vsel %vm487_vm0, %v572_v37, 0.0 }
  0xa7   : > { %592 = vadd.xlane.f32.xlu0 %v591_v33  ;;  %589 = vadd.xlane.f32.xlu1 %v588_v40  ;;  %v508_v41 = vpop.xlane.xlu0 %507  ;;  %v511_v42 = vpop.xlane.xlu1 %510 }
  0xa8   : > { %v543_v44 = vmul.f32 0.03125, %v508_v41  ;;  %v544_v45 = vmul.f32 0.03125, %v511_v42  ;;  %v573_v46 = vmul.f32 %v10423_v38, %v10423_v38  ;;  %v574_v47 = vmul.f32 %v10425_v39, %v10425_v39 }
  0xaa   : > { %v10433_v48 = vsub.f32 %v475_v12, %v543_v44  ;;  %v10435_v49 = vsub.f32 %v476_v14, %v544_v45  ;;  %v597_v50 = vsel %vm487_vm0, %v573_v46, 0.0  ;;  %v600_v51 = vsel %vm487_vm0, %v574_v47, 0.0 }
  0xab   : > { %595 = vadd.xlane.f32.xlu1 %v594_v43  ;;  %598 = vadd.xlane.f32.xlu0 %v597_v50 }
  0xac   : > { %v575_v52 = vmul.f32 %v10433_v48, %v10433_v48  ;;  %v576_v53 = vmul.f32 %v10435_v49, %v10435_v49 }
  0xae   : > { %v603_v54 = vsel %vm487_vm0, %v575_v52, 0.0  ;;  %v606_v55 = vsel %vm487_vm0, %v576_v53, 0.0 }
  0xaf   : > { %601 = vadd.xlane.f32.xlu1 %v600_v51  ;;  %604 = vadd.xlane.f32.xlu0 %v603_v54 }
  0xb3   : > { %607 = vadd.xlane.f32.xlu1 %v606_v55 }
 0x12c   : > { %v587_v61 = vpop.xlane.xlu0 %586 }
 0x12d   : > { %v633_v62 = vmul.f32 0.03125, %v587_v61 }
 0x12f   : > { %v649_v63 = vadd.f32 1e-05, %v633_v62 }
 0x130   : > { %v590_v0 = vpop.xlane.xlu1 %589  ;;  %v593_v1 = vpop.xlane.xlu0 %592 }
 0x131   : > { %9592 = vrsqrt.f32 %v649_v63  ;;  %v634_v2 = vmul.f32 0.03125, %v590_v0  ;;  %v635_v3 = vmul.f32 0.03125, %v593_v1 }
 0x133   : > { %v650_v4 = vadd.f32 1e-05, %v634_v2  ;;  %v651_v5 = vadd.f32 1e-05, %v635_v3 }
 0x134   : > { %v596_v6 = vpop.xlane.xlu1 %595  ;;  %v599_v7 = vpop.xlane.xlu0 %598 }
 0x135   : > { %9594 = vrsqrt.f32 %v650_v4  ;;  %v636_v8 = vmul.f32 0.03125, %v596_v6  ;;  %v637_v10 = vmul.f32 0.03125, %v599_v7 }
 0x136   : > { %9596 = vrsqrt.f32 %v651_v5 }
 0x137   : > { %v652_v9 = vadd.f32 1e-05, %v636_v8  ;;  %v653_v13 = vadd.f32 1e-05, %v637_v10 }
 0x138   : > { %v602_v11 = vpop.xlane.xlu1 %601  ;;  %v605_v15 = vpop.xlane.xlu0 %604 }
 0x139   : > { %9598 = vrsqrt.f32 %v652_v9  ;;  %v638_v12 = vmul.f32 0.03125, %v602_v11  ;;  %v639_v19 = vmul.f32 0.03125, %v605_v15 }
 0x13b   : > { %v654_v14 = vadd.f32 1e-05, %v638_v12  ;;  %v655_v26 = vadd.f32 1e-05, %v639_v19 }
 0x13c   : > { %v608_v16 = vpop.xlane.xlu1 %607 }
 0x13d   : > { %9600 = vrsqrt.f32 %v654_v14  ;;  %v640_v17 = vmul.f32 0.03125, %v608_v16 }
 0x13e   : > { %v9593_v18 = vpop.eup %9592  ;;  %9602 = vrsqrt.f32 %v653_v13 }
 0x13f   : > { %v681_v22 = vmul.f32 %v9593_v18, %v10405_v20  ;;  %v656_v24 = vadd.f32 1e-05, %v640_v17 }
 0x141   : > { %v703_v30 = vmul.f32 %v10462_v23, %v681_v22  ;;  %9604 = vrsqrt.f32 %v656_v24 }
 0x142   : > { %v9595_v25 = vpop.eup %9594  ;;  %9606 = vrsqrt.f32 %v655_v26 }
 0x143   : > { %v682_v27 = vmul.f32 %v9595_v25, %v10413_v28  ;;  %v9597_v31 = vpop.eup %9596  ;;  %v725_v34 = vadd.f32 %v10469_v32, %v703_v30 }
 0x144   : > { %v683_v36 = vmul.f32 %v9597_v31, %v10407_v21 }
 0x145   : > { %v704_v20 = vmul.f32 %v10462_v23, %v682_v27 }
 0x146   : > { %v9599_v33 = vpop.eup %9598  ;;  %v705_v42 = vmul.f32 %v10462_v23, %v683_v36 }
 0x147   : > { %v726_v35 = vadd.f32 %v10469_v32, %v704_v20  ;;  %v684_v28 = vmul.f32 %v9599_v33, %v10415_v29  ;;  %v477_v20 = vld [vmem:[%s10387_s18 + $0x40] sm:$0xff] }
 0x148   : > { %v727_v46 = vadd.f32 %v10469_v32, %v705_v42  ;;  %v512_v33 = vsel %vm487_vm0, %v477_v20, 0.0  ;;  %v10554_v42 = vld [vmem:[%s10387_s18 + $0x60] sm:$0xff] }
 0x149   : > { %v741_v37 = vpack.c.bf16 %v726_v35, %v725_v34  ;;  %v706_v40 = vmul.f32 %v10462_v23, %v684_v28  ;;  %v479_v34 = vld [vmem:[%s10387_s18 + $0x50] sm:$0xff]  ;;  %v10540_v35 = vld [vmem:[%s10387_s18 + $0x48] sm:$0xff] }
 0x14a   : > { %v9601_v41 = vpop.eup %9600  ;;  %v518_v36 = vsel %vm487_vm0, %v479_v34, 0.0  ;;  %v515_v28 = vsel %vm487_vm0, %v10540_v35, 0.0 }
 0x14b   : > { %8243 = vmatmul.mubr.msk.bf16.vlgmr.msra.gmra.mxu0 %vm487_vm0, %v741_v37  ;;  %v9603_v43 = vpop.eup %9602  ;;  %v728_v44 = vadd.f32 %v10469_v32, %v706_v40  ;;  %v686_v45 = vmul.f32 %v9601_v41, %v10425_v39  ;;  %v10546_v37 = vld [vmem:[%s10387_s18 + $0x58] sm:$0xff]  ;;  %v10549_v40 = vld [vmem:[%s10387_s18 + $0x68] sm:$0xff] }
 0x14c   : > { %839 = vmatprep.mubr.bf16.mxu0 %v14405_v59  ;;  %v685_v21 = vmul.f32 %v9603_v43, %v10423_v38  ;;  %v521_v41 = vsel %vm487_vm0, %v10546_v37, 0.0  ;;  %v527_v43 = vsel %vm487_vm0, %v10549_v40, 0.0 }
 0x14d   : > { %v742_v29 = vpack.c.bf16 %v728_v44, %v727_v46  ;;  %v708_v47 = vmul.f32 %v10462_v23, %v686_v45  ;;  %v10559_v44 = vld [vmem:[%s10387_s18 + $0x78] sm:$0xff]  ;;  %v524_v45 = vsel %vm487_vm0, %v10554_v42, 0.0  ;;  %v10564_v46 = vld [vmem:[%s10387_s18 + $0x70] sm:$0xff] }
 0x14e   : > { %v9605_v50 = vpop.eup %9604  ;;  %v707_v52 = vmul.f32 %v10462_v23, %v685_v21  ;;  %v533_v21 = vsel %vm487_vm0, %v10559_v44, 0.0 }
 0x14f   : > { %v9607_v51 = vpop.eup %9606  ;;  %v730_v53 = vadd.f32 %v10469_v32, %v708_v47  ;;  %v688_v54 = vmul.f32 %v9605_v50, %v10435_v49 }
 0x150   : > { %v729_v39 = vadd.f32 %v10469_v32, %v707_v52  ;;  %v687_v55 = vmul.f32 %v9607_v51, %v10433_v48 }
 0x151   : > { %v710_v56 = vmul.f32 %v10462_v23, %v688_v54 }
 0x152   : > { %v743_v38 = vpack.c.bf16 %v730_v53, %v729_v39  ;;  %v709_v57 = vmul.f32 %v10462_v23, %v687_v55 }
 0x153   : > { %8244 = vmatmul.mubr.msk.bf16.gmra.mxu0 %vm487_vm0, %v742_v29  ;;  %v732_v58 = vadd.f32 %v10469_v32, %v710_v56  ;;  %v530_v29 = vsel %vm487_vm0, %v10564_v46, 0.0 }
 0x154   : > { %849 = vmatprep.mubr.bf16.mxu0 %v14405_v59  ;;  %v731_v60 = vadd.f32 %v10469_v32, %v709_v57 }
 0x156   : > { %v744_v61 = vpack.c.bf16 %v732_v58, %v731_v60 }
 0x15b   : > { %8245 = vmatmul.mubr.msk.bf16.gmra.mxu0 %vm487_vm0, %v743_v38 }
 0x15c   : > { %859 = vmatprep.mubr.bf16.mxu0 %v14405_v59 }
 0x163   : > { %8246 = vmatmul.mubr.msk.bf16.gmra.mxu0 %vm487_vm0, %v744_v61 }
 0x164   : > { %869 = vmatprep.mubr.bf16.mxu0 %v14405_v59 }
 0x20b   : > { %v831_v49 = vpop.f32.mrf.mxu0 }
 0x20c   : > { %v910_v63 = vmul.f32 0.25, %v831_v49 }
 0x20d   : > { %v10500_v48 = vpop.f32.mrf.mxu0 }
 0x20f   : > { %v835_v62 = vpop.f32.mrf.mxu0 }
 0x210   : > { %v911_v0 = vmul.f32 0.25, %v835_v62  ;;  %v10526_v25 = vpack.c.bf16 %v835_v62, %v831_v49 }
 0x211   : > { %v10502_v1 = vpop.f32.mrf.mxu0 }
 0x212   : > { %v10504_v2 = vpack.c.bf16 %v911_v0, %v910_v63  ;;  %v10598_v60 = vpack.c.bf16 %v10502_v1, %v10500_v48 }
 0x213   : > { %v841_v3 = vpop.f32.mrf.mxu0 }
 0x214   : > { %8840 = vmatprep.mubr.msk.bf16.mxu1 %vm962_vm1, %v10504_v2  ;;  %v912_v6 = vmul.f32 0.25, %v841_v3 }
 0x215   : > { %v10508_v4 = vpop.f32.mrf.mxu0 }
 0x217   : > { %v845_v5 = vpop.f32.mrf.mxu0 }
 0x218   : > { %v913_v7 = vmul.f32 0.25, %v845_v5  ;;  %v10522_v19 = vpack.c.bf16 %v845_v5, %v841_v3 }
 0x219   : > { %v10510_v8 = vpop.f32.mrf.mxu0 }
 0x21a   : > { %v10512_v9 = vpack.c.bf16 %v913_v7, %v912_v6  ;;  %v10592_v58 = vpack.c.bf16 %v10510_v8, %v10508_v4 }
 0x21b   : > { %v851_v10 = vpop.f32.mrf.mxu0 }
 0x21c   : > { %v914_v13 = vmul.f32 0.25, %v851_v10 }
 0x21d   : > { %v10514_v11 = vpop.f32.mrf.mxu0 }
 0x21f   : > { %v855_v12 = vpop.f32.mrf.mxu0 }
 0x220   : > { %v915_v14 = vmul.f32 0.25, %v855_v12  ;;  %v10516_v15 = vpack.c.bf16 %v855_v12, %v851_v10 }
 0x221   : > { %v857_v16 = vpop.f32.mrf.mxu0 }
 0x222   : > { %v10518_v17 = vpack.c.bf16 %v915_v14, %v914_v13  ;;  %958 = vrot.lane.b32.xlu1 %v10516_v15, %s10289_s19  ;;  %v10582_v57 = vpack.c.bf16 %v857_v16, %v10514_v11 }
 0x223   : > { %v861_v18 = vpop.f32.mrf.mxu0 }
 0x224   : > { %v916_v26 = vmul.f32 0.25, %v861_v18 }
 0x225   : > { %v863_v22 = vpop.f32.mrf.mxu0 }
 0x226   : > { %956 = vrot.lane.b32.xlu1 %v10522_v19, %s10289_s19 }
 0x227   : > { %v865_v24 = vpop.f32.mrf.mxu0 }
 0x228   : > { %v917_v27 = vmul.f32 0.25, %v865_v24  ;;  %v10528_v30 = vpack.c.bf16 %v865_v24, %v861_v18 }
 0x229   : > { %v867_v55 = vpop.f32.mrf.mxu0 }
 0x22a   : > { %v10530_v31 = vpack.c.bf16 %v917_v27, %v916_v26  ;;  %954 = vrot.lane.b32.xlu1 %v10526_v25, %s10289_s19  ;;  %960 = vrot.lane.b32.xlu0 %v10528_v30, %s10289_s19  ;;  %v10577_v38 = vpack.c.bf16 %v867_v55, %v863_v22 }
 0x249   : > { %513 = vadd.xlane.f32.xlu0 %v512_v33 }
 0x24d   : > { %519 = vadd.xlane.f32.xlu0 %v518_v36 }
 0x24e   : > { %516 = vadd.xlane.f32.xlu1 %v515_v28 }
 0x251   : > { %522 = vadd.xlane.f32.xlu0 %v521_v41 }
 0x252   : > { %528 = vadd.xlane.f32.xlu1 %v527_v43 }
 0x255   : > { %525 = vadd.xlane.f32.xlu0 %v524_v45 }
 0x256   : > { %534 = vadd.xlane.f32.xlu1 %v533_v21 }
 0x259   : > { %531 = vadd.xlane.f32.xlu0 %v530_v29 }
 0x294   : > { %v959_v51 = vpop.permute.xlu1 %958 }
 0x295   : > { %v982_v52 = vsel %vm962_vm1, %v959_v51, 0 }
 0x298   : > { %v957_v53 = vpop.permute.xlu1 %956 }
 0x299   : > { %v979_v54 = vsel %vm962_vm1, %v957_v53, 0 }
 0x29c   : > { %v961_v47 = vpop.permute.xlu0 %960  ;;  %v955_v39 = vpop.permute.xlu1 %954 }
 0x29d   : > { %9480 = vmatprep.subr.msk.bf16.mxu1 %vm962_vm1, %v961_v47  ;;  %v985_v50 = vsel %vm962_vm1, %v961_v47, 0  ;;  %v976_v56 = vsel %vm962_vm1, %v955_v39, 0 }
 0x29e   : > { %8833 = vmatpush3.bf16.xpose.msra.mxu1 %v985_v50 }
 0x29f   : > { %9481 = vmatprep.subr.msk.bf16.mxu1 %vm962_vm1, %v959_v51 }
 0x2a6   : > { %8835 = vmatpush3.bf16.xpose.msra.mxu1 %v982_v52 }
 0x2a7   : > { %9482 = vmatprep.subr.msk.bf16.mxu1 %vm962_vm1, %v957_v53 }
 0x2ae   : > { %8837 = vmatpush3.bf16.xpose.msra.mxu1 %v979_v54 }
 0x2af   : > { %9483 = vmatprep.subr.msk.bf16.mxu1 %vm962_vm1, %v955_v39 }
 0x2b6   : > { %8839 = vmatpush3.bf16.xpose.msra.mxu1 %v976_v56 }
 0x2b7   : > { %8848 = vmatprep.subr.bf16.mxu1 %v10577_v38 }
 0x2bd   : > { %8841 = vmatmul.mubr.msk.bf16.vlgmr.msra.gmra.mxu1 %vm962_vm1, %v10512_v9 }
 0x2be   : > { %8844 = vmatprep.mubr.msk.bf16.mxu1 %vm962_vm1, %v10518_v17  ;;  %8849 = vmatpush3.bf16.msra.mxu1 %v10577_v38 }
 0x2bf   : > { %8850 = vmatprep.subr.bf16.mxu1 %v10582_v57 }
 0x2c2   : > { %8851 = vmatpush3.bf16.msra.mxu1 %v10582_v57 }
 0x2c3   : > { %8852 = vmatprep.subr.bf16.mxu1 %v10592_v58 }
 0x2c5   : > { %8845 = vmatmul.mubr.msk.bf16.gmra.mxu1 %vm962_vm1, %v10530_v31 }
 0x2c6   : > { %8853 = vmatpush3.bf16.msra.mxu1 %v10592_v58 }
 0x2c7   : > { %8854 = vmatprep.subr.bf16.mxu1 %v10598_v60 }
 0x2ca   : > { %8855 = vmatpush3.bf16.msra.mxu1 %v10598_v60 }
 0x2d2   : > { %v514_v61 = vpop.xlane.xlu0 %513 }
 0x2d3   : > { %v545_v49 = vmul.f32 0.03125, %v514_v61 }
 0x2d5   : > { %v10605_v62 = vsub.f32 %v477_v20, %v545_v49 }
 0x2d6   : > { %v520_v63 = vpop.xlane.xlu0 %519 }
 0x2d7   : > { %v547_v0 = vmul.f32 0.03125, %v520_v63  ;;  %v517_v3 = vpop.xlane.xlu1 %516  ;;  %v577_v48 = vmul.f32 %v10605_v62, %v10605_v62 }
 0x2d8   : > { %v546_v1 = vmul.f32 0.03125, %v517_v3 }
 0x2d9   : > { %v10609_v4 = vsub.f32 %v479_v34, %v547_v0  ;;  %v609_v5 = vsel %vm487_vm0, %v577_v48, 0.0 }
 0x2da   : > { %v10613_v6 = vsub.f32 %v10540_v35, %v546_v1  ;;  %610 = vadd.xlane.f32.xlu0 %v609_v5  ;;  %v523_v7 = vpop.xlane.xlu0 %522 }
 0x2db   : > { %v548_v8 = vmul.f32 0.03125, %v523_v7  ;;  %v579_v10 = vmul.f32 %v10609_v4, %v10609_v4  ;;  %v529_v11 = vpop.xlane.xlu1 %528 }
 0x2dc   : > { %v578_v12 = vmul.f32 %v10613_v6, %v10613_v6  ;;  %v550_v13 = vmul.f32 0.03125, %v529_v11 }
 0x2dd   : > { %v10620_v14 = vsub.f32 %v10546_v37, %v548_v8  ;;  %v615_v16 = vsel %vm487_vm0, %v579_v10, 0.0 }
 0x2de   : > { %616 = vadd.xlane.f32.xlu0 %v615_v16  ;;  %v526_v18 = vpop.xlane.xlu0 %525  ;;  %v612_v22 = vsel %vm487_vm0, %v578_v12, 0.0  ;;  %v10625_v24 = vsub.f32 %v10549_v40, %v550_v13 }
 0x2df   : > { %v549_v26 = vmul.f32 0.03125, %v526_v18  ;;  %613 = vadd.xlane.f32.xlu1 %v612_v22  ;;  %v535_v27 = vpop.xlane.xlu1 %534  ;;  %v580_v20 = vmul.f32 %v10620_v14, %v10620_v14 }
 0x2e0   : > { %v552_v33 = vmul.f32 0.03125, %v535_v27  ;;  %v582_v34 = vmul.f32 %v10625_v24, %v10625_v24 }
 0x2e1   : > { %v10632_v35 = vsub.f32 %v10554_v42, %v549_v26  ;;  %v618_v36 = vsel %vm487_vm0, %v580_v20, 0.0 }
 0x2e2   : > { %v532_v28 = vpop.xlane.xlu0 %531  ;;  %v10636_v37 = vsub.f32 %v10559_v44, %v552_v33  ;;  %v624_v43 = vsel %vm487_vm0, %v582_v34, 0.0 }
 0x2e3   : > { %v551_v40 = vmul.f32 0.03125, %v532_v28  ;;  %619 = vadd.xlane.f32.xlu1 %v618_v36  ;;  %v581_v41 = vmul.f32 %v10632_v35, %v10632_v35 }
 0x2e4   : > { %v584_v45 = vmul.f32 %v10636_v37, %v10636_v37 }
 0x2e5   : > { %v10644_v21 = vsub.f32 %v10564_v46, %v551_v40  ;;  %v621_v42 = vsel %vm487_vm0, %v581_v41, 0.0 }
 0x2e6   : > { %622 = vadd.xlane.f32.xlu0 %v621_v42  ;;  %v630_v29 = vsel %vm487_vm0, %v584_v45, 0.0 }
 0x2e7   : > { %625 = vadd.xlane.f32.xlu1 %v624_v43  ;;  %v583_v44 = vmul.f32 %v10644_v21, %v10644_v21 }
 0x2e9   : > { %v627_v47 = vsel %vm487_vm0, %v583_v44, 0.0 }
 0x2ea   : > { %628 = vadd.xlane.f32.xlu0 %v627_v47 }
 0x2eb   : > { %631 = vadd.xlane.f32.xlu1 %v630_v29 }
 0x2fc   : > { %1242 = vrot.lane.b32.xlu1 %v10516_v15, %s10290_s20 }
 0x300   : > { %1536 = vrot.lane.b32.xlu1 %v10516_v15, %s10291_s21  ;;  %1244 = vrot.lane.b32.xlu0 %v10528_v30, %s10290_s20 }
 0x304   : > { %1232 = vrot.lane.b32.xlu1 %v10512_v9, %s10292_s22 }
 0x363   : > { %v611_v46 = vpop.xlane.xlu0 %610 }
 0x364   : > { %v641_v50 = vmul.f32 0.03125, %v611_v46 }
 0x366   : > { %v657_v51 = vadd.f32 1e-05, %v641_v50 }
 0x367   : > { %v617_v52 = vpop.xlane.xlu0 %616 }
 0x368   : > { %9608 = vrsqrt.f32 %v657_v51  ;;  %v643_v53 = vmul.f32 0.03125, %v617_v52  ;;  %v614_v54 = vpop.xlane.xlu1 %613 }
 0x369   : > { %v642_v39 = vmul.f32 0.03125, %v614_v54 }
 0x36a   : > { %v659_v56 = vadd.f32 1e-05, %v643_v53 }
 0x36b   : > { %v658_v55 = vadd.f32 1e-05, %v642_v39 }
 0x36c   : > { %v620_v61 = vpop.xlane.xlu1 %619 }
 0x36d   : > { %9610 = vrsqrt.f32 %v658_v55  ;;  %v644_v49 = vmul.f32 0.03125, %v620_v61 }
 0x36e   : > { %9612 = vrsqrt.f32 %v659_v56 }
 0x36f   : > { %v660_v63 = vadd.f32 1e-05, %v644_v49  ;;  %v623_v0 = vpop.xlane.xlu0 %622 }
 0x370   : > { %v645_v3 = vmul.f32 0.03125, %v623_v0  ;;  %v626_v48 = vpop.xlane.xlu1 %625 }
 0x371   : > { %9614 = vrsqrt.f32 %v660_v63  ;;  %v646_v1 = vmul.f32 0.03125, %v626_v48 }
 0x372   : > { %v661_v5 = vadd.f32 1e-05, %v645_v3 }
 0x373   : > { %v662_v7 = vadd.f32 1e-05, %v646_v1  ;;  %v629_v8 = vpop.xlane.xlu0 %628 }
 0x374   : > { %v632_v10 = vpop.xlane.xlu1 %631  ;;  %9616 = vrsqrt.f32 %v661_v5  ;;  %v647_v12 = vmul.f32 0.03125, %v629_v8 }
 0x375   : > { %v9609_v11 = vpop.eup %9608  ;;  %9618 = vrsqrt.f32 %v662_v7  ;;  %v648_v13 = vmul.f32 0.03125, %v632_v10 }
 0x376   : > { %v689_v18 = vmul.f32 %v9609_v11, %v10605_v62  ;;  %v663_v27 = vadd.f32 1e-05, %v647_v12 }
 0x377   : > { %v1245_v16 = vpop.permute.xlu0 %1244  ;;  %v664_v33 = vadd.f32 1e-05, %v648_v13 }
 0x378   : > { %v1243_v22 = vpop.permute.xlu1 %1242  ;;  %9484 = vmatprep.subr.msk.bf16.mxu0 %vm962_vm1, %v1245_v16  ;;  %v1268_v26 = vsel %vm962_vm1, %v1245_v16, 0  ;;  %v711_v36 = vmul.f32 %v10462_v23, %v689_v18  ;;  %9620 = vrsqrt.f32 %v663_v27 }
 0x379   : > { %8865 = vmatpush3.bf16.xpose.msra.mxu0 %v1268_v26  ;;  %9622 = vrsqrt.f32 %v664_v33  ;;  %v1265_v29 = vsel %vm962_vm1, %v1243_v22, 0 }
 0x37a   : > { %v9611_v20 = vpop.eup %9610  ;;  %9485 = vmatprep.subr.msk.bf16.mxu0 %vm962_vm1, %v1243_v22  ;;  %v733_v42 = vadd.f32 %v10469_v32, %v711_v36 }
 0x37b   : > { %v690_v34 = vmul.f32 %v9611_v20, %v10613_v6  ;;  %v9613_v28 = vpop.eup %9612 }
 0x37c   : > { %v691_v47 = vmul.f32 %v9613_v28, %v10609_v4  ;;  %v1537_v33 = vpop.permute.xlu1 %1536 }
 0x37d   : > { %v10665_v40 = vpop.f32.mrf.mxu1  ;;  %v712_v62 = vmul.f32 %v10462_v23, %v690_v34 }
 0x37e   : > { %v9615_v41 = vpop.eup %9614  ;;  %v1059_v43 = vsel %vm1052_vm2, %v10665_v40, -inf  ;;  %v713_v4 = vmul.f32 %v10462_v23, %v691_v47 }
 0x37f   : > { %v10670_v45 = vpop.f32.mrf.mxu1  ;;  %1060 = vmax.xlane.f32.xlu0 %v1059_v43  ;;  %v734_v6 = vadd.f32 %v10469_v32, %v712_v62  ;;  %v692_v44 = vmul.f32 %v9615_v41, %v10620_v14 }
 0x380   : > { %v1053_v53 = vsel %vm1052_vm2, %v10670_v45, -inf  ;;  %v735_v63 = vadd.f32 %v10469_v32, %v713_v4  ;;  %v1233_v34 = vpop.permute.xlu1 %1232 }
 0x381   : > { %v10677_v46 = vpop.f32.mrf.mxu1  ;;  %8867 = vmatpush3.bf16.xpose.msra.mxu0 %v1265_v29  ;;  %v745_v50 = vpack.c.bf16 %v734_v6, %v733_v42  ;;  %v9617_v51 = vpop.eup %9616  ;;  %v714_v54 = vmul.f32 %v10462_v23, %v692_v44 }
 0x382   : > { %v1062_v52 = vsel %vm1052_vm2, %v10677_v46, -inf  ;;  %v9619_v39 = vpop.eup %9618  ;;  %v693_v61 = vmul.f32 %v9617_v51, %v10632_v35 }
 0x383   : > { %v10684_v55 = vpop.f32.mrf.mxu1  ;;  %1063 = vmax.xlane.f32.xlu1 %v1062_v52  ;;  %1054 = vmax.xlane.f32.xlu0 %v1053_v53  ;;  %v736_v56 = vadd.f32 %v10469_v32, %v714_v54  ;;  %v694_v49 = vmul.f32 %v9619_v39, %v10625_v24 }
 0x384   : > { %8247 = vmatmul.mubr.msk.bf16.gmra.mxu0 %vm487_vm0, %v745_v50  ;;  %v1056_v14 = vsel %vm1052_vm2, %v10684_v55, -inf  ;;  %v715_v48 = vmul.f32 %v10462_v23, %v693_v61 }
 0x385   : > { %879 = vmatprep.mubr.bf16.mxu0 %v14405_v59  ;;  %v9621_v0 = vpop.eup %9620  ;;  %v746_v3 = vpack.c.bf16 %v736_v56, %v735_v63  ;;  %v716_v1 = vmul.f32 %v10462_v23, %v694_v49 }
 0x386   : > { %v9623_v5 = vpop.eup %9622  ;;  %v737_v7 = vadd.f32 %v10469_v32, %v715_v48  ;;  %v695_v24 = vmul.f32 %v9621_v0, %v10644_v21  ;;  %v1559_v48 = vsel %vm962_vm1, %v1537_v33, 0 }
 0x387   : > { %1057 = vmax.xlane.f32.xlu1 %v1056_v14  ;;  %v738_v35 = vadd.f32 %v10469_v32, %v716_v1  ;;  %v696_v8 = vmul.f32 %v9623_v5, %v10636_v37 }
 0x388   : > { %v717_v11 = vmul.f32 %v10462_v23, %v695_v24 }
 0x389   : > { %v747_v10 = vpack.c.bf16 %v738_v35, %v737_v7  ;;  %v718_v12 = vmul.f32 %v10462_v23, %v696_v8  ;;  %v10728_v23 = vpop.f32.mrf.mxu1 }
 0x38a   : > { %v739_v13 = vadd.f32 %v10469_v32, %v717_v11 }
 0x38b   : > { %v740_v16 = vadd.f32 %v10469_v32, %v718_v12  ;;  %v1071_v32 = vsel %vm1052_vm2, %v10728_v23, -inf  ;;  %v10732_v21 = vpop.f32.mrf.mxu1 }
 0x38c   : > { %8248 = vmatmul.mubr.msk.bf16.gmra.mxu0 %vm487_vm0, %v746_v3  ;;  %v1065_v18 = vsel %vm1052_vm2, %v10732_v21, -inf }
 0x38d   : > { %889 = vmatprep.mubr.bf16.mxu0 %v14405_v59  ;;  %v748_v37 = vpack.c.bf16 %v740_v16, %v739_v13  ;;  %v10736_v22 = vpop.f32.mrf.mxu1 }
 0x38e   : > { %v1074_v26 = vsel %vm1052_vm2, %v10736_v22, -inf }
 0x38f   : > { %v10740_v27 = vpop.f32.mrf.mxu1 }
 0x390   : > { %v1068_v20 = vsel %vm1052_vm2, %v10740_v27, -inf }
 0x394   : > { %8249 = vmatmul.mubr.msk.bf16.gmra.mxu0 %vm487_vm0, %v747_v10 }
 0x395   : > { %899 = vmatprep.mubr.bf16.mxu0 %v14405_v59 }
 0x398   : > { %1234 = vrot.lane.b32.xlu1 %v10518_v17, %s10292_s22 }
 0x399   : > { %1240 = vrot.lane.b32.xlu0 %v10522_v19, %s10290_s20 }
 0x39c   : > { %8250 = vmatmul.mubr.msk.bf16.gmra.mxu0 %vm487_vm0, %v748_v37 }
 0x39d   : > { %1538 = vrot.lane.b32.xlu0 %v10528_v30, %s10291_s21 }
 0x3a1   : > { %1238 = vrot.lane.b32.xlu0 %v10526_v25, %s10290_s20 }
 0x3a5   : > { %1230 = vrot.lane.b32.xlu0 %v10504_v2, %s10292_s22 }
 0x3a9   : > { %1534 = vrot.lane.b32.xlu0 %v10522_v19, %s10291_s21 }
 0x3ad   : > { %1236 = vrot.lane.b32.xlu0 %v10530_v31, %s10292_s22 }
 0x3b1   : > { %1524 = vrot.lane.b32.xlu0 %v10504_v2, %s10293_s23 }
 0x3b5   : > { %1528 = vrot.lane.b32.xlu0 %v10518_v17, %s10293_s23 }
 0x3bc   : > { %1072 = vmax.xlane.f32.xlu1 %v1071_v32 }
 0x3c0   : > { %1066 = vmax.xlane.f32.xlu1 %v1065_v18 }
 0x3c4   : > { %1075 = vmax.xlane.f32.xlu1 %v1074_v26 }
 0x3c8   : > { %1069 = vmax.xlane.f32.xlu1 %v1068_v20 }
 0x3d9   : > { %1532 = vrot.lane.b32.xlu1 %v10526_v25, %s10291_s21 }
 0x3dd   : > { %1526 = vrot.lane.b32.xlu1 %v10512_v9, %s10293_s23 }
 0x3e1   : > { %1530 = vrot.lane.b32.xlu1 %v10530_v31, %s10293_s23 }
 0x408   : > { %v1061_v36 = vpop.xlane.xlu0 %1060 }
 0x409   : > { %v1079_v42 = vsub.f32 %v10665_v40, %v1061_v36 }
 0x40b   : > { %v1089_v52 = vmul.f32 1.442695, %v1079_v42 }
 0x40c   : > { %v1064_v28 = vpop.xlane.xlu1 %1063  ;;  %v1055_v62 = vpop.xlane.xlu0 %1054 }
 0x40d   : > { %v1080_v41 = vsub.f32 %v10677_v46, %v1064_v28  ;;  %v1077_v43 = vsub.f32 %v10670_v45, %v1055_v62 }
 0x40f   : > { %v1091_v6 = vmul.f32 1.442695, %v1080_v41  ;;  %v1085_v44 = vmul.f32 1.442695, %v1077_v43 }
 0x410   : > { %v1058_v29 = vpop.xlane.xlu1 %1057  ;;  %v1241_v47 = vpop.permute.xlu0 %1240 }
 0x411   : > { %v1078_v50 = vsub.f32 %v10684_v55, %v1058_v29  ;;  %9486 = vmatprep.subr.msk.bf16.mxu0 %vm962_vm1, %v1241_v47  ;;  %v1262_v51 = vsel %vm962_vm1, %v1241_v47, 0  ;;  %9624 = vpow2.f32 %v1091_v6 }
 0x412   : > { %8869 = vmatpush3.bf16.xpose.msra.mxu0 %v1262_v51  ;;  %9626 = vpow2.f32 %v1085_v44 }
 0x413   : > { %v1087_v53 = vmul.f32 1.442695, %v1078_v50 }
 0x414   : > { %v1539_v46 = vpop.permute.xlu0 %1538  ;;  %v1235_v4 = vpop.permute.xlu1 %1234 }
 0x415   : > { %9628 = vpow2.f32 %v1087_v53  ;;  %9488 = vmatprep.subr.msk.bf16.mxu1 %vm962_vm1, %v1539_v46  ;;  %v1562_v0 = vsel %vm962_vm1, %v1539_v46, 0 }
 0x416   : > { %9630 = vpow2.f32 %v1089_v52 }
 0x418   : > { %v1239_v40 = vpop.permute.xlu0 %1238 }
 0x419   : > { %9487 = vmatprep.subr.msk.bf16.mxu0 %vm962_vm1, %v1239_v40  ;;  %v1259_v45 = vsel %vm962_vm1, %v1239_v40, 0 }
 0x41a   : > { %8871 = vmatpush3.bf16.xpose.msra.mxu0 %v1259_v45 }
 0x41c   : > { %v1231_v54 = vpop.permute.xlu0 %1230 }
 0x41d   : > { %8872 = vmatprep.mubr.msk.bf16.mxu0 %vm962_vm1, %v1231_v54 }
 0x41e   : > { %v10760_v39 = vpop.eup %9624 }
 0x41f   : > { %v10762_v55 = vpop.eup %9626 }
 0x420   : > { %v1535_v56 = vpop.permute.xlu0 %1534 }
 0x421   : > { %8873 = vmatmul.mubr.msk.bf16.vlgmr.msra.gmra.mxu0 %vm962_vm1, %v1233_v34  ;;  %v1556_v1 = vsel %vm962_vm1, %v1535_v56, 0 }
 0x422   : > { %v10765_v14 = vpop.eup %9628  ;;  %8876 = vmatprep.mubr.msk.bf16.mxu0 %vm962_vm1, %v1235_v4 }
 0x423   : > { %v10768_v61 = vpop.eup %9630  ;;  %v1125_v49 = vpack.c.bf16 %v10765_v14, %v10762_v55 }
 0x424   : > { %v1126_v63 = vpack.c.bf16 %v10760_v39, %v10768_v61  ;;  %v1237_v3 = vpop.permute.xlu0 %1236 }
 0x425   : > { %8856 = vmatprep.mubr.msk.bf16.mxu1 %vm1052_vm2, %v1125_v49 }
 0x426   : > { %8857 = vmatmul.mubr.msk.bf16.vlgmr.msra.gmra.mxu1 %vm1052_vm2, %v1126_v63 }
 0x427   : > { %8897 = vmatpush3.bf16.xpose.msra.mxu1 %v1562_v0 }
 0x428   : > { %9489 = vmatprep.subr.msk.bf16.mxu1 %vm962_vm1, %v1537_v33 }
 0x429   : > { %8877 = vmatmul.mubr.msk.bf16.gmra.mxu0 %vm962_vm1, %v1237_v3 }
 0x42f   : > { %8899 = vmatpush3.bf16.xpose.msra.mxu1 %v1559_v48 }
 0x430   : > { %9490 = vmatprep.subr.msk.bf16.mxu1 %vm962_vm1, %v1535_v56 }
 0x437   : > { %8901 = vmatpush3.bf16.xpose.msra.mxu1 %v1556_v1 }
 0x444   : > { %v871_v5 = vpop.f32.mrf.mxu0 }
 0x445   : > { %v1073_v7 = vpop.xlane.xlu1 %1072  ;;  %v918_v8 = vmul.f32 0.25, %v871_v5 }
 0x446   : > { %v10782_v35 = vpop.f32.mrf.mxu0  ;;  %v1083_v33 = vsub.f32 %v10728_v23, %v1073_v7 }
 0x448   : > { %v875_v24 = vpop.f32.mrf.mxu0 }
 0x449   : > { %v919_v10 = vmul.f32 0.25, %v875_v24  ;;  %v10784_v11 = vpack.c.bf16 %v875_v24, %v871_v5  ;;  %v1067_v12 = vpop.xlane.xlu1 %1066 }
 0x44a   : > { %v10786_v13 = vpop.f32.mrf.mxu0  ;;  %v1081_v37 = vsub.f32 %v10732_v21, %v1067_v12  ;;  %v1097_v21 = vmul.f32 1.442695, %v1083_v33 }
 0x44b   : > { %v10788_v16 = vpack.c.bf16 %v919_v10, %v918_v8  ;;  %v1525_v10 = vpop.permute.xlu0 %1524 }
 0x44c   : > { %v881_v32 = vpop.f32.mrf.mxu0  ;;  %v1093_v34 = vmul.f32 1.442695, %v1081_v37 }
 0x44d   : > { %v1076_v18 = vpop.xlane.xlu1 %1075  ;;  %v920_v28 = vmul.f32 0.25, %v881_v32 }
 0x44e   : > { %v1084_v26 = vsub.f32 %v10736_v22, %v1076_v18  ;;  %v10792_v20 = vpop.f32.mrf.mxu0  ;;  %9632 = vpow2.f32 %v1093_v34 }
 0x44f   : > { %v1529_v37 = vpop.permute.xlu0 %1528 }
 0x450   : > { %v885_v36 = vpop.f32.mrf.mxu0  ;;  %v1099_v62 = vmul.f32 1.442695, %v1084_v26 }
 0x451   : > { %v921_v41 = vmul.f32 0.25, %v885_v36  ;;  %v10795_v43 = vpack.c.bf16 %v885_v36, %v881_v32  ;;  %v1070_v42 = vpop.xlane.xlu1 %1069 }
 0x452   : > { %v1082_v6 = vsub.f32 %v10740_v27, %v1070_v42  ;;  %v10798_v44 = vpop.f32.mrf.mxu0  ;;  %9634 = vpow2.f32 %v1099_v62 }
 0x453   : > { %v10800_v29 = vpack.c.bf16 %v921_v41, %v920_v28 }
 0x454   : > { %v1095_v22 = vmul.f32 1.442695, %v1082_v6  ;;  %v891_v47 = vpop.f32.mrf.mxu0 }
 0x455   : > { %v1533_v23 = vpop.permute.xlu1 %1532  ;;  %v922_v52 = vmul.f32 0.25, %v891_v47 }
 0x456   : > { %9636 = vpow2.f32 %v1095_v22  ;;  %v10802_v50 = vpop.f32.mrf.mxu0  ;;  %9491 = vmatprep.subr.msk.bf16.mxu1 %vm962_vm1, %v1533_v23  ;;  %v1553_v51 = vsel %vm962_vm1, %v1533_v23, 0 }
 0x457   : > { %9638 = vpow2.f32 %v1097_v21  ;;  %8903 = vmatpush3.bf16.xpose.msra.mxu1 %v1553_v51 }
 0x458   : > { %v895_v27 = vpop.f32.mrf.mxu0 }
 0x459   : > { %v923_v53 = vmul.f32 0.25, %v895_v27  ;;  %v10806_v46 = vpack.c.bf16 %v895_v27, %v891_v47  ;;  %v1527_v12 = vpop.permute.xlu1 %1526 }
 0x45a   : > { %v10808_v40 = vpop.f32.mrf.mxu0 }
 0x45b   : > { %v10810_v45 = vpack.c.bf16 %v923_v53, %v922_v52  ;;  %v10814_v49 = vpop.eup %9632 }
 0x45c   : > { %v901_v54 = vpop.f32.mrf.mxu0  ;;  %14449 = vst [vmem:[#allocation2_spill] sm:$0xff] %v10814_v49 }
 0x45d   : > { %v924_v63 = vmul.f32 0.25, %v901_v54  ;;  %v1531_v32 = vpop.permute.xlu1 %1530 }
 0x45e   : > { %v10812_v4 = vpop.f32.mrf.mxu0 }
 0x45f   : > { %v10818_v48 = vpop.eup %9634 }
 0x460   : > { %v905_v56 = vpop.f32.mrf.mxu0  ;;  %14450 = vst [vmem:[#allocation3_spill] sm:$0xff] %v10818_v48 }
 0x461   : > { %v925_v0 = vmul.f32 0.25, %v905_v56  ;;  %v10816_v3 = vpack.c.bf16 %v905_v56, %v901_v54 }
 0x462   : > { %v10836_v18 = vpop.f32.mrf.mxu0 }
 0x463   : > { %v10820_v1 = vpop.eup %9636  ;;  %v10822_v5 = vpack.c.bf16 %v925_v0, %v924_v63 }
 0x464   : > { %v10824_v7 = vpop.eup %9638  ;;  %v1127_v24 = vpack.c.bf16 %v10820_v1, %v10814_v49 }
 0x465   : > { %14451 = vst [vmem:[#allocation4_spill] sm:$0xff] %v10824_v7  ;;  %v1128_v8 = vpack.c.bf16 %v10818_v48, %v10824_v7 }
 0x466   : > { %8860 = vmatprep.mubr.msk.bf16.mxu1 %vm1052_vm2, %v1127_v24 }
 0x467   : > { %8861 = vmatmul.mubr.msk.bf16.gmra.mxu1 %vm1052_vm2, %v1128_v8 }
 0x468   : > { %8904 = vmatprep.mubr.msk.bf16.mxu1 %vm962_vm1, %v1525_v10 }
 0x46f   : > { %8905 = vmatmul.mubr.msk.bf16.vlgmr.msra.gmra.mxu1 %vm962_vm1, %v1527_v12 }
 0x470   : > { %8908 = vmatprep.mubr.msk.bf16.mxu1 %vm962_vm1, %v1529_v37 }
 0x477   : > { %8909 = vmatmul.mubr.msk.bf16.gmra.mxu1 %vm962_vm1, %v1531_v32 }
 0x4e1   : > { %v10838_v26 = vpop.f32.mrf.mxu0 }
 0x4e2   : > { %v1341_v62 = vsel %vm1052_vm2, %v10838_v26, -inf }
 0x4e3   : > { %v10840_v33 = vpop.f32.mrf.mxu0 }
 0x4e4   : > { %v1335_v34 = vsel %vm1052_vm2, %v10840_v33, -inf }
 0x4e5   : > { %1336 = vmax.xlane.f32.xlu0 %v1335_v34  ;;  %v10844_v36 = vpop.f32.mrf.mxu0 }
 0x4e6   : > { %v1344_v21 = vsel %vm1052_vm2, %v10844_v36, -inf  ;;  %v10882_v27 = vpop.f32.mrf.mxu1 }
 0x4e7   : > { %v10846_v28 = vpop.f32.mrf.mxu0  ;;  %14452 = vst [vmem:[#allocation5_spill] sm:$0xff] %v10882_v27 }
 0x4e8   : > { %v1338_v41 = vsel %vm1052_vm2, %v10846_v28, -inf  ;;  %v10886_v52 = vpop.f32.mrf.mxu1 }
 0x4e9   : > { %1342 = vmax.xlane.f32.xlu0 %v1341_v62  ;;  %1339 = vmax.xlane.f32.xlu1 %v1338_v41  ;;  %v10852_v42 = vpop.f32.mrf.mxu0  ;;  %14453 = vst [vmem:[#allocation6_spill] sm:$0xff] %v10886_v52 }
 0x4ea   : > { %v1353_v51 = vsel %vm1052_vm2, %v10852_v42, -inf  ;;  %v10888_v53 = vpop.f32.mrf.mxu1 }
 0x4eb   : > { %v10854_v6 = vpop.f32.mrf.mxu0  ;;  %14454 = vst [vmem:[#allocation7_spill] sm:$0xff] %v10888_v53 }
 0x4ec   : > { %v1347_v23 = vsel %vm1052_vm2, %v10854_v6, -inf  ;;  %v10890_v54 = vpop.f32.mrf.mxu1 }
 0x4ed   : > { %1345 = vmax.xlane.f32.xlu0 %v1344_v21  ;;  %v10858_v22 = vpop.f32.mrf.mxu0  ;;  %14455 = vst [vmem:[#allocation8_spill] sm:$0xff] %v10890_v54 }
 0x4ee   : > { %v1356_v47 = vsel %vm1052_vm2, %v10858_v22, -inf }
 0x4ef   : > { %1357 = vmax.xlane.f32.xlu1 %v1356_v47  ;;  %v10898_v0 = vpop.f32.mrf.mxu0 }
 0x4f0   : > { %v1350_v10 = vsel %vm1052_vm2, %v10898_v0, -inf }
 0x4f1   : > { %1348 = vmax.xlane.f32.xlu0 %v1347_v23 }
 0x4f5   : > { %1354 = vmax.xlane.f32.xlu0 %v1353_v51 }
 0x500   : > { %1419 = vrot.lane.b32.xlu1 %v10582_v57, %s10292_s22 }
 0x504   : > { %1709 = vrot.lane.b32.xlu1 %v10582_v57, %s10293_s23 }
 0x508   : > { %1705 = vrot.lane.b32.xlu1 %v10598_v60, %s10293_s23 }
 0x50b   : > { %1421 = vrot.lane.b32.xlu0 %v10577_v38, %s10292_s22 }
 0x50c   : > { %1828 = vrot.lane.b32.xlu1 %v10528_v30, %s10294_s24 }
 0x50f   : > { %1417 = vrot.lane.b32.xlu0 %v10592_v58, %s10292_s22 }
 0x513   : > { %1415 = vrot.lane.b32.xlu0 %v10598_v60, %s10292_s22 }
 0x517   : > { %1711 = vrot.lane.b32.xlu0 %v10577_v38, %s10293_s23 }
 0x51b   : > { %1707 = vrot.lane.b32.xlu0 %v10592_v58, %s10293_s23 }
 0x527   : > { %v10892_v30 = vpop.f32.mrf.mxu1 }
 0x528   : > { %14456 = vst [vmem:[#allocation9_spill] sm:$0xff] %v10892_v30 }
 0x529   : > { %v10894_v56 = vpop.f32.mrf.mxu1 }
 0x52a   : > { %14457 = vst [vmem:[#allocation10_spill] sm:$0xff] %v10894_v56 }
 0x52b   : > { %v10896_v63 = vpop.f32.mrf.mxu1 }
 0x52c   : > { %14458 = vst [vmem:[#allocation11_spill] sm:$0xff] %v10896_v63 }
 0x52d   : > { %v10900_v24 = vpop.f32.mrf.mxu1 }
 0x52e   : > { %14459 = vst [vmem:[#allocation12_spill] sm:$0xff] %v10900_v24 }
 0x52f   : > { %v10902_v8 = vpop.f32.mrf.mxu1 }
 0x530   : > { %1351 = vmax.xlane.f32.xlu1 %v1350_v10  ;;  %v1635_v32 = vsel %vm1052_vm2, %v10902_v8, -inf }
 0x531   : > { %v10906_v12 = vpop.f32.mrf.mxu1 }
 0x532   : > { %v1629_v41 = vsel %vm1052_vm2, %v10906_v12, -inf }
 0x533   : > { %v10908_v37 = vpop.f32.mrf.mxu1 }
 0x534   : > { %1636 = vmax.xlane.f32.xlu1 %v1635_v32  ;;  %v1638_v23 = vsel %vm1052_vm2, %v10908_v37, -inf }
 0x535   : > { %v10912_v34 = vpop.f32.mrf.mxu1 }
 0x536   : > { %v1632_v32 = vsel %vm1052_vm2, %v10912_v34, -inf }
 0x537   : > { %v10914_v62 = vpop.f32.mrf.mxu1 }
 0x538   : > { %1630 = vmax.xlane.f32.xlu1 %v1629_v41  ;;  %v1647_v21 = vsel %vm1052_vm2, %v10914_v62, -inf }
 0x539   : > { %v10920_v47 = vpop.f32.mrf.mxu1 }
 0x53a   : > { %1648 = vmax.xlane.f32.xlu0 %v1647_v21  ;;  %v1641_v51 = vsel %vm1052_vm2, %v10920_v47, -inf }
 0x53b   : > { %v10926_v10 = vpop.f32.mrf.mxu1 }
 0x53c   : > { %1639 = vmax.xlane.f32.xlu1 %v1638_v23  ;;  %v1650_v41 = vsel %vm1052_vm2, %v10926_v10, -inf }
 0x53e   : > { %1642 = vmax.xlane.f32.xlu0 %v1641_v51  ;;  %v10943_v51 = vpop.f32.mrf.mxu1 }
 0x53f   : > { %v1644_v59 = vsel %vm1052_vm2, %v10943_v51, -inf }
 0x540   : > { %1633 = vmax.xlane.f32.xlu1 %v1632_v32 }
 0x542   : > { %1651 = vmax.xlane.f32.xlu0 %v1650_v41 }
 0x551   : > { %1826 = vrot.lane.b32.xlu1 %v10516_v15, %s10294_s24 }
 0x558   : > { %1824 = vrot.lane.b32.xlu0 %v10522_v19, %s10294_s24 }
 0x55c   : > { %1814 = vrot.lane.b32.xlu0 %v10504_v2, %s14419_s25 }
 0x560   : > { %1818 = vrot.lane.b32.xlu0 %v10518_v17, %s14419_s25 }
 0x564   : > { %2001 = vrot.lane.b32.xlu0 %v10577_v38, %s14419_s25 }
 0x56e   : > { %v1337_v21 = vpop.xlane.xlu0 %1336 }
 0x56f   : > { %v1359_v23 = vsub.f32 %v10840_v33, %v1337_v21 }
 0x571   : > { %v1367_v41 = vmul.f32 1.442695, %v1359_v23 }
 0x572   : > { %v1343_v32 = vpop.xlane.xlu0 %1342  ;;  %v1340_v15 = vpop.xlane.xlu1 %1339 }
 0x573   : > { %v1360_v19 = vsub.f32 %v10846_v28, %v1340_v15  ;;  %9640 = vpow2.f32 %v1367_v41  ;;  %v1361_v33 = vsub.f32 %v10838_v26, %v1343_v32 }
 0x575   : > { %v1369_v2 = vmul.f32 1.442695, %v1360_v19  ;;  %1645 = vmax.xlane.f32.xlu1 %v1644_v59  ;;  %v1371_v53 = vmul.f32 1.442695, %v1361_v33 }
 0x576   : > { %v1346_v30 = vpop.xlane.xlu0 %1345 }
 0x577   : > { %9642 = vpow2.f32 %v1369_v2  ;;  %v1362_v17 = vsub.f32 %v10844_v36, %v1346_v30 }
 0x578   : > { %v1358_v63 = vpop.xlane.xlu1 %1357 }
 0x579   : > { %v1373_v21 = vmul.f32 1.442695, %v1362_v17  ;;  %v1366_v33 = vsub.f32 %v10858_v22, %v1358_v63 }
 0x57a   : > { %v1349_v38 = vpop.xlane.xlu0 %1348 }
 0x57b   : > { %9644 = vpow2.f32 %v1373_v21 }
 0x57c   : > { %9646 = vpow2.f32 %v1371_v53  ;;  %v1420_v15 = vpop.permute.xlu1 %1419 }
 0x57e   : > { %v1355_v24 = vpop.xlane.xlu0 %1354 }
 0x57f   : > { %v1365_v17 = vsub.f32 %v10852_v42, %v1355_v24 }
 0x580   : > { %v10950_v28 = vpop.eup %9640 }
 0x581   : > { %v1379_v21 = vmul.f32 1.442695, %v1365_v17 }
 0x582   : > { %v1422_v23 = vpop.permute.xlu0 %1421 }
 0x583   : > { %8880 = vmatprep.subr.bf16.mxu0 %v1422_v23 }
 0x584   : > { %8881 = vmatpush3.bf16.msra.mxu0 %v1422_v23  ;;  %v10952_v59 = vpop.eup %9642 }
 0x585   : > { %8882 = vmatprep.subr.bf16.mxu0 %v1420_v15  ;;  %v1407_v26 = vpack.c.bf16 %v10952_v59, %v10950_v28 }
 0x586   : > { %v1418_v41 = vpop.permute.xlu0 %1417  ;;  %1822 = vrot.lane.b32.xlu1 %v10526_v25, %s10294_s24 }
 0x587   : > { %8888 = vmatprep.mubr.msk.bf16.mxu0 %vm1052_vm2, %v1407_v26 }
 0x588   : > { %8883 = vmatpush3.bf16.msra.mxu0 %v1420_v15  ;;  %v10961_v53 = vpop.eup %9644 }
 0x589   : > { %8884 = vmatprep.subr.bf16.mxu0 %v1418_v41  ;;  %v10965_v30 = vpop.eup %9646 }
 0x58a   : > { %v1416_v36 = vpop.permute.xlu0 %1415  ;;  %1816 = vrot.lane.b32.xlu1 %v10512_v9, %s14419_s25  ;;  %v1408_v32 = vpack.c.bf16 %v10961_v53, %v10965_v30  ;;  %v1710_v9 = vpop.permute.xlu1 %1709 }
 0x58c   : > { %8885 = vmatpush3.bf16.msra.mxu0 %v1418_v41  ;;  %v1381_v41 = vmul.f32 1.442695, %v1366_v33 }
 0x58d   : > { %8886 = vmatprep.subr.bf16.mxu0 %v1416_v36 }
 0x58e   : > { %1820 = vrot.lane.b32.xlu1 %v10530_v31, %s14419_s25  ;;  %v1712_v25 = vpop.permute.xlu0 %1711  ;;  %v1706_v19 = vpop.permute.xlu1 %1705 }
 0x590   : > { %8887 = vmatpush3.bf16.msra.mxu0 %v1416_v36 }
 0x591   : > { %8912 = vmatprep.subr.bf16.mxu0 %v1712_v25 }
 0x592   : > { %1999 = vrot.lane.b32.xlu1 %v10582_v57, %s14419_s25  ;;  %v1708_v31 = vpop.permute.xlu0 %1707  ;;  %v1829_v2 = vpop.permute.xlu1 %1828  ;;  %v1363_v57 = vsub.f32 %v10854_v6, %v1349_v38 }
 0x593   : > { %8889 = vmatmul.mubr.msk.bf16.vlgmr.msra.gmra.mxu0 %vm1052_vm2, %v1408_v32 }
 0x594   : > { %8913 = vmatpush3.bf16.msra.mxu0 %v1712_v25 }
 0x595   : > { %8914 = vmatprep.subr.bf16.mxu0 %v1710_v9 }
 0x596   : > { %1995 = vrot.lane.b32.xlu1 %v10598_v60, %s14419_s25  ;;  %v1375_v60 = vmul.f32 1.442695, %v1363_v57 }
 0x598   : > { %8915 = vmatpush3.bf16.msra.mxu0 %v1710_v9  ;;  %9648 = vpow2.f32 %v1375_v60 }
 0x599   : > { %8916 = vmatprep.subr.bf16.mxu0 %v1708_v31  ;;  %9650 = vpow2.f32 %v1379_v21 }
 0x59a   : > { %2179 = vrot.lane.b32.xlu1 %v10816_v3, %s10289_s19 }
 0x59c   : > { %8917 = vmatpush3.bf16.msra.mxu0 %v1708_v31 }
 0x59d   : > { %8918 = vmatprep.subr.bf16.mxu0 %v1706_v19 }
 0x5a0   : > { %8919 = vmatpush3.bf16.msra.mxu0 %v1706_v19 }
 0x5a1   : > { %9492 = vmatprep.subr.msk.bf16.mxu0 %vm962_vm1, %v1829_v2 }
 0x5a5   : > { %v10984_v9 = vpop.eup %9648 }
 0x5a6   : > { %v10986_v19 = vpop.eup %9650 }
 0x5b9   : > { %v1352_v23 = vpop.xlane.xlu1 %1351 }
 0x5ba   : > { %v1364_v15 = vsub.f32 %v10898_v0, %v1352_v23 }
 0x5bc   : > { %v1377_v26 = vmul.f32 1.442695, %v1364_v15 }
 0x5bd   : > { %v1637_v36 = vpop.xlane.xlu1 %1636 }
 0x5be   : > { %9652 = vpow2.f32 %v1377_v26  ;;  %v1655_v22 = vsub.f32 %v10902_v8, %v1637_v36 }
 0x5bf   : > { %9654 = vpow2.f32 %v1381_v41 }
 0x5c0   : > { %v1665_v33 = vmul.f32 1.442695, %v1655_v22  ;;  %v1852_v22 = vsel %vm962_vm1, %v1829_v2, 0 }
 0x5c1   : > { %v1631_v25 = vpop.xlane.xlu1 %1630 }
 0x5c2   : > { %v1653_v6 = vsub.f32 %v10906_v12, %v1631_v25 }
 0x5c3   : > { %v1649_v32 = vpop.xlane.xlu0 %1648 }
 0x5c4   : > { %v1661_v24 = vmul.f32 1.442695, %v1653_v6 }
 0x5c5   : > { %v1640_v38 = vpop.xlane.xlu1 %1639 }
 0x5c6   : > { %v1656_v42 = vsub.f32 %v10908_v37, %v1640_v38  ;;  %9656 = vpow2.f32 %v1661_v24 }
 0x5c7   : > { %v1643_v63 = vpop.xlane.xlu0 %1642 }
 0x5c8   : > { %v1667_v0 = vmul.f32 1.442695, %v1656_v42 }
 0x5c9   : > { %v1634_v31 = vpop.xlane.xlu1 %1633 }
 0x5ca   : > { %v1654_v57 = vsub.f32 %v10912_v34, %v1634_v31  ;;  %9658 = vpow2.f32 %v1667_v0 }
 0x5cb   : > { %v10989_v17 = vpop.eup %9652  ;;  %v1652_v60 = vpop.xlane.xlu0 %1651 }
 0x5cc   : > { %v10991_v12 = vpop.eup %9654  ;;  %v1663_v37 = vmul.f32 1.442695, %v1654_v57  ;;  %v1409_v8 = vpack.c.bf16 %v10989_v17, %v10984_v9  ;;  %v1657_v57 = vsub.f32 %v10920_v47, %v1643_v63 }
 0x5cd   : > { %v1410_v21 = vpack.c.bf16 %v10991_v12, %v10986_v19  ;;  %v1827_v24 = vpop.permute.xlu1 %1826 }
 0x5ce   : > { %9660 = vpow2.f32 %v1663_v37  ;;  %8892 = vmatprep.mubr.msk.bf16.mxu0 %vm1052_vm2, %v1409_v8  ;;  %v1849_v0 = vsel %vm962_vm1, %v1827_v24, 0  ;;  %v1659_v37 = vsub.f32 %v10914_v62, %v1649_v32  ;;  %v1669_v8 = vmul.f32 1.442695, %v1657_v57 }
 0x5cf   : > { %9662 = vpow2.f32 %v1665_v33  ;;  %v1825_v34 = vpop.permute.xlu0 %1824  ;;  %8893 = vmatmul.mubr.msk.bf16.gmra.mxu0 %vm1052_vm2, %v1410_v21  ;;  %v1660_v33 = vsub.f32 %v10926_v10, %v1652_v60 }
 0x5d0   : > { %v1846_v31 = vsel %vm962_vm1, %v1825_v34, 0  ;;  %9664 = vpow2.f32 %v1669_v8 }
 0x5d1   : > { %v1675_v2 = vmul.f32 1.442695, %v1660_v33 }
 0x5d3   : > { %v1815_v23 = vpop.permute.xlu0 %1814  ;;  %v10999_v41 = vpop.eup %9656  ;;  %9666 = vpow2.f32 %v1675_v2 }
 0x5d7   : > { %v1819_v15 = vpop.permute.xlu0 %1818  ;;  %v11001_v26 = vpop.eup %9658 }
 0x5db   : > { %v11003_v36 = vpop.eup %9660  ;;  %v2002_v25 = vpop.permute.xlu0 %2001 }
 0x5dc   : > { %v11005_v6 = vpop.eup %9662  ;;  %8944 = vmatprep.subr.bf16.mxu1 %v2002_v25  ;;  %v1701_v38 = vpack.c.bf16 %v11003_v36, %v10999_v41 }
 0x5dd   : > { %v1702_v42 = vpack.c.bf16 %v11001_v26, %v11005_v6  ;;  %8945 = vmatpush3.bf16.msra.mxu1 %v2002_v25 }
 0x5de   : > { %8920 = vmatprep.mubr.msk.bf16.mxu0 %vm1052_vm2, %v1701_v38  ;;  %v1673_v38 = vmul.f32 1.442695, %v1659_v37 }
 0x5df   : > { %8921 = vmatmul.mubr.msk.bf16.vlgmr.msra.gmra.mxu0 %vm1052_vm2, %v1702_v42 }
 0x5e0   : > { %8929 = vmatpush3.bf16.xpose.msra.mxu0 %v1852_v22 }
 0x5e1   : > { %9493 = vmatprep.subr.msk.bf16.mxu0 %vm962_vm1, %v1827_v24 }
 0x5e8   : > { %8931 = vmatpush3.bf16.xpose.msra.mxu0 %v1849_v0  ;;  %v11046_v0 = vpack.c.bf16 %v10808_v40, %v10802_v50  ;;  %v11060_v50 = vpack.c.bf16 %v10786_v13, %v10782_v35 }
 0x5e9   : > { %9494 = vmatprep.subr.msk.bf16.mxu0 %vm962_vm1, %v1825_v34  ;;  %v11024_v34 = vpack.c.bf16 %v10836_v18, %v10812_v4 }
 0x5f0   : > { %8933 = vmatpush3.bf16.xpose.msra.mxu0 %v1846_v31  ;;  %v11054_v31 = vpack.c.bf16 %v10798_v44, %v10792_v20 }
 0x5fe   : > { %v1646_v21 = vpop.xlane.xlu1 %1645 }
 0x5ff   : > { %v1658_v25 = vsub.f32 %v10943_v51, %v1646_v21  ;;  %v11029_v51 = vpop.eup %9664 }
 0x600   : > { %v11031_v63 = vpop.eup %9666 }
 0x601   : > { %v1671_v42 = vmul.f32 1.442695, %v1658_v25 }
 0x602   : > { %v1823_v22 = vpop.permute.xlu1 %1822 }
 0x603   : > { %9668 = vpow2.f32 %v1671_v42  ;;  %9495 = vmatprep.subr.msk.bf16.mxu0 %vm962_vm1, %v1823_v22  ;;  %v1843_v47 = vsel %vm962_vm1, %v1823_v22, 0 }
 0x604   : > { %9670 = vpow2.f32 %v1673_v38  ;;  %8935 = vmatpush3.bf16.xpose.msra.mxu0 %v1843_v47 }
 0x605   : > { %8976 = vmatprep.subr.bf16.mxu0 %v11024_v34 }
 0x606   : > { %v1817_v62 = vpop.permute.xlu1 %1816 }
 0x60a   : > { %v1821_v10 = vpop.permute.xlu1 %1820 }
 0x60e   : > { %v2000_v32 = vpop.permute.xlu1 %1999 }
 0x60f   : > { %8946 = vmatprep.subr.bf16.mxu1 %v2000_v32 }
 0x610   : > { %v11033_v60 = vpop.eup %9668  ;;  %8947 = vmatpush3.bf16.msra.mxu1 %v2000_v32 }
 0x611   : > { %v11035_v4 = vpop.eup %9670  ;;  %v1703_v18 = vpack.c.bf16 %v11033_v60, %v11029_v51 }
 0x612   : > { %v1704_v24 = vpack.c.bf16 %v11031_v63, %v11035_v4 }
 0x613   : > { %8924 = vmatprep.mubr.msk.bf16.mxu0 %vm1052_vm2, %v1703_v18 }
 0x614   : > { %8925 = vmatmul.mubr.msk.bf16.gmra.mxu0 %vm1052_vm2, %v1704_v24 }
 0x615   : > { %8936 = vmatprep.mubr.msk.bf16.mxu0 %vm962_vm1, %v1815_v23 }
 0x61c   : > { %8937 = vmatmul.mubr.msk.bf16.vlgmr.msra.gmra.mxu0 %vm962_vm1, %v1817_v62 }
 0x61d   : > { %8977 = vmatpush3.bf16.msra.mxu0 %v11024_v34  ;;  %8940 = vmatprep.mubr.msk.bf16.mxu0 %vm962_vm1, %v1819_v15 }
 0x61e   : > { %8978 = vmatprep.subr.bf16.mxu0 %v11046_v0 }
 0x621   : > { %8979 = vmatpush3.bf16.msra.mxu0 %v11046_v0 }
 0x622   : > { %8980 = vmatprep.subr.bf16.mxu0 %v11054_v31 }
 0x624   : > { %8941 = vmatmul.mubr.msk.bf16.gmra.mxu0 %vm962_vm1, %v1821_v10 }
 0x625   : > { %8981 = vmatpush3.bf16.msra.mxu0 %v11054_v31 }
 0x626   : > { %8982 = vmatprep.subr.bf16.mxu0 %v11060_v50 }
 0x629   : > { %8983 = vmatpush3.bf16.msra.mxu0 %v11060_v50 }
 0x653   : > { %v11066_v40 = vpop.f32.mrf.mxu0 }
 0x654   : > { %14460 = vst [vmem:[#allocation13_spill] sm:$0xff] %v11066_v40 }
 0x655   : > { %v11068_v20 = vpop.f32.mrf.mxu0 }
 0x656   : > { %14461 = vst [vmem:[#allocation14_spill] sm:$0xff] %v11068_v20 }
 0x657   : > { %v11070_v44 = vpop.f32.mrf.mxu0 }
 0x658   : > { %14462 = vst [vmem:[#allocation15_spill] sm:$0xff] %v11070_v44 }
 0x659   : > { %v11072_v23 = vpop.f32.mrf.mxu0 }
 0x65a   : > { %14463 = vst [vmem:[#allocation16_spill] sm:$0xff] %v11072_v23 }
 0x68f   : > { %v11074_v15 = vpop.f32.mrf.mxu0 }
 0x690   : > { %14464 = vst [vmem:[#allocation17_spill] sm:$0xff] %v11074_v15 }
 0x691   : > { %v11076_v35 = vpop.f32.mrf.mxu0 }
 0x692   : > { %14465 = vst [vmem:[#allocation18_spill] sm:$0xff] %v11076_v35 }
 0x693   : > { %v11078_v13 = vpop.f32.mrf.mxu0 }
 0x694   : > { %14466 = vst [vmem:[#allocation19_spill] sm:$0xff] %v11078_v13 }
 0x695   : > { %v11080_v57 = vpop.f32.mrf.mxu0 }
 0x696   : > { %14467 = vst [vmem:[#allocation20_spill] sm:$0xff] %v11080_v57 }
 0x69f   : > { %v11082_v33 = vpop.f32.mrf.mxu0 }
 0x6a0   : > { %14468 = vst [vmem:[#allocation21_spill] sm:$0xff] %v11082_v33 }
 0x6a1   : > { %v11084_v37 = vpop.f32.mrf.mxu0 }
 0x6a2   : > { %14469 = vst [vmem:[#allocation22_spill] sm:$0xff] %v11084_v37 }
 0x6a3   : > { %v11086_v8 = vpop.f32.mrf.mxu0 }
 0x6a4   : > { %14470 = vst [vmem:[#allocation23_spill] sm:$0xff] %v11086_v8 }
 0x6a5   : > { %v11088_v2 = vpop.f32.mrf.mxu0 }
 0x6a6   : > { %14471 = vst [vmem:[#allocation24_spill] sm:$0xff] %v11088_v2 }
 0x6d4   : > { %v11090_v21 = vpop.f32.mrf.mxu0 }
 0x6d5   : > { %14472 = vst [vmem:[#allocation25_spill] sm:$0xff] %v11090_v21 }
 0x6d6   : > { %v11092_v25 = vpop.f32.mrf.mxu0 }
 0x6d7   : > { %14473 = vst [vmem:[#allocation26_spill] sm:$0xff] %v11092_v25 }
 0x6d8   : > { %v11094_v38 = vpop.f32.mrf.mxu0 }
 0x6d9   : > { %14474 = vst [vmem:[#allocation27_spill] sm:$0xff] %v11094_v38 }
 0x6da   : > { %v11096_v42 = vpop.f32.mrf.mxu0 }
 0x6db   : > { %14475 = vst [vmem:[#allocation28_spill] sm:$0xff] %v11096_v42 }
 0x6dc   : > { %v8938_v22 = vpop.f32.mrf.mxu0 }
 0x6dd   : > { %v1925_v47 = vsel %vm1052_vm2, %v8938_v22, -inf }
 0x6de   : > { %1926 = vmax.xlane.f32.xlu0 %v1925_v47  ;;  %v1888_v62 = vpop.f32.mrf.mxu0 }
 0x6df   : > { %v1919_v32 = vsel %vm1052_vm2, %v1888_v62, -inf }
 0x6e0   : > { %v8939_v10 = vpop.f32.mrf.mxu0 }
 0x6e1   : > { %v1928_v56 = vsel %vm1052_vm2, %v8939_v10, -inf }
 0x6e2   : > { %1920 = vmax.xlane.f32.xlu0 %v1919_v32  ;;  %v1891_v18 = vpop.f32.mrf.mxu0 }
 0x6e3   : > { %v1922_v24 = vsel %vm1052_vm2, %v1891_v18, -inf }
 0x6e4   : > { %1923 = vmax.xlane.f32.xlu1 %v1922_v24  ;;  %v8942_v27 = vpop.f32.mrf.mxu0 }
 0x6e5   : > { %v1937_v32 = vsel %vm1052_vm2, %v8942_v27, -inf }
 0x6e6   : > { %1929 = vmax.xlane.f32.xlu0 %v1928_v56  ;;  %v1904_v47 = vpop.f32.mrf.mxu0 }
 0x6e7   : > { %v1931_v52 = vsel %vm1052_vm2, %v1904_v47, -inf }
 0x6e8   : > { %v8943_v54 = vpop.f32.mrf.mxu0 }
 0x6e9   : > { %v1940_v24 = vsel %vm1052_vm2, %v8943_v54, -inf }
 0x6ea   : > { %v1907_v38 = vpop.f32.mrf.mxu0 }
 0x6eb   : > { %v1934_v56 = vsel %vm1052_vm2, %v1907_v38, -inf }
 0x6f5   : > { %2177 = vrot.lane.b32.xlu1 %v10806_v46, %s10289_s19 }
 0x6fc   : > { %1997 = vrot.lane.b32.xlu0 %v10592_v58, %s14419_s25  ;;  %v1996_v58 = vpop.permute.xlu1 %1995 }
 0x700   : > { %v2180_v13 = vpop.permute.xlu1 %2179 }
 0x719   : > { %1932 = vmax.xlane.f32.xlu1 %v1931_v52 }
 0x71b   : > { %1938 = vmax.xlane.f32.xlu0 %v1937_v32 }
 0x71d   : > { %1941 = vmax.xlane.f32.xlu1 %v1940_v24 }
 0x71f   : > { %1935 = vmax.xlane.f32.xlu0 %v1934_v56 }
 0x72e   : > { %2173 = vrot.lane.b32.xlu1 %v10784_v11, %s10289_s19 }
 0x735   : > { %2175 = vrot.lane.b32.xlu0 %v10795_v43, %s10289_s19 }
 0x767   : > { %v1927_v21 = vpop.xlane.xlu0 %1926 }
 0x768   : > { %v1945_v52 = vsub.f32 %v8938_v22, %v1927_v21 }
 0x76a   : > { %v1955_v25 = vmul.f32 1.442695, %v1945_v52 }
 0x76b   : > { %v1921_v15 = vpop.xlane.xlu0 %1920 }
 0x76c   : > { %v1943_v8 = vsub.f32 %v1888_v62, %v1921_v15 }
 0x76d   : > { %v1924_v33 = vpop.xlane.xlu1 %1923 }
 0x76e   : > { %v1951_v32 = vmul.f32 1.442695, %v1943_v8  ;;  %v1944_v42 = vsub.f32 %v1891_v18, %v1924_v33 }
 0x76f   : > { %v1930_v24 = vpop.xlane.xlu0 %1929 }
 0x770   : > { %v1953_v57 = vmul.f32 1.442695, %v1944_v42  ;;  %v1946_v35 = vsub.f32 %v8939_v10, %v1930_v24  ;;  %9672 = vpow2.f32 %v1951_v32 }
 0x772   : > { %9674 = vpow2.f32 %v1953_v57  ;;  %v1957_v56 = vmul.f32 1.442695, %v1946_v35 }
 0x773   : > { %9676 = vpow2.f32 %v1955_v25  ;;  %v1998_v23 = vpop.permute.xlu0 %1997  ;;  %v2178_v25 = vpop.permute.xlu1 %2177 }
 0x774   : > { %9678 = vpow2.f32 %v1957_v56  ;;  %8948 = vmatprep.subr.bf16.mxu1 %v1998_v23  ;;  %v2200_v42 = vsel %vm962_vm1, %v2178_v25, 0 }
 0x775   : > { %8949 = vmatpush3.bf16.msra.mxu1 %v1998_v23  ;;  %v2203_v23 = vsel %vm962_vm1, %v2180_v13, 0 }
 0x776   : > { %8950 = vmatprep.subr.bf16.mxu1 %v1996_v58 }
 0x779   : > { %8951 = vmatpush3.bf16.msra.mxu1 %v1996_v58 }
 0x77a   : > { %9496 = vmatprep.subr.msk.bf16.mxu1 %vm962_vm1, %v2180_v13 }
 0x77d   : > { %v11115_v15 = vpop.eup %9672 }
 0x77f   : > { %v11117_v8 = vpop.eup %9674 }
 0x780   : > { %v11119_v33 = vpop.eup %9676  ;;  %v1991_v21 = vpack.c.bf16 %v11117_v8, %v11115_v15 }
 0x781   : > { %v11123_v57 = vpop.eup %9678 }
 0x782   : > { %v1992_v35 = vpack.c.bf16 %v11123_v57, %v11119_v33  ;;  %8952 = vmatprep.mubr.msk.bf16.mxu1 %vm1052_vm2, %v1991_v21 }
 0x784   : > { %8953 = vmatmul.mubr.msk.bf16.vlgmr.msra.gmra.mxu1 %vm1052_vm2, %v1992_v35 }
 0x785   : > { %8961 = vmatpush3.bf16.xpose.msra.mxu1 %v2203_v23 }
 0x786   : > { %9497 = vmatprep.subr.msk.bf16.mxu1 %vm962_vm1, %v2178_v25 }
 0x78d   : > { %8963 = vmatpush3.bf16.xpose.msra.mxu1 %v2200_v42 }
 0x7a2   : > { %v1933_v22 = vpop.xlane.xlu1 %1932 }
 0x7a3   : > { %v1947_v62 = vsub.f32 %v1904_v47, %v1933_v22 }
 0x7a4   : > { %v1939_v10 = vpop.xlane.xlu0 %1938 }
 0x7a5   : > { %v1949_v18 = vsub.f32 %v8942_v27, %v1939_v10  ;;  %v1959_v52 = vmul.f32 1.442695, %v1947_v62 }
 0x7a6   : > { %v1942_v58 = vpop.xlane.xlu1 %1941 }
 0x7a7   : > { %v1950_v32 = vsub.f32 %v8943_v54, %v1942_v58  ;;  %v1963_v35 = vmul.f32 1.442695, %v1949_v18  ;;  %9680 = vpow2.f32 %v1959_v52 }
 0x7a8   : > { %v1936_v24 = vpop.xlane.xlu0 %1935 }
 0x7a9   : > { %v1965_v56 = vmul.f32 1.442695, %v1950_v32  ;;  %v1948_v21 = vsub.f32 %v1907_v38, %v1936_v24 }
 0x7aa   : > { %v2174_v47 = vpop.permute.xlu1 %2173 }
 0x7ab   : > { %v1961_v13 = vmul.f32 1.442695, %v1948_v21  ;;  %9682 = vpow2.f32 %v1965_v56  ;;  %v2194_v27 = vsel %vm962_vm1, %v2174_v47, 0 }
 0x7ac   : > { %v2176_v23 = vpop.permute.xlu0 %2175 }
 0x7ad   : > { %9684 = vpow2.f32 %v1961_v13  ;;  %9498 = vmatprep.subr.msk.bf16.mxu1 %vm962_vm1, %v2176_v23  ;;  %v2197_v25 = vsel %vm962_vm1, %v2176_v23, 0 }
 0x7ae   : > { %9686 = vpow2.f32 %v1963_v35  ;;  %8965 = vmatpush3.bf16.xpose.msra.mxu1 %v2197_v25 }
 0x7af   : > { %9499 = vmatprep.subr.msk.bf16.mxu1 %vm962_vm1, %v2174_v47 }
 0x7b4   : > { %v11136_v54 = vpop.eup %9680 }
 0x7b6   : > { %8967 = vmatpush3.bf16.xpose.msra.mxu1 %v2194_v27 }
 0x7b8   : > { %v11138_v38 = vpop.eup %9682 }
 0x7ba   : > { %v11140_v42 = vpop.eup %9684 }
 0x7bb   : > { %v11142_v22 = vpop.eup %9686  ;;  %v1993_v62 = vpack.c.bf16 %v11140_v42, %v11136_v54 }
 0x7bc   : > { %v1994_v10 = vpack.c.bf16 %v11138_v38, %v11142_v22 }
 0x7bd   : > { %8956 = vmatprep.mubr.msk.bf16.mxu1 %vm1052_vm2, %v1993_v62 }
 0x7be   : > { %8957 = vmatmul.mubr.msk.bf16.gmra.mxu1 %vm1052_vm2, %v1994_v10 }
 0x7bf   : > { %8968 = vmatprep.mubr.msk.bf16.mxu1 %vm962_vm1, %v10788_v16 }
 0x7c6   : > { %8969 = vmatmul.mubr.msk.bf16.vlgmr.msra.gmra.mxu1 %vm962_vm1, %v10800_v29 }
 0x7c7   : > { %8972 = vmatprep.mubr.msk.bf16.mxu1 %vm962_vm1, %v10810_v45 }
 0x7ce   : > { %8973 = vmatmul.mubr.msk.bf16.gmra.mxu1 %vm962_vm1, %v10822_v5 }
 0x844   : > { %v11158_v18 = vpop.f32.mrf.mxu1 }
 0x845   : > { %14476 = vst [vmem:[#allocation29_spill] sm:$0xff] %v11158_v18 }
 0x846   : > { %v11160_v58 = vpop.f32.mrf.mxu1 }
 0x847   : > { %14477 = vst [vmem:[#allocation30_spill] sm:$0xff] %v11160_v58 }
 0x848   : > { %v11162_v52 = vpop.f32.mrf.mxu1 }
 0x849   : > { %14478 = vst [vmem:[#allocation31_spill] sm:$0xff] %v11162_v52 }
 0x84a   : > { %v11164_v32 = vpop.f32.mrf.mxu1 }
 0x84b   : > { %14479 = vst [vmem:[#allocation32_spill] sm:$0xff] %v11164_v32 }
 0x87e   : > { %v11166_v24 = vpop.f32.mrf.mxu1 }
 0x87f   : > { %14480 = vst [vmem:[#allocation33_spill] sm:$0xff] %v11166_v24 }
 0x880   : > { %v11168_v56 = vpop.f32.mrf.mxu1 }
 0x881   : > { %14481 = vst [vmem:[#allocation34_spill] sm:$0xff] %v11168_v56 }
 0x882   : > { %v11170_v21 = vpop.f32.mrf.mxu1 }
 0x883   : > { %14482 = vst [vmem:[#allocation35_spill] sm:$0xff] %v11170_v21 }
 0x884   : > { %v11172_v35 = vpop.f32.mrf.mxu1 }
 0x885   : > { %14483 = vst [vmem:[#allocation36_spill] sm:$0xff] %v11172_v35 }
 0x886   : > { %v8970_v13 = vpop.f32.mrf.mxu1 }
 0x887   : > { %v2276_v23 = vsel %vm1052_vm2, %v8970_v13, -inf }
 0x888   : > { %2277 = vmax.xlane.f32.xlu0 %v2276_v23  ;;  %v2239_v25 = vpop.f32.mrf.mxu1 }
 0x889   : > { %v2270_v27 = vsel %vm1052_vm2, %v2239_v25, -inf }
 0x88a   : > { %v8971_v47 = vpop.f32.mrf.mxu1 }
 0x88b   : > { %v2279_v24 = vsel %vm1052_vm2, %v8971_v47, -inf }
 0x88c   : > { %2271 = vmax.xlane.f32.xlu0 %v2270_v27  ;;  %v2242_v62 = vpop.f32.mrf.mxu1 }
 0x88d   : > { %v2273_v10 = vsel %vm1052_vm2, %v2242_v62, -inf }
 0x88e   : > { %2274 = vmax.xlane.f32.xlu1 %v2273_v10  ;;  %v11178_v52 = vpop.f32.mrf.mxu1 }
 0x88f   : > { %v2288_v21 = vsel %vm1052_vm2, %v11178_v52, -inf }
 0x890   : > { %2280 = vmax.xlane.f32.xlu0 %v2279_v24  ;;  %v11182_v18 = vpop.f32.mrf.mxu1 }
 0x891   : > { %v2282_v23 = vsel %vm1052_vm2, %v11182_v18, -inf }
 0x892   : > { %v8975_v24 = vpop.f32.mrf.mxu1 }
 0x894   : > { %2289 = vmax.xlane.f32.xlu0 %v2288_v21  ;;  %v2291_v21 = vsel %vm1052_vm2, %v8975_v24, -inf  ;;  %v11199_v27 = vpop.f32.mrf.mxu1 }
 0x895   : > { %v2285_v10 = vsel %vm1052_vm2, %v11199_v27, -inf }
 0x898   : > { %2283 = vmax.xlane.f32.xlu0 %v2282_v23 }
 0x89f   : > { %2459 = vrot.lane.b32.xlu1 %v10806_v46, %s10290_s20 }
 0x8a3   : > { %2457 = vrot.lane.b32.xlu1 %v10795_v43, %s10290_s20 }
 0x8ae   : > { %2461 = vrot.lane.b32.xlu0 %v10816_v3, %s10290_s20 }
 0x8b2   : > { %2447 = vrot.lane.b32.xlu0 %v10788_v16, %s10292_s22 }
 0x8b6   : > { %2451 = vrot.lane.b32.xlu0 %v10810_v45, %s10292_s22 }
 0x8ba   : > { %2638 = vrot.lane.b32.xlu0 %v11024_v34, %s10292_s22 }
 0x8c7   : > { %2292 = vmax.xlane.f32.xlu1 %v2291_v21 }
 0x8cb   : > { %2286 = vmax.xlane.f32.xlu1 %v2285_v10 }
 0x8dc   : > { %2455 = vrot.lane.b32.xlu1 %v10784_v11, %s10290_s20 }
 0x8e0   : > { %2449 = vrot.lane.b32.xlu1 %v10800_v29, %s10292_s22 }
 0x8e4   : > { %2453 = vrot.lane.b32.xlu1 %v10822_v5, %s10292_s22 }
 0x8e8   : > { %2636 = vrot.lane.b32.xlu1 %v11046_v0, %s10292_s22 }
 0x8ec   : > { %2632 = vrot.lane.b32.xlu1 %v11060_v50, %s10292_s22 }
 0x8f0   : > { %2755 = vrot.lane.b32.xlu1 %v10816_v3, %s10291_s21 }
 0x911   : > { %v2278_v23 = vpop.xlane.xlu0 %2277 }
 0x912   : > { %v2296_v21 = vsub.f32 %v8970_v13, %v2278_v23 }
 0x914   : > { %v2306_v20 = vmul.f32 1.442695, %v2296_v21 }
 0x915   : > { %v2272_v10 = vpop.xlane.xlu0 %2271 }
 0x916   : > { %v2294_v35 = vsub.f32 %v2239_v25, %v2272_v10 }
 0x917   : > { %v2275_v56 = vpop.xlane.xlu1 %2274 }
 0x918   : > { %v2302_v32 = vmul.f32 1.442695, %v2294_v35  ;;  %v2295_v58 = vsub.f32 %v2242_v62, %v2275_v56 }
 0x919   : > { %v2281_v2 = vpop.xlane.xlu0 %2280 }
 0x91a   : > { %v2304_v37 = vmul.f32 1.442695, %v2295_v58  ;;  %v2297_v40 = vsub.f32 %v8971_v47, %v2281_v2  ;;  %9688 = vpow2.f32 %v2302_v32 }
 0x91c   : > { %9690 = vpow2.f32 %v2304_v37  ;;  %v2308_v44 = vmul.f32 1.442695, %v2297_v40  ;;  %v2460_v37 = vpop.permute.xlu1 %2459 }
 0x91d   : > { %9692 = vpow2.f32 %v2306_v20  ;;  %v2290_v48 = vpop.xlane.xlu0 %2289  ;;  %v2482_v47 = vsel %vm962_vm1, %v2460_v37, 0 }
 0x91e   : > { %9694 = vpow2.f32 %v2308_v44 }
 0x920   : > { %v2458_v62 = vpop.permute.xlu1 %2457 }
 0x921   : > { %v2284_v7 = vpop.xlane.xlu0 %2283  ;;  %v2479_v23 = vsel %vm962_vm1, %v2458_v62, 0 }
 0x922   : > { %v2298_v21 = vsub.f32 %v11182_v18, %v2284_v7 }
 0x925   : > { %v2462_v49 = vpop.permute.xlu0 %2461 }
 0x926   : > { %9500 = vmatprep.subr.msk.bf16.mxu0 %vm962_vm1, %v2462_v49  ;;  %v2485_v44 = vsel %vm962_vm1, %v2462_v49, 0 }
 0x927   : > { %v11216_v13 = vpop.eup %9688 }
 0x928   : > { %14484 = vst [vmem:[#allocation37_spill] sm:$0xff] %v11216_v13 }
 0x929   : > { %v11218_v25 = vpop.eup %9690  ;;  %v2448_v35 = vpop.permute.xlu0 %2447 }
 0x92a   : > { %14485 = vst [vmem:[#allocation38_spill] sm:$0xff] %v11218_v25  ;;  %v11220_v56 = vpop.eup %9692  ;;  %v2342_v2 = vpack.c.bf16 %v11218_v25, %v11216_v13 }
 0x92b   : > { %14486 = vst [vmem:[#allocation39_spill] sm:$0xff] %v11220_v56  ;;  %v11224_v58 = vpop.eup %9694 }
 0x92c   : > { %14487 = vst [vmem:[#allocation40_spill] sm:$0xff] %v11224_v58  ;;  %v2343_v40 = vpack.c.bf16 %v11224_v58, %v11220_v56  ;;  %8984 = vmatprep.mubr.msk.bf16.mxu0 %vm1052_vm2, %v2342_v2  ;;  %v2300_v2 = vsub.f32 %v11178_v52, %v2290_v48 }
 0x92d   : > { %v2452_v20 = vpop.permute.xlu0 %2451 }
 0x92e   : > { %8985 = vmatmul.mubr.msk.bf16.vlgmr.msra.gmra.mxu0 %vm1052_vm2, %v2343_v40  ;;  %v2310_v40 = vmul.f32 1.442695, %v2298_v21  ;;  %v2314_v25 = vmul.f32 1.442695, %v2300_v2 }
 0x92f   : > { %8993 = vmatpush3.bf16.xpose.msra.mxu0 %v2485_v44 }
 0x930   : > { %9501 = vmatprep.subr.msk.bf16.mxu0 %vm962_vm1, %v2460_v37  ;;  %9696 = vpow2.f32 %v2310_v40 }
 0x931   : > { %v2639_v32 = vpop.permute.xlu0 %2638 }
 0x932   : > { %9008 = vmatprep.subr.bf16.mxu1 %v2639_v32 }
 0x933   : > { %9009 = vmatpush3.bf16.msra.mxu1 %v2639_v32 }
 0x937   : > { %8995 = vmatpush3.bf16.xpose.msra.mxu0 %v2482_v47 }
 0x938   : > { %9502 = vmatprep.subr.msk.bf16.mxu0 %vm962_vm1, %v2458_v62 }
 0x93d   : > { %v11240_v48 = vpop.eup %9696 }
 0x93e   : > { %14488 = vst [vmem:[#allocation41_spill] sm:$0xff] %v11240_v48 }
 0x93f   : > { %8997 = vmatpush3.bf16.xpose.msra.mxu0 %v2479_v23 }
 0x950   : > { %v2293_v10 = vpop.xlane.xlu1 %2292 }
 0x951   : > { %v2301_v49 = vsub.f32 %v8975_v24, %v2293_v10 }
 0x953   : > { %v2316_v44 = vmul.f32 1.442695, %v2301_v49 }
 0x954   : > { %v2287_v58 = vpop.xlane.xlu1 %2286 }
 0x955   : > { %v2299_v32 = vsub.f32 %v11199_v27, %v2287_v58  ;;  %9698 = vpow2.f32 %v2316_v44 }
 0x957   : > { %v2312_v37 = vmul.f32 1.442695, %v2299_v32 }
 0x958   : > { %v2456_v47 = vpop.permute.xlu1 %2455 }
 0x959   : > { %9700 = vpow2.f32 %v2312_v37  ;;  %9503 = vmatprep.subr.msk.bf16.mxu0 %vm962_vm1, %v2456_v47  ;;  %v2476_v62 = vsel %vm962_vm1, %v2456_v47, 0 }
 0x95a   : > { %9702 = vpow2.f32 %v2314_v25  ;;  %8999 = vmatpush3.bf16.xpose.msra.mxu0 %v2476_v62 }
 0x95c   : > { %v2450_v7 = vpop.permute.xlu1 %2449 }
 0x960   : > { %v2454_v18 = vpop.permute.xlu1 %2453 }
 0x962   : > { %v11242_v24 = vpop.eup %9698 }
 0x963   : > { %14489 = vst [vmem:[#allocation42_spill] sm:$0xff] %v11242_v24 }
 0x964   : > { %v2637_v52 = vpop.permute.xlu1 %2636 }
 0x965   : > { %9010 = vmatprep.subr.bf16.mxu1 %v2637_v52 }
 0x966   : > { %v11244_v27 = vpop.eup %9700  ;;  %9011 = vmatpush3.bf16.msra.mxu1 %v2637_v52 }
 0x967   : > { %14490 = vst [vmem:[#allocation43_spill] sm:$0xff] %v11244_v27  ;;  %v11246_v58 = vpop.eup %9702  ;;  %v2344_v23 = vpack.c.bf16 %v11244_v27, %v11240_v48 }
 0x968   : > { %14491 = vst [vmem:[#allocation44_spill] sm:$0xff] %v11246_v58  ;;  %v2345_v25 = vpack.c.bf16 %v11242_v24, %v11246_v58 }
 0x969   : > { %8988 = vmatprep.mubr.msk.bf16.mxu0 %vm1052_vm2, %v2344_v23 }
 0x96a   : > { %8989 = vmatmul.mubr.msk.bf16.gmra.mxu0 %vm1052_vm2, %v2345_v25 }
 0x96b   : > { %9000 = vmatprep.mubr.msk.bf16.mxu0 %vm962_vm1, %v2448_v35 }
 0x972   : > { %9001 = vmatmul.mubr.msk.bf16.vlgmr.msra.gmra.mxu0 %vm962_vm1, %v2450_v7 }
 0x973   : > { %9004 = vmatprep.mubr.msk.bf16.mxu0 %vm962_vm1, %v2452_v20 }
 0x97a   : > { %9005 = vmatmul.mubr.msk.bf16.gmra.mxu0 %vm962_vm1, %v2454_v18 }
 0x9ee   : > { %v11258_v21 = vpop.f32.mrf.mxu0 }
 0x9ef   : > { %14492 = vst [vmem:[#allocation45_spill] sm:$0xff] %v11258_v21 }
 0x9f0   : > { %v11260_v10 = vpop.f32.mrf.mxu0 }
 0x9f1   : > { %14493 = vst [vmem:[#allocation46_spill] sm:$0xff] %v11260_v10 }
 0x9f2   : > { %v11262_v49 = vpop.f32.mrf.mxu0 }
 0x9f3   : > { %14494 = vst [vmem:[#allocation47_spill] sm:$0xff] %v11262_v49 }
 0x9f4   : > { %v11264_v2 = vpop.f32.mrf.mxu0 }
 0x9f5   : > { %14495 = vst [vmem:[#allocation48_spill] sm:$0xff] %v11264_v2 }
 0xa2a   : > { %v11266_v40 = vpop.f32.mrf.mxu0 }
 0xa2b   : > { %14496 = vst [vmem:[#allocation49_spill] sm:$0xff] %v11266_v40 }
 0xa2c   : > { %v11268_v44 = vpop.f32.mrf.mxu0 }
 0xa2d   : > { %14497 = vst [vmem:[#allocation50_spill] sm:$0xff] %v11268_v44 }
 0xa2e   : > { %v11270_v32 = vpop.f32.mrf.mxu0 }
 0xa2f   : > { %14498 = vst [vmem:[#allocation51_spill] sm:$0xff] %v11270_v32 }
 0xa30   : > { %v11272_v35 = vpop.f32.mrf.mxu0 }
 0xa31   : > { %14499 = vst [vmem:[#allocation52_spill] sm:$0xff] %v11272_v35 }
 0xa32   : > { %v9002_v37 = vpop.f32.mrf.mxu0 }
 0xa33   : > { %v2558_v20 = vsel %vm1052_vm2, %v9002_v37, -inf }
 0xa34   : > { %2559 = vmax.xlane.f32.xlu0 %v2558_v20  ;;  %v2521_v47 = vpop.f32.mrf.mxu0 }
 0xa35   : > { %v2552_v7 = vsel %vm1052_vm2, %v2521_v47, -inf }
 0xa36   : > { %v9003_v62 = vpop.f32.mrf.mxu0 }
 0xa37   : > { %v2561_v23 = vsel %vm1052_vm2, %v9003_v62, -inf }
 0xa38   : > { %2553 = vmax.xlane.f32.xlu0 %v2552_v7  ;;  %v2524_v18 = vpop.f32.mrf.mxu0 }
 0xa39   : > { %v2555_v52 = vsel %vm1052_vm2, %v2524_v18, -inf }
 0xa3a   : > { %2556 = vmax.xlane.f32.xlu1 %v2555_v52  ;;  %v11282_v25 = vpop.f32.mrf.mxu0 }
 0xa3b   : > { %v2570_v52 = vsel %vm1052_vm2, %v11282_v25, -inf }
 0xa3c   : > { %2562 = vmax.xlane.f32.xlu0 %v2561_v23  ;;  %v11284_v20 = vpop.f32.mrf.mxu0 }
 0xa3d   : > { %v2564_v7 = vsel %vm1052_vm2, %v11284_v20, -inf }
 0xa3e   : > { %v11286_v40 = vpop.f32.mrf.mxu0 }
 0xa3f   : > { %v2573_v44 = vsel %vm1052_vm2, %v11286_v40, -inf }
 0xa40   : > { %v11292_v23 = vpop.f32.mrf.mxu0 }
 0xa41   : > { %v2567_v32 = vsel %vm1052_vm2, %v11292_v23, -inf }
 0xa4b   : > { %2753 = vrot.lane.b32.xlu1 %v10806_v46, %s10291_s21 }
 0xa52   : > { %2634 = vrot.lane.b32.xlu0 %v11054_v31, %s10292_s22 }
 0xa6f   : > { %2565 = vmax.xlane.f32.xlu1 %v2564_v7 }
 0xa71   : > { %2571 = vmax.xlane.f32.xlu0 %v2570_v52 }
 0xa73   : > { %2574 = vmax.xlane.f32.xlu1 %v2573_v44  ;;  %v2633_v44 = vpop.permute.xlu1 %2632 }
 0xa75   : > { %2568 = vmax.xlane.f32.xlu0 %v2567_v32 }
 0xa77   : > { %v2756_v7 = vpop.permute.xlu1 %2755 }
 0xa84   : > { %2749 = vrot.lane.b32.xlu1 %v10784_v11, %s10291_s21 }
 0xa88   : > { %2743 = vrot.lane.b32.xlu1 %v10800_v29, %s10293_s23 }
 0xa8b   : > { %2751 = vrot.lane.b32.xlu0 %v10795_v43, %s10291_s21 }
 0xa8c   : > { %2747 = vrot.lane.b32.xlu1 %v10822_v5, %s10293_s23 }
 0xa8f   : > { %2741 = vrot.lane.b32.xlu0 %v10788_v16, %s10293_s23 }
 0xa90   : > { %2926 = vrot.lane.b32.xlu1 %v11046_v0, %s10293_s23 }
 0xa93   : > { %2745 = vrot.lane.b32.xlu0 %v10810_v45, %s10293_s23 }
 0xa94   : > { %2922 = vrot.lane.b32.xlu1 %v11060_v50, %s10293_s23 }
 0xa97   : > { %2928 = vrot.lane.b32.xlu0 %v11024_v34, %s10293_s23 }
 0xa98   : > { %3045 = vrot.lane.b32.xlu1 %v10816_v3, %s10294_s24 }
 0xabd   : > { %v2560_v32 = vpop.xlane.xlu0 %2559 }
 0xabe   : > { %v2578_v52 = vsub.f32 %v9002_v37, %v2560_v32 }
 0xac0   : > { %v2588_v24 = vmul.f32 1.442695, %v2578_v52 }
 0xac1   : > { %v2554_v35 = vpop.xlane.xlu0 %2553 }
 0xac2   : > { %v2576_v21 = vsub.f32 %v2521_v47, %v2554_v35 }
 0xac3   : > { %v2557_v10 = vpop.xlane.xlu1 %2556 }
 0xac4   : > { %v2584_v49 = vmul.f32 1.442695, %v2576_v21  ;;  %v2577_v2 = vsub.f32 %v2524_v18, %v2557_v10 }
 0xac5   : > { %v2563_v27 = vpop.xlane.xlu0 %2562 }
 0xac6   : > { %v2586_v58 = vmul.f32 1.442695, %v2577_v2  ;;  %v2579_v48 = vsub.f32 %v9003_v62, %v2563_v27  ;;  %9704 = vpow2.f32 %v2584_v49 }
 0xac8   : > { %9706 = vpow2.f32 %v2586_v58  ;;  %v2590_v56 = vmul.f32 1.442695, %v2579_v48  ;;  %v2754_v48 = vpop.permute.xlu1 %2753 }
 0xac9   : > { %9708 = vpow2.f32 %v2588_v24  ;;  %v2635_v13 = vpop.permute.xlu0 %2634  ;;  %v2776_v24 = vsel %vm962_vm1, %v2754_v48, 0 }
 0xaca   : > { %9710 = vpow2.f32 %v2590_v56  ;;  %9012 = vmatprep.subr.bf16.mxu1 %v2635_v13 }
 0xacb   : > { %9013 = vmatpush3.bf16.msra.mxu1 %v2635_v13  ;;  %v2779_v13 = vsel %vm962_vm1, %v2756_v7, 0 }
 0xacc   : > { %9014 = vmatprep.subr.bf16.mxu1 %v2633_v44 }
 0xacf   : > { %9015 = vmatpush3.bf16.msra.mxu1 %v2633_v44 }
 0xad0   : > { %9504 = vmatprep.subr.msk.bf16.mxu1 %vm962_vm1, %v2756_v7 }
 0xad3   : > { %v11319_v3 = vpop.eup %9704 }
 0xad5   : > { %v11321_v21 = vpop.eup %9706 }
 0xad6   : > { %v11323_v10 = vpop.eup %9708  ;;  %v2624_v27 = vpack.c.bf16 %v11321_v21, %v11319_v3 }
 0xad7   : > { %v11327_v58 = vpop.eup %9710 }
 0xad8   : > { %v2625_v56 = vpack.c.bf16 %v11327_v58, %v11323_v10  ;;  %9016 = vmatprep.mubr.msk.bf16.mxu1 %vm1052_vm2, %v2624_v27 }
 0xada   : > { %9017 = vmatmul.mubr.msk.bf16.vlgmr.msra.gmra.mxu1 %vm1052_vm2, %v2625_v56 }
 0xadb   : > { %9025 = vmatpush3.bf16.xpose.msra.mxu1 %v2779_v13 }
 0xadc   : > { %9505 = vmatprep.subr.msk.bf16.mxu1 %vm962_vm1, %v2754_v48 }
 0xae3   : > { %9027 = vmatpush3.bf16.xpose.msra.mxu1 %v2776_v24 }
 0xaf8   : > { %v2566_v49 = vpop.xlane.xlu1 %2565 }
 0xaf9   : > { %v2580_v2 = vsub.f32 %v11284_v20, %v2566_v49 }
 0xafa   : > { %v2572_v35 = vpop.xlane.xlu0 %2571 }
 0xafb   : > { %v2582_v37 = vsub.f32 %v11282_v25, %v2572_v35  ;;  %v2592_v62 = vmul.f32 1.442695, %v2580_v2 }
 0xafc   : > { %v2575_v47 = vpop.xlane.xlu1 %2574 }
 0xafd   : > { %v2583_v18 = vsub.f32 %v11286_v40, %v2575_v47  ;;  %v2596_v52 = vmul.f32 1.442695, %v2582_v37  ;;  %9712 = vpow2.f32 %v2592_v62 }
 0xafe   : > { %v2569_v44 = vpop.xlane.xlu0 %2568 }
 0xaff   : > { %v2598_v32 = vmul.f32 1.442695, %v2583_v18  ;;  %v2581_v7 = vsub.f32 %v11292_v23, %v2569_v44 }
 0xb00   : > { %v2750_v27 = vpop.permute.xlu1 %2749 }
 0xb01   : > { %v2594_v56 = vmul.f32 1.442695, %v2581_v7  ;;  %9714 = vpow2.f32 %v2598_v32  ;;  %v2770_v23 = vsel %vm962_vm1, %v2750_v27, 0 }
 0xb02   : > { %v2752_v13 = vpop.permute.xlu0 %2751 }
 0xb03   : > { %9716 = vpow2.f32 %v2594_v56  ;;  %9506 = vmatprep.subr.msk.bf16.mxu1 %vm962_vm1, %v2752_v13  ;;  %v2773_v20 = vsel %vm962_vm1, %v2752_v13, 0 }
 0xb04   : > { %9718 = vpow2.f32 %v2596_v52  ;;  %v2744_v25 = vpop.permute.xlu1 %2743  ;;  %9029 = vmatpush3.bf16.xpose.msra.mxu1 %v2773_v20 }
 0xb05   : > { %9507 = vmatprep.subr.msk.bf16.mxu1 %vm962_vm1, %v2750_v27 }
 0xb06   : > { %v2742_v40 = vpop.permute.xlu0 %2741 }
 0xb08   : > { %v2748_v48 = vpop.permute.xlu1 %2747 }
 0xb0a   : > { %v2746_v24 = vpop.permute.xlu0 %2745  ;;  %v11344_v49 = vpop.eup %9712 }
 0xb0c   : > { %9031 = vmatpush3.bf16.xpose.msra.mxu1 %v2770_v23  ;;  %v2927_v47 = vpop.permute.xlu1 %2926 }
 0xb0e   : > { %v2929_v2 = vpop.permute.xlu0 %2928  ;;  %v11346_v35 = vpop.eup %9714 }
 0xb0f   : > { %9040 = vmatprep.subr.bf16.mxu0 %v2929_v2 }
 0xb10   : > { %v11348_v37 = vpop.eup %9716  ;;  %9041 = vmatpush3.bf16.msra.mxu0 %v2929_v2 }
 0xb11   : > { %v11350_v62 = vpop.eup %9718  ;;  %9042 = vmatprep.subr.bf16.mxu0 %v2927_v47  ;;  %v2626_v18 = vpack.c.bf16 %v11348_v37, %v11344_v49 }
 0xb12   : > { %v2627_v44 = vpack.c.bf16 %v11346_v35, %v11350_v62 }
 0xb13   : > { %9020 = vmatprep.mubr.msk.bf16.mxu1 %vm1052_vm2, %v2626_v18 }
 0xb14   : > { %9021 = vmatmul.mubr.msk.bf16.gmra.mxu1 %vm1052_vm2, %v2627_v44  ;;  %9043 = vmatpush3.bf16.msra.mxu0 %v2927_v47 }
 0xb15   : > { %9032 = vmatprep.mubr.msk.bf16.mxu1 %vm962_vm1, %v2742_v40 }
 0xb1c   : > { %9033 = vmatmul.mubr.msk.bf16.vlgmr.msra.gmra.mxu1 %vm962_vm1, %v2744_v25 }
 0xb1d   : > { %9036 = vmatprep.mubr.msk.bf16.mxu1 %vm962_vm1, %v2746_v24 }
 0xb24   : > { %9037 = vmatmul.mubr.msk.bf16.gmra.mxu1 %vm962_vm1, %v2748_v48 }
 0xb9a   : > { %v11362_v32 = vpop.f32.mrf.mxu1 }
 0xb9c   : > { %v11364_v7 = vpop.f32.mrf.mxu1 }
 0xb9e   : > { %v11366_v52 = vpop.f32.mrf.mxu1 }
 0xba0   : > { %v11368_v27 = vpop.f32.mrf.mxu1 }
 0xbd4   : > { %v11370_v56 = vpop.f32.mrf.mxu1 }
 0xbd5   : > { %14500 = vst [vmem:[#allocation53_spill] sm:$0xff] %v11370_v56 }
 0xbd6   : > { %v11372_v13 = vpop.f32.mrf.mxu1 }
 0xbd7   : > { %14501 = vst [vmem:[#allocation54_spill] sm:$0xff] %v11372_v13 }
 0xbd8   : > { %v11374_v20 = vpop.f32.mrf.mxu1 }
 0xbd9   : > { %14502 = vst [vmem:[#allocation55_spill] sm:$0xff] %v11374_v20 }
 0xbda   : > { %v11376_v40 = vpop.f32.mrf.mxu1 }
 0xbdb   : > { %14503 = vst [vmem:[#allocation56_spill] sm:$0xff] %v11376_v40 }
 0xbdc   : > { %v11378_v25 = vpop.f32.mrf.mxu1 }
 0xbdd   : > { %v2852_v48 = vsel %vm1052_vm2, %v11378_v25, -inf }
 0xbde   : > { %2853 = vmax.xlane.f32.xlu0 %v2852_v48  ;;  %v2815_v24 = vpop.f32.mrf.mxu1 }
 0xbdf   : > { %v2846_v2 = vsel %vm1052_vm2, %v2815_v24, -inf }
 0xbe0   : > { %v11382_v23 = vpop.f32.mrf.mxu1 }
 0xbe1   : > { %v2855_v44 = vsel %vm1052_vm2, %v11382_v23, -inf }
 0xbe2   : > { %2847 = vmax.xlane.f32.xlu0 %v2846_v2  ;;  %v2818_v47 = vpop.f32.mrf.mxu1 }
 0xbe3   : > { %v2849_v18 = vsel %vm1052_vm2, %v2818_v47, -inf }
 0xbe4   : > { %2850 = vmax.xlane.f32.xlu1 %v2849_v18  ;;  %v11392_v48 = vpop.f32.mrf.mxu1 }
 0xbe5   : > { %v2864_v18 = vsel %vm1052_vm2, %v11392_v48, -inf }
 0xbe6   : > { %2856 = vmax.xlane.f32.xlu0 %v2855_v44  ;;  %v11394_v13 = vpop.f32.mrf.mxu1 }
 0xbe7   : > { %v2858_v2 = vsel %vm1052_vm2, %v11394_v13, -inf }
 0xbe8   : > { %v11396_v40 = vpop.f32.mrf.mxu1 }
 0xbea   : > { %v11402_v44 = vpop.f32.mrf.mxu1 }
 0xbeb   : > { %v2861_v56 = vsel %vm1052_vm2, %v11402_v44, -inf }
 0xbf5   : > { %3043 = vrot.lane.b32.xlu1 %v10806_v46, %s10294_s24  ;;  %v2867_v46 = vsel %vm1052_vm2, %v11396_v40, -inf }
 0xbfc   : > { %2924 = vrot.lane.b32.xlu0 %v11054_v31, %s10293_s23 }
 0xc19   : > { %2859 = vmax.xlane.f32.xlu1 %v2858_v2  ;;  %v1976_v2 = vsel %vm1052_vm2, %v11123_v57, 0.0  ;;  %v1967_v57 = vsel %vm1052_vm2, %v11115_v15, 0.0  ;;  %v1692_v15 = vsel %vm1052_vm2, %v11033_v60, 0.0  ;;  %v1982_v60 = vsel %vm1052_vm2, %v11140_v42, 0.0 }
 0xc1b   : > { %2865 = vmax.xlane.f32.xlu0 %v2864_v18 }
 0xc1d   : > { %2868 = vmax.xlane.f32.xlu1 %v2867_v46 }
 0xc1f   : > { %2862 = vmax.xlane.f32.xlu0 %v2861_v56  ;;  %v1386_v56 = vsel %vm1052_vm2, %v10952_v59, 0.0 }
 0xc2e   : > { %3039 = vrot.lane.b32.xlu1 %v10784_v11, %s10294_s24  ;;  %v1383_v11 = vsel %vm1052_vm2, %v10950_v28, 0.0  ;;  %v1970_v28 = vsel %vm1052_vm2, %v11117_v8, 0.0 }
 0xc32   : > { %3033 = vrot.lane.b32.xlu1 %v10800_v29, %s14419_s25  ;;  %v1389_v29 = vsel %vm1052_vm2, %v10965_v30, 0.0 }
 0xc35   : > { %3041 = vrot.lane.b32.xlu0 %v10795_v43, %s10294_s24  ;;  %v1680_v43 = vsel %vm1052_vm2, %v11003_v36, 0.0  ;;  %v1677_v36 = vsel %vm1052_vm2, %v10999_v41, 0.0 }
 0xc36   : > { %3037 = vrot.lane.b32.xlu1 %v10822_v5, %s14419_s25  ;;  %v1392_v5 = vsel %vm1052_vm2, %v10961_v53, 0.0  ;;  %v1683_v53 = vsel %vm1052_vm2, %v11005_v6, 0.0  ;;  %v1404_v6 = vsel %vm1052_vm2, %v10991_v12, 0.0  ;;  %v1395_v12 = vsel %vm1052_vm2, %v10984_v9, 0.0 }
 0xc37   : > { %v1689_v9 = vsel %vm1052_vm2, %v11029_v51, 0.0  ;;  %v1695_v51 = vsel %vm1052_vm2, %v11035_v4, 0.0  ;;  %v1110_v4 = vsel %vm1052_vm2, %v10760_v39, 0.0 }
 0xc39   : > { %3031 = vrot.lane.b32.xlu0 %v10788_v16, %s14419_s25  ;;  %v1686_v16 = vsel %vm1052_vm2, %v11001_v26, 0.0 }
 0xc3d   : > { %3035 = vrot.lane.b32.xlu0 %v10810_v45, %s14419_s25  ;;  %v2923_v45 = vpop.permute.xlu1 %2922 }
 0xc41   : > { %v3046_v30 = vpop.permute.xlu1 %3045 }
 0xc5a   : > { %1387 = vadd.xlane.f32.xlu1 %v1386_v56  ;;  %v1398_v56 = vsel %vm1052_vm2, %v10989_v17, 0.0 }
 0xc5c   : > { %1384 = vadd.xlane.f32.xlu0 %v1383_v11 }
 0xc5e   : > { %1681 = vadd.xlane.f32.xlu1 %v1680_v43 }
 0xc60   : > { %1390 = vadd.xlane.f32.xlu0 %v1389_v29 }
 0xc62   : > { %1687 = vadd.xlane.f32.xlu1 %v1686_v16 }
 0xc64   : > { %1393 = vadd.xlane.f32.xlu0 %v1392_v5 }
 0xc66   : > { %1971 = vadd.xlane.f32.xlu1 %v1970_v28 }
 0xc67   : > { %v2854_v59 = vpop.xlane.xlu0 %2853 }
 0xc68   : > { %1678 = vadd.xlane.f32.xlu0 %v1677_v36  ;;  %v2872_v26 = vsub.f32 %v11378_v25, %v2854_v59  ;;  %v3069_v36 = vsel %vm962_vm1, %v3046_v30, 0 }
 0xc6a   : > { %1977 = vadd.xlane.f32.xlu1 %v1976_v2  ;;  %v2882_v43 = vmul.f32 1.442695, %v2872_v26  ;;  %v1104_v26 = vsel %vm1052_vm2, %v10765_v14, 0.0  ;;  %v1101_v14 = vsel %vm1052_vm2, %v10762_v55, 0.0 }
 0xc6b   : > { %v2848_v18 = vpop.xlane.xlu0 %2847 }
 0xc6c   : > { %v2870_v46 = vsub.f32 %v2815_v24, %v2848_v18  ;;  %1684 = vadd.xlane.f32.xlu0 %v1683_v53  ;;  %v1985_v18 = vsel %vm1052_vm2, %v11142_v22, 0.0  ;;  %v1107_v53 = vsel %vm1052_vm2, %v10768_v61, 0.0 }
 0xc6d   : > { %v2851_v8 = vpop.xlane.xlu1 %2850 }
 0xc6e   : > { %v2878_v11 = vmul.f32 1.442695, %v2870_v46  ;;  %v2871_v41 = vsub.f32 %v2818_v47, %v2851_v8  ;;  %1399 = vadd.xlane.f32.xlu1 %v1398_v56  ;;  %v1973_v47 = vsel %vm1052_vm2, %v11119_v33, 0.0  ;;  %v1401_v33 = vsel %vm1052_vm2, %v10986_v19, 0.0 }
 0xc6f   : > { %v2857_v29 = vpop.xlane.xlu0 %2856  ;;  %v1988_v19 = vsel %vm1052_vm2, %v11138_v38, 0.0  ;;  %v1979_v38 = vsel %vm1052_vm2, %v11136_v54, 0.0 }
 0xc70   : > { %v2880_v16 = vmul.f32 1.442695, %v2871_v41  ;;  %v2873_v25 = vsub.f32 %v11382_v23, %v2857_v29  ;;  %1968 = vadd.xlane.f32.xlu0 %v1967_v57  ;;  %9720 = vpow2.f32 %v2878_v11  ;;  %v1698_v23 = vsel %vm1052_vm2, %v11031_v63, 0.0 }
 0xc71   : > { %v3044_v2 = vpop.permute.xlu1 %3043 }
 0xc72   : > { %9722 = vpow2.f32 %v2880_v16  ;;  %v2884_v24 = vmul.f32 1.442695, %v2873_v25  ;;  %1405 = vadd.xlane.f32.xlu1 %v1404_v6 }
 0xc73   : > { %9724 = vpow2.f32 %v2882_v43  ;;  %v2925_v17 = vpop.permute.xlu0 %2924 }
 0xc74   : > { %9726 = vpow2.f32 %v2884_v24  ;;  %1974 = vadd.xlane.f32.xlu0 %v1973_v47  ;;  %9044 = vmatprep.subr.bf16.mxu0 %v2925_v17  ;;  %v14504_v47 = vld [vmem:[#allocation2_spill] sm:$0xff] }
 0xc75   : > { %9045 = vmatpush3.bf16.msra.mxu0 %v2925_v17  ;;  %v1116_v17 = vsel %vm1052_vm2, %v10820_v1, 0.0 }
 0xc76   : > { %1693 = vadd.xlane.f32.xlu1 %v1692_v15  ;;  %9046 = vmatprep.subr.bf16.mxu0 %v2923_v45  ;;  %v1113_v15 = vsel %vm1052_vm2, %v14504_v47, 0.0 }
 0xc78   : > { %1396 = vadd.xlane.f32.xlu0 %v1395_v12  ;;  %v14505_v12 = vld [vmem:[#allocation4_spill] sm:$0xff] }
 0xc79   : > { %9047 = vmatpush3.bf16.msra.mxu0 %v2923_v45 }
 0xc7a   : > { %1699 = vadd.xlane.f32.xlu1 %v1698_v23  ;;  %9508 = vmatprep.subr.msk.bf16.mxu0 %vm962_vm1, %v3046_v30  ;;  %v3066_v30 = vsel %vm962_vm1, %v3044_v2, 0  ;;  %v1119_v23 = vsel %vm1052_vm2, %v14505_v12, 0.0 }
 0xc7c   : > { %1402 = vadd.xlane.f32.xlu0 %v1401_v33 }
 0xc7d   : > { %v11461_v5 = vpop.eup %9720 }
 0xc7e   : > { %1983 = vadd.xlane.f32.xlu1 %v1982_v60 }
 0xc7f   : > { %v11463_v28 = vpop.eup %9722 }
 0xc80   : > { %v11467_v45 = vpop.eup %9724  ;;  %1690 = vadd.xlane.f32.xlu0 %v1689_v9  ;;  %v2918_v63 = vpack.c.bf16 %v11463_v28, %v11461_v5 }
 0xc81   : > { %v11471_v59 = vpop.eup %9726 }
 0xc82   : > { %v2919_v42 = vpack.c.bf16 %v11471_v59, %v11467_v45  ;;  %1989 = vadd.xlane.f32.xlu1 %v1988_v19  ;;  %9048 = vmatprep.mubr.msk.bf16.mxu0 %vm1052_vm2, %v2918_v63 }
 0xc84   : > { %1696 = vadd.xlane.f32.xlu0 %v1695_v51  ;;  %9049 = vmatmul.mubr.msk.bf16.vlgmr.msra.gmra.mxu0 %vm1052_vm2, %v2919_v42 }
 0xc85   : > { %9057 = vmatpush3.bf16.xpose.msra.mxu0 %v3069_v36 }
 0xc86   : > { %9509 = vmatprep.subr.msk.bf16.mxu0 %vm962_vm1, %v3044_v2  ;;  %1105 = vadd.xlane.f32.xlu1 %v1104_v26 }
 0xc88   : > { %1980 = vadd.xlane.f32.xlu0 %v1979_v38 }
 0xc8a   : > { %1111 = vadd.xlane.f32.xlu1 %v1110_v4 }
 0xc8c   : > { %1986 = vadd.xlane.f32.xlu0 %v1985_v18 }
 0xc8d   : > { %9059 = vmatpush3.bf16.xpose.msra.mxu0 %v3066_v30 }
 0xc90   : > { %1102 = vadd.xlane.f32.xlu0 %v1101_v14 }
 0xc94   : > { %1108 = vadd.xlane.f32.xlu0 %v1107_v53 }
 0xc9b   : > { %3216 = vrot.lane.b32.xlu1 %v11046_v0, %s14419_s25 }
 0xc9f   : > { %3214 = vrot.lane.b32.xlu1 %v11054_v31, %s14419_s25 }
 0xca2   : > { %v2860_v39 = vpop.xlane.xlu1 %2859 }
 0xca3   : > { %v2874_v54 = vsub.f32 %v11394_v13, %v2860_v39  ;;  %3212 = vrot.lane.b32.xlu1 %v11060_v50, %s14419_s25 }
 0xca4   : > { %v2866_v22 = vpop.xlane.xlu0 %2865 }
 0xca5   : > { %v2876_v55 = vsub.f32 %v11392_v48, %v2866_v22  ;;  %v2886_v8 = vmul.f32 1.442695, %v2874_v54 }
 0xca6   : > { %v2869_v46 = vpop.xlane.xlu1 %2868 }
 0xca7   : > { %v2877_v61 = vsub.f32 %v11396_v40, %v2869_v46  ;;  %v2890_v41 = vmul.f32 1.442695, %v2876_v55  ;;  %9728 = vpow2.f32 %v2886_v8 }
 0xca8   : > { %v2863_v56 = vpop.xlane.xlu0 %2862 }
 0xca9   : > { %v2892_v11 = vmul.f32 1.442695, %v2877_v61  ;;  %v2875_v0 = vsub.f32 %v11402_v44, %v2863_v56 }
 0xcaa   : > { %3218 = vrot.lane.b32.xlu0 %v11024_v34, %s14419_s25  ;;  %v3040_v48 = vpop.permute.xlu1 %3039  ;;  %s14731_s25 = sshll.u32 %s14733_s30, 7 }
 0xcab   : > { %v2888_v31 = vmul.f32 1.442695, %v2875_v0  ;;  %9730 = vpow2.f32 %v2892_v11  ;;  %v3060_v40 = vsel %vm962_vm1, %v3040_v48, 0 }
 0xcac   : > { %v3042_v13 = vpop.permute.xlu0 %3041 }
 0xcad   : > { %9732 = vpow2.f32 %v2888_v31  ;;  %9510 = vmatprep.subr.msk.bf16.mxu0 %vm962_vm1, %v3042_v13  ;;  %v3063_v50 = vsel %vm962_vm1, %v3042_v13, 0 }
 0xcae   : > { %9734 = vpow2.f32 %v2890_v41  ;;  %9061 = vmatpush3.bf16.xpose.msra.mxu0 %v3063_v50  ;;  %v3034_v6 = vpop.permute.xlu1 %3033 }
 0xcaf   : > { %9511 = vmatprep.subr.msk.bf16.mxu0 %vm962_vm1, %v3040_v48 }
 0xcb0   : > { %v3032_v25 = vpop.permute.xlu0 %3031 }
 0xcb2   : > { %v3038_v33 = vpop.permute.xlu1 %3037 }
 0xcb4   : > { %v11512_v44 = vpop.eup %9728  ;;  %v3036_v24 = vpop.permute.xlu0 %3035 }
 0xcb6   : > { %9063 = vmatpush3.bf16.xpose.msra.mxu0 %v3060_v40 }
 0xcb8   : > { %v11514_v34 = vpop.eup %9730 }
 0xcba   : > { %v11516_v43 = vpop.eup %9732 }
 0xcbb   : > { %v11518_v29 = vpop.eup %9734  ;;  %v2920_v57 = vpack.c.bf16 %v11516_v43, %v11512_v44 }
 0xcbc   : > { %v2921_v16 = vpack.c.bf16 %v11514_v34, %v11518_v29 }
 0xcbd   : > { %9052 = vmatprep.mubr.msk.bf16.mxu0 %vm1052_vm2, %v2920_v57 }
 0xcbe   : > { %9053 = vmatmul.mubr.msk.bf16.gmra.mxu0 %vm1052_vm2, %v2921_v16 }
 0xcbf   : > { %9064 = vmatprep.mubr.msk.bf16.mxu0 %vm962_vm1, %v3032_v25 }
 0xcc6   : > { %9065 = vmatmul.mubr.msk.bf16.vlgmr.msra.gmra.mxu0 %vm962_vm1, %v3034_v6 }
 0xcc7   : > { %1117 = vadd.xlane.f32.xlu1 %v1116_v17  ;;  %9068 = vmatprep.mubr.msk.bf16.mxu0 %vm962_vm1, %v3036_v24 }
 0xcc9   : > { %1114 = vadd.xlane.f32.xlu0 %v1113_v15 }
 0xccd   : > { %1120 = vadd.xlane.f32.xlu0 %v1119_v23 }
 0xcce   : > { %9069 = vmatmul.mubr.msk.bf16.gmra.mxu0 %vm962_vm1, %v3038_v33 }
 0xce3   : > { %v11536_v60 = vpop.xlane.xlu1 %1387 }
 0xce5   : > { %v11538_v9 = vpop.xlane.xlu0 %1384 }
 0xce7   : > { %v11540_v63 = vpop.xlane.xlu1 %1681 }
 0xce9   : > { %v1391_v1 = vpop.xlane.xlu0 %1390 }
 0xceb   : > { %v11542_v19 = vpop.xlane.xlu1 %1687 }
 0xced   : > { %v1394_v42 = vpop.xlane.xlu0 %1393 }
 0xcee   : > { %9736 = vrcp.f32 %v1394_v42 }
 0xcef   : > { %v11544_v51 = vpop.xlane.xlu1 %1971  ;;  %9738 = vrcp.f32 %v1391_v1  ;;  %v14512_v1 = vld [vmem:[#allocation3_spill] sm:$0xff] }
 0xcf1   : > { %v1679_v36 = vpop.xlane.xlu0 %1678 }
 0xcf2   : > { %9740 = vrcp.f32 %v1679_v36 }
 0xcf3   : > { %v11546_v2 = vpop.xlane.xlu1 %1977  ;;  %9742 = vrcp.f32 %v11540_v63  ;;  %v14514_v63 = vld [vmem:[#allocation13_spill] sm:$0xff] }
 0xcf4   : > { %9744 = vrcp.f32 %v11538_v9  ;;  %v14516_v9 = vld [vmem:[#allocation24_spill] sm:$0xff] }
 0xcf5   : > { %v11548_v26 = vpop.xlane.xlu0 %1684  ;;  %9746 = vrcp.f32 %v11536_v60 }
 0xcf7   : > { %v11550_v38 = vpop.xlane.xlu1 %1399 }
 0xcf9   : > { %v11552_v4 = vpop.xlane.xlu0 %1968 }
 0xcfa   : > { %9748 = vrcp.f32 %v11552_v4 }
 0xcfb   : > { %v11554_v18 = vpop.xlane.xlu1 %1405  ;;  %v9737_v36 = vpop.eup %9736  ;;  %9750 = vrcp.f32 %v11544_v51 }
 0xcfd   : > { %v11556_v30 = vpop.xlane.xlu0 %1974 }
 0xcff   : > { %v11558_v14 = vpop.xlane.xlu1 %1693 }
 0xd01   : > { %v11560_v53 = vpop.xlane.xlu0 %1396 }
 0xd02   : > { %9752 = vrcp.f32 %v11560_v53 }
 0xd03   : > { %v11562_v39 = vpop.xlane.xlu1 %1699  ;;  %9754 = vrcp.f32 %v11550_v38 }
 0xd05   : > { %v11564_v54 = vpop.xlane.xlu0 %1402 }
 0xd07   : > { %v11566_v22 = vpop.xlane.xlu1 %1983 }
 0xd09   : > { %v11568_v55 = vpop.xlane.xlu0 %1690 }
 0xd0a   : > { %9756 = vrcp.f32 %v11568_v55 }
 0xd0b   : > { %v11570_v46 = vpop.xlane.xlu1 %1989  ;;  %9758 = vrcp.f32 %v11558_v14 }
 0xd0d   : > { %v11572_v8 = vpop.xlane.xlu0 %1696 }
 0xd0f   : > { %v11576_v56 = vpop.xlane.xlu1 %1105 }
 0xd11   : > { %v11574_v61 = vpop.xlane.xlu0 %1980 }
 0xd12   : > { %9760 = vrcp.f32 %v11574_v61 }
 0xd13   : > { %v11580_v0 = vpop.xlane.xlu1 %1111  ;;  %9762 = vrcp.f32 %v11566_v22 }
 0xd14   : > { %9764 = vrcp.f32 %v11548_v26 }
 0xd15   : > { %v11578_v11 = vpop.xlane.xlu0 %1986  ;;  %9766 = vrcp.f32 %v11542_v19  ;;  %v14527_v19 = vld [vmem:[#allocation21_spill] sm:$0xff] }
 0xd16   : > { %9768 = vrcp.f32 %v11556_v30 }
 0xd17   : > { %v3217_v13 = vpop.permute.xlu1 %3216 }
 0xd19   : > { %v11582_v41 = vpop.xlane.xlu0 %1102 }
 0xd1b   : > { %v3215_v48 = vpop.permute.xlu1 %3214 }
 0xd1d   : > { %v11584_v31 = vpop.xlane.xlu0 %1108 }
 0xd1f   : > { %v3213_v40 = vpop.permute.xlu1 %3212 }
 0xd21   : > { %v3219_v50 = vpop.permute.xlu0 %3218 }
 0xd22   : > { %9072 = vmatprep.subr.bf16.mxu1 %v3219_v50 }
 0xd23   : > { %9073 = vmatpush3.bf16.msra.mxu1 %v3219_v50 }
 0xd24   : > { %9074 = vmatprep.subr.bf16.mxu1 %v3217_v13 }
 0xd27   : > { %9075 = vmatpush3.bf16.msra.mxu1 %v3217_v13 }
 0xd28   : > { %9076 = vmatprep.subr.bf16.mxu1 %v3215_v48 }
 0xd2b   : > { %9077 = vmatpush3.bf16.msra.mxu1 %v3215_v48 }
 0xd2c   : > { %9078 = vmatprep.subr.bf16.mxu1 %v3213_v40 }
 0xd2f   : > { %9079 = vmatpush3.bf16.msra.mxu1 %v3213_v40 }
 0xd44   : > { %v11586_v57 = vpop.f32.mrf.mxu0 }
 0xd45   : > { %14506 = vst [vmem:[#allocation2_spill] sm:$0xff] %v11586_v57  ;;  %v14515_v57 = vld [vmem:[#allocation22_spill] sm:$0xff] }
 0xd46   : > { %v11588_v16 = vpop.f32.mrf.mxu0 }
 0xd48   : > { %v11590_v25 = vpop.f32.mrf.mxu0 }
 0xd49   : > { %14507 = vst [vmem:[#allocation4_spill] sm:$0xff] %v11590_v25 }
 0xd4a   : > { %v11592_v6 = vpop.f32.mrf.mxu0 }
 0xd7e   : > { %v11594_v24 = vpop.f32.mrf.mxu0 }
 0xd7f   : > { %14508 = vst [vmem:[#allocation57_spill] sm:$0xff] %v11594_v24  ;;  %v9739_v24 = vpop.eup %9738  ;;  %9770 = vrcp.f32 %v11546_v2 }
 0xd80   : > { %v11596_v17 = vpop.f32.mrf.mxu0  ;;  %v1514_v20 = vmul.f32 %v9739_v24, %v14514_v63  ;;  %v14518_v24 = vld [vmem:[#allocation16_spill] sm:$0xff] }
 0xd81   : > { %14509 = vst [vmem:[#allocation58_spill] sm:$0xff] %v11596_v17 }
 0xd82   : > { %v11598_v47 = vpop.f32.mrf.mxu0 }
 0xd83   : > { %14510 = vst [vmem:[#allocation59_spill] sm:$0xff] %v11598_v47  ;;  %v9741_v47 = vpop.eup %9740  ;;  %9772 = vrcp.f32 %v11564_v54  ;;  %v2600_v54 = vsel %vm1052_vm2, %v11319_v3, 0.0  ;;  %v14532_v3 = vld [vmem:[#allocation19_spill] sm:$0xff] }
 0xd84   : > { %v11600_v15 = vpop.f32.mrf.mxu0  ;;  %v9743_v25 = vpop.eup %9742  ;;  %9774 = vrcp.f32 %v11554_v18 }
 0xd85   : > { %14511 = vst [vmem:[#allocation60_spill] sm:$0xff] %v11600_v15  ;;  %v9745_v4 = vpop.eup %9744  ;;  %9776 = vrcp.f32 %v11572_v8 }
 0xd86   : > { %v11602_v12 = vpop.f32.mrf.mxu0  ;;  %v9747_v51 = vpop.eup %9746  ;;  %9778 = vrcp.f32 %v11562_v39  ;;  %v14530_v39 = vld [vmem:[#allocation31_spill] sm:$0xff] }
 0xd87   : > { %v3142_v23 = vsel %vm1052_vm2, %v11602_v12, -inf  ;;  %v9749_v53 = vpop.eup %9748  ;;  %9780 = vrcp.f32 %v11578_v11 }
 0xd88   : > { %3143 = vmax.xlane.f32.xlu0 %v3142_v23  ;;  %v11606_v33 = vpop.f32.mrf.mxu0 }
 0xd89   : > { %v3136_v50 = vsel %vm1052_vm2, %v11606_v33, -inf }
 0xd8a   : > { %v11608_v13 = vpop.f32.mrf.mxu0 }
 0xd8b   : > { %v3145_v48 = vsel %vm1052_vm2, %v11608_v13, -inf }
 0xd8c   : > { %3137 = vmax.xlane.f32.xlu0 %v3136_v50  ;;  %3146 = vmax.xlane.f32.xlu1 %v3145_v48  ;;  %v11614_v40 = vpop.f32.mrf.mxu0  ;;  %v1122_v48 = vsel %vm1052_vm2, %v14512_v1, 0.0  ;;  %v1802_v1 = vmul.f32 %v9741_v47, %v14515_v57  ;;  %v9751_v47 = vpop.eup %9750  ;;  %9782 = vrcp.f32 %v11570_v46 }
 0xd8d   : > { %v3139_v23 = vsel %vm1052_vm2, %v11614_v40, -inf  ;;  %v9753_v55 = vpop.eup %9752 }
 0xd8e   : > { %v11616_v17 = vpop.f32.mrf.mxu0  ;;  %v9755_v14 = vpop.eup %9754 }
 0xd8f   : > { %v3154_v42 = vsel %vm1052_vm2, %v11616_v17, -inf }
 0xd90   : > { %3140 = vmax.xlane.f32.xlu1 %v3139_v23  ;;  %3155 = vmax.xlane.f32.xlu0 %v3154_v42  ;;  %v11622_v15 = vpop.f32.mrf.mxu0  ;;  %v14513_v23 = vld [vmem:[#allocation15_spill] sm:$0xff] }
 0xd91   : > { %v3148_v50 = vsel %vm1052_vm2, %v11622_v15, -inf  ;;  %v1515_v42 = vmul.f32 %v9737_v36, %v14513_v23  ;;  %v14519_v36 = vld [vmem:[#allocation30_spill] sm:$0xff] }
 0xd92   : > { %v2092_v23 = vmul.f32 %v9749_v53, %v14519_v36  ;;  %v14524_v53 = vld [vmem:[#allocation28_spill] sm:$0xff] }
 0xd94   : > { %3149 = vmax.xlane.f32.xlu0 %v3148_v50  ;;  %v1521_v50 = vpack.c.bf16 %v1515_v42, %v1514_v20  ;;  %v14517_v20 = vld [vmem:[#allocation14_spill] sm:$0xff]  ;;  %v14520_v42 = vld [vmem:[#allocation32_spill] sm:$0xff] }
 0xd95   : > { %v1512_v57 = vmul.f32 %v9745_v4, %v14517_v20  ;;  %v2093_v63 = vmul.f32 %v9751_v47, %v14520_v42 }
 0xd98   : > { %1123 = vadd.xlane.f32.xlu0 %v1122_v48  ;;  %v1803_v48 = vmul.f32 %v9743_v25, %v14516_v9  ;;  %v1513_v25 = vmul.f32 %v9747_v51, %v14518_v24  ;;  %v9757_v9 = vpop.eup %9756  ;;  %v14523_v51 = vld [vmem:[#allocation26_spill] sm:$0xff] }
 0xd99   : > { %v1806_v20 = vmul.f32 %v9757_v9, %v14523_v51 }
 0xd9a   : > { %v1810_v60 = vpack.c.bf16 %v1803_v48, %v1802_v1  ;;  %v1520_v38 = vpack.c.bf16 %v1513_v25, %v1512_v57  ;;  %v14521_v1 = vld [vmem:[#allocation18_spill] sm:$0xff]  ;;  %v14522_v48 = vld [vmem:[#allocation20_spill] sm:$0xff] }
 0xd9b   : > { %v1516_v61 = vmul.f32 %v9753_v55, %v14521_v1  ;;  %v1517_v22 = vmul.f32 %v9755_v14, %v14522_v48  ;;  %v14528_v48 = vld [vmem:[#allocation23_spill] sm:$0xff] }
 0xd9d   : > { %v1522_v4 = vpack.c.bf16 %v1517_v22, %v1516_v61 }
 0xda1   : > { %2110 = vrot.lane.b32.xlu1 %v1521_v50, %s10294_s24  ;;  %v2100_v50 = vpack.c.bf16 %v2093_v63, %v2092_v23  ;;  %v14526_v23 = vld [vmem:[#allocation36_spill] sm:$0xff]  ;;  %v11660_v63 = vpop.f32.mrf.mxu0 }
 0xda2   : > { %v3157_v14 = vsel %vm1052_vm2, %v11660_v63, -inf }
 0xda5   : > { %2120 = vrot.lane.b32.xlu1 %v1810_v60, %s10291_s21  ;;  %v9759_v60 = vpop.eup %9758 }
 0xda6   : > { %v9761_v57 = vpop.eup %9760  ;;  %v1807_v24 = vmul.f32 %v9759_v60, %v14524_v53  ;;  %v14529_v60 = vld [vmem:[#allocation29_spill] sm:$0xff] }
 0xda7   : > { %v9763_v25 = vpop.eup %9762 }
 0xda8   : > { %v1812_v47 = vpack.c.bf16 %v1807_v24, %v1806_v20  ;;  %v2097_v55 = vmul.f32 %v9763_v25, %v14526_v23  ;;  %v9765_v26 = vpop.eup %9764  ;;  %v2606_v20 = vsel %vm1052_vm2, %v11323_v10, 0.0  ;;  %v14533_v10 = vld [vmem:[#allocation25_spill] sm:$0xff] }
 0xda9   : > { %v9767_v61 = vpop.eup %9766  ;;  %v1804_v30 = vmul.f32 %v9765_v26, %v14527_v19 }
 0xdaa   : > { %v9769_v9 = vpop.eup %9768  ;;  %v1805_v22 = vmul.f32 %v9767_v61, %v14528_v48  ;;  %v2894_v61 = vsel %vm1052_vm2, %v11461_v5, 0.0  ;;  %v2618_v5 = vsel %vm1052_vm2, %v11350_v62, 0.0  ;;  %v14539_v62 = vld [vmem:[#allocation41_spill] sm:$0xff] }
 0xdab   : > { %v9771_v2 = vpop.eup %9770  ;;  %v2094_v8 = vmul.f32 %v9769_v9, %v14529_v60  ;;  %v2912_v60 = vsel %vm1052_vm2, %v11518_v29, 0.0  ;;  %v11729_v29 = vpop.xlane.xlu1 %1117 }
 0xdac   : > { %v1811_v18 = vpack.c.bf16 %v1805_v22, %v1804_v30  ;;  %v2095_v11 = vmul.f32 %v9771_v2, %v14530_v39  ;;  %v14535_v30 = vld [vmem:[#allocation33_spill] sm:$0xff]  ;;  %v2900_v22 = vsel %vm1052_vm2, %v11467_v45, 0.0  ;;  %v11721_v39 = vpop.xlane.xlu0 %1114 }
 0xdad   : > { %v14537_v45 = vld [vmem:[#allocation37_spill] sm:$0xff] }
 0xdae   : > { %2108 = vrot.lane.b32.xlu0 %v1520_v38, %s10294_s24  ;;  %v14525_v38 = vld [vmem:[#allocation34_spill] sm:$0xff]  ;;  %v2101_v46 = vpack.c.bf16 %v2095_v11, %v2094_v8  ;;  %v2318_v8 = vsel %vm1052_vm2, %v14537_v45, 0.0  ;;  %v2330_v11 = vsel %vm1052_vm2, %v14539_v62, 0.0 }
 0xdaf   : > { %v2096_v36 = vmul.f32 %v9761_v57, %v14525_v38  ;;  %v14531_v57 = vld [vmem:[#allocation17_spill] sm:$0xff] }
 0xdb0   : > { %v11693_v38 = vld [vmem:[%s14394_s4 + $0x18] sm:$0xff]  }
 0xdb1   : > { %v2102_v42 = vpack.c.bf16 %v2097_v55, %v2096_v36  ;;  %v2609_v36 = vsel %vm1052_vm2, %v11327_v58, 0.0  ;;  %9088 = vmatprep.subr.bf16.mxu1 %v11693_v38  ;;  %v14536_v58 = vld [vmem:[#allocation35_spill] sm:$0xff] }
 0xdb2   : > { %2132 = vrot.lane.b32.xlu0 %v2100_v50, %s10290_s20  ;;  %v11665_v50 = vpop.f32.mrf.mxu0 }
 0xdb3   : > { %v3151_v1 = vsel %vm1052_vm2, %v11665_v50, -inf }
 0xdb6   : > { %2112 = vrot.lane.b32.xlu0 %v1522_v4, %s10294_s24  ;;  %v9773_v4 = vpop.eup %9772 }
 0xdb7   : > { %v9775_v51 = vpop.eup %9774  ;;  %v1518_v53 = vmul.f32 %v9773_v4, %v14531_v57  ;;  %v14538_v4 = vld [vmem:[#allocation39_spill] sm:$0xff]  ;;  %v2603_v57 = vsel %vm1052_vm2, %v11321_v21, 0.0 }
 0xdb8   : > { %v9777_v24 = vpop.eup %9776  ;;  %v1519_v25 = vmul.f32 %v9775_v51, %v14532_v3  ;;  %v2897_v3 = vsel %vm1052_vm2, %v11463_v28, 0.0  ;;  %v2615_v28 = vsel %vm1052_vm2, %v11348_v37, 0.0 }
 0xdb9   : > { %v1808_v55 = vmul.f32 %v9777_v24, %v14533_v10 }
 0xdba   : > { %2124 = vrot.lane.b32.xlu0 %v1812_v47, %s10291_s21  ;;  %v9779_v47 = vpop.eup %9778  ;;  %v1523_v23 = vpack.c.bf16 %v1519_v25, %v1518_v53 }
 0xdbe   : > { %2136 = vrot.lane.b32.xlu0 %v2102_v42, %s10290_s20  ;;  %v9781_v42 = vpop.eup %9780 }
 0xdbf   : > { %v9783_v26 = vpop.eup %9782  ;;  %v2098_v9 = vmul.f32 %v9781_v42, %v14535_v30  ;;  %v2903_v42 = vsel %vm1052_vm2, %v11471_v59, 0.0  ;;  %v2909_v59 = vsel %vm1052_vm2, %v11516_v43, 0.0  ;;  %v14541_v43 = vld [vmem:[#allocation38_spill] sm:$0xff]  ;;  %v14542_v30 = vld [vmem:[#allocation40_spill] sm:$0xff] }
 0xdc0   : > { %v2099_v48 = vmul.f32 %v9783_v26, %v14536_v58  ;;  %v9568_v58 = vld [vmem:[%s14394_s4 + $0x8] sm:$0xff]  }
 0xdc2   : > { %v2103_v2 = vpack.c.bf16 %v2099_v48, %v2098_v9  ;;  %v2327_v9 = vsel %vm1052_vm2, %v14542_v30, 0.0  ;;  %v14543_v48 = vld [vmem:[#allocation43_spill] sm:$0xff]  ;;  %v14548_v30 = vld [vmem:[#allocation10_spill] sm:$0xff] }
 0xdc9   : > { %3158 = vmax.xlane.f32.xlu1 %v3157_v14  ;;  %v14534_v14 = vld [vmem:[#allocation27_spill] sm:$0xff] }
 0xdcd   : > { %3152 = vmax.xlane.f32.xlu1 %v3151_v1  ;;  %v1809_v1 = vmul.f32 %v9779_v47, %v14534_v14 }
 0xdcf   : > { %v1813_v19 = vpack.c.bf16 %v1809_v1, %v1808_v55 }
 0xddd   : > { %2601 = vadd.xlane.f32.xlu0 %v2600_v54  ;;  %v2612_v54 = vsel %vm1052_vm2, %v11344_v49, 0.0  ;;  %v2324_v49 = vsel %vm1052_vm2, %v14538_v4, 0.0 }
 0xdde   : > { %2122 = vrot.lane.b32.xlu1 %v1811_v18, %s10291_s21  ;;  %v2906_v18 = vsel %vm1052_vm2, %v11512_v44, 0.0  ;;  %v14540_v44 = vld [vmem:[#allocation44_spill] sm:$0xff] }
 0xddf   : > { %v2336_v51 = vsel %vm1052_vm2, %v14540_v44, 0.0 }
 0xde1   : > { %2607 = vadd.xlane.f32.xlu0 %v2606_v20  ;;  %v11727_v20 = vpop.xlane.xlu0 %1120 }
 0xde2   : > { %2134 = vrot.lane.b32.xlu1 %v2101_v46, %s10290_s20 }
 0xde5   : > { %2610 = vadd.xlane.f32.xlu0 %v2609_v36 }
 0xde6   : > { %2114 = vrot.lane.b32.xlu1 %v1523_v23, %s10294_s24 }
 0xde9   : > { %2895 = vadd.xlane.f32.xlu0 %v2894_v61 }
 0xdea   : > { %2126 = vrot.lane.b32.xlu1 %v1813_v19, %s10291_s21  ;;  %v2321_v19 = vsel %vm1052_vm2, %v14541_v43, 0.0 }
 0xded   : > { %2901 = vadd.xlane.f32.xlu0 %v2900_v22  ;;  %v2333_v22 = vsel %vm1052_vm2, %v14543_v48, 0.0  ;;  %v14549_v48 = vld [vmem:[#allocation7_spill] sm:$0xff] }
 0xdee   : > { %2138 = vrot.lane.b32.xlu1 %v2103_v2, %s10290_s20  ;;  %v9569_v2 = vld [vmem:[%s14394_s4] sm:$0xff]  }
 0xdf1   : > { %2613 = vadd.xlane.f32.xlu0 %v2612_v54  ;;  %v14544_v54 = vld [vmem:[#allocation42_spill] sm:$0xff] }
 0xdf5   : > { %2619 = vadd.xlane.f32.xlu0 %v2618_v5  ;;  %v2339_v5 = vsel %vm1052_vm2, %v14544_v54, 0.0 }
 0xdf9   : > { %2907 = vadd.xlane.f32.xlu0 %v2906_v18 }
 0xdfd   : > { %2913 = vadd.xlane.f32.xlu0 %v2912_v60 }
 0xe01   : > { %2319 = vadd.xlane.f32.xlu0 %v2318_v8 }
 0xe05   : > { %2325 = vadd.xlane.f32.xlu0 %v2324_v49 }
 0xe09   : > { %2331 = vadd.xlane.f32.xlu0 %v2330_v11 }
 0xe0d   : > { %2337 = vadd.xlane.f32.xlu0 %v2336_v51 }
 0xe11   : > { %v3144_v46 = vpop.xlane.xlu0 %3143 }
 0xe12   : > { %2604 = vadd.xlane.f32.xlu1 %v2603_v57  ;;  %v3162_v36 = vsub.f32 %v11602_v12, %v3144_v46  ;;  %v2621_v12 = vsel %vm1052_vm2, %v11346_v35, 0.0 }
 0xe14   : > { %v3172_v14 = vmul.f32 1.442695, %v3162_v36 }
 0xe15   : > { %v3147_v53 = vpop.xlane.xlu1 %3146  ;;  %v3138_v24 = vpop.xlane.xlu0 %3137 }
 0xe16   : > { %v3163_v25 = vsub.f32 %v11608_v13, %v3147_v53  ;;  %v3160_v47 = vsub.f32 %v11606_v33, %v3138_v24  ;;  %2898 = vadd.xlane.f32.xlu1 %v2897_v3  ;;  %v2915_v13 = vsel %vm1052_vm2, %v11514_v34, 0.0  ;;  %v9567_v34 = vld [vmem:[%s14394_s4 + $0x10] sm:$0xff]  }
 0xe18   : > { %v3174_v23 = vmul.f32 1.442695, %v3163_v25  ;;  %v3168_v10 = vmul.f32 1.442695, %v3160_v47  ;;  %v14545_v47 = vld [vmem:[#allocation6_spill] sm:$0xff] }
 0xe19   : > { %v3141_v55 = vpop.xlane.xlu1 %3140 }
 0xe1a   : > { %v3161_v21 = vsub.f32 %v11614_v40, %v3141_v55  ;;  %2904 = vadd.xlane.f32.xlu1 %v2903_v42  ;;  %9784 = vpow2.f32 %v3174_v23 }
 0xe1b   : > { %9786 = vpow2.f32 %v3168_v10 }
 0xe1c   : > { %v3170_v1 = vmul.f32 1.442695, %v3161_v21 }
 0xe1d   : > { %v11781_v45 = vpop.permute.xlu1 %2110 }
 0xe1e   : > { %9788 = vpow2.f32 %v3170_v1  ;;  %2616 = vadd.xlane.f32.xlu1 %v2615_v28 }
 0xe1f   : > { %9790 = vpow2.f32 %v3172_v14 }
 0xe20   : > { %9792 = vrcp.f32 %v11582_v41 }
 0xe21   : > { %v2121_v4 = vpop.permute.xlu1 %2120  ;;  %9794 = vrcp.f32 %v11576_v56 }
 0xe22   : > { %2622 = vadd.xlane.f32.xlu1 %v2621_v12  ;;  %9796 = vrcp.f32 %v11584_v31 }
 0xe23   : > { %9798 = vrcp.f32 %v11721_v39  ;;  %v14546_v39 = vld [vmem:[#allocation8_spill] sm:$0xff] }
 0xe26   : > { %2910 = vadd.xlane.f32.xlu1 %v2909_v59 }
 0xe27   : > { %v11747_v33 = vpop.eup %9784 }
 0xe28   : > { %v11751_v40 = vpop.eup %9786 }
 0xe2a   : > { %2916 = vadd.xlane.f32.xlu1 %v2915_v13 }
 0xe2b   : > { %v11753_v37 = vpop.eup %9788 }
 0xe2c   : > { %v11755_v26 = vpop.eup %9790  ;;  %v3208_v35 = vpack.c.bf16 %v11753_v37, %v11751_v40 }
 0xe2d   : > { %v3209_v61 = vpack.c.bf16 %v11747_v33, %v11755_v26  ;;  %v9793_v56 = vpop.eup %9792 }
 0xe2e   : > { %2322 = vadd.xlane.f32.xlu1 %v2321_v19  ;;  %9080 = vmatprep.mubr.msk.bf16.mxu1 %vm1052_vm2, %v3208_v35  ;;  %v9795_v25 = vpop.eup %9794  ;;  %v1214_v31 = vmul.f32 %v9793_v56, %v14545_v47 }
 0xe2f   : > { %9081 = vmatmul.mubr.msk.bf16.vlgmr.msra.gmra.mxu1 %vm1052_vm2, %v3209_v61  ;;  %v1215_v23 = vmul.f32 %v9795_v25, %v14546_v39  ;;  %v14547_v61 = vld [vmem:[#allocation5_spill] sm:$0xff] }
 0xe30   : > { %9089 = vmatpush3.bf16.msra.mxu1 %v11693_v38  ;;  %v3156_v38 = vpop.xlane.xlu0 %3155 }
 0xe31   : > { %9090 = vmatprep.subr.bf16.mxu1 %v9567_v34  ;;  %v3166_v51 = vsub.f32 %v11616_v17, %v3156_v38  ;;  %v1222_v42 = vpack.c.bf16 %v1215_v23, %v1214_v31 }
 0xe32   : > { %2328 = vadd.xlane.f32.xlu1 %v2327_v9 }
 0xe34   : > { %9091 = vmatpush3.bf16.msra.mxu1 %v9567_v34  ;;  %v3150_v18 = vpop.xlane.xlu0 %3149 }
 0xe35   : > { %9092 = vmatprep.subr.bf16.mxu1 %v9568_v58  ;;  %v3164_v62 = vsub.f32 %v11622_v15, %v3150_v18  ;;  %v3180_v15 = vmul.f32 1.442695, %v3166_v51 }
 0xe36   : > { %2334 = vadd.xlane.f32.xlu1 %v2333_v22 }
 0xe37   : > { %v3176_v46 = vmul.f32 1.442695, %v3164_v62 }
 0xe38   : > { %9093 = vmatpush3.bf16.msra.mxu1 %v9568_v58  ;;  %v1124_v60 = vpop.xlane.xlu0 %1123 }
 0xe39   : > { %9094 = vmatprep.subr.bf16.mxu1 %v9569_v2  ;;  %9800 = vpow2.f32 %v3176_v46  ;;  %v14551_v46 = vld [vmem:[#allocation11_spill] sm:$0xff] }
 0xe3a   : > { %2340 = vadd.xlane.f32.xlu1 %v2339_v5 }
 0xe3c   : > { %9095 = vmatpush3.bf16.msra.mxu1 %v9569_v2  ;;  %v2109_v8 = vpop.permute.xlu0 %2108  ;;  %v14550_v2 = vld [vmem:[#allocation12_spill] sm:$0xff] }
 0xe3d   : > { %v2142_v1 = vsel %vm962_vm1, %v1222_v42, %v2109_v8 }
 0xe3e   : > { %v2153_v19 = vsel %vm487_vm0, %v2142_v1, %v2121_v4 }
 0xe40   : > { %v2133_v49 = vpop.permute.xlu0 %2132 }
 0xe41   : > { %v2162_v34 = vsel %vm2160_vm3, %v2153_v19, %v2133_v49  ;;  %v14553_v19 = vld [vmem:[#allocation2_spill] sm:$0xff] }
 0xe44   : > { %v2113_v57 = vpop.permute.xlu0 %2112 }
 0xe52   : > { %v3159_v11 = vpop.xlane.xlu1 %3158 }
 0xe53   : > { %v3167_v44 = vsub.f32 %v11660_v63, %v3159_v11  ;;  %v2125_v63 = vpop.permute.xlu0 %2124 }
 0xe55   : > { %v3182_v53 = vmul.f32 1.442695, %v3167_v44 }
 0xe56   : > { %v3153_v24 = vpop.xlane.xlu1 %3152 }
 0xe57   : > { %v3165_v3 = vsub.f32 %v11665_v50, %v3153_v24  ;;  %9802 = vpow2.f32 %v3182_v53  ;;  %v2137_v36 = vpop.permute.xlu0 %2136  ;;  %v9797_v50 = vpop.eup %9796 }
 0xe58   : > { %v9799_v10 = vpop.eup %9798  ;;  %v1216_v43 = vmul.f32 %v9797_v50, %v14547_v61 }
 0xe59   : > { %v3178_v41 = vmul.f32 1.442695, %v3165_v3  ;;  %v11796_v55 = vpop.eup %9800  ;;  %v1218_v9 = vmul.f32 %v9799_v10, %v14548_v30  ;;  %v14552_v3 = vld [vmem:[#allocation9_spill] sm:$0xff]  ;;  %v14554_v30 = vld [vmem:[#allocation4_spill] sm:$0xff] }
 0xe5a   : > { %v2123_v17 = vpop.permute.xlu1 %2122 }
 0xe5b   : > { %9804 = vpow2.f32 %v3178_v41 }
 0xe5c   : > { %9806 = vpow2.f32 %v3180_v15 }
 0xe5d   : > { %9808 = vrcp.f32 %v11580_v0 }
 0xe5e   : > { %9810 = vrcp.f32 %v11729_v29  ;;  %v2135_v21 = vpop.permute.xlu1 %2134 }
 0xe5f   : > { %9812 = vrcp.f32 %v1124_v60 }
 0xe60   : > { %9814 = vrcp.f32 %v11727_v20 }
 0xe62   : > { %v2115_v58 = vpop.permute.xlu1 %2114 }
 0xe64   : > { %v11798_v14 = vpop.eup %9802 }
 0xe66   : > { %v2602_v0 = vpop.xlane.xlu0 %2601  ;;  %v2127_v11 = vpop.permute.xlu1 %2126 }
 0xe68   : > { %v11800_v29 = vpop.eup %9804 }
 0xe69   : > { %v11803_v28 = vpop.eup %9806  ;;  %v3210_v12 = vpack.c.bf16 %v11800_v29, %v11796_v55 }
 0xe6a   : > { %v9809_v59 = vpop.eup %9808  ;;  %v2608_v13 = vpop.xlane.xlu0 %2607  ;;  %v3211_v20 = vpack.c.bf16 %v11798_v14, %v11803_v28 }
 0xe6b   : > { %v9811_v35 = vpop.eup %9810  ;;  %9084 = vmatprep.mubr.msk.bf16.mxu1 %vm1052_vm2, %v3210_v12  ;;  %v1217_v22 = vmul.f32 %v9809_v59, %v14549_v48  ;;  %9816 = vrcp.f32 %v2608_v13  ;;  %v2139_v41 = vpop.permute.xlu1 %2138  ;;  %v3193_v48 = vsel %vm1052_vm2, %v11747_v33, 0.0 }
 0xe6c   : > { %9085 = vmatmul.mubr.msk.bf16.gmra.mxu1 %vm1052_vm2, %v3211_v20  ;;  %v1219_v38 = vmul.f32 %v9811_v35, %v14550_v2  ;;  %v9813_v18 = vpop.eup %9812 }
 0xe6d   : > { %9096 = vmatprep.mubr.msk.bf16.mxu1 %vm1052_vm2, %v2162_v34  ;;  %v1223_v5 = vpack.c.bf16 %v1217_v22, %v1216_v43  ;;  %v9815_v4 = vpop.eup %9814  ;;  %v1221_v53 = vmul.f32 %v9813_v18, %v14551_v46 }
 0xe6e   : > { %v2611_v54 = vpop.xlane.xlu0 %2610  ;;  %v1224_v60 = vpack.c.bf16 %v1219_v38, %v1218_v9  ;;  %v1220_v15 = vmul.f32 %v9815_v4, %v14552_v3 }
 0xe6f   : > { %9818 = vrcp.f32 %v2611_v54  ;;  %v2145_v8 = vsel %vm962_vm1, %v1223_v5, %v11781_v45 }
 0xe70   : > { %v2148_v49 = vsel %vm962_vm1, %v1224_v60, %v2113_v57  ;;  %v2155_v62 = vsel %vm487_vm0, %v2145_v8, %v2123_v17  ;;  %v1225_v45 = vpack.c.bf16 %v1221_v53, %v1220_v15  ;;  %9820 = vrcp.f32 %v2602_v0 }
 0xe71   : > { %v2157_v44 = vsel %vm487_vm0, %v2148_v49, %v2125_v63  ;;  %v2164_v51 = vsel %vm2160_vm3, %v2155_v62, %v2135_v21 }
 0xe72   : > { %v2166_v24 = vsel %vm2160_vm3, %v2157_v44, %v2137_v36  ;;  %v2151_v57 = vsel %vm962_vm1, %v1225_v45, %v2115_v58  ;;  %v2896_v50 = vpop.xlane.xlu0 %2895  ;;  %v3196_v58 = vsel %vm1052_vm2, %v11796_v55, 0.0 }
 0xe73   : > { %v2159_v17 = vsel %vm487_vm0, %v2151_v57, %v2127_v11 }
 0xe74   : > { %9097 = vmatmul.mubr.msk.bf16.vlgmr.msra.gmra.mxu1 %vm1052_vm2, %v2164_v51  ;;  %v2168_v63 = vsel %vm2160_vm3, %v2159_v17, %v2139_v41 }
 0xe75   : > { %9100 = vmatprep.mubr.msk.bf16.mxu1 %vm1052_vm2, %v2166_v24 }
 0xe76   : > { %v2902_v23 = vpop.xlane.xlu0 %2901 }
 0xe78   : > { %v9817_v56 = vpop.eup %9816 }
 0xe79   : > { %v2731_v47 = vmul.f32 %v9817_v56, %v11362_v32 }
 0xe7a   : > { %v11863_v55 = vpop.xlane.xlu0 %2613 }
 0xe7c   : > { %v9819_v25 = vpop.eup %9818  ;;  %9101 = vmatmul.mubr.msk.bf16.gmra.mxu1 %vm1052_vm2, %v2168_v63 }
 0xe7d   : > { %v2732_v31 = vmul.f32 %v9819_v25, %v11366_v52  ;;  %v9821_v21 = vpop.eup %9820 }
 0xe7e   : > { %v2729_v32 = vmul.f32 %v9821_v21, %v11364_v7  ;;  %v2620_v38 = vpop.xlane.xlu0 %2619  ;;  %v14556_v21 = vld [vmem:[#allocation53_spill] sm:$0xff] }
 0xe7f   : > { %v2738_v36 = vpack.c.bf16 %v2732_v31, %v2731_v47 }
 0xe81   : > { %3327 = vrot.lane.b32.xlu1 %v2738_v36, %s10294_s24 }
 0xe82   : > { %v11867_v54 = vpop.xlane.xlu0 %2907 }
 0xe86   : > { %v11871_v5 = vpop.xlane.xlu0 %2913 }
 0xe8a   : > { %v11875_v18 = vpop.xlane.xlu0 %2319 }
 0xe8e   : > { %v11879_v60 = vpop.xlane.xlu0 %2325 }
 0xe92   : > { %v11883_v4 = vpop.xlane.xlu0 %2331 }
 0xe96   : > { %v11887_v62 = vpop.xlane.xlu0 %2337 }
 0xe9b   : > { %v2605_v39 = vpop.xlane.xlu1 %2604 }
 0xe9c   : > { %9822 = vrcp.f32 %v2605_v39  ;;  %v14555_v39 = vld [vmem:[#allocation55_spill] sm:$0xff] }
 0xe9d   : > { %9824 = vrcp.f32 %v2896_v50 }
 0xe9f   : > { %v2899_v10 = vpop.xlane.xlu1 %2898 }
 0xea0   : > { %9826 = vrcp.f32 %v2899_v10 }
 0xea1   : > { %9828 = vrcp.f32 %v2902_v23 }
 0xea3   : > { %v2905_v42 = vpop.xlane.xlu1 %2904 }
 0xea4   : > { %9830 = vrcp.f32 %v2905_v42 }
 0xea7   : > { %v11861_v22 = vpop.xlane.xlu1 %2616 }
 0xea9   : > { %v9823_v1 = vpop.eup %9822 }
 0xeaa   : > { %v2730_v52 = vmul.f32 %v9823_v1, %v11368_v27  ;;  %v9825_v12 = vpop.eup %9824  ;;  %v3190_v27 = vsel %vm1052_vm2, %v11755_v26, 0.0  ;;  %v3187_v26 = vsel %vm1052_vm2, %v11753_v37, 0.0 }
 0xeab   : > { %v3019_v0 = vmul.f32 %v9825_v12, %v11588_v16  ;;  %v3184_v16 = vsel %vm1052_vm2, %v11751_v40, 0.0  ;;  %v3205_v40 = vsel %vm1052_vm2, %v11798_v14, 0.0  ;;  %v2623_v2 = vpop.xlane.xlu1 %2622 }
 0xeac   : > { %v2737_v59 = vpack.c.bf16 %v2730_v52, %v2729_v32 }
 0xead   : > { %v9827_v13 = vpop.eup %9826 }
 0xeae   : > { %3325 = vrot.lane.b32.xlu0 %v2737_v59, %s10294_s24  ;;  %v3020_v20 = vmul.f32 %v9827_v13, %v11592_v6  ;;  %v9829_v35 = vpop.eup %9828  ;;  %v3202_v6 = vsel %vm1052_vm2, %v11803_v28, 0.0  ;;  %v3199_v28 = vsel %vm1052_vm2, %v11800_v29, 0.0 }
 0xeaf   : > { %v3021_v34 = vmul.f32 %v9829_v35, %v14553_v19  ;;  %v11865_v33 = vpop.xlane.xlu1 %2910  ;;  %v10264_v19 = vld [vmem:[%s10387_s18 + $0x10] sm:$0xff] }
 0xeb0   : > { %v3027_v61 = vpack.c.bf16 %v3020_v20, %v3019_v0 }
 0xeb1   : > { %v9831_v43 = vpop.eup %9830 }
 0xeb2   : > { %3337 = vrot.lane.b32.xlu1 %v3027_v61, %s10291_s21  ;;  %v3022_v7 = vmul.f32 %v9831_v43, %v14554_v30  ;;  %v11914_v30 = vld [vmem:[%s14395_s5] ss:$0 sm:$0xff] }
 0xeb3   : > { %v11869_v37 = vpop.xlane.xlu1 %2916 }
 0xeb4   : > { %v3028_v9 = vpack.c.bf16 %v3022_v7, %v3021_v34 }
 0xeb6   : > { %3339 = vrot.lane.b32.xlu1 %v3028_v9, %s10291_s21 }
 0xeb7   : > { %v11873_v14 = vpop.xlane.xlu1 %2322 }
 0xebb   : > { %v11877_v29 = vpop.xlane.xlu1 %2328 }
 0xebf   : > { %v11881_v8 = vpop.xlane.xlu1 %2334 }
 0xec3   : > { %v11885_v49 = vpop.xlane.xlu1 %2340 }
 0xecd   : > { %3191 = vadd.xlane.f32.xlu0 %v3190_v27  ;;  %v10265_v27 = vld [vmem:[%s10387_s18] sm:$0xff] }
 0xed1   : > { %3185 = vadd.xlane.f32.xlu0 %v3184_v16 }
 0xed5   : > { %3203 = vadd.xlane.f32.xlu0 %v3202_v6  ;;  %v10266_v6 = vld [vmem:[%s10387_s18 + $0x18] sm:$0xff] }
 0xed9   : > { %3197 = vadd.xlane.f32.xlu0 %v3196_v58 }
 0xeda   : > { %3194 = vadd.xlane.f32.xlu1 %v3193_v48 }
 0xede   : > { %3188 = vadd.xlane.f32.xlu1 %v3187_v26 }
 0xee2   : > { %3206 = vadd.xlane.f32.xlu1 %v3205_v40 }
 0xee6   : > { %3200 = vadd.xlane.f32.xlu1 %v3199_v28 }
 0xeef   : > { %v9082_v45 = vpop.f32.mrf.mxu1 }
 0xef1   : > { %v3270_v41 = vpop.f32.mrf.mxu1 }
 0xef3   : > { %v11889_v11 = vpop.permute.xlu1 %3327  ;;  %v9083_v63 = vpop.f32.mrf.mxu1 }
 0xef5   : > { %v3273_v42 = vpop.f32.mrf.mxu1 }
 0xf20   : > { %v11891_v44 = vpop.permute.xlu0 %3325 }
 0xf24   : > { %v11893_v51 = vpop.permute.xlu1 %3337 }
 0xf28   : > { %v11895_v53 = vpop.permute.xlu1 %3339 }
 0xf2c   : > { %v11900_v13 = vpop.f32.mrf.mxu1 }
 0xf2e   : > { %v11904_v0 = vpop.f32.mrf.mxu1 }
 0xf30   : > { %v11906_v20 = vpop.f32.mrf.mxu1 }
 0xf32   : > { %v11908_v35 = vpop.f32.mrf.mxu1 }
 0xf34   : > { %v9098_v61 = vpop.f32.mrf.mxu1 }
 0xf35   : > { %v3532_v34 = vadd.f32 %v10264_v19, %v9098_v61 }
 0xf36   : > { %v3467_v43 = vpop.f32.mrf.mxu1 }
 0xf37   : > { %v11917_v9 = vadd.f32 %v11914_v30, %v3532_v34  ;;  %v3530_v16 = vadd.f32 %v10265_v27, %v3467_v43 }
 0xf38   : > { %v9099_v7 = vpop.f32.mrf.mxu1 }
 0xf39   : > { %v3533_v58 = vadd.f32 %v10266_v6, %v9099_v7  ;;  %v11922_v26 = vadd.f32 %v11914_v30, %v3530_v16  ;;  %v3577_v40 = vsel %vm487_vm0, %v11917_v9, 0.0  ;;  %v10271_v7 = vld [vmem:[%s10387_s18 + $0x28] sm:$0xff] }
 0xf3a   : > { %v3470_v48 = vpop.f32.mrf.mxu1 }
 0xf3b   : > { %v11927_v28 = vadd.f32 %v11914_v30, %v3533_v58 }
 0xf56   : > { %v3192_v46 = vpop.xlane.xlu0 %3191 }
 0xf57   : > { %9832 = vrcp.f32 %v3192_v46  ;;  %v3571_v46 = vsel %vm487_vm0, %v11922_v26, 0.0 }
 0xf58   : > { %9834 = vrcp.f32 %v2623_v2  ;;  %v10267_v2 = vld [vmem:[%s10387_s18 + $0x8] sm:$0xff] }
 0xf5a   : > { %v3186_v24 = vpop.xlane.xlu0 %3185 }
 0xf5e   : > { %v3204_v16 = vpop.xlane.xlu0 %3203 }
 0xf63   : > { %v3195_v3 = vpop.xlane.xlu1 %3194 }
 0xf64   : > { %9836 = vrcp.f32 %v3195_v3  ;;  %v9833_v57 = vpop.eup %9832  ;;  %v3580_v3 = vsel %vm487_vm0, %v11927_v28, 0.0 }
 0xf65   : > { %9838 = vrcp.f32 %v2620_v38  ;;  %v9835_v56 = vpop.eup %9834  ;;  %v3311_v47 = vmul.f32 %v9833_v57, %v9082_v45  ;;  %v3531_v38 = vadd.f32 %v10267_v2, %v3470_v48  ;;  %v14557_v57 = vld [vmem:[#allocation59_spill] sm:$0xff] }
 0xf66   : > { %9840 = vrcp.f32 %v3186_v24  ;;  %v2736_v23 = vmul.f32 %v9835_v56, %v14555_v39 }
 0xf67   : > { %v3189_v15 = vpop.xlane.xlu1 %3188  ;;  %v11935_v24 = vadd.f32 %v11914_v30, %v3531_v38 }
 0xf68   : > { %9842 = vrcp.f32 %v3189_v15 }
 0xf69   : > { %9844 = vrcp.f32 %v11861_v22  ;;  %v3574_v22 = vsel %vm487_vm0, %v11935_v24, 0.0 }
 0xf6a   : > { %9846 = vrcp.f32 %v11869_v37 }
 0xf6b   : > { %9848 = vrcp.f32 %v11863_v55  ;;  %v3207_v43 = vpop.xlane.xlu1 %3206 }
 0xf6c   : > { %9850 = vrcp.f32 %v11871_v5 }
 0xf6d   : > { %9852 = vrcp.f32 %v11867_v54 }
 0xf6e   : > { %9854 = vrcp.f32 %v11875_v18 }
 0xf6f   : > { %9856 = vrcp.f32 %v11865_v33  ;;  %v3201_v58 = vpop.xlane.xlu1 %3200  ;;  %v3198_v33 = vpop.xlane.xlu0 %3197 }
 0xf70   : > { %9858 = vrcp.f32 %v11873_v14 }
 0xf71   : > { %v9837_v17 = vpop.eup %9836  ;;  %9860 = vrcp.f32 %v11877_v29 }
 0xf72   : > { %v9839_v25 = vpop.eup %9838  ;;  %v3312_v31 = vmul.f32 %v9837_v17, %v9083_v63  ;;  %v14558_v17 = vld [vmem:[#allocation56_spill] sm:$0xff]  ;;  %9862 = vrcp.f32 %v3207_v43 }
 0xf73   : > { %v9841_v36 = vpop.eup %9840  ;;  %v2735_v1 = vmul.f32 %v9839_v25, %v14556_v21  ;;  %v14559_v25 = vld [vmem:[#allocation57_spill] sm:$0xff]  ;;  %9864 = vrcp.f32 %v11879_v60 }
 0xf74   : > { %v3318_v50 = vpack.c.bf16 %v3312_v31, %v3311_v47  ;;  %v3309_v32 = vmul.f32 %v9841_v36, %v3270_v41  ;;  %v14560_v47 = vld [vmem:[#allocation54_spill] sm:$0xff]  ;;  %9866 = vrcp.f32 %v3204_v16 }
 0xf75   : > { %v9843_v10 = vpop.eup %9842  ;;  %v2740_v12 = vpack.c.bf16 %v2736_v23, %v2735_v1  ;;  %v10268_v23 = vld [vmem:[%s10387_s18 + $0x30] sm:$0xff]  ;;  %v10269_v1 = vld [vmem:[%s10387_s18 + $0x20] sm:$0xff]  ;;  %9868 = vrcp.f32 %v3201_v58 }
 0xf76   : > { %3351 = vrot.lane.b32.xlu1 %v3318_v50, %s10290_s20  ;;  %v3310_v52 = vmul.f32 %v9843_v10, %v3273_v42  ;;  %v9845_v15 = vpop.eup %9844  ;;  %v9102_v50 = vpop.f32.mrf.mxu1  ;;  %9870 = vrcp.f32 %v3198_v33 }
 0xf77   : > { %v9847_v45 = vpop.eup %9846  ;;  %v2734_v63 = vmul.f32 %v9845_v15, %v14558_v17  ;;  %v3536_v10 = vadd.f32 %v10268_v23, %v9102_v50  ;;  %v14561_v15 = vld [vmem:[#allocation48_spill] sm:$0xff]  ;;  %9872 = vrcp.f32 %v11881_v8 }
 0xf78   : > { %v3317_v59 = vpack.c.bf16 %v3310_v52, %v3309_v32  ;;  %v9849_v37 = vpop.eup %9848  ;;  %v3026_v56 = vmul.f32 %v9847_v45, %v14557_v57  ;;  %v3483_v39 = vpop.f32.mrf.mxu1  ;;  %v10270_v52 = vld [vmem:[%s10387_s18 + $0x38] sm:$0xff]  ;;  %v14562_v45 = vld [vmem:[#allocation47_spill] sm:$0xff]  ;;  %9874 = vrcp.f32 %v11885_v49 }
 0xf79   : > { %v9851_v41 = vpop.eup %9850  ;;  %v2733_v31 = vmul.f32 %v9849_v37, %v14560_v47  ;;  %v11951_v21 = vadd.f32 %v11914_v30, %v3536_v10  ;;  %v3534_v32 = vadd.f32 %v10269_v1, %v3483_v39  ;;  %9876 = vrcp.f32 %v11883_v4  ;;  %v14567_v4 = vld [vmem:[#allocation52_spill] sm:$0xff] }
 0xf7a   : > { %3331 = vrot.lane.b32.xlu1 %v2740_v12, %s10294_s24  ;;  %3349 = vrot.lane.b32.xlu0 %v3317_v59, %s10290_s20  ;;  %v3025_v55 = vmul.f32 %v9851_v41, %v14559_v25  ;;  %v9103_v42 = vpop.f32.mrf.mxu1  ;;  %v9853_v29 = vpop.eup %9852  ;;  %v14563_v41 = vld [vmem:[#allocation60_spill] sm:$0xff]  ;;  %9878 = vrcp.f32 %v11887_v62 }
 0xf7b   : > { %v2739_v36 = vpack.c.bf16 %v2734_v63, %v2733_v31  ;;  %v3537_v12 = vadd.f32 %v10270_v52, %v9103_v42  ;;  %v11957_v61 = vadd.f32 %v11914_v30, %v3534_v32  ;;  %v3589_v19 = vsel %vm487_vm0, %v11951_v21, 0.0  ;;  %v9855_v48 = vpop.eup %9854  ;;  %v14564_v63 = vld [vmem:[#allocation46_spill] sm:$0xff] }
 0xf7c   : > { %v3030_v5 = vpack.c.bf16 %v3026_v56, %v3025_v55  ;;  %v3486_v59 = vpop.f32.mrf.mxu1  ;;  %v2431_v25 = vmul.f32 %v9855_v48, %v14564_v63  ;;  %v14565_v55 = vld [vmem:[#allocation45_spill] sm:$0xff]  ;;  %v14566_v31 = vld [vmem:[#allocation58_spill] sm:$0xff] }
 0xf7d   : > { %v11963_v34 = vadd.f32 %v11914_v30, %v3537_v12  ;;  %v3535_v27 = vadd.f32 %v10271_v7, %v3486_v59  ;;  %v3583_v54 = vsel %vm487_vm0, %v11957_v61, 0.0 }
 0xf7f   : > { %v11972_v6 = vadd.f32 %v11914_v30, %v3535_v27  ;;  %v3592_v18 = vsel %vm487_vm0, %v11963_v34, 0.0 }
 0xf81   : > { %v3586_v14 = vsel %vm487_vm0, %v11972_v6, 0.0 }
 0xf99   : > { %3578 = vadd.xlane.f32.xlu0 %v3577_v40  ;;  %v9857_v40 = vpop.eup %9856 }
 0xf9a   : > { %v9859_v2 = vpop.eup %9858  ;;  %v3024_v57 = vmul.f32 %v9857_v40, %v14563_v41 }
 0xf9b   : > { %v9861_v38 = vpop.eup %9860  ;;  %v2432_v60 = vmul.f32 %v9859_v2, %v14561_v15 }
 0xf9c   : > { %v2434_v37 = vmul.f32 %v9861_v38, %v14562_v45  ;;  %v9571_v45 = vld [vmem:[%s14398_s8] sm:$0xff]  }
 0xf9d   : > { %3572 = vadd.xlane.f32.xlu0 %v3571_v46  ;;  %v9863_v46 = vpop.eup %9862  ;;  %v2439_v39 = vpack.c.bf16 %v2432_v60, %v2431_v25  ;;  %v9570_v60 = vld [vmem:[%s14398_s8 + $0x8] sm:$0xff]  }
 0xf9e   : > { %3581 = vadd.xlane.f32.xlu1 %v3580_v3  ;;  %v9865_v3 = vpop.eup %9864  ;;  %v3316_v56 = vmul.f32 %v9863_v46, %v11906_v20  ;;  %9112 = vmatprep.subr.bf16.mxu0 %v9570_v60 }
 0xf9f   : > { %v2433_v47 = vmul.f32 %v9865_v3, %v14565_v55  ;;  %v3359_v32 = vsel %vm962_vm1, %v2439_v39, %v11891_v44  ;;  %9113 = vmatpush3.bf16.msra.mxu0 %v9570_v60  ;;  %v10273_v60 = vld [vmem:[%s10387_s18 + $0x40] sm:$0xff] }
 0xfa0   : > { %v3370_v12 = vsel %vm487_vm0, %v3359_v32, %v11893_v51  ;;  %9114 = vmatprep.subr.bf16.mxu0 %v9571_v45 }
 0xfa1   : > { %v2440_v23 = vpack.c.bf16 %v2434_v37, %v2433_v47 }
 0xfa2   : > { %3575 = vadd.xlane.f32.xlu1 %v3574_v22  ;;  %v9867_v22 = vpop.eup %9866 }
 0xfa3   : > { %v9869_v17 = vpop.eup %9868  ;;  %v3362_v52 = vsel %vm962_vm1, %v2440_v23, %v11889_v11  ;;  %9115 = vmatpush3.bf16.msra.mxu0 %v9571_v45 }
 0xfa4   : > { %v9871_v50 = vpop.eup %9870  ;;  %v3314_v1 = vmul.f32 %v9869_v17, %v11908_v35  ;;  %v3372_v35 = vsel %vm487_vm0, %v3362_v52, %v11895_v53 }
 0xfa5   : > { %v3313_v59 = vmul.f32 %v9871_v50, %v11904_v0  ;;  %v9873_v49 = vpop.eup %9872 }
 0xfa6   : > { %v2436_v55 = vmul.f32 %v9873_v49, %v14567_v4 }
 0xfa7   : > { %v3319_v11 = vpack.c.bf16 %v3314_v1, %v3313_v59 }
 0xfb3   : > { %3343 = vrot.lane.b32.xlu1 %v3030_v5, %s10291_s21  ;;  %3329 = vrot.lane.b32.xlu0 %v2739_v36, %s10294_s24  ;;  %v3023_v5 = vmul.f32 %v9853_v29, %v14566_v31  ;;  %v3315_v36 = vmul.f32 %v9867_v22, %v11900_v13  ;;  %v14568_v31 = vld [vmem:[#allocation51_spill] sm:$0xff] }
 0xfb5   : > { %v3029_v10 = vpack.c.bf16 %v3024_v57, %v3023_v5  ;;  %v3320_v42 = vpack.c.bf16 %v3316_v56, %v3315_v36  ;;  %v9875_v57 = vpop.eup %9874  ;;  %v14569_v36 = vld [vmem:[#allocation50_spill] sm:$0xff] }
 0xfb6   : > { %v9877_v17 = vpop.eup %9876  ;;  %v2438_v5 = vmul.f32 %v9875_v57, %v14568_v31  ;;  %v10274_v57 = vld [vmem:[%s10387_s18 + $0x58] sm:$0xff] }
 0xfb7   : > { %v9879_v25 = vpop.eup %9878  ;;  %v2435_v50 = vmul.f32 %v9877_v17, %v14569_v36  ;;  %v10275_v17 = vld [vmem:[%s10387_s18 + $0x48] sm:$0xff] }
 0xfd2   : > { %3590 = vadd.xlane.f32.xlu0 %v3589_v19 }
 0xfd6   : > { %3584 = vadd.xlane.f32.xlu0 %v3583_v54 }
 0xfd7   : > { %3593 = vadd.xlane.f32.xlu1 %v3592_v18 }
 0xfdb   : > { %3587 = vadd.xlane.f32.xlu1 %v3586_v14 }
 0xfe8   : > { %v3352_v20 = vpop.permute.xlu1 %3351 }
 0xfe9   : > { %v3380_v44 = vsel %vm2160_vm3, %v3372_v35, %v3352_v20  ;;  %v2441_v20 = vpack.c.bf16 %v2436_v55, %v2435_v50 }
 0xfec   : > { %3341 = vrot.lane.b32.xlu0 %v3029_v10, %s10291_s21  ;;  %3355 = vrot.lane.b32.xlu1 %v3320_v42, %s10290_s20  ;;  %v3350_v13 = vpop.permute.xlu0 %3349  ;;  %v3332_v19 = vpop.permute.xlu1 %3331  ;;  %v14570_v10 = vld [vmem:[#allocation49_spill] sm:$0xff] }
 0xfed   : > { %v3378_v43 = vsel %vm2160_vm3, %v3370_v12, %v3350_v13  ;;  %v2437_v42 = vmul.f32 %v9879_v25, %v14570_v10 }
 0xfee   : > { %9104 = vmatprep.mubr.msk.bf16.mxu1 %vm1052_vm2, %v3378_v43 }
 0xfef   : > { %9105 = vmatmul.mubr.msk.bf16.gmra.mxu1 %vm1052_vm2, %v3380_v44  ;;  %v2442_v13 = vpack.c.bf16 %v2438_v5, %v2437_v42 }
 0xff0   : > { %3353 = vrot.lane.b32.xlu0 %v3319_v11, %s10290_s20 }
 0xff1   : > { %v3368_v11 = vsel %vm962_vm1, %v2442_v13, %v3332_v19 }
0x1022   : > { %v3579_v51 = vpop.xlane.xlu0 %3578 }
0x1023   : > { %v3621_v7 = vmul.f32 0.03125, %v3579_v51 }
0x1025   : > { %v12005_v54 = vsub.f32 %v11917_v9, %v3621_v7 }
0x1026   : > { %v3573_v27 = vpop.xlane.xlu0 %3572 }
0x1027   : > { %v3619_v16 = vmul.f32 0.03125, %v3573_v27  ;;  %v3582_v0 = vpop.xlane.xlu1 %3581  ;;  %v3653_v40 = vmul.f32 %v12005_v54, %v12005_v54 }
0x1028   : > { %v3622_v18 = vmul.f32 0.03125, %v3582_v0 }
0x1029   : > { %v12008_v53 = vsub.f32 %v11922_v26, %v3619_v16  ;;  %v3673_v46 = vsel %vm487_vm0, %v3653_v40, 0.0 }
0x102a   : > { %v12013_v29 = vsub.f32 %v11927_v28, %v3622_v18  ;;  %v3330_v37 = vpop.permute.xlu0 %3329 }
0x102b   : > { %v3576_v58 = vpop.xlane.xlu1 %3575  ;;  %v3651_v33 = vmul.f32 %v12008_v53, %v12008_v53  ;;  %v3365_v35 = vsel %vm962_vm1, %v2441_v20, %v3330_v37 }
0x102c   : > { %v3620_v14 = vmul.f32 0.03125, %v3576_v58  ;;  %v3654_v3 = vmul.f32 %v12013_v29, %v12013_v29 }
0x102d   : > { %v3667_v48 = vsel %vm487_vm0, %v3651_v33, 0.0 }
0x102e   : > { %v12019_v2 = vsub.f32 %v11935_v24, %v3620_v14  ;;  %3668 = vadd.xlane.f32.xlu0 %v3667_v48  ;;  %v3676_v15 = vsel %vm487_vm0, %v3654_v3, 0.0 }
0x102f   : > { %v3344_v41 = vpop.permute.xlu1 %3343 }
0x1030   : > { %v3652_v38 = vmul.f32 %v12019_v2, %v12019_v2  ;;  %v3376_v0 = vsel %vm487_vm0, %v3368_v11, %v3344_v41 }
0x1032   : > { %3674 = vadd.xlane.f32.xlu0 %v3673_v46  ;;  %v3670_v22 = vsel %vm487_vm0, %v3652_v38, 0.0 }
0x1033   : > { %3671 = vadd.xlane.f32.xlu1 %v3670_v22  ;;  %v10272_v22 = vld [vmem:[%s10387_s18 + $0x50] sm:$0xff] }
0x1036   : > { %3677 = vadd.xlane.f32.xlu0 %v3676_v15 }
0x105b   : > { %v3591_v8 = vpop.xlane.xlu0 %3590 }
0x105c   : > { %v3625_v56 = vmul.f32 0.03125, %v3591_v8 }
0x105e   : > { %v12042_v39 = vsub.f32 %v11951_v21, %v3625_v56 }
0x105f   : > { %v3585_v63 = vpop.xlane.xlu0 %3584 }
0x1060   : > { %v3623_v62 = vmul.f32 0.03125, %v3585_v63  ;;  %v3594_v47 = vpop.xlane.xlu1 %3593  ;;  %v3657_v44 = vmul.f32 %v12042_v39, %v12042_v39 }
0x1061   : > { %v3626_v1 = vmul.f32 0.03125, %v3594_v47 }
0x1062   : > { %v12045_v23 = vsub.f32 %v11957_v61, %v3623_v62  ;;  %v3685_v14 = vsel %vm487_vm0, %v3657_v44, 0.0  ;;  %v12102_v44 = vld [vmem:[%s14396_s6] ss:$0 sm:$0xff] }
0x1063   : > { %v3342_v32 = vpop.permute.xlu0 %3341  ;;  %v12056_v51 = vsub.f32 %v11963_v34, %v3626_v1 }
0x1064   : > { %v3588_v52 = vpop.xlane.xlu1 %3587  ;;  %v3655_v12 = vmul.f32 %v12045_v23, %v12045_v23  ;;  %v3374_v7 = vsel %vm487_vm0, %v3365_v35, %v3342_v32 }
0x1065   : > { %v3624_v59 = vmul.f32 0.03125, %v3588_v52  ;;  %v3658_v40 = vmul.f32 %v12056_v51, %v12056_v51 }
0x1066   : > { %v3679_v43 = vsel %vm487_vm0, %v3655_v12, 0.0 }
0x1067   : > { %v12060_v27 = vsub.f32 %v11972_v6, %v3624_v59  ;;  %3680 = vadd.xlane.f32.xlu0 %v3679_v43  ;;  %v3354_v16 = vpop.permute.xlu0 %3353  ;;  %v3688_v38 = vsel %vm487_vm0, %v3658_v40, 0.0 }
0x1068   : > { %v3382_v18 = vsel %vm2160_vm3, %v3374_v7, %v3354_v16  ;;  %v3356_v58 = vpop.permute.xlu1 %3355 }
0x1069   : > { %v3384_v33 = vsel %vm2160_vm3, %v3376_v0, %v3356_v58  ;;  %9108 = vmatprep.mubr.msk.bf16.mxu1 %vm1052_vm2, %v3382_v18  ;;  %v3656_v19 = vmul.f32 %v12060_v27, %v12060_v27  ;;  %v12110_v58 = vld [vmem:[%s14397_s7] ss:$0 sm:$0xff] }
0x106a   : > { %9109 = vmatmul.mubr.msk.bf16.gmra.mxu1 %vm1052_vm2, %v3384_v33 }
0x106b   : > { %3686 = vadd.xlane.f32.xlu0 %v3685_v14  ;;  %v3682_v48 = vsel %vm487_vm0, %v3656_v19, 0.0 }
0x106c   : > { %3683 = vadd.xlane.f32.xlu1 %v3682_v48 }
0x1070   : > { %3689 = vadd.xlane.f32.xlu1 %v3688_v38 }
0x10af   : > { %v9106_v46 = vpop.f32.mrf.mxu1 }
0x10b0   : > { %v3540_v15 = vadd.f32 %v10272_v22, %v9106_v46 }
0x10b1   : > { %v3499_v3 = vpop.f32.mrf.mxu1 }
0x10b2   : > { %v3538_v45 = vadd.f32 %v10273_v60, %v3499_v3  ;;  %v12080_v49 = vadd.f32 %v11914_v30, %v3540_v15 }
0x10b3   : > { %v9107_v37 = vpop.f32.mrf.mxu1 }
0x10b4   : > { %v12077_v8 = vadd.f32 %v11914_v30, %v3538_v45  ;;  %v3541_v56 = vadd.f32 %v10274_v57, %v9107_v37  ;;  %v3601_v36 = vsel %vm487_vm0, %v12080_v49, 0.0 }
0x10b5   : > { %v3502_v41 = vpop.f32.mrf.mxu1 }
0x10b6   : > { %v3539_v63 = vadd.f32 %v10275_v17, %v3502_v41  ;;  %v3595_v25 = vsel %vm487_vm0, %v12077_v8, 0.0  ;;  %v12090_v47 = vadd.f32 %v11914_v30, %v3541_v56 }
0x10b7   : > { %3596 = vadd.xlane.f32.xlu0 %v3595_v25  ;;  %v3669_v4 = vpop.xlane.xlu0 %3668 }
0x10b8   : > { %v12087_v55 = vadd.f32 %v11914_v30, %v3539_v63  ;;  %v3715_v62 = vmul.f32 0.03125, %v3669_v4  ;;  %v3604_v20 = vsel %vm487_vm0, %v12090_v47, 0.0 }
0x10ba   : > { %v3731_v31 = vadd.f32 1e-05, %v3715_v62  ;;  %v3598_v5 = vsel %vm487_vm0, %v12087_v55, 0.0 }
0x10bb   : > { %3599 = vadd.xlane.f32.xlu1 %v3598_v5  ;;  %3602 = vadd.xlane.f32.xlu0 %v3601_v36  ;;  %v3675_v50 = vpop.xlane.xlu0 %3674 }
0x10bc   : > { %9880 = vrsqrt.f32 %v3731_v31  ;;  %v3717_v10 = vmul.f32 0.03125, %v3675_v50  ;;  %v3672_v42 = vpop.xlane.xlu1 %3671 }
0x10bd   : > { %v3716_v1 = vmul.f32 0.03125, %v3672_v42 }
0x10be   : > { %v3733_v32 = vadd.f32 1e-05, %v3717_v10 }
0x10bf   : > { %v3732_v52 = vadd.f32 1e-05, %v3716_v1  ;;  %3605 = vadd.xlane.f32.xlu1 %v3604_v20  ;;  %v3678_v12 = vpop.xlane.xlu0 %3677 }
0x10c0   : > { %9882 = vrsqrt.f32 %v3733_v32  ;;  %v3718_v13 = vmul.f32 0.03125, %v3678_v12 }
0x10c1   : > { %9884 = vrsqrt.f32 %v3732_v52 }
0x10c2   : > { %v3734_v59 = vadd.f32 1e-05, %v3718_v13 }
0x10c4   : > { %9886 = vrsqrt.f32 %v3734_v59 }
0x10c9   : > { %v9881_v35 = vpop.eup %9880 }
0x10ca   : > { %v3763_v43 = vmul.f32 %v9881_v35, %v12008_v53  ;;  %v9572_v53 = vld [vmem:[%s14400_s10 + $0x18] sm:$0xff]  }
0x10cb   : > { %9132 = vmatprep.subr.bf16.mxu1 %v9572_v53 }
0x10cc   : > { %v3785_v18 = vmul.f32 %v12102_v44, %v3763_v43  ;;  %9133 = vmatpush3.bf16.msra.mxu1 %v9572_v53  ;;  %v9574_v43 = vld [vmem:[%s14400_s10 + $0x8] sm:$0xff]   ;;  %v10277_v53 = vld [vmem:[%s10387_s18 + $0x60] sm:$0xff] }
0x10cd   : > { %v9883_v11 = vpop.eup %9882 }
0x10ce   : > { %v9885_v7 = vpop.eup %9884  ;;  %v3765_v16 = vmul.f32 %v9883_v11, %v12005_v54  ;;  %v9575_v11 = vld [vmem:[%s14400_s10] sm:$0xff]  }
0x10cf   : > { %v3764_v0 = vmul.f32 %v9885_v7, %v12019_v2  ;;  %v3807_v2 = vadd.f32 %v12110_v58, %v3785_v18 }
0x10d0   : > { %v3787_v14 = vmul.f32 %v12102_v44, %v3765_v16 }
0x10d1   : > { %v9887_v33 = vpop.eup %9886  ;;  %v3786_v19 = vmul.f32 %v12102_v44, %v3764_v0  ;;  %v10276_v0 = vld [vmem:[%s10387_s18 + $0x70] sm:$0xff] }
0x10d2   : > { %v3766_v54 = vmul.f32 %v9887_v33, %v12013_v29  ;;  %v3809_v46 = vadd.f32 %v12110_v58, %v3787_v14 }
0x10d3   : > { %v3808_v48 = vadd.f32 %v12110_v58, %v3786_v19 }
0x10d4   : > { %v3788_v40 = vmul.f32 %v12102_v44, %v3766_v54 }
0x10d5   : > { %v3823_v38 = vpack.c.bf16 %v3808_v48, %v3807_v2  ;;  %v10278_v48 = vld [vmem:[%s10387_s18 + $0x78] sm:$0xff] }
0x10d6   : > { %v3810_v3 = vadd.f32 %v12110_v58, %v3788_v40 }
0x10d7   : > { %9116 = vmatprep.mubr.msk.bf16.mxu0 %vm487_vm0, %v3823_v38  ;;  %v10279_v38 = vld [vmem:[%s10387_s18 + $0x68] sm:$0xff]  ;;  %s14608_s18 = smov 80  }
0x10d8   : > { %v3824_v22 = vpack.c.bf16 %v3810_v3, %v3809_v46 }
0x10da   : > { %9117 = vmatmul.mubr.msk.bf16.vlgmr.msra.gmra.mxu0 %vm487_vm0, %v3824_v22 }
0x10f0   : > { %v3681_v15 = vpop.xlane.xlu0 %3680 }
0x10f1   : > { %v3719_v29 = vmul.f32 0.03125, %v3681_v15 }
0x10f3   : > { %v3735_v60 = vadd.f32 1e-05, %v3719_v29 }
0x10f4   : > { %v3687_v45 = vpop.xlane.xlu0 %3686 }
0x10f5   : > { %9888 = vrsqrt.f32 %v3735_v60  ;;  %v3721_v37 = vmul.f32 0.03125, %v3687_v45  ;;  %v3684_v41 = vpop.xlane.xlu1 %3683 }
0x10f6   : > { %v3720_v57 = vmul.f32 0.03125, %v3684_v41 }
0x10f7   : > { %v3737_v56 = vadd.f32 1e-05, %v3721_v37 }
0x10f8   : > { %v3736_v17 = vadd.f32 1e-05, %v3720_v57 }
0x10f9   : > { %9890 = vrsqrt.f32 %v3737_v56  ;;  %v3690_v63 = vpop.xlane.xlu1 %3689 }
0x10fa   : > { %9892 = vrsqrt.f32 %v3736_v17  ;;  %v3722_v25 = vmul.f32 0.03125, %v3690_v63 }
0x10fc   : > { %v3738_v4 = vadd.f32 1e-05, %v3722_v25 }
0x10fe   : > { %9894 = vrsqrt.f32 %v3738_v4 }
0x1102   : > { %v9889_v62 = vpop.eup %9888 }
0x1103   : > { %v3767_v31 = vmul.f32 %v9889_v62, %v12045_v23 }
0x1105   : > { %v3789_v10 = vmul.f32 %v12102_v44, %v3767_v31 }
0x1106   : > { %v9891_v5 = vpop.eup %9890 }
0x1107   : > { %v9893_v36 = vpop.eup %9892  ;;  %v3769_v42 = vmul.f32 %v9891_v5, %v12042_v39  ;;  %v3811_v20 = vadd.f32 %v12110_v58, %v3789_v10 }
0x1108   : > { %v3768_v50 = vmul.f32 %v9893_v36, %v12060_v27 }
0x1109   : > { %v3791_v13 = vmul.f32 %v12102_v44, %v3769_v42 }
0x110a   : > { %v3790_v1 = vmul.f32 %v12102_v44, %v3768_v50 }
0x110b   : > { %v9895_v32 = vpop.eup %9894  ;;  %v3813_v27 = vadd.f32 %v12110_v58, %v3791_v13 }
0x110c   : > { %v3812_v52 = vadd.f32 %v12110_v58, %v3790_v1  ;;  %v3770_v12 = vmul.f32 %v9895_v32, %v12056_v51  ;;  %v9573_v51 = vld [vmem:[%s14400_s10 + $0x10] sm:$0xff]  }
0x110d   : > { %9134 = vmatprep.subr.bf16.mxu1 %v9573_v51 }
0x110e   : > { %v3825_v23 = vpack.c.bf16 %v3812_v52, %v3811_v20  ;;  %v3792_v59 = vmul.f32 %v12102_v44, %v3770_v12  ;;  %9135 = vmatpush3.bf16.msra.mxu1 %v9573_v51 }
0x110f   : > { %9136 = vmatprep.subr.bf16.mxu1 %v9574_v43 }
0x1110   : > { %9120 = vmatprep.mubr.msk.bf16.mxu0 %vm487_vm0, %v3825_v23  ;;  %v3814_v39 = vadd.f32 %v12110_v58, %v3792_v59  ;;  %v12199_v23 = vld [vmem:[%s14399_s9] ss:$0 sm:$0xff] }
0x1112   : > { %v3826_v35 = vpack.c.bf16 %v3814_v39, %v3813_v27  ;;  %9137 = vmatpush3.bf16.msra.mxu1 %v9574_v43 }
0x1113   : > { %9138 = vmatprep.subr.bf16.mxu1 %v9575_v11 }
0x1114   : > { %9121 = vmatmul.mubr.msk.bf16.gmra.mxu0 %vm487_vm0, %v3826_v35 }
0x1116   : > { %9139 = vmatpush3.bf16.msra.mxu1 %v9575_v11 }
0x112a   : > { %v9110_v7 = vpop.f32.mrf.mxu1 }
0x112b   : > { %v3544_v18 = vadd.f32 %v10276_v0, %v9110_v7 }
0x112c   : > { %v3515_v16 = vpop.f32.mrf.mxu1 }
0x112d   : > { %v3542_v33 = vadd.f32 %v10277_v53, %v3515_v16  ;;  %v12154_v2 = vadd.f32 %v11914_v30, %v3544_v18 }
0x112e   : > { %v9111_v19 = vpop.f32.mrf.mxu1 }
0x112f   : > { %v12151_v14 = vadd.f32 %v11914_v30, %v3542_v33  ;;  %v3545_v40 = vadd.f32 %v10278_v48, %v9111_v19  ;;  %v3613_v29 = vsel %vm487_vm0, %v12154_v2, 0.0 }
0x1130   : > { %v3518_v54 = vpop.f32.mrf.mxu1 }
0x1131   : > { %v3543_v46 = vadd.f32 %v10279_v38, %v3518_v54  ;;  %v3607_v3 = vsel %vm487_vm0, %v12151_v14, 0.0  ;;  %v12164_v15 = vadd.f32 %v11914_v30, %v3545_v40 }
0x1132   : > { %3608 = vadd.xlane.f32.xlu0 %v3607_v3 }
0x1133   : > { %v12161_v22 = vadd.f32 %v11914_v30, %v3543_v46  ;;  %v3616_v45 = vsel %vm487_vm0, %v12164_v15, 0.0 }
0x1135   : > { %v3610_v60 = vsel %vm487_vm0, %v12161_v22, 0.0 }
0x1136   : > { %3614 = vadd.xlane.f32.xlu0 %v3613_v29  ;;  %3611 = vadd.xlane.f32.xlu1 %v3610_v60 }
0x113a   : > { %3617 = vadd.xlane.f32.xlu1 %v3616_v45 }
0x1140   : > { %v3597_v37 = vpop.xlane.xlu0 %3596 }
0x1141   : > { %v3627_v41 = vmul.f32 0.03125, %v3597_v37 }
0x1143   : > { %v12173_v57 = vsub.f32 %v12077_v8, %v3627_v41 }
0x1144   : > { %v3600_v56 = vpop.xlane.xlu1 %3599  ;;  %v3603_v30 = vpop.xlane.xlu0 %3602 }
0x1145   : > { %v3628_v17 = vmul.f32 0.03125, %v3600_v56  ;;  %v3629_v63 = vmul.f32 0.03125, %v3603_v30  ;;  %v3659_v25 = vmul.f32 %v12173_v57, %v12173_v57 }
0x1147   : > { %v12178_v4 = vsub.f32 %v12087_v55, %v3628_v17  ;;  %v12181_v62 = vsub.f32 %v12080_v49, %v3629_v63  ;;  %v3691_v31 = vsel %vm487_vm0, %v3659_v25, 0.0 }
0x1148   : > { %v3606_v5 = vpop.xlane.xlu1 %3605  ;;  %3692 = vadd.xlane.f32.xlu0 %v3691_v31 }
0x1149   : > { %v3630_v36 = vmul.f32 0.03125, %v3606_v5  ;;  %v3660_v50 = vmul.f32 %v12178_v4, %v12178_v4  ;;  %v3661_v10 = vmul.f32 %v12181_v62, %v12181_v62 }
0x114b   : > { %v12189_v42 = vsub.f32 %v12090_v47, %v3630_v36  ;;  %v3694_v1 = vsel %vm487_vm0, %v3660_v50, 0.0  ;;  %v3697_v32 = vsel %vm487_vm0, %v3661_v10, 0.0 }
0x114c   : > { %3695 = vadd.xlane.f32.xlu1 %v3694_v1  ;;  %3698 = vadd.xlane.f32.xlu0 %v3697_v32 }
0x114d   : > { %v3662_v20 = vmul.f32 %v12189_v42, %v12189_v42 }
0x114f   : > { %v3700_v52 = vsel %vm487_vm0, %v3662_v20, 0.0 }
0x1150   : > { %3701 = vadd.xlane.f32.xlu1 %v3700_v52 }
0x119a   : > { %v9118_v12 = vpop.f32.mrf.mxu0 }
0x119b   : > { %v3921_v35 = vadd.f32 %v9118_v12, %v12199_v23 }
0x119c   : > { %v3912_v13 = vpop.f32.mrf.mxu0 }
0x119d   : > { %v3913_v27 = vadd.f32 %v12199_v23, %v3912_v13  ;;  %v3977_v0 = vmax.f32 %v3921_v35, 0.0 }
0x119e   : > { %v9119_v59 = vpop.f32.mrf.mxu0 }
0x119f   : > { %v3924_v39 = vadd.f32 %v9119_v59, %v12199_v23  ;;  %v3975_v7 = vmax.f32 %v3913_v27, 0.0 }
0x11a0   : > { %v3915_v51 = vpop.f32.mrf.mxu0 }
0x11a1   : > { %v3916_v43 = vadd.f32 %v12199_v23, %v3915_v51  ;;  %v3978_v11 = vmax.f32 %v3924_v39, 0.0 }
0x11a3   : > { %v3976_v16 = vmax.f32 %v3916_v43, 0.0  ;;  %v3992_v53 = vpack.c.bf16 %v3978_v11, %v3977_v0 }
0x11a5   : > { %v3991_v18 = vpack.c.bf16 %v3976_v16, %v3975_v7 }
0x11a7   : > { %9140 = vmatprep.mubr.msk.bf16.mxu1 %vm1052_vm2, %v3991_v18 }
0x11a8   : > { %9141 = vmatmul.mubr.msk.bf16.vlgmr.msra.gmra.mxu1 %vm1052_vm2, %v3992_v53 }
0x11bb   : > { %v3609_v33 = vpop.xlane.xlu0 %3608 }
0x11bc   : > { %v3631_v19 = vmul.f32 0.03125, %v3609_v33 }
0x11be   : > { %v12208_v54 = vsub.f32 %v12151_v14, %v3631_v19 }
0x11bf   : > { %v3612_v48 = vpop.xlane.xlu1 %3611  ;;  %v3615_v40 = vpop.xlane.xlu0 %3614 }
0x11c0   : > { %v3632_v38 = vmul.f32 0.03125, %v3612_v48  ;;  %v3633_v46 = vmul.f32 0.03125, %v3615_v40  ;;  %v3663_v3 = vmul.f32 %v12208_v54, %v12208_v54 }
0x11c2   : > { %v12213_v29 = vsub.f32 %v12161_v22, %v3632_v38  ;;  %v12216_v60 = vsub.f32 %v12154_v2, %v3633_v46  ;;  %v3703_v45 = vsel %vm487_vm0, %v3663_v3, 0.0 }
0x11c3   : > { %v3618_v37 = vpop.xlane.xlu1 %3617  ;;  %3704 = vadd.xlane.f32.xlu0 %v3703_v45 }
0x11c4   : > { %v3634_v41 = vmul.f32 0.03125, %v3618_v37  ;;  %v3664_v56 = vmul.f32 %v12213_v29, %v12213_v29  ;;  %v3665_v30 = vmul.f32 %v12216_v60, %v12216_v60 }
0x11c6   : > { %v12224_v17 = vsub.f32 %v12164_v15, %v3634_v41  ;;  %v3706_v63 = vsel %vm487_vm0, %v3664_v56, 0.0  ;;  %v3709_v25 = vsel %vm487_vm0, %v3665_v30, 0.0 }
0x11c7   : > { %3707 = vadd.xlane.f32.xlu1 %v3706_v63  ;;  %3710 = vadd.xlane.f32.xlu0 %v3709_v25 }
0x11c8   : > { %v3666_v31 = vmul.f32 %v12224_v17, %v12224_v17 }
0x11ca   : > { %v3712_v5 = vsel %vm487_vm0, %v3666_v31, 0.0 }
0x11cb   : > { %3713 = vadd.xlane.f32.xlu1 %v3712_v5 }
0x11d1   : > { %v3693_v36 = vpop.xlane.xlu0 %3692 }
0x11d2   : > { %v3723_v50 = vmul.f32 0.03125, %v3693_v36 }
0x11d4   : > { %v3739_v10 = vadd.f32 1e-05, %v3723_v50  ;;  %v9122_v1 = vpop.f32.mrf.mxu0 }
0x11d5   : > { %v3696_v32 = vpop.xlane.xlu1 %3695  ;;  %v3699_v20 = vpop.xlane.xlu0 %3698  ;;  %v3937_v11 = vadd.f32 %v9122_v1, %v12199_v23 }
0x11d6   : > { %9896 = vrsqrt.f32 %v3739_v10  ;;  %v3724_v52 = vmul.f32 0.03125, %v3696_v32  ;;  %v3725_v12 = vmul.f32 0.03125, %v3699_v20  ;;  %v3928_v13 = vpop.f32.mrf.mxu0 }
0x11d7   : > { %v3929_v35 = vadd.f32 %v12199_v23, %v3928_v13  ;;  %v3981_v48 = vmax.f32 %v3937_v11, 0.0 }
0x11d8   : > { %v3740_v59 = vadd.f32 1e-05, %v3724_v52  ;;  %v3741_v27 = vadd.f32 1e-05, %v3725_v12  ;;  %v9123_v39 = vpop.f32.mrf.mxu0 }
0x11d9   : > { %v3940_v51 = vadd.f32 %v9123_v39, %v12199_v23  ;;  %v3702_v43 = vpop.xlane.xlu1 %3701  ;;  %v3979_v33 = vmax.f32 %v3929_v35, 0.0 }
0x11da   : > { %9898 = vrsqrt.f32 %v3740_v59  ;;  %v3726_v7 = vmul.f32 0.03125, %v3702_v43  ;;  %v3931_v16 = vpop.f32.mrf.mxu0 }
0x11db   : > { %9900 = vrsqrt.f32 %v3741_v27  ;;  %v3932_v0 = vadd.f32 %v12199_v23, %v3931_v16  ;;  %v3982_v18 = vmax.f32 %v3940_v51, 0.0 }
0x11dc   : > { %v3742_v53 = vadd.f32 1e-05, %v3726_v7 }
0x11dd   : > { %v3980_v19 = vmax.f32 %v3932_v0, 0.0  ;;  %v3994_v38 = vpack.c.bf16 %v3982_v18, %v3981_v48 }
0x11de   : > { %9902 = vrsqrt.f32 %v3742_v53 }
0x11df   : > { %v3993_v40 = vpack.c.bf16 %v3980_v19, %v3979_v33 }
0x11e1   : > { %9144 = vmatprep.mubr.msk.bf16.mxu1 %vm1052_vm2, %v3993_v40 }
0x11e2   : > { %9145 = vmatmul.mubr.msk.bf16.gmra.mxu1 %vm1052_vm2, %v3994_v38 }
0x11e3   : > { %v9897_v46 = vpop.eup %9896 }
0x11e4   : > { %v3771_v3 = vmul.f32 %v9897_v46, %v12173_v57 }
0x11e6   : > { %v3793_v56 = vmul.f32 %v12102_v44, %v3771_v3 }
0x11e7   : > { %v9899_v45 = vpop.eup %9898 }
0x11e8   : > { %v9901_v37 = vpop.eup %9900  ;;  %v3772_v41 = vmul.f32 %v9899_v45, %v12178_v4  ;;  %v3815_v31 = vadd.f32 %v12110_v58, %v3793_v56 }
0x11e9   : > { %v3773_v30 = vmul.f32 %v9901_v37, %v12181_v62 }
0x11ea   : > { %v3794_v63 = vmul.f32 %v12102_v44, %v3772_v41 }
0x11eb   : > { %v9903_v25 = vpop.eup %9902  ;;  %v3795_v50 = vmul.f32 %v12102_v44, %v3773_v30 }
0x11ec   : > { %v3816_v5 = vadd.f32 %v12110_v58, %v3794_v63  ;;  %v3774_v36 = vmul.f32 %v9903_v25, %v12189_v42 }
0x11ed   : > { %v3817_v4 = vadd.f32 %v12110_v58, %v3795_v50 }
0x11ee   : > { %v3827_v57 = vpack.c.bf16 %v3816_v5, %v3815_v31  ;;  %v3796_v10 = vmul.f32 %v12102_v44, %v3774_v36  ;;  %v14573_v36 = vmov 0  }
0x11f0   : > { %9124 = vmatprep.mubr.msk.bf16.mxu0 %vm487_vm0, %v3827_v57  ;;  %v3818_v62 = vadd.f32 %v12110_v58, %v3796_v10 }
0x11f2   : > { %v3828_v1 = vpack.c.bf16 %v3818_v62, %v3817_v4 }
0x11f4   : > { %9125 = vmatmul.mubr.msk.bf16.gmra.mxu0 %vm487_vm0, %v3828_v1 }
0x124c   : > { %v3705_v32 = vpop.xlane.xlu0 %3704 }
0x124d   : > { %v3727_v20 = vmul.f32 0.03125, %v3705_v32 }
0x124f   : > { %v3743_v52 = vadd.f32 1e-05, %v3727_v20 }
0x1250   : > { %v3708_v12 = vpop.xlane.xlu1 %3707  ;;  %v3711_v13 = vpop.xlane.xlu0 %3710 }
0x1251   : > { %9904 = vrsqrt.f32 %v3743_v52  ;;  %v3728_v42 = vmul.f32 0.03125, %v3708_v12  ;;  %v3729_v59 = vmul.f32 0.03125, %v3711_v13 }
0x1253   : > { %v3744_v27 = vadd.f32 1e-05, %v3728_v42  ;;  %v3745_v39 = vadd.f32 1e-05, %v3729_v59 }
0x1254   : > { %v3714_v35 = vpop.xlane.xlu1 %3713 }
0x1255   : > { %9906 = vrsqrt.f32 %v3744_v27  ;;  %v3730_v51 = vmul.f32 0.03125, %v3714_v35 }
0x1256   : > { %9908 = vrsqrt.f32 %v3745_v39 }
0x1257   : > { %v3746_v43 = vadd.f32 1e-05, %v3730_v51 }
0x1259   : > { %9910 = vrsqrt.f32 %v3746_v43 }
0x125e   : > { %v9905_v11 = vpop.eup %9904 }
0x125f   : > { %v3775_v7 = vmul.f32 %v9905_v11, %v12208_v54 }
0x1261   : > { %v3797_v53 = vmul.f32 %v12102_v44, %v3775_v7 }
0x1262   : > { %v9907_v16 = vpop.eup %9906 }
0x1263   : > { %v9909_v0 = vpop.eup %9908  ;;  %v3776_v18 = vmul.f32 %v9907_v16, %v12213_v29  ;;  %v3819_v40 = vadd.f32 %v12110_v58, %v3797_v53 }
0x1264   : > { %v3777_v33 = vmul.f32 %v9909_v0, %v12216_v60 }
0x1265   : > { %v3798_v19 = vmul.f32 %v12102_v44, %v3776_v18 }
0x1266   : > { %v9911_v48 = vpop.eup %9910  ;;  %v3799_v3 = vmul.f32 %v12102_v44, %v3777_v33 }
0x1267   : > { %v3820_v38 = vadd.f32 %v12110_v58, %v3798_v19  ;;  %v3778_v46 = vmul.f32 %v9911_v48, %v12224_v17  ;;  %v12269_v17 = vld [vmem:[%s14401_s11] ss:$0 sm:$0xff] }
0x1268   : > { %v9142_v54 = vpop.f32.mrf.mxu1  ;;  %v3821_v56 = vadd.f32 %v12110_v58, %v3799_v3 }
0x1269   : > { %v3829_v45 = vpack.c.bf16 %v3820_v38, %v3819_v40  ;;  %v3800_v37 = vmul.f32 %v12102_v44, %v3778_v46  ;;  %v4154_v41 = vadd.f32 %v9142_v54, %v11917_v9 }
0x126a   : > { %v4089_v29 = vpop.f32.mrf.mxu1 }
0x126b   : > { %v4152_v60 = vadd.f32 %v4089_v29, %v11922_v26  ;;  %9128 = vmatprep.mubr.msk.bf16.mxu0 %vm487_vm0, %v3829_v45  ;;  %v3822_v30 = vadd.f32 %v12110_v58, %v3800_v37  ;;  %v12275_v9 = vadd.f32 %v12269_v17, %v4154_v41 }
0x126c   : > { %v9143_v63 = vpop.f32.mrf.mxu1 }
0x126d   : > { %v12272_v25 = vadd.f32 %v12269_v17, %v4152_v60  ;;  %v3830_v44 = vpack.c.bf16 %v3822_v30, %v3821_v56  ;;  %14572 = vst [vmem:[#allocation15_spill] sm:$0xff] %v12275_v9  ;;  %v4155_v26 = vadd.f32 %v9143_v63, %v11927_v28  ;;  %v4201_v28 = vsel %vm487_vm0, %v12275_v9, 0.0 }
0x126e   : > { %v4092_v31 = vpop.f32.mrf.mxu1 }
0x126f   : > { %14571 = vst [vmem:[#allocation3_spill] sm:$0xff] %v12272_v25  ;;  %v4153_v5 = vadd.f32 %v4092_v31, %v11935_v24  ;;  %9129 = vmatmul.mubr.msk.bf16.gmra.mxu0 %vm487_vm0, %v3830_v44  ;;  %v4195_v58 = vsel %vm487_vm0, %v12272_v25, 0.0  ;;  %v12287_v57 = vadd.f32 %v12269_v17, %v4155_v26 }
0x1270   : > { %4196 = vadd.xlane.f32.xlu0 %v4195_v58  ;;  %4536 = vmatprep.mubr.bf16.mxu0 %v14573_v36 }
0x1271   : > { %v12284_v50 = vadd.f32 %v12269_v17, %v4153_v5  ;;  %14575 = vst [vmem:[#allocation22_spill] sm:$0xff] %v12287_v57  ;;  %v4204_v24 = vsel %vm487_vm0, %v12287_v57, 0.0 }
0x1273   : > { %14574 = vst [vmem:[#allocation13_spill] sm:$0xff] %v12284_v50  ;;  %v4198_v10 = vsel %vm487_vm0, %v12284_v50, 0.0 }
0x1274   : > { %4199 = vadd.xlane.f32.xlu1 %v4198_v10  ;;  %4202 = vadd.xlane.f32.xlu0 %v4201_v28 }
0x1278   : > { %4205 = vadd.xlane.f32.xlu1 %v4204_v24 }
0x12a2   : > { %v9146_v4 = vpop.f32.mrf.mxu1 }
0x12a3   : > { %v4158_v1 = vadd.f32 %v9146_v4, %v11951_v21 }
0x12a4   : > { %v4105_v62 = vpop.f32.mrf.mxu1 }
0x12a5   : > { %v4156_v32 = vadd.f32 %v4105_v62, %v11957_v61  ;;  %v12301_v13 = vadd.f32 %v12269_v17, %v4158_v1  ;;  %v9578_v62 = vld [vmem:[%s14393_s3 + $0x34] ss:$8 sps:$4 sm:$0xff]   ;;  %v9576_v1 = vld [vmem:[%s14393_s3 + $0x30] ss:$8 sps:$4 sm:$0xff]  }
0x12a6   : > { %v9147_v20 = vpop.f32.mrf.mxu1  ;;  %4516 = vmatprep.subr.bf16.mxu0 %v9578_v62 }
0x12a7   : > { %v12298_v52 = vadd.f32 %v12269_v17, %v4156_v32  ;;  %14577 = vst [vmem:[#allocation14_spill] sm:$0xff] %v12301_v13  ;;  %v4159_v42 = vadd.f32 %v9147_v20, %v11963_v34  ;;  %v4213_v35 = vsel %vm487_vm0, %v12301_v13, 0.0  ;;  %4517 = vmatpush1.bf16.msra.mxu0 %v9576_v1  ;;  %v9581_v32 = vld [vmem:[%s14393_s3 + $0x24] ss:$8 sps:$4 sm:$0xff]   ;;  %v9579_v20 = vld [vmem:[%s14393_s3 + $0x20] ss:$8 sps:$4 sm:$0xff]  }
0x12a8   : > { %v4108_v12 = vpop.f32.mrf.mxu1  ;;  %4518 = vmatprep.subr.bf16.mxu0 %v9581_v32 }
0x12a9   : > { %14576 = vst [vmem:[#allocation24_spill] sm:$0xff] %v12298_v52  ;;  %v4157_v59 = vadd.f32 %v4108_v12, %v11972_v6  ;;  %v4207_v27 = vsel %vm487_vm0, %v12298_v52, 0.0  ;;  %v12311_v61 = vadd.f32 %v12269_v17, %v4159_v42 }
0x12aa   : > { %4208 = vadd.xlane.f32.xlu0 %v4207_v27 }
0x12ab   : > { %v12308_v21 = vadd.f32 %v12269_v17, %v4157_v59  ;;  %14579 = vst [vmem:[#allocation30_spill] sm:$0xff] %v12311_v61  ;;  %v4216_v34 = vsel %vm487_vm0, %v12311_v61, 0.0  ;;  %4519 = vmatpush1.bf16.msra.mxu0 %v9579_v20 }
0x12ad   : > { %14578 = vst [vmem:[#allocation16_spill] sm:$0xff] %v12308_v21  ;;  %v4210_v39 = vsel %vm487_vm0, %v12308_v21, 0.0 }
0x12ae   : > { %4211 = vadd.xlane.f32.xlu1 %v4210_v39  ;;  %4214 = vadd.xlane.f32.xlu0 %v4213_v35 }
0x12b2   : > { %4217 = vadd.xlane.f32.xlu1 %v4216_v34 }
0x12b4   : > { %v9126_v6 = vpop.f32.mrf.mxu0 }
0x12b5   : > { %v3953_v16 = vadd.f32 %v9126_v6, %v12199_v23 }
0x12b6   : > { %v3944_v51 = vpop.f32.mrf.mxu0 }
0x12b7   : > { %v3945_v11 = vadd.f32 %v12199_v23, %v3944_v51  ;;  %v3985_v48 = vmax.f32 %v3953_v16, 0.0 }
0x12b8   : > { %v9127_v43 = vpop.f32.mrf.mxu0 }
0x12b9   : > { %v3956_v7 = vadd.f32 %v9127_v43, %v12199_v23  ;;  %v3983_v33 = vmax.f32 %v3945_v11, 0.0 }
0x12ba   : > { %v3947_v0 = vpop.f32.mrf.mxu0 }
0x12bb   : > { %v3948_v18 = vadd.f32 %v12199_v23, %v3947_v0  ;;  %v3986_v53 = vmax.f32 %v3956_v7, 0.0 }
0x12bd   : > { %v3984_v19 = vmax.f32 %v3948_v18, 0.0  ;;  %v3996_v38 = vpack.c.bf16 %v3986_v53, %v3985_v48 }
0x12bf   : > { %v3995_v40 = vpack.c.bf16 %v3984_v19, %v3983_v33 }
0x12c1   : > { %9148 = vmatprep.mubr.msk.bf16.mxu1 %vm1052_vm2, %v3995_v40 }
0x12c2   : > { %9149 = vmatmul.mubr.msk.bf16.gmra.mxu1 %vm1052_vm2, %v3996_v38 }
0x12f9   : > { %v4197_v46 = vpop.xlane.xlu0 %4196 }
0x12fa   : > { %v4243_v3 = vmul.f32 0.03125, %v4197_v46 }
0x12fc   : > { %v12326_v54 = vsub.f32 %v12272_v25, %v4243_v3 }
0x12fd   : > { %v4200_v45 = vpop.xlane.xlu1 %4199  ;;  %v4203_v37 = vpop.xlane.xlu0 %4202 }
0x12fe   : > { %v4244_v29 = vmul.f32 0.03125, %v4200_v45  ;;  %v4245_v41 = vmul.f32 0.03125, %v4203_v37  ;;  %v4275_v60 = vmul.f32 %v12326_v54, %v12326_v54 }
0x1300   : > { %v12331_v56 = vsub.f32 %v12284_v50, %v4244_v29  ;;  %v12334_v30 = vsub.f32 %v12275_v9, %v4245_v41  ;;  %v4291_v63 = vsel %vm487_vm0, %v4275_v60, 0.0 }
0x1301   : > { %v4206_v44 = vpop.xlane.xlu1 %4205  ;;  %4292 = vadd.xlane.f32.xlu0 %v4291_v63 }
0x1302   : > { %v4246_v31 = vmul.f32 0.03125, %v4206_v44  ;;  %v4276_v26 = vmul.f32 %v12331_v56, %v12331_v56  ;;  %v4277_v5 = vmul.f32 %v12334_v30, %v12334_v30 }
0x1304   : > { %v12342_v58 = vsub.f32 %v12287_v57, %v4246_v31  ;;  %v4294_v10 = vsel %vm487_vm0, %v4276_v26, 0.0  ;;  %v4297_v28 = vsel %vm487_vm0, %v4277_v5, 0.0 }
0x1305   : > { %4295 = vadd.xlane.f32.xlu1 %v4294_v10  ;;  %4298 = vadd.xlane.f32.xlu0 %v4297_v28 }
0x1306   : > { %v4278_v24 = vmul.f32 %v12342_v58, %v12342_v58 }
0x1308   : > { %v4300_v4 = vsel %vm487_vm0, %v4278_v24, 0.0 }
0x1309   : > { %4301 = vadd.xlane.f32.xlu1 %v4300_v4 }
0x132f   : > { %v9130_v12 = vpop.f32.mrf.mxu0 }
0x1330   : > { %v3969_v6 = vadd.f32 %v9130_v12, %v12199_v23 }
0x1331   : > { %v3960_v42 = vpop.f32.mrf.mxu0 }
0x1332   : > { %v3961_v39 = vadd.f32 %v12199_v23, %v3960_v42  ;;  %v3989_v48 = vmax.f32 %v3969_v6, 0.0 }
0x1333   : > { %v9131_v59 = vpop.f32.mrf.mxu0  ;;  %v4209_v27 = vpop.xlane.xlu0 %4208 }
0x1334   : > { %v3972_v35 = vadd.f32 %v9131_v59, %v12199_v23  ;;  %v4247_v34 = vmul.f32 0.03125, %v4209_v27  ;;  %v3987_v18 = vmax.f32 %v3961_v39, 0.0 }
0x1335   : > { %v3963_v51 = vpop.f32.mrf.mxu0 }
0x1336   : > { %v12365_v43 = vsub.f32 %v12298_v52, %v4247_v34  ;;  %v3964_v11 = vadd.f32 %v12199_v23, %v3963_v51  ;;  %v3990_v7 = vmax.f32 %v3972_v35, 0.0 }
0x1337   : > { %v4212_v16 = vpop.xlane.xlu1 %4211  ;;  %v4215_v0 = vpop.xlane.xlu0 %4214 }
0x1338   : > { %v3988_v53 = vmax.f32 %v3964_v11, 0.0  ;;  %v4248_v33 = vmul.f32 0.03125, %v4212_v16  ;;  %v4249_v19 = vmul.f32 0.03125, %v4215_v0  ;;  %v4279_v40 = vmul.f32 %v12365_v43, %v12365_v43 }
0x1339   : > { %v3998_v45 = vpack.c.bf16 %v3990_v7, %v3989_v48 }
0x133a   : > { %v3997_v38 = vpack.c.bf16 %v3988_v53, %v3987_v18  ;;  %v12371_v46 = vsub.f32 %v12308_v21, %v4248_v33  ;;  %v12374_v3 = vsub.f32 %v12301_v13, %v4249_v19  ;;  %v4303_v37 = vsel %vm487_vm0, %v4279_v40, 0.0  ;;  %v12419_v40 = vld [vmem:[%s14391_s1 + $0x1] ss:$0 sm:$0xff] }
0x133b   : > { %v4218_v23 = vpop.xlane.xlu1 %4217  ;;  %4304 = vadd.xlane.f32.xlu0 %v4303_v37 }
0x133c   : > { %v4250_v29 = vmul.f32 0.03125, %v4218_v23  ;;  %9152 = vmatprep.mubr.msk.bf16.mxu1 %vm1052_vm2, %v3997_v38  ;;  %v4280_v41 = vmul.f32 %v12371_v46, %v12371_v46  ;;  %v4281_v60 = vmul.f32 %v12374_v3, %v12374_v3 }
0x133d   : > { %9153 = vmatmul.mubr.msk.bf16.gmra.mxu1 %vm1052_vm2, %v3998_v45 }
0x133e   : > { %v12384_v63 = vsub.f32 %v12311_v61, %v4250_v29  ;;  %v4306_v44 = vsel %vm487_vm0, %v4280_v41, 0.0  ;;  %v4309_v31 = vsel %vm487_vm0, %v4281_v60, 0.0  ;;  %v12426_v29 = vld [vmem:[%s14392_s2 + $0x1] ss:$0 sm:$0xff] }
0x133f   : > { %4307 = vadd.xlane.f32.xlu1 %v4306_v44  ;;  %4310 = vadd.xlane.f32.xlu0 %v4309_v31 }
0x1340   : > { %v4282_v26 = vmul.f32 %v12384_v63, %v12384_v63 }
0x1342   : > { %v4312_v5 = vsel %vm487_vm0, %v4282_v26, 0.0 }
0x1343   : > { %4313 = vadd.xlane.f32.xlu1 %v4312_v5 }
0x1382   : > { %v9150_v10 = vpop.f32.mrf.mxu1 }
0x1383   : > { %v4162_v24 = vadd.f32 %v9150_v10, %v12080_v49 }
0x1384   : > { %v4121_v28 = vpop.f32.mrf.mxu1 }
0x1385   : > { %v4160_v4 = vadd.f32 %v4121_v28, %v12077_v8  ;;  %v12397_v20 = vadd.f32 %v12269_v17, %v4162_v24 }
0x1386   : > { %v9151_v62 = vpop.f32.mrf.mxu1 }
0x1387   : > { %v12394_v1 = vadd.f32 %v12269_v17, %v4160_v4  ;;  %14581 = vst [vmem:[#allocation18_spill] sm:$0xff] %v12397_v20  ;;  %v4163_v12 = vadd.f32 %v9151_v62, %v12090_v47  ;;  %v4225_v47 = vsel %vm487_vm0, %v12397_v20, 0.0 }
0x1388   : > { %v4124_v32 = vpop.f32.mrf.mxu1 }
0x1389   : > { %14580 = vst [vmem:[#allocation32_spill] sm:$0xff] %v12394_v1  ;;  %v4161_v42 = vadd.f32 %v4124_v32, %v12087_v55  ;;  %v4219_v59 = vsel %vm487_vm0, %v12394_v1, 0.0  ;;  %v12407_v39 = vadd.f32 %v12269_v17, %v4163_v12 }
0x138a   : > { %4220 = vadd.xlane.f32.xlu0 %v4219_v59  ;;  %v4293_v27 = vpop.xlane.xlu0 %4292 }
0x138b   : > { %v12404_v49 = vadd.f32 %v12269_v17, %v4161_v42  ;;  %v4339_v8 = vmul.f32 0.03125, %v4293_v27  ;;  %14583 = vst [vmem:[#allocation26_spill] sm:$0xff] %v12407_v39  ;;  %v4228_v0 = vsel %vm487_vm0, %v12407_v39, 0.0 }
0x138d   : > { %14582 = vst [vmem:[#allocation20_spill] sm:$0xff] %v12404_v49  ;;  %v4355_v35 = vadd.f32 1e-05, %v4339_v8  ;;  %v4222_v34 = vsel %vm487_vm0, %v12404_v49, 0.0 }
0x138e   : > { %v4296_v55 = vpop.xlane.xlu1 %4295  ;;  %4223 = vadd.xlane.f32.xlu1 %v4222_v34  ;;  %4226 = vadd.xlane.f32.xlu0 %v4225_v47  ;;  %v4299_v6 = vpop.xlane.xlu0 %4298 }
0x138f   : > { %9912 = vrsqrt.f32 %v4355_v35  ;;  %v4340_v51 = vmul.f32 0.03125, %v4296_v55  ;;  %v4341_v11 = vmul.f32 0.03125, %v4299_v6 }
0x1391   : > { %v4356_v7 = vadd.f32 1e-05, %v4340_v51  ;;  %v4357_v16 = vadd.f32 1e-05, %v4341_v11 }
0x1392   : > { %v4302_v18 = vpop.xlane.xlu1 %4301  ;;  %4229 = vadd.xlane.f32.xlu1 %v4228_v0 }
0x1393   : > { %9914 = vrsqrt.f32 %v4356_v7  ;;  %v4342_v53 = vmul.f32 0.03125, %v4302_v18 }
0x1394   : > { %9916 = vrsqrt.f32 %v4357_v16 }
0x1395   : > { %v4358_v33 = vadd.f32 1e-05, %v4342_v53 }
0x1397   : > { %9918 = vrsqrt.f32 %v4358_v33 }
0x139c   : > { %v9913_v19 = vpop.eup %9912 }
0x139d   : > { %v4387_v48 = vmul.f32 %v9913_v19, %v12326_v54 }
0x139f   : > { %v4409_v45 = vmul.f32 %v12419_v40, %v4387_v48 }
0x13a0   : > { %v9915_v38 = vpop.eup %9914 }
0x13a1   : > { %v4388_v23 = vmul.f32 %v9915_v38, %v12331_v56  ;;  %v9917_v37 = vpop.eup %9916  ;;  %v4431_v54 = vadd.f32 %v12426_v29, %v4409_v45 }
0x13a2   : > { %v4389_v31 = vmul.f32 %v9917_v37, %v12334_v30 }
0x13a3   : > { %v4410_v41 = vmul.f32 %v12419_v40, %v4388_v23 }
0x13a4   : > { %v9919_v60 = vpop.eup %9918  ;;  %v4411_v10 = vmul.f32 %v12419_v40, %v4389_v31 }
0x13a5   : > { %v4432_v44 = vadd.f32 %v12426_v29, %v4410_v41  ;;  %v4390_v26 = vmul.f32 %v9919_v60, %v12342_v58 }
0x13a6   : > { %v4433_v24 = vadd.f32 %v12426_v29, %v4411_v10 }
0x13a7   : > { %v4447_v5 = vpack.c.bf16 %v4432_v44, %v4431_v54  ;;  %v4412_v56 = vmul.f32 %v12419_v40, %v4390_v26 }
0x13a9   : > { %8366 = vmatmul.mubr.msk.bf16.vlgmr.msra.gmra.mxu0 %vm487_vm0, %v4447_v5  ;;  %v4434_v28 = vadd.f32 %v12426_v29, %v4412_v56 }
0x13aa   : > { %4546 = vmatprep.mubr.bf16.mxu0 %v14573_v36 }
0x13ab   : > { %v4448_v4 = vpack.c.bf16 %v4434_v28, %v4433_v24 }
0x13b1   : > { %8367 = vmatmul.mubr.msk.bf16.gmra.mxu0 %vm487_vm0, %v4448_v4 }
0x13b2   : > { %4556 = vmatprep.mubr.bf16.mxu0 %v14573_v36 }
0x13c4   : > { %v4305_v30 = vpop.xlane.xlu0 %4304 }
0x13c5   : > { %v4343_v58 = vmul.f32 0.03125, %v4305_v30 }
0x13c7   : > { %v4359_v62 = vadd.f32 1e-05, %v4343_v58 }
0x13c8   : > { %v4308_v32 = vpop.xlane.xlu1 %4307  ;;  %v4311_v42 = vpop.xlane.xlu0 %4310 }
0x13c9   : > { %v4344_v12 = vmul.f32 0.03125, %v4308_v32  ;;  %9920 = vrsqrt.f32 %v4359_v62  ;;  %v4345_v59 = vmul.f32 0.03125, %v4311_v42 }
0x13cb   : > { %v4360_v27 = vadd.f32 1e-05, %v4344_v12  ;;  %v4361_v8 = vadd.f32 1e-05, %v4345_v59 }
0x13cc   : > { %v4314_v35 = vpop.xlane.xlu1 %4313 }
0x13cd   : > { %9922 = vrsqrt.f32 %v4360_v27  ;;  %v4346_v34 = vmul.f32 0.03125, %v4314_v35 }
0x13ce   : > { %9924 = vrsqrt.f32 %v4361_v8 }
0x13cf   : > { %v4362_v47 = vadd.f32 1e-05, %v4346_v34 }
0x13d1   : > { %9926 = vrsqrt.f32 %v4362_v47 }
0x13d6   : > { %v9921_v55 = vpop.eup %9920 }
0x13d7   : > { %v4391_v6 = vmul.f32 %v9921_v55, %v12365_v43 }
0x13d9   : > { %v4413_v7 = vmul.f32 %v12419_v40, %v4391_v6 }
0x13da   : > { %v9923_v51 = vpop.eup %9922 }
0x13db   : > { %v4392_v11 = vmul.f32 %v9923_v51, %v12371_v46  ;;  %v9925_v16 = vpop.eup %9924  ;;  %v4435_v19 = vadd.f32 %v12426_v29, %v4413_v7 }
0x13dc   : > { %v4393_v53 = vmul.f32 %v9925_v16, %v12374_v3 }
0x13dd   : > { %v4414_v0 = vmul.f32 %v12419_v40, %v4392_v11 }
0x13de   : > { %v9927_v18 = vpop.eup %9926  ;;  %v4415_v46 = vmul.f32 %v12419_v40, %v4393_v53 }
0x13df   : > { %v4394_v33 = vmul.f32 %v9927_v18, %v12384_v63  ;;  %v4436_v48 = vadd.f32 %v12426_v29, %v4414_v0 }
0x13e0   : > { %v4437_v23 = vadd.f32 %v12426_v29, %v4415_v46 }
0x13e1   : > { %v4449_v38 = vpack.c.bf16 %v4436_v48, %v4435_v19  ;;  %v4416_v43 = vmul.f32 %v12419_v40, %v4394_v33 }
0x13e3   : > { %8368 = vmatmul.mubr.msk.bf16.gmra.mxu0 %vm487_vm0, %v4449_v38  ;;  %v4438_v45 = vadd.f32 %v12426_v29, %v4416_v43 }
0x13e4   : > { %4566 = vmatprep.mubr.bf16.mxu0 %v14573_v36 }
0x13e5   : > { %v4450_v3 = vpack.c.bf16 %v4438_v45, %v4437_v23 }
0x13eb   : > { %8369 = vmatmul.mubr.msk.bf16.gmra.mxu0 %vm487_vm0, %v4450_v3 }
0x13ec   : > { %4576 = vmatprep.mubr.bf16.mxu0 %v14573_v36 }
0x13fd   : > { %v9154_v63 = vpop.f32.mrf.mxu1 }
0x13fe   : > { %v4166_v41 = vadd.f32 %v9154_v63, %v12154_v2 }
0x13ff   : > { %v4137_v37 = vpop.f32.mrf.mxu1 }
0x1400   : > { %v4164_v60 = vadd.f32 %v4137_v37, %v12151_v14  ;;  %v12463_v26 = vadd.f32 %v12269_v17, %v4166_v41 }
0x1401   : > { %v9155_v54 = vpop.f32.mrf.mxu1 }
0x1402   : > { %v12460_v44 = vadd.f32 %v12269_v17, %v4164_v60  ;;  %14585 = vst [vmem:[#allocation34_spill] sm:$0xff] %v12463_v26  ;;  %v4167_v5 = vadd.f32 %v9155_v54, %v12164_v15  ;;  %v4237_v24 = vsel %vm487_vm0, %v12463_v26, 0.0 }
0x1403   : > { %v4140_v31 = vpop.f32.mrf.mxu1 }
0x1404   : > { %14584 = vst [vmem:[#allocation28_spill] sm:$0xff] %v12460_v44  ;;  %v4165_v56 = vadd.f32 %v4140_v31, %v12161_v22  ;;  %v4231_v10 = vsel %vm487_vm0, %v12460_v44, 0.0  ;;  %v12473_v14 = vadd.f32 %v12269_v17, %v4167_v5 }
0x1405   : > { %4232 = vadd.xlane.f32.xlu0 %v4231_v10 }
0x1406   : > { %v12470_v2 = vadd.f32 %v12269_v17, %v4165_v56  ;;  %14587 = vst [vmem:[#allocation21_spill] sm:$0xff] %v12473_v14  ;;  %v4240_v22 = vsel %vm487_vm0, %v12473_v14, 0.0 }
0x1408   : > { %14586 = vst [vmem:[#allocation36_spill] sm:$0xff] %v12470_v2  ;;  %v4234_v28 = vsel %vm487_vm0, %v12470_v2, 0.0 }
0x1409   : > { %4235 = vadd.xlane.f32.xlu1 %v4234_v28  ;;  %4238 = vadd.xlane.f32.xlu0 %v4237_v24 }
0x140d   : > { %4241 = vadd.xlane.f32.xlu1 %v4240_v22 }
0x1413   : > { %v4221_v15 = vpop.xlane.xlu0 %4220 }
0x1414   : > { %v4251_v4 = vmul.f32 0.03125, %v4221_v15 }
0x1416   : > { %v12482_v17 = vsub.f32 %v12394_v1, %v4251_v4 }
0x1417   : > { %v4224_v30 = vpop.xlane.xlu1 %4223  ;;  %v4227_v58 = vpop.xlane.xlu0 %4226 }
0x1418   : > { %v4253_v62 = vmul.f32 0.03125, %v4227_v58  ;;  %v4252_v32 = vmul.f32 0.03125, %v4224_v30  ;;  %v4283_v47 = vmul.f32 %v12482_v17, %v12482_v17 }
0x141a   : > { %v12485_v12 = vsub.f32 %v12397_v20, %v4253_v62  ;;  %v12490_v8 = vsub.f32 %v12404_v49, %v4252_v32  ;;  %v4315_v51 = vsel %vm487_vm0, %v4283_v47, 0.0 }
0x141b   : > { %v4230_v42 = vpop.xlane.xlu1 %4229 }
0x141c   : > { %v4254_v59 = vmul.f32 0.03125, %v4230_v42  ;;  %v4285_v27 = vmul.f32 %v12485_v12, %v12485_v12  ;;  %v4284_v11 = vmul.f32 %v12490_v8, %v12490_v8 }
0x141e   : > { %v12493_v35 = vsub.f32 %v12407_v39, %v4254_v59  ;;  %v4321_v34 = vsel %vm487_vm0, %v4285_v27, 0.0  ;;  %v4318_v7 = vsel %vm487_vm0, %v4284_v11, 0.0 }
0x141f   : > { %4322 = vadd.xlane.f32.xlu0 %v4321_v34 }
0x1420   : > { %v4286_v55 = vmul.f32 %v12493_v35, %v12493_v35 }
0x1422   : > { %v4324_v6 = vsel %vm487_vm0, %v4286_v55, 0.0 }
0x1423   : > { %4325 = vadd.xlane.f32.xlu1 %v4324_v6  ;;  %4316 = vadd.xlane.f32.xlu0 %v4315_v51 }
0x1427   : > { %4319 = vadd.xlane.f32.xlu1 %v4318_v7 }
0x1469   : > { %v4538_v16 = vpop.f32.mrf.mxu0 }
0x146a   : > { %v4617_v53 = vmul.f32 0.25, %v4538_v16 }
0x146b   : > { %v4540_v0 = vpop.f32.mrf.mxu0 }
0x146d   : > { %v4542_v18 = vpop.f32.mrf.mxu0 }
0x146e   : > { %v4618_v33 = vmul.f32 0.25, %v4542_v18  ;;  %v12505_v19 = vpack.c.bf16 %v4542_v18, %v4538_v16 }
0x146f   : > { %v4544_v48 = vpop.f32.mrf.mxu0 }
0x1470   : > { %v12507_v38 = vpack.c.bf16 %v4618_v33, %v4617_v53  ;;  %v12509_v43 = vpack.c.bf16 %v4544_v48, %v4540_v0 }
0x1471   : > { %v12511_v46 = vpop.f32.mrf.mxu0 }
0x1472   : > { %9164 = vmatprep.mubr.msk.bf16.mxu1 %vm962_vm1, %v12507_v38 }
0x1473   : > { %v4550_v45 = vpop.f32.mrf.mxu0 }
0x1475   : > { %v4552_v23 = vpop.f32.mrf.mxu0 }
0x1477   : > { %v4554_v3 = vpop.f32.mrf.mxu0 }
0x1478   : > { %v12515_v63 = vpack.c.bf16 %v4554_v3, %v4550_v45 }
0x148e   : > { %v4233_v37 = vpop.xlane.xlu0 %4232 }
0x148f   : > { %v4255_v41 = vmul.f32 0.03125, %v4233_v37 }
0x1491   : > { %v12518_v60 = vsub.f32 %v12460_v44, %v4255_v41 }
0x1492   : > { %v4236_v54 = vpop.xlane.xlu1 %4235  ;;  %v4239_v31 = vpop.xlane.xlu0 %4238 }
0x1493   : > { %v4256_v5 = vmul.f32 0.03125, %v4236_v54  ;;  %v4257_v56 = vmul.f32 0.03125, %v4239_v31  ;;  %v4287_v10 = vmul.f32 %v12518_v60, %v12518_v60 }
0x1495   : > { %v12523_v28 = vsub.f32 %v12470_v2, %v4256_v5  ;;  %v12526_v24 = vsub.f32 %v12463_v26, %v4257_v56  ;;  %v4327_v22 = vsel %vm487_vm0, %v4287_v10, 0.0  ;;  %v12550_v10 = vpack.c.bf16 %v4552_v23, %v12511_v46 }
0x1496   : > { %v4242_v15 = vpop.xlane.xlu1 %4241  ;;  %4328 = vadd.xlane.f32.xlu0 %v4327_v22  ;;  %v4620_v22 = vmul.f32 0.25, %v4552_v23 }
0x1497   : > { %v4258_v4 = vmul.f32 0.03125, %v4242_v15  ;;  %v4288_v30 = vmul.f32 %v12523_v28, %v12523_v28  ;;  %v4289_v32 = vmul.f32 %v12526_v24, %v12526_v24 }
0x1499   : > { %v12532_v58 = vsub.f32 %v12473_v14, %v4258_v4  ;;  %v4330_v62 = vsel %vm487_vm0, %v4288_v30, 0.0  ;;  %v4333_v42 = vsel %vm487_vm0, %v4289_v32, 0.0  ;;  %v4619_v4 = vmul.f32 0.25, %v12511_v46 }
0x149a   : > { %4331 = vadd.xlane.f32.xlu1 %v4330_v62 }
0x149b   : > { %v4290_v59 = vmul.f32 %v12532_v58, %v12532_v58 }
0x149d   : > { %v4336_v27 = vsel %vm487_vm0, %v4290_v59, 0.0 }
0x149e   : > { %4334 = vadd.xlane.f32.xlu1 %v4333_v42  ;;  %v12566_v42 = vpack.c.bf16 %v4620_v22, %v4619_v4 }
0x14a2   : > { %4337 = vadd.xlane.f32.xlu1 %v4336_v27 }
0x14a3   : > { %v4558_v34 = vpop.f32.mrf.mxu0 }
0x14a5   : > { %v4560_v47 = vpop.f32.mrf.mxu0 }
0x14a7   : > { %v4562_v55 = vpop.f32.mrf.mxu0 }
0x14a8   : > { %v4323_v6 = vpop.xlane.xlu0 %4322  ;;  %v12543_v54 = vpack.c.bf16 %v4562_v55, %v4558_v34  ;;  %v4622_v30 = vmul.f32 0.25, %v4562_v55 }
0x14a9   : > { %v4564_v51 = vpop.f32.mrf.mxu0  ;;  %v4349_v33 = vmul.f32 0.03125, %v4323_v6  ;;  %v4621_v6 = vmul.f32 0.25, %v4558_v34 }
0x14ab   : > { %v4568_v11 = vpop.f32.mrf.mxu0  ;;  %v4365_v5 = vadd.f32 1e-05, %v4349_v33 }
0x14ac   : > { %v4326_v7 = vpop.xlane.xlu1 %4325  ;;  %v4317_v16 = vpop.xlane.xlu0 %4316  ;;  %v4623_v23 = vmul.f32 0.25, %v4568_v11 }
0x14ad   : > { %v4350_v0 = vmul.f32 0.03125, %v4326_v7  ;;  %v4347_v18 = vmul.f32 0.03125, %v4317_v16  ;;  %v4570_v53 = vpop.f32.mrf.mxu0  ;;  %v12574_v16 = vpack.c.bf16 %v4622_v30, %v4621_v6 }
0x14af   : > { %v4363_v48 = vadd.f32 1e-05, %v4347_v18  ;;  %v4572_v45 = vpop.f32.mrf.mxu0  ;;  %v4366_v3 = vadd.f32 1e-05, %v4350_v0 }
0x14b0   : > { %v12541_v37 = vpack.c.bf16 %v4572_v45, %v4568_v11  ;;  %v4320_v41 = vpop.xlane.xlu1 %4319  ;;  %v4624_v59 = vmul.f32 0.25, %v4572_v45 }
0x14b1   : > { %v4348_v31 = vmul.f32 0.03125, %v4320_v41  ;;  %9928 = vrsqrt.f32 %v4363_v48  ;;  %v4574_v18 = vpop.f32.mrf.mxu0 }
0x14b2   : > { %4667 = vrot.lane.b32.xlu0 %v12541_v37, %s10289_s19  ;;  %9930 = vrsqrt.f32 %v4366_v3  ;;  %v12577_v0 = vpack.c.bf16 %v4624_v59, %v4623_v23  ;;  %v12587_v48 = vpack.c.bf16 %v4574_v18, %v4570_v53 }
0x14b3   : > { %v4364_v56 = vadd.f32 1e-05, %v4348_v31  ;;  %4665 = vrot.lane.b32.xlu1 %v12543_v54, %s10289_s19 }
0x14b5   : > { %9932 = vrsqrt.f32 %v4364_v56 }
0x14b6   : > { %4663 = vrot.lane.b32.xlu0 %v12550_v10, %s10289_s19  ;;  %9934 = vrsqrt.f32 %v4365_v5 }
0x14b7   : > { %4949 = vrot.lane.b32.xlu1 %v12541_v37, %s10290_s20 }
0x14ba   : > { %4661 = vrot.lane.b32.xlu0 %v12505_v19, %s10289_s19 }
0x14bb   : > { %4947 = vrot.lane.b32.xlu1 %v12543_v54, %s10290_s20 }
0x14be   : > { %4945 = vrot.lane.b32.xlu0 %v12550_v10, %s10290_s20  ;;  %v9929_v15 = vpop.eup %9928 }
0x14bf   : > { %4943 = vrot.lane.b32.xlu1 %v12505_v19, %s10290_s20  ;;  %v4395_v62 = vmul.f32 %v9929_v15, %v12482_v17  ;;  %v9931_v32 = vpop.eup %9930 }
0x14c0   : > { %v4398_v17 = vmul.f32 %v9931_v32, %v12493_v35  ;;  %v12589_v35 = vpack.c.bf16 %v4564_v51, %v4560_v47 }
0x14c1   : > { %v4417_v46 = vmul.f32 %v12419_v40, %v4395_v62 }
0x14c2   : > { %v9933_v27 = vpop.eup %9932  ;;  %4935 = vrot.lane.b32.xlu0 %v12507_v38, %s10292_s22  ;;  %v4420_v3 = vmul.f32 %v12419_v40, %v4398_v17 }
0x14c3   : > { %v4396_v7 = vmul.f32 %v9933_v27, %v12490_v8  ;;  %4937 = vrot.lane.b32.xlu1 %v12566_v42, %s10292_s22  ;;  %v9935_v55 = vpop.eup %9934  ;;  %v4439_v11 = vadd.f32 %v12426_v29, %v4417_v46 }
0x14c4   : > { %v4397_v8 = vmul.f32 %v9935_v55, %v12485_v12  ;;  %v4442_v53 = vadd.f32 %v12426_v29, %v4420_v3 }
0x14c5   : > { %v4418_v34 = vmul.f32 %v12419_v40, %v4396_v7 }
0x14c6   : > { %4939 = vrot.lane.b32.xlu0 %v12574_v16, %s10292_s22  ;;  %v4419_v12 = vmul.f32 %v12419_v40, %v4397_v8 }
0x14c7   : > { %4941 = vrot.lane.b32.xlu1 %v12577_v0, %s10292_s22  ;;  %v4440_v33 = vadd.f32 %v12426_v29, %v4418_v34 }
0x14c8   : > { %v4441_v47 = vadd.f32 %v12426_v29, %v4419_v12 }
0x14c9   : > { %v4451_v45 = vpack.c.bf16 %v4440_v33, %v4439_v11 }
0x14ca   : > { %5126 = vrot.lane.b32.xlu0 %v12587_v48, %s10292_s22  ;;  %v4452_v51 = vpack.c.bf16 %v4442_v53, %v4441_v47 }
0x14cb   : > { %5124 = vrot.lane.b32.xlu1 %v12589_v35, %s10292_s22  ;;  %8370 = vmatmul.mubr.msk.bf16.gmra.mxu0 %vm487_vm0, %v4451_v45 }
0x14cc   : > { %4586 = vmatprep.mubr.bf16.mxu0 %v14573_v36 }
0x14d3   : > { %8371 = vmatmul.mubr.msk.bf16.gmra.mxu0 %vm487_vm0, %v4452_v51 }
0x14d4   : > { %4596 = vmatprep.mubr.bf16.mxu0 %v14573_v36 }
0x151f   : > { %v4329_v41 = vpop.xlane.xlu0 %4328 }
0x1520   : > { %v4351_v31 = vmul.f32 0.03125, %v4329_v41 }
0x1522   : > { %v4367_v5 = vadd.f32 1e-05, %v4351_v31 }
0x1523   : > { %v4332_v56 = vpop.xlane.xlu1 %4331 }
0x1524   : > { %9936 = vrsqrt.f32 %v4367_v5  ;;  %v4352_v22 = vmul.f32 0.03125, %v4332_v56  ;;  %v4668_v15 = vpop.permute.xlu0 %4667 }
0x1525   : > { %9512 = vmatprep.subr.msk.bf16.mxu1 %vm962_vm1, %v4668_v15  ;;  %v4691_v4 = vsel %vm962_vm1, %v4668_v15, 0 }
0x1526   : > { %v4368_v30 = vadd.f32 1e-05, %v4352_v22  ;;  %9157 = vmatpush3.bf16.xpose.msra.mxu1 %v4691_v4 }
0x1527   : > { %v4335_v62 = vpop.xlane.xlu1 %4334 }
0x1528   : > { %9938 = vrsqrt.f32 %v4368_v30  ;;  %v4353_v32 = vmul.f32 0.03125, %v4335_v62  ;;  %v4664_v17 = vpop.permute.xlu0 %4663 }
0x1529   : > { %v4685_v53 = vsel %vm962_vm1, %v4664_v17, 0 }
0x152a   : > { %v4369_v59 = vadd.f32 1e-05, %v4353_v32 }
0x152b   : > { %v4338_v27 = vpop.xlane.xlu1 %4337 }
0x152c   : > { %9940 = vrsqrt.f32 %v4369_v59  ;;  %v4354_v6 = vmul.f32 0.03125, %v4338_v27  ;;  %v4662_v3 = vpop.permute.xlu0 %4661 }
0x152d   : > { %v4682_v4 = vsel %vm962_vm1, %v4662_v3, 0 }
0x152e   : > { %v4370_v23 = vadd.f32 1e-05, %v4354_v6 }
0x152f   : > { %v4666_v7 = vpop.permute.xlu1 %4665 }
0x1530   : > { %9942 = vrsqrt.f32 %v4370_v23  ;;  %9513 = vmatprep.subr.msk.bf16.mxu1 %vm962_vm1, %v4666_v7  ;;  %v4688_v46 = vsel %vm962_vm1, %v4666_v7, 0  ;;  %v4946_v22 = vpop.permute.xlu0 %4945 }
0x1531   : > { %v9937_v55 = vpop.eup %9936  ;;  %9159 = vmatpush3.bf16.xpose.msra.mxu1 %v4688_v46 }
0x1532   : > { %v4399_v18 = vmul.f32 %v9937_v55, %v12518_v60  ;;  %9514 = vmatprep.subr.msk.bf16.mxu1 %vm962_vm1, %v4664_v17 }
0x1533   : > { %v4950_v34 = vpop.permute.xlu1 %4949 }
0x1534   : > { %9516 = vmatprep.subr.msk.bf16.mxu0 %vm962_vm1, %v4950_v34  ;;  %v4973_v8 = vsel %vm962_vm1, %v4950_v34, 0  ;;  %v4421_v45 = vmul.f32 %v12419_v40, %v4399_v18  ;;  %v4936_v6 = vpop.permute.xlu0 %4935 }
0x1535   : > { %v9939_v11 = vpop.eup %9938  ;;  %9189 = vmatpush3.bf16.xpose.msra.mxu0 %v4973_v8 }
0x1536   : > { %v4400_v33 = vmul.f32 %v9939_v11, %v12523_v28  ;;  %v4443_v41 = vadd.f32 %v12426_v29, %v4421_v45 }
0x1537   : > { %v4948_v12 = vpop.permute.xlu1 %4947 }
0x1538   : > { %9517 = vmatprep.subr.msk.bf16.mxu0 %vm962_vm1, %v4948_v12  ;;  %v4422_v60 = vmul.f32 %v12419_v40, %v4400_v33  ;;  %v4970_v31 = vsel %vm962_vm1, %v4948_v12, 0 }
0x1539   : > { %v9941_v47 = vpop.eup %9940  ;;  %9161 = vmatpush3.bf16.xpose.msra.mxu1 %v4685_v53 }
0x153a   : > { %v4401_v51 = vmul.f32 %v9941_v47, %v12526_v24  ;;  %9515 = vmatprep.subr.msk.bf16.mxu1 %vm962_vm1, %v4662_v3  ;;  %v4444_v28 = vadd.f32 %v12426_v29, %v4422_v60 }
0x153b   : > { %v4944_v27 = vpop.permute.xlu1 %4943 }
0x153c   : > { %v4453_v5 = vpack.c.bf16 %v4444_v28, %v4443_v41  ;;  %v4423_v24 = vmul.f32 %v12419_v40, %v4401_v51 }
0x153d   : > { %v9943_v56 = vpop.eup %9942  ;;  %9191 = vmatpush3.bf16.xpose.msra.mxu0 %v4970_v31 }
0x153e   : > { %v4402_v15 = vmul.f32 %v9943_v56, %v12532_v58  ;;  %8372 = vmatmul.mubr.msk.bf16.gmra.mxu0 %vm487_vm0, %v4453_v5  ;;  %9518 = vmatprep.subr.msk.bf16.mxu0 %vm962_vm1, %v4946_v22  ;;  %v4445_v62 = vadd.f32 %v12426_v29, %v4423_v24  ;;  %v4967_v58 = vsel %vm962_vm1, %v4946_v22, 0 }
0x153f   : > { %4606 = vmatprep.mubr.bf16.mxu0 %v14573_v36  ;;  %v4964_v36 = vsel %vm962_vm1, %v4944_v27, 0 }
0x1540   : > { %v4424_v30 = vmul.f32 %v12419_v40, %v4402_v15  ;;  %v4940_v40 = vpop.permute.xlu0 %4939 }
0x1541   : > { %9163 = vmatpush3.bf16.xpose.msra.mxu1 %v4682_v4 }
0x1542   : > { %9172 = vmatprep.subr.bf16.mxu1 %v12587_v48  ;;  %v4446_v32 = vadd.f32 %v12426_v29, %v4424_v30  ;;  %v4938_v29 = vpop.permute.xlu1 %4937 }
0x1544   : > { %v4454_v59 = vpack.c.bf16 %v4446_v32, %v4445_v62  ;;  %v12649_v23 = vpop.permute.xlu0 %5126 }
0x1545   : > { %9193 = vmatpush3.bf16.xpose.msra.mxu0 %v4967_v58 }
0x1546   : > { %8373 = vmatmul.mubr.msk.bf16.gmra.mxu0 %vm487_vm0, %v4454_v59  ;;  %9519 = vmatprep.subr.msk.bf16.mxu0 %vm962_vm1, %v4944_v27  ;;  %v4942_v7 = vpop.permute.xlu1 %4941 }
0x1547   : > { %9196 = vmatprep.mubr.msk.bf16.mxu0 %vm962_vm1, %v4936_v6 }
0x1548   : > { %9165 = vmatmul.mubr.msk.bf16.vlgmr.msra.gmra.mxu1 %vm962_vm1, %v12566_v42 }
0x1549   : > { %9168 = vmatprep.mubr.msk.bf16.mxu1 %vm962_vm1, %v12574_v16  ;;  %9173 = vmatpush3.bf16.msra.mxu1 %v12587_v48 }
0x154a   : > { %9174 = vmatprep.subr.bf16.mxu1 %v12589_v35 }
0x154d   : > { %9175 = vmatpush3.bf16.msra.mxu1 %v12589_v35  ;;  %9195 = vmatpush3.bf16.xpose.msra.mxu0 %v4964_v36 }
0x154e   : > { %9176 = vmatprep.subr.bf16.mxu1 %v12515_v63 }
0x1550   : > { %9169 = vmatmul.mubr.msk.bf16.gmra.mxu1 %vm962_vm1, %v12577_v0 }
0x1551   : > { %9177 = vmatpush3.bf16.msra.mxu1 %v12515_v63 }
0x1552   : > { %9178 = vmatprep.subr.bf16.mxu1 %v12509_v43 }
0x1554   : > { %9197 = vmatmul.mubr.msk.bf16.vlgmr.msra.gmra.mxu0 %vm962_vm1, %v4938_v29 }
0x1555   : > { %9179 = vmatpush3.bf16.msra.mxu1 %v12509_v43  ;;  %9200 = vmatprep.mubr.msk.bf16.mxu0 %vm962_vm1, %v4940_v40 }
0x1556   : > { %9204 = vmatprep.subr.bf16.mxu1 %v12649_v23 }
0x155c   : > { %9201 = vmatmul.mubr.msk.bf16.gmra.mxu0 %vm962_vm1, %v4942_v7 }
0x158b   : > { %v4578_v46 = vpop.f32.mrf.mxu0 }
0x158c   : > { %v4625_v18 = vmul.f32 0.25, %v4578_v46 }
0x158d   : > { %v4580_v55 = vpop.f32.mrf.mxu0 }
0x158f   : > { %v4582_v17 = vpop.f32.mrf.mxu0 }
0x1590   : > { %v4626_v34 = vmul.f32 0.25, %v4582_v17  ;;  %v12655_v8 = vpack.c.bf16 %v4582_v17, %v4578_v46 }
0x1591   : > { %v4584_v11 = vpop.f32.mrf.mxu0 }
0x1592   : > { %v12657_v33 = vpack.c.bf16 %v4626_v34, %v4625_v18  ;;  %v12659_v45 = vpack.c.bf16 %v4584_v11, %v4580_v55 }
0x1593   : > { %v4588_v3 = vpop.f32.mrf.mxu0 }
0x1594   : > { %v4627_v60 = vmul.f32 0.25, %v4588_v3 }
0x1595   : > { %v12661_v12 = vpop.f32.mrf.mxu0 }
0x1597   : > { %v4592_v53 = vpop.f32.mrf.mxu0 }
0x1598   : > { %v4628_v47 = vmul.f32 0.25, %v4592_v53  ;;  %v12663_v51 = vpack.c.bf16 %v4592_v53, %v4588_v3 }
0x1599   : > { %v12667_v28 = vpop.f32.mrf.mxu0 }
0x159a   : > { %v12665_v41 = vpack.c.bf16 %v4628_v47, %v4627_v60 }
0x15fe   : > { %v4598_v31 = vpop.f32.mrf.mxu0 }
0x15ff   : > { %v4629_v22 = vmul.f32 0.25, %v4598_v31 }
0x1600   : > { %v4600_v5 = vpop.f32.mrf.mxu0 }
0x1602   : > { %v4602_v56 = vpop.f32.mrf.mxu0 }
0x1603   : > { %v4630_v15 = vmul.f32 0.25, %v4602_v56  ;;  %v12669_v24 = vpack.c.bf16 %v4602_v56, %v4598_v31 }
0x1604   : > { %v4604_v4 = vpop.f32.mrf.mxu0 }
0x1605   : > { %v12671_v30 = vpack.c.bf16 %v4630_v15, %v4629_v22  ;;  %v12673_v62 = vpack.c.bf16 %v4604_v4, %v4600_v5 }
0x1606   : > { %v4608_v32 = vpop.f32.mrf.mxu0 }
0x1607   : > { %v4631_v36 = vmul.f32 0.25, %v4608_v32 }
0x1608   : > { %v4610_v58 = vpop.f32.mrf.mxu0  ;;  %v12675_v59 = vpop.f32.mrf.mxu1 }
0x1609   : > { %v4764_v27 = vsel %vm1052_vm2, %v12675_v59, -inf }
0x160a   : > { %v4612_v6 = vpop.f32.mrf.mxu0  ;;  %4765 = vmax.xlane.f32.xlu0 %v4764_v27  ;;  %v12685_v17 = vpop.f32.mrf.mxu1 }
0x160b   : > { %v4632_v40 = vmul.f32 0.25, %v4612_v6  ;;  %v12679_v29 = vpack.c.bf16 %v4612_v6, %v4608_v32  ;;  %v4758_v60 = vsel %vm1052_vm2, %v12685_v17, -inf }
0x160c   : > { %v4614_v7 = vpop.f32.mrf.mxu0  ;;  %v12691_v11 = vpop.f32.mrf.mxu1 }
0x160d   : > { %v12681_v46 = vpack.c.bf16 %v4632_v40, %v4631_v36  ;;  %v12683_v55 = vpack.c.bf16 %v4614_v7, %v4610_v58  ;;  %v4767_v32 = vsel %vm1052_vm2, %v12691_v11, -inf }
0x160e   : > { %v4730_v31 = vpop.f32.mrf.mxu1 }
0x160f   : > { %v4761_v22 = vsel %vm1052_vm2, %v4730_v31, -inf }
0x1610   : > { %v12706_v15 = vpop.f32.mrf.mxu1 }
0x1611   : > { %v4776_v36 = vsel %vm1052_vm2, %v12706_v15, -inf }
0x1612   : > { %v12714_v27 = vpop.f32.mrf.mxu1 }
0x1614   : > { %v12687_v18 = vpop.f32.mrf.mxu0  ;;  %v12722_v7 = vpop.f32.mrf.mxu1 }
0x1615   : > { %v5046_v34 = vsel %vm1052_vm2, %v12687_v18, -inf }
0x1616   : > { %5047 = vmax.xlane.f32.xlu0 %v5046_v34  ;;  %v12693_v3 = vpop.f32.mrf.mxu0 }
0x1617   : > { %v5040_v56 = vsel %vm1052_vm2, %v12693_v3, -inf }
0x1618   : > { %v12695_v53 = vpop.f32.mrf.mxu0 }
0x1619   : > { %v5049_v47 = vsel %vm1052_vm2, %v12695_v53, -inf }
0x161a   : > { %4759 = vmax.xlane.f32.xlu0 %v4758_v60  ;;  %5050 = vmax.xlane.f32.xlu1 %v5049_v47  ;;  %v12701_v5 = vpop.f32.mrf.mxu0  ;;  %v4779_v60 = vsel %vm1052_vm2, %v12722_v7, -inf }
0x161b   : > { %v5043_v58 = vsel %vm1052_vm2, %v12701_v5, -inf }
0x161c   : > { %v12708_v4 = vpop.f32.mrf.mxu0 }
0x161d   : > { %v5058_v34 = vsel %vm1052_vm2, %v12708_v4, -inf }
0x161e   : > { %5041 = vmax.xlane.f32.xlu0 %v5040_v56  ;;  %4762 = vmax.xlane.f32.xlu1 %v4761_v22  ;;  %v12716_v6 = vpop.f32.mrf.mxu0  ;;  %v4770_v56 = vsel %vm1052_vm2, %v12714_v27, -inf }
0x161f   : > { %v5052_v40 = vsel %vm1052_vm2, %v12716_v6, -inf }
0x1620   : > { %v12728_v47 = vpop.f32.mrf.mxu0 }
0x1621   : > { %v5061_v22 = vsel %vm1052_vm2, %v12728_v47, -inf }
0x1622   : > { %4768 = vmax.xlane.f32.xlu0 %v4767_v32  ;;  %5044 = vmax.xlane.f32.xlu1 %v5043_v58  ;;  %v12734_v32 = vpop.f32.mrf.mxu1 }
0x1623   : > { %v4773_v58 = vsel %vm1052_vm2, %v12734_v32, -inf }
0x1626   : > { %4777 = vmax.xlane.f32.xlu0 %v4776_v36  ;;  %5053 = vmax.xlane.f32.xlu1 %v5052_v40  ;;  %v12754_v36 = vpop.f32.mrf.mxu0 }
0x1627   : > { %v5055_v40 = vsel %vm1052_vm2, %v12754_v36, -inf }
0x162a   : > { %5059 = vmax.xlane.f32.xlu0 %v5058_v34  ;;  %4780 = vmax.xlane.f32.xlu1 %v4779_v60  ;;  %v5125_v60 = vpop.permute.xlu1 %5124 }
0x162e   : > { %4771 = vmax.xlane.f32.xlu0 %v4770_v56  ;;  %5062 = vmax.xlane.f32.xlu1 %v5061_v22 }
0x1632   : > { %4774 = vmax.xlane.f32.xlu1 %v4773_v58 }
0x1643   : > { %5120 = vrot.lane.b32.xlu1 %v12509_v43, %s10292_s22 }
0x1644   : > { %5122 = vrot.lane.b32.xlu0 %v12515_v63, %s10292_s22 }
0x1647   : > { %5243 = vrot.lane.b32.xlu1 %v12541_v37, %s10291_s21 }
0x164b   : > { %5241 = vrot.lane.b32.xlu1 %v12543_v54, %s10291_s21 }
0x164f   : > { %5237 = vrot.lane.b32.xlu1 %v12505_v19, %s10291_s21 }
0x1653   : > { %5231 = vrot.lane.b32.xlu1 %v12566_v42, %s10293_s23 }
0x1657   : > { %5235 = vrot.lane.b32.xlu1 %v12577_v0, %s10293_s23 }
0x165b   : > { %5414 = vrot.lane.b32.xlu1 %v12589_v35, %s10293_s23 }
0x165f   : > { %5410 = vrot.lane.b32.xlu1 %v12509_v43, %s10293_s23 }
0x1663   : > { %5533 = vrot.lane.b32.xlu1 %v12541_v37, %s10294_s24  ;;  %5056 = vmax.xlane.f32.xlu0 %v5055_v40 }
0x1679   : > { %5239 = vrot.lane.b32.xlu0 %v12550_v10, %s10291_s21 }
0x167d   : > { %5229 = vrot.lane.b32.xlu0 %v12507_v38, %s10293_s23 }
0x1681   : > { %5233 = vrot.lane.b32.xlu0 %v12574_v16, %s10293_s23 }
0x1685   : > { %5416 = vrot.lane.b32.xlu0 %v12587_v48, %s10293_s23 }
0x1693   : > { %v4766_v34 = vpop.xlane.xlu0 %4765 }
0x1694   : > { %v4784_v44 = vsub.f32 %v12675_v59, %v4766_v34 }
0x1696   : > { %v4794_v20 = vmul.f32 1.442695, %v4784_v44 }
0x169f   : > { %v5048_v56 = vpop.xlane.xlu0 %5047 }
0x16a3   : > { %v5051_v22 = vpop.xlane.xlu1 %5050  ;;  %v4760_v58 = vpop.xlane.xlu0 %4759 }
0x16a4   : > { %v4782_v37 = vsub.f32 %v12685_v17, %v4760_v58 }
0x16a6   : > { %v4790_v40 = vmul.f32 1.442695, %v4782_v37 }
0x16a7   : > { %v4763_v2 = vpop.xlane.xlu1 %4762  ;;  %v5042_v14 = vpop.xlane.xlu0 %5041 }
0x16a8   : > { %v4783_v26 = vsub.f32 %v4730_v31, %v4763_v2  ;;  %9944 = vpow2.f32 %v4790_v40 }
0x16aa   : > { %v4792_v49 = vmul.f32 1.442695, %v4783_v26 }
0x16ab   : > { %v5045_v39 = vpop.xlane.xlu1 %5044  ;;  %v4769_v1 = vpop.xlane.xlu0 %4768 }
0x16ac   : > { %9946 = vpow2.f32 %v4792_v49  ;;  %v4785_v21 = vsub.f32 %v12691_v11, %v4769_v1  ;;  %v5065_v59 = vsub.f32 %v12701_v5, %v5045_v39 }
0x16ad   : > { %9948 = vpow2.f32 %v4794_v20 }
0x16ae   : > { %v4796_v61 = vmul.f32 1.442695, %v4785_v21  ;;  %v5074_v49 = vmul.f32 1.442695, %v5065_v59 }
0x16af   : > { %v12773_v52 = vpop.xlane.xlu1 %5053  ;;  %v4778_v13 = vpop.xlane.xlu0 %4777 }
0x16b0   : > { %9950 = vpow2.f32 %v4796_v61  ;;  %v4788_v20 = vsub.f32 %v12706_v15, %v4778_v13  ;;  %v5064_v61 = vsub.f32 %v12693_v3, %v5042_v14  ;;  %v5067_v14 = vsub.f32 %v12695_v53, %v5051_v22 }
0x16b1   : > { %9952 = vpow2.f32 %v5074_v49  ;;  %v5066_v15 = vsub.f32 %v12687_v18, %v5048_v56 }
0x16b3   : > { %v4781_v17 = vpop.xlane.xlu1 %4780  ;;  %v12775_v58 = vpop.xlane.xlu0 %5059  ;;  %v5076_v59 = vmul.f32 1.442695, %v5066_v15 }
0x16b4   : > { %v4789_v26 = vsub.f32 %v12722_v7, %v4781_v17  ;;  %v5072_v17 = vmul.f32 1.442695, %v5064_v61 }
0x16b5   : > { %v12781_v44 = vpop.eup %9944 }
0x16b6   : > { %v4804_v11 = vmul.f32 1.442695, %v4789_v26 }
0x16b7   : > { %v12779_v2 = vpop.xlane.xlu1 %5062  ;;  %v4772_v31 = vpop.xlane.xlu0 %4771 }
0x16b8   : > { %v4786_v1 = vsub.f32 %v12714_v27, %v4772_v31  ;;  %v4802_v27 = vmul.f32 1.442695, %v4788_v20  ;;  %9954 = vpow2.f32 %v4804_v11 }
0x16b9   : > { %v12784_v21 = vpop.eup %9946 }
0x16ba   : > { %14588 = vst [vmem:[#allocation23_spill] sm:$0xff] %v12784_v21  ;;  %v4830_v39 = vpack.c.bf16 %v12784_v21, %v12781_v44  ;;  %v4798_v5 = vmul.f32 1.442695, %v4786_v1  ;;  %v12792_v37 = vpop.eup %9948 }
0x16bb   : > { %v4775_v7 = vpop.xlane.xlu1 %4774  ;;  %v5123_v26 = vpop.permute.xlu0 %5122 }
0x16bc   : > { %v4787_v34 = vsub.f32 %v12734_v32, %v4775_v7  ;;  %9180 = vmatprep.mubr.msk.bf16.mxu1 %vm1052_vm2, %v4830_v39  ;;  %9956 = vpow2.f32 %v4798_v5  ;;  %v5078_v32 = vmul.f32 1.442695, %v5067_v14  ;;  %v5070_v14 = vsub.f32 %v12708_v4, %v12775_v58 }
0x16bd   : > { %v12794_v40 = vpop.eup %9950 }
0x16be   : > { %14589 = vst [vmem:[#allocation29_spill] sm:$0xff] %v12794_v40  ;;  %v4800_v13 = vmul.f32 1.442695, %v4787_v34  ;;  %v4831_v3 = vpack.c.bf16 %v12794_v40, %v12792_v37  ;;  %v12802_v22 = vpop.eup %9952 }
0x16bf   : > { %v5121_v53 = vpop.permute.xlu1 %5120 }
0x16c0   : > { %9958 = vpow2.f32 %v4800_v13  ;;  %9181 = vmatmul.mubr.msk.bf16.vlgmr.msra.gmra.mxu1 %vm1052_vm2, %v4831_v3  ;;  %v5071_v13 = vsub.f32 %v12728_v47, %v12779_v2 }
0x16c1   : > { %9960 = vpow2.f32 %v4802_v27  ;;  %9205 = vmatpush3.bf16.msra.mxu1 %v12649_v23 }
0x16c2   : > { %9962 = vpow2.f32 %v5072_v17  ;;  %9206 = vmatprep.subr.bf16.mxu1 %v5125_v60  ;;  %v5068_v17 = vsub.f32 %v12716_v6, %v12773_v52  ;;  %v5086_v15 = vmul.f32 1.442695, %v5071_v13 }
0x16c3   : > { %9964 = vpow2.f32 %v5078_v32  ;;  %v5244_v1 = vpop.permute.xlu1 %5243 }
0x16c4   : > { %9966 = vpow2.f32 %v5076_v59  ;;  %v5267_v7 = vsel %vm962_vm1, %v5244_v1, 0  ;;  %v5080_v3 = vmul.f32 1.442695, %v5068_v17 }
0x16c5   : > { %9207 = vmatpush3.bf16.msra.mxu1 %v5125_v60  ;;  %v12804_v31 = vpop.eup %9954 }
0x16c6   : > { %9208 = vmatprep.subr.bf16.mxu1 %v5123_v26  ;;  %14590 = vst [vmem:[#allocation31_spill] sm:$0xff] %v12804_v31  ;;  %9968 = vpow2.f32 %v5080_v3 }
0x16c7   : > { %v5242_v34 = vpop.permute.xlu1 %5241  ;;  %9970 = vpow2.f32 %v5086_v15 }
0x16c8   : > { %v5264_v27 = vsel %vm962_vm1, %v5242_v34, 0 }
0x16c9   : > { %9209 = vmatpush3.bf16.msra.mxu1 %v5123_v26  ;;  %v12806_v18 = vpop.eup %9956 }
0x16ca   : > { %9210 = vmatprep.subr.bf16.mxu1 %v5121_v53 }
0x16cb   : > { %v5238_v32 = vpop.permute.xlu1 %5237 }
0x16cd   : > { %v12808_v56 = vpop.eup %9958  ;;  %9211 = vmatpush3.bf16.msra.mxu1 %v5121_v53  ;;  %v5084_v53 = vmul.f32 1.442695, %v5070_v14 }
0x16ce   : > { %14591 = vst [vmem:[#allocation17_spill] sm:$0xff] %v12808_v56  ;;  %v12810_v23 = vpop.eup %9960  ;;  %v4832_v60 = vpack.c.bf16 %v12808_v56, %v12806_v18  ;;  %9520 = vmatprep.subr.msk.bf16.mxu1 %vm962_vm1, %v5244_v1 }
0x16cf   : > { %v12814_v49 = vpop.eup %9962  ;;  %v4833_v20 = vpack.c.bf16 %v12804_v31, %v12810_v23  ;;  %v5232_v6 = vpop.permute.xlu1 %5231 }
0x16d0   : > { %9184 = vmatprep.mubr.msk.bf16.mxu1 %vm1052_vm2, %v4832_v60  ;;  %v5112_v61 = vpack.c.bf16 %v12802_v22, %v12814_v49  ;;  %v12824_v11 = vpop.eup %9964 }
0x16d1   : > { %9185 = vmatmul.mubr.msk.bf16.gmra.mxu1 %vm1052_vm2, %v4833_v20  ;;  %v12826_v39 = vpop.eup %9966 }
0x16d2   : > { %9212 = vmatprep.mubr.msk.bf16.mxu1 %vm1052_vm2, %v5112_v61  ;;  %v5113_v5 = vpack.c.bf16 %v12824_v11, %v12826_v39 }
0x16d3   : > { %v5236_v47 = vpop.permute.xlu1 %5235  ;;  %v12845_v2 = vpop.eup %9968 }
0x16d4   : > { %v12847_v61 = vpop.eup %9970 }
0x16d9   : > { %9213 = vmatmul.mubr.msk.bf16.vlgmr.msra.gmra.mxu1 %vm1052_vm2, %v5113_v5 }
0x16da   : > { %9221 = vmatpush3.bf16.xpose.msra.mxu1 %v5267_v7  ;;  %v5415_v7 = vpop.permute.xlu1 %5414 }
0x16db   : > { %9521 = vmatprep.subr.msk.bf16.mxu1 %vm962_vm1, %v5242_v34 }
0x16e2   : > { %9223 = vmatpush3.bf16.xpose.msra.mxu1 %v5264_v27 }
0x16ec   : > { %v5057_v59 = vpop.xlane.xlu0 %5056 }
0x16ed   : > { %v5069_v26 = vsub.f32 %v12754_v36, %v5057_v59  ;;  %v5258_v36 = vsel %vm962_vm1, %v5238_v32, 0 }
0x16ef   : > { %v5082_v1 = vmul.f32 1.442695, %v5069_v26 }
0x16f0   : > { %v5240_v60 = vpop.permute.xlu0 %5239 }
0x16f1   : > { %9972 = vpow2.f32 %v5082_v1  ;;  %9522 = vmatprep.subr.msk.bf16.mxu1 %vm962_vm1, %v5240_v60  ;;  %v5261_v52 = vsel %vm962_vm1, %v5240_v60, 0 }
0x16f2   : > { %9974 = vpow2.f32 %v5084_v53  ;;  %9225 = vmatpush3.bf16.xpose.msra.mxu1 %v5261_v52 }
0x16f3   : > { %9523 = vmatprep.subr.msk.bf16.mxu1 %vm962_vm1, %v5238_v32 }
0x16f4   : > { %v5230_v4 = vpop.permute.xlu0 %5229 }
0x16f8   : > { %v5234_v58 = vpop.permute.xlu0 %5233 }
0x16fa   : > { %9227 = vmatpush3.bf16.xpose.msra.mxu1 %v5258_v36 }
0x16fc   : > { %v5417_v20 = vpop.permute.xlu0 %5416 }
0x16fd   : > { %9236 = vmatprep.subr.bf16.mxu0 %v5417_v20 }
0x16fe   : > { %v12849_v5 = vpop.eup %9972  ;;  %9237 = vmatpush3.bf16.msra.mxu0 %v5417_v20 }
0x16ff   : > { %v12851_v34 = vpop.eup %9974  ;;  %9238 = vmatprep.subr.bf16.mxu0 %v5415_v7  ;;  %v5114_v27 = vpack.c.bf16 %v12849_v5, %v12845_v2 }
0x1700   : > { %v5115_v17 = vpack.c.bf16 %v12847_v61, %v12851_v34 }
0x1701   : > { %9216 = vmatprep.mubr.msk.bf16.mxu1 %vm1052_vm2, %v5114_v27 }
0x1702   : > { %9217 = vmatmul.mubr.msk.bf16.gmra.mxu1 %vm1052_vm2, %v5115_v17  ;;  %9239 = vmatpush3.bf16.msra.mxu0 %v5415_v7 }
0x1703   : > { %9228 = vmatprep.mubr.msk.bf16.mxu1 %vm962_vm1, %v5230_v4 }
0x170a   : > { %9229 = vmatmul.mubr.msk.bf16.vlgmr.msra.gmra.mxu1 %vm962_vm1, %v5232_v6 }
0x170b   : > { %9232 = vmatprep.mubr.msk.bf16.mxu1 %vm962_vm1, %v5234_v58 }
0x1712   : > { %9233 = vmatmul.mubr.msk.bf16.gmra.mxu1 %vm962_vm1, %v5236_v47 }
0x1780   : > { %v12863_v13 = vpop.f32.mrf.mxu1 }
0x1781   : > { %14592 = vst [vmem:[#allocation19_spill] sm:$0xff] %v12863_v13 }
0x1782   : > { %v12865_v14 = vpop.f32.mrf.mxu1 }
0x1783   : > { %14593 = vst [vmem:[#allocation25_spill] sm:$0xff] %v12865_v14 }
0x1784   : > { %v12867_v3 = vpop.f32.mrf.mxu1 }
0x1785   : > { %14594 = vst [vmem:[#allocation27_spill] sm:$0xff] %v12867_v3 }
0x1786   : > { %v12869_v15 = vpop.f32.mrf.mxu1 }
0x1787   : > { %14595 = vst [vmem:[#allocation33_spill] sm:$0xff] %v12869_v15 }
0x1791   : > { %v12871_v32 = vpop.f32.mrf.mxu1 }
0x1792   : > { %14596 = vst [vmem:[#allocation35_spill] sm:$0xff] %v12871_v32 }
0x1793   : > { %v12873_v59 = vpop.f32.mrf.mxu1 }
0x1794   : > { %14597 = vst [vmem:[#allocation37_spill] sm:$0xff] %v12873_v59 }
0x1795   : > { %v12875_v26 = vpop.f32.mrf.mxu1 }
0x1796   : > { %14598 = vst [vmem:[#allocation39_spill] sm:$0xff] %v12875_v26 }
0x1797   : > { %v12877_v53 = vpop.f32.mrf.mxu1 }
0x1798   : > { %14599 = vst [vmem:[#allocation41_spill] sm:$0xff] %v12877_v53 }
0x1799   : > { %v12879_v1 = vpop.f32.mrf.mxu1 }
0x179a   : > { %14600 = vst [vmem:[#allocation44_spill] sm:$0xff] %v12879_v1 }
0x179b   : > { %v12881_v60 = vpop.f32.mrf.mxu1 }
0x179c   : > { %14601 = vst [vmem:[#allocation38_spill] sm:$0xff] %v12881_v60 }
0x179d   : > { %v12883_v52 = vpop.f32.mrf.mxu1 }
0x179e   : > { %14602 = vst [vmem:[#allocation40_spill] sm:$0xff] %v12883_v52 }
0x179f   : > { %v12885_v6 = vpop.f32.mrf.mxu1 }
0x17a0   : > { %14603 = vst [vmem:[#allocation43_spill] sm:$0xff] %v12885_v6 }
0x17c2   : > { %v12887_v4 = vpop.f32.mrf.mxu1 }
0x17c3   : > { %14604 = vst [vmem:[#allocation42_spill] sm:$0xff] %v12887_v4 }
0x17c4   : > { %v12889_v47 = vpop.f32.mrf.mxu1 }
0x17c5   : > { %14605 = vst [vmem:[#allocation6_spill] sm:$0xff] %v12889_v47 }
0x17c6   : > { %v12891_v58 = vpop.f32.mrf.mxu1 }
0x17c7   : > { %14606 = vst [vmem:[#allocation8_spill] sm:$0xff] %v12891_v58 }
0x17c8   : > { %v12893_v36 = vpop.f32.mrf.mxu1 }
0x17c9   : > { %14607 = vst [vmem:[#allocation5_spill] sm:$0xff] %v12893_v36 }
0x17ca   : > { %v9230_v20 = vpop.f32.mrf.mxu1 }
0x17cb   : > { %v5340_v7 = vsel %vm1052_vm2, %v9230_v20, -inf }
0x17cc   : > { %5341 = vmax.xlane.f32.xlu0 %v5340_v7  ;;  %v5303_v27 = vpop.f32.mrf.mxu1 }
0x17cd   : > { %v5334_v50 = vsel %vm1052_vm2, %v5303_v27, -inf }
0x17ce   : > { %v9231_v17 = vpop.f32.mrf.mxu1 }
0x17cf   : > { %v5343_v9 = vsel %vm1052_vm2, %v9231_v17, -inf }
0x17d0   : > { %5335 = vmax.xlane.f32.xlu0 %v5334_v50  ;;  %v5306_v57 = vpop.f32.mrf.mxu1 }
0x17d1   : > { %v5337_v25 = vsel %vm1052_vm2, %v5306_v57, -inf }
0x17d2   : > { %5338 = vmax.xlane.f32.xlu1 %v5337_v25  ;;  %v12903_v32 = vpop.f32.mrf.mxu1 }
0x17d3   : > { %v5352_v25 = vsel %vm1052_vm2, %v12903_v32, -inf }
0x17d4   : > { %5344 = vmax.xlane.f32.xlu0 %v5343_v9  ;;  %v12905_v7 = vpop.f32.mrf.mxu1 }
0x17d5   : > { %v5346_v50 = vsel %vm1052_vm2, %v12905_v7, -inf }
0x17d6   : > { %v12907_v26 = vpop.f32.mrf.mxu1 }
0x17d8   : > { %v12913_v9 = vpop.f32.mrf.mxu1 }
0x17d9   : > { %v5349_v59 = vsel %vm1052_vm2, %v12913_v9, -inf }
0x17e3   : > { %5531 = vrot.lane.b32.xlu1 %v12543_v54, %s10294_s24  ;;  %v5355_v54 = vsel %vm1052_vm2, %v12907_v26, -inf }
0x17ea   : > { %5412 = vrot.lane.b32.xlu0 %v12515_v63, %s10293_s23 }
0x1807   : > { %5347 = vmax.xlane.f32.xlu1 %v5346_v50 }
0x1809   : > { %5353 = vmax.xlane.f32.xlu0 %v5352_v25 }
0x180b   : > { %5356 = vmax.xlane.f32.xlu1 %v5355_v54 }
0x180d   : > { %5350 = vmax.xlane.f32.xlu0 %v5349_v59 }
0x181c   : > { %5527 = vrot.lane.b32.xlu1 %v12505_v19, %s10294_s24  ;;  %v5411_v19 = vpop.permute.xlu1 %5410 }
0x1820   : > { %5521 = vrot.lane.b32.xlu1 %v12566_v42, %s14608_s18  ;;  %v5534_v42 = vpop.permute.xlu1 %5533 }
0x1823   : > { %5529 = vrot.lane.b32.xlu0 %v12550_v10, %s10294_s24 }
0x1824   : > { %5525 = vrot.lane.b32.xlu1 %v12577_v0, %s14608_s18 }
0x1827   : > { %5519 = vrot.lane.b32.xlu0 %v12507_v38, %s14608_s18 }
0x1828   : > { %5704 = vrot.lane.b32.xlu1 %v12589_v35, %s14608_s18 }
0x182b   : > { %5523 = vrot.lane.b32.xlu0 %v12574_v16, %s14608_s18 }
0x182c   : > { %5700 = vrot.lane.b32.xlu1 %v12509_v43, %s14608_s18 }
0x182f   : > { %5706 = vrot.lane.b32.xlu0 %v12587_v48, %s14608_s18 }
0x1830   : > { %5883 = vrot.lane.b32.xlu1 %v12679_v29, %s10289_s19 }
0x1855   : > { %v5342_v10 = vpop.xlane.xlu0 %5341 }
0x1856   : > { %v5360_v0 = vsub.f32 %v9230_v20, %v5342_v10 }
0x1858   : > { %v5370_v54 = vmul.f32 1.442695, %v5360_v0 }
0x1859   : > { %v5336_v38 = vpop.xlane.xlu0 %5335 }
0x185a   : > { %v5358_v59 = vsub.f32 %v5303_v27, %v5336_v38 }
0x185b   : > { %v5339_v50 = vpop.xlane.xlu1 %5338 }
0x185c   : > { %v5366_v35 = vmul.f32 1.442695, %v5358_v59  ;;  %v5359_v25 = vsub.f32 %v5306_v57, %v5339_v50 }
0x185d   : > { %v5345_v16 = vpop.xlane.xlu0 %5344 }
0x185e   : > { %v5368_v53 = vmul.f32 1.442695, %v5359_v25  ;;  %v5361_v13 = vsub.f32 %v9231_v17, %v5345_v16  ;;  %9976 = vpow2.f32 %v5366_v35 }
0x185f   : > { %v5532_v10 = vpop.permute.xlu1 %5531 }
0x1860   : > { %9978 = vpow2.f32 %v5368_v53  ;;  %v5372_v43 = vmul.f32 1.442695, %v5361_v13  ;;  %v5554_v0 = vsel %vm962_vm1, %v5532_v10, 0 }
0x1861   : > { %9980 = vpow2.f32 %v5370_v54  ;;  %v5413_v48 = vpop.permute.xlu0 %5412 }
0x1862   : > { %9982 = vpow2.f32 %v5372_v43  ;;  %9240 = vmatprep.subr.bf16.mxu0 %v5413_v48 }
0x1863   : > { %9241 = vmatpush3.bf16.msra.mxu0 %v5413_v48 }
0x1864   : > { %9242 = vmatprep.subr.bf16.mxu0 %v5411_v19 }
0x1867   : > { %9243 = vmatpush3.bf16.msra.mxu0 %v5411_v19  ;;  %v5557_v19 = vsel %vm962_vm1, %v5534_v42, 0 }
0x1868   : > { %9524 = vmatprep.subr.msk.bf16.mxu0 %vm962_vm1, %v5534_v42 }
0x186b   : > { %v12940_v20 = vpop.eup %9976 }
0x186d   : > { %v12942_v27 = vpop.eup %9978 }
0x186e   : > { %v12944_v57 = vpop.eup %9980  ;;  %v5406_v17 = vpack.c.bf16 %v12942_v27, %v12940_v20 }
0x186f   : > { %v12948_v53 = vpop.eup %9982 }
0x1870   : > { %v5407_v13 = vpack.c.bf16 %v12948_v53, %v12944_v57  ;;  %9244 = vmatprep.mubr.msk.bf16.mxu0 %vm1052_vm2, %v5406_v17 }
0x1872   : > { %9245 = vmatmul.mubr.msk.bf16.vlgmr.msra.gmra.mxu0 %vm1052_vm2, %v5407_v13 }
0x1873   : > { %9253 = vmatpush3.bf16.xpose.msra.mxu0 %v5557_v19 }
0x1874   : > { %9525 = vmatprep.subr.msk.bf16.mxu0 %vm962_vm1, %v5532_v10 }
0x187b   : > { %9255 = vmatpush3.bf16.xpose.msra.mxu0 %v5554_v0 }
0x1890   : > { %v5348_v38 = vpop.xlane.xlu1 %5347 }
0x1891   : > { %v5362_v59 = vsub.f32 %v12905_v7, %v5348_v38 }
0x1892   : > { %v5354_v50 = vpop.xlane.xlu0 %5353 }
0x1893   : > { %v5364_v35 = vsub.f32 %v12903_v32, %v5354_v50  ;;  %v5374_v54 = vmul.f32 1.442695, %v5362_v59 }
0x1894   : > { %v5357_v25 = vpop.xlane.xlu1 %5356 }
0x1895   : > { %v5365_v16 = vsub.f32 %v12907_v26, %v5357_v25  ;;  %v5378_v17 = vmul.f32 1.442695, %v5364_v35  ;;  %9984 = vpow2.f32 %v5374_v54 }
0x1896   : > { %v5351_v43 = vpop.xlane.xlu0 %5350 }
0x1897   : > { %v5380_v48 = vmul.f32 1.442695, %v5365_v16  ;;  %v5363_v42 = vsub.f32 %v12913_v9, %v5351_v43 }
0x1898   : > { %v5528_v13 = vpop.permute.xlu1 %5527 }
0x1899   : > { %v5376_v19 = vmul.f32 1.442695, %v5363_v42  ;;  %9986 = vpow2.f32 %v5380_v48  ;;  %v5548_v9 = vsel %vm962_vm1, %v5528_v13, 0  ;;  %v12987_v42 = vpack.c.bf16 %v12667_v28, %v12661_v12 }
0x189a   : > { %v5530_v10 = vpop.permute.xlu0 %5529 }
0x189b   : > { %9988 = vpow2.f32 %v5376_v19  ;;  %9526 = vmatprep.subr.msk.bf16.mxu0 %vm962_vm1, %v5530_v10  ;;  %v5551_v7 = vsel %vm962_vm1, %v5530_v10, 0 }
0x189c   : > { %9990 = vpow2.f32 %v5378_v17  ;;  %v5522_v32 = vpop.permute.xlu1 %5521  ;;  %9257 = vmatpush3.bf16.xpose.msra.mxu0 %v5551_v7 }
0x189d   : > { %9527 = vmatprep.subr.msk.bf16.mxu0 %vm962_vm1, %v5528_v13 }
0x189e   : > { %v5520_v26 = vpop.permute.xlu0 %5519 }
0x18a0   : > { %v5526_v0 = vpop.permute.xlu1 %5525 }
0x18a2   : > { %v5524_v38 = vpop.permute.xlu0 %5523  ;;  %v12966_v59 = vpop.eup %9984 }
0x18a4   : > { %9259 = vmatpush3.bf16.xpose.msra.mxu0 %v5548_v9  ;;  %v5705_v54 = vpop.permute.xlu1 %5704 }
0x18a5   : > { %9300 = vmatprep.subr.bf16.mxu0 %v12683_v55 }
0x18a6   : > { %v5707_v50 = vpop.permute.xlu0 %5706  ;;  %v12968_v35 = vpop.eup %9986 }
0x18a7   : > { %9268 = vmatprep.subr.bf16.mxu1 %v5707_v50 }
0x18a8   : > { %v12970_v25 = vpop.eup %9988  ;;  %9269 = vmatpush3.bf16.msra.mxu1 %v5707_v50 }
0x18a9   : > { %v12972_v16 = vpop.eup %9990  ;;  %9270 = vmatprep.subr.bf16.mxu1 %v5705_v54  ;;  %v5408_v43 = vpack.c.bf16 %v12970_v25, %v12966_v59 }
0x18aa   : > { %v5409_v48 = vpack.c.bf16 %v12968_v35, %v12972_v16 }
0x18ab   : > { %9248 = vmatprep.mubr.msk.bf16.mxu0 %vm1052_vm2, %v5408_v43 }
0x18ac   : > { %9249 = vmatmul.mubr.msk.bf16.gmra.mxu0 %vm1052_vm2, %v5409_v48  ;;  %9271 = vmatpush3.bf16.msra.mxu1 %v5705_v54 }
0x18ad   : > { %9260 = vmatprep.mubr.msk.bf16.mxu0 %vm962_vm1, %v5520_v26 }
0x18b4   : > { %9261 = vmatmul.mubr.msk.bf16.vlgmr.msra.gmra.mxu0 %vm962_vm1, %v5522_v32 }
0x18b5   : > { %9301 = vmatpush3.bf16.msra.mxu0 %v12683_v55  ;;  %9264 = vmatprep.mubr.msk.bf16.mxu0 %vm962_vm1, %v5524_v38 }
0x18b6   : > { %9302 = vmatprep.subr.bf16.mxu0 %v12673_v62 }
0x18b9   : > { %9303 = vmatpush3.bf16.msra.mxu0 %v12673_v62 }
0x18ba   : > { %9304 = vmatprep.subr.bf16.mxu0 %v12987_v42 }
0x18bc   : > { %9265 = vmatmul.mubr.msk.bf16.gmra.mxu0 %vm962_vm1, %v5526_v0 }
0x18bd   : > { %9305 = vmatpush3.bf16.msra.mxu0 %v12987_v42 }
0x18be   : > { %9306 = vmatprep.subr.bf16.mxu0 %v12659_v45 }
0x18c1   : > { %9307 = vmatpush3.bf16.msra.mxu0 %v12659_v45 }
0x1932   : > { %v12995_v17 = vpop.f32.mrf.mxu0 }
0x1933   : > { %14609 = vst [vmem:[#allocation10_spill] sm:$0xff] %v12995_v17 }
0x1934   : > { %v12997_v13 = vpop.f32.mrf.mxu0 }
0x1935   : > { %14610 = vst [vmem:[#allocation7_spill] sm:$0xff] %v12997_v13 }
0x1936   : > { %v12999_v19 = vpop.f32.mrf.mxu0 }
0x1937   : > { %14611 = vst [vmem:[#allocation12_spill] sm:$0xff] %v12999_v19 }
0x1938   : > { %v13001_v12 = vpop.f32.mrf.mxu0 }
0x1939   : > { %14612 = vst [vmem:[#allocation11_spill] sm:$0xff] %v13001_v12 }
0x196c   : > { %v13003_v28 = vpop.f32.mrf.mxu0 }
0x196d   : > { %14613 = vst [vmem:[#allocation9_spill] sm:$0xff] %v13003_v28 }
0x196e   : > { %v13005_v10 = vpop.f32.mrf.mxu0 }
0x196f   : > { %14614 = vst [vmem:[#allocation2_spill] sm:$0xff] %v13005_v10 }
0x1970   : > { %v13007_v7 = vpop.f32.mrf.mxu0 }
0x1971   : > { %14615 = vst [vmem:[#allocation4_spill] sm:$0xff] %v13007_v7 }
0x1972   : > { %v13009_v32 = vpop.f32.mrf.mxu0 }
0x1973   : > { %14616 = vst [vmem:[#allocation55_spill] sm:$0xff] %v13009_v32 }
0x1974   : > { %v9262_v26 = vpop.f32.mrf.mxu0 }
0x1975   : > { %v5630_v0 = vsel %vm1052_vm2, %v9262_v26, -inf }
0x1976   : > { %5631 = vmax.xlane.f32.xlu0 %v5630_v0  ;;  %v5593_v38 = vpop.f32.mrf.mxu0 }
0x1977   : > { %v5624_v50 = vsel %vm1052_vm2, %v5593_v38, -inf }
0x1978   : > { %v9263_v9 = vpop.f32.mrf.mxu0 }
0x1979   : > { %v5633_v48 = vsel %vm1052_vm2, %v9263_v9, -inf }
0x197a   : > { %5625 = vmax.xlane.f32.xlu0 %v5624_v50  ;;  %v5596_v54 = vpop.f32.mrf.mxu0 }
0x197b   : > { %v5627_v43 = vsel %vm1052_vm2, %v5596_v54, -inf }
0x197c   : > { %5628 = vmax.xlane.f32.xlu1 %v5627_v43  ;;  %v9266_v3 = vpop.f32.mrf.mxu0 }
0x197d   : > { %v5642_v50 = vsel %vm1052_vm2, %v9266_v3, -inf }
0x197e   : > { %5634 = vmax.xlane.f32.xlu0 %v5633_v48  ;;  %v5609_v0 = vpop.f32.mrf.mxu0 }
0x197f   : > { %v5636_v15 = vsel %vm1052_vm2, %v5609_v0, -inf }
0x1980   : > { %v9267_v14 = vpop.f32.mrf.mxu0 }
0x1981   : > { %v5645_v43 = vsel %vm1052_vm2, %v9267_v14, -inf }
0x1982   : > { %v5612_v7 = vpop.f32.mrf.mxu0 }
0x1983   : > { %v5639_v48 = vsel %vm1052_vm2, %v5612_v7, -inf }
0x198d   : > { %5881 = vrot.lane.b32.xlu1 %v12669_v24, %s10289_s19 }
0x1994   : > { %5702 = vrot.lane.b32.xlu0 %v12515_v63, %s14608_s18  ;;  %v5701_v63 = vpop.permute.xlu1 %5700 }
0x1998   : > { %v5884_v32 = vpop.permute.xlu1 %5883 }
0x19b1   : > { %5637 = vmax.xlane.f32.xlu1 %v5636_v15 }
0x19b3   : > { %5643 = vmax.xlane.f32.xlu0 %v5642_v50 }
0x19b5   : > { %5646 = vmax.xlane.f32.xlu1 %v5645_v43 }
0x19b7   : > { %5640 = vmax.xlane.f32.xlu0 %v5639_v48 }
0x19c6   : > { %5877 = vrot.lane.b32.xlu1 %v12655_v8, %s10289_s19 }
0x19cd   : > { %5879 = vrot.lane.b32.xlu0 %v12663_v51, %s10289_s19 }
0x19ff   : > { %v5632_v28 = vpop.xlane.xlu0 %5631 }
0x1a00   : > { %v5650_v15 = vsub.f32 %v9262_v26, %v5632_v28 }
0x1a02   : > { %v5660_v47 = vmul.f32 1.442695, %v5650_v15 }
0x1a03   : > { %v5626_v10 = vpop.xlane.xlu0 %5625 }
0x1a04   : > { %v5648_v58 = vsub.f32 %v5593_v38, %v5626_v10 }
0x1a05   : > { %v5629_v4 = vpop.xlane.xlu1 %5628 }
0x1a06   : > { %v5656_v50 = vmul.f32 1.442695, %v5648_v58  ;;  %v5649_v36 = vsub.f32 %v5596_v54, %v5629_v4 }
0x1a07   : > { %v5635_v43 = vpop.xlane.xlu0 %5634 }
0x1a08   : > { %v5658_v19 = vmul.f32 1.442695, %v5649_v36  ;;  %v5651_v17 = vsub.f32 %v9263_v9, %v5635_v43  ;;  %9992 = vpow2.f32 %v5656_v50 }
0x1a0a   : > { %9994 = vpow2.f32 %v5658_v19  ;;  %v5662_v48 = vmul.f32 1.442695, %v5651_v17  ;;  %v5907_v17 = vsel %vm962_vm1, %v5884_v32, 0 }
0x1a0b   : > { %9996 = vpow2.f32 %v5660_v47  ;;  %v5703_v12 = vpop.permute.xlu0 %5702 }
0x1a0c   : > { %9998 = vpow2.f32 %v5662_v48  ;;  %9272 = vmatprep.subr.bf16.mxu1 %v5703_v12 }
0x1a0d   : > { %9273 = vmatpush3.bf16.msra.mxu1 %v5703_v12  ;;  %v5882_v12 = vpop.permute.xlu1 %5881 }
0x1a0e   : > { %9274 = vmatprep.subr.bf16.mxu1 %v5701_v63  ;;  %v5904_v10 = vsel %vm962_vm1, %v5882_v12, 0 }
0x1a11   : > { %9275 = vmatpush3.bf16.msra.mxu1 %v5701_v63 }
0x1a12   : > { %9528 = vmatprep.subr.msk.bf16.mxu1 %vm962_vm1, %v5884_v32 }
0x1a15   : > { %v13028_v28 = vpop.eup %9992 }
0x1a17   : > { %v13030_v58 = vpop.eup %9994 }
0x1a18   : > { %v13032_v4 = vpop.eup %9996  ;;  %v5696_v36 = vpack.c.bf16 %v13030_v58, %v13028_v28 }
0x1a19   : > { %v13036_v19 = vpop.eup %9998 }
0x1a1a   : > { %v5697_v47 = vpack.c.bf16 %v13036_v19, %v13032_v4  ;;  %9276 = vmatprep.mubr.msk.bf16.mxu1 %vm1052_vm2, %v5696_v36 }
0x1a1c   : > { %9277 = vmatmul.mubr.msk.bf16.vlgmr.msra.gmra.mxu1 %vm1052_vm2, %v5697_v47 }
0x1a1d   : > { %9285 = vmatpush3.bf16.xpose.msra.mxu1 %v5907_v17 }
0x1a1e   : > { %9529 = vmatprep.subr.msk.bf16.mxu1 %vm962_vm1, %v5882_v12 }
0x1a25   : > { %9287 = vmatpush3.bf16.xpose.msra.mxu1 %v5904_v10 }
0x1a3a   : > { %v5638_v26 = vpop.xlane.xlu1 %5637 }
0x1a3b   : > { %v5652_v38 = vsub.f32 %v5609_v0, %v5638_v26 }
0x1a3c   : > { %v5644_v9 = vpop.xlane.xlu0 %5643 }
0x1a3d   : > { %v5654_v54 = vsub.f32 %v9266_v3, %v5644_v9  ;;  %v5664_v15 = vmul.f32 1.442695, %v5652_v38 }
0x1a3e   : > { %v5647_v63 = vpop.xlane.xlu1 %5646 }
0x1a3f   : > { %v5655_v50 = vsub.f32 %v9267_v14, %v5647_v63  ;;  %v5668_v47 = vmul.f32 1.442695, %v5654_v54  ;;  %10000 = vpow2.f32 %v5664_v15 }
0x1a40   : > { %v5641_v43 = vpop.xlane.xlu0 %5640 }
0x1a41   : > { %v5670_v48 = vmul.f32 1.442695, %v5655_v50  ;;  %v5653_v36 = vsub.f32 %v5612_v7, %v5641_v43 }
0x1a42   : > { %v5878_v0 = vpop.permute.xlu1 %5877 }
0x1a43   : > { %v5666_v32 = vmul.f32 1.442695, %v5653_v36  ;;  %10002 = vpow2.f32 %v5670_v48  ;;  %v5898_v14 = vsel %vm962_vm1, %v5878_v0, 0 }
0x1a44   : > { %v5880_v17 = vpop.permute.xlu0 %5879 }
0x1a45   : > { %10004 = vpow2.f32 %v5666_v32  ;;  %9530 = vmatprep.subr.msk.bf16.mxu1 %vm962_vm1, %v5880_v17  ;;  %v5901_v12 = vsel %vm962_vm1, %v5880_v17, 0 }
0x1a46   : > { %10006 = vpow2.f32 %v5668_v47  ;;  %9289 = vmatpush3.bf16.xpose.msra.mxu1 %v5901_v12 }
0x1a47   : > { %9531 = vmatprep.subr.msk.bf16.mxu1 %vm962_vm1, %v5878_v0 }
0x1a4c   : > { %v13049_v3 = vpop.eup %10000 }
0x1a4e   : > { %9291 = vmatpush3.bf16.xpose.msra.mxu1 %v5898_v14 }
0x1a50   : > { %v13051_v7 = vpop.eup %10002 }
0x1a52   : > { %v13053_v10 = vpop.eup %10004 }
0x1a53   : > { %v13055_v26 = vpop.eup %10006  ;;  %v5698_v38 = vpack.c.bf16 %v13053_v10, %v13049_v3 }
0x1a54   : > { %v5699_v9 = vpack.c.bf16 %v13051_v7, %v13055_v26 }
0x1a55   : > { %9280 = vmatprep.mubr.msk.bf16.mxu1 %vm1052_vm2, %v5698_v38 }
0x1a56   : > { %9281 = vmatmul.mubr.msk.bf16.gmra.mxu1 %vm1052_vm2, %v5699_v9 }
0x1a57   : > { %9292 = vmatprep.mubr.msk.bf16.mxu1 %vm962_vm1, %v12657_v33 }
0x1a5e   : > { %9293 = vmatmul.mubr.msk.bf16.vlgmr.msra.gmra.mxu1 %vm962_vm1, %v12665_v41 }
0x1a5f   : > { %9296 = vmatprep.mubr.msk.bf16.mxu1 %vm962_vm1, %v12671_v30 }
0x1a66   : > { %9297 = vmatmul.mubr.msk.bf16.gmra.mxu1 %vm962_vm1, %v12681_v46 }
0x1adc   : > { %v13071_v54 = vpop.f32.mrf.mxu1 }
0x1add   : > { %14617 = vst [vmem:[#allocation53_spill] sm:$0xff] %v13071_v54 }
0x1ade   : > { %v13073_v63 = vpop.f32.mrf.mxu1 }
0x1adf   : > { %14618 = vst [vmem:[#allocation59_spill] sm:$0xff] %v13073_v63 }
0x1ae0   : > { %v13075_v15 = vpop.f32.mrf.mxu1 }
0x1ae1   : > { %14619 = vst [vmem:[#allocation56_spill] sm:$0xff] %v13075_v15 }
0x1ae2   : > { %v13077_v50 = vpop.f32.mrf.mxu1 }
0x1ae3   : > { %14620 = vst [vmem:[#allocation57_spill] sm:$0xff] %v13077_v50 }
0x1b16   : > { %v13079_v43 = vpop.f32.mrf.mxu1 }
0x1b17   : > { %14621 = vst [vmem:[#allocation54_spill] sm:$0xff] %v13079_v43 }
0x1b18   : > { %v13081_v48 = vpop.f32.mrf.mxu1 }
0x1b19   : > { %14622 = vst [vmem:[#allocation48_spill] sm:$0xff] %v13081_v48 }
0x1b1a   : > { %v13083_v36 = vpop.f32.mrf.mxu1 }
0x1b1b   : > { %14623 = vst [vmem:[#allocation47_spill] sm:$0xff] %v13083_v36 }
0x1b1c   : > { %v13085_v47 = vpop.f32.mrf.mxu1 }
0x1b1d   : > { %14624 = vst [vmem:[#allocation60_spill] sm:$0xff] %v13085_v47 }
0x1b1e   : > { %v9294_v32 = vpop.f32.mrf.mxu1 }
0x1b1f   : > { %v5980_v17 = vsel %vm1052_vm2, %v9294_v32, -inf }
0x1b20   : > { %5981 = vmax.xlane.f32.xlu0 %v5980_v17  ;;  %v5943_v12 = vpop.f32.mrf.mxu1 }
0x1b21   : > { %v5974_v14 = vsel %vm1052_vm2, %v5943_v12, -inf }
0x1b22   : > { %v9295_v0 = vpop.f32.mrf.mxu1 }
0x1b23   : > { %v5983_v43 = vsel %vm1052_vm2, %v9295_v0, -inf }
0x1b24   : > { %5975 = vmax.xlane.f32.xlu0 %v5974_v14  ;;  %v5946_v38 = vpop.f32.mrf.mxu1 }
0x1b25   : > { %v5977_v9 = vsel %vm1052_vm2, %v5946_v38, -inf }
0x1b26   : > { %5978 = vmax.xlane.f32.xlu1 %v5977_v9  ;;  %v13091_v48 = vpop.f32.mrf.mxu1 }
0x1b27   : > { %v5992_v36 = vsel %vm1052_vm2, %v13091_v48, -inf }
0x1b28   : > { %5984 = vmax.xlane.f32.xlu0 %v5983_v43  ;;  %v13095_v47 = vpop.f32.mrf.mxu1 }
0x1b29   : > { %v5986_v17 = vsel %vm1052_vm2, %v13095_v47, -inf }
0x1b2a   : > { %v9299_v43 = vpop.f32.mrf.mxu1 }
0x1b2c   : > { %5993 = vmax.xlane.f32.xlu0 %v5992_v36  ;;  %v5995_v36 = vsel %vm1052_vm2, %v9299_v43, -inf  ;;  %v13112_v14 = vpop.f32.mrf.mxu1 }
0x1b2d   : > { %v5989_v9 = vsel %vm1052_vm2, %v13112_v14, -inf }
0x1b30   : > { %5987 = vmax.xlane.f32.xlu0 %v5986_v17 }
0x1b37   : > { %6163 = vrot.lane.b32.xlu1 %v12669_v24, %s10290_s20 }
0x1b3b   : > { %6161 = vrot.lane.b32.xlu1 %v12663_v51, %s10290_s20 }
0x1b46   : > { %6165 = vrot.lane.b32.xlu0 %v12679_v29, %s10290_s20 }
0x1b4a   : > { %6151 = vrot.lane.b32.xlu0 %v12657_v33, %s10292_s22 }
0x1b4e   : > { %6155 = vrot.lane.b32.xlu0 %v12671_v30, %s10292_s22 }
0x1b52   : > { %6342 = vrot.lane.b32.xlu0 %v12683_v55, %s10292_s22 }
0x1b5f   : > { %5996 = vmax.xlane.f32.xlu1 %v5995_v36 }
0x1b63   : > { %5990 = vmax.xlane.f32.xlu1 %v5989_v9 }
0x1b74   : > { %6159 = vrot.lane.b32.xlu1 %v12655_v8, %s10290_s20 }
0x1b78   : > { %6153 = vrot.lane.b32.xlu1 %v12665_v41, %s10292_s22 }
0x1b7c   : > { %6157 = vrot.lane.b32.xlu1 %v12681_v46, %s10292_s22 }
0x1b80   : > { %6340 = vrot.lane.b32.xlu1 %v12673_v62, %s10292_s22 }
0x1b84   : > { %6336 = vrot.lane.b32.xlu1 %v12659_v45, %s10292_s22 }
0x1b88   : > { %6459 = vrot.lane.b32.xlu1 %v12679_v29, %s10291_s21 }
0x1ba9   : > { %v5982_v17 = vpop.xlane.xlu0 %5981 }
0x1baa   : > { %v6000_v36 = vsub.f32 %v9294_v32, %v5982_v17 }
0x1bac   : > { %v6010_v13 = vmul.f32 1.442695, %v6000_v36 }
0x1bad   : > { %v5976_v9 = vpop.xlane.xlu0 %5975 }
0x1bae   : > { %v5998_v15 = vsub.f32 %v5943_v12, %v5976_v9 }
0x1baf   : > { %v5979_v54 = vpop.xlane.xlu1 %5978 }
0x1bb0   : > { %v6006_v50 = vmul.f32 1.442695, %v5998_v15  ;;  %v5999_v63 = vsub.f32 %v5946_v38, %v5979_v54 }
0x1bb1   : > { %v5985_v6 = vpop.xlane.xlu0 %5984 }
0x1bb2   : > { %v6008_v60 = vmul.f32 1.442695, %v5999_v63  ;;  %v6001_v1 = vsub.f32 %v9295_v0, %v5985_v6  ;;  %10008 = vpow2.f32 %v6006_v50 }
0x1bb4   : > { %10010 = vpow2.f32 %v6008_v60  ;;  %v6012_v52 = vmul.f32 1.442695, %v6001_v1 }
0x1bb5   : > { %10012 = vpow2.f32 %v6010_v13  ;;  %v5994_v31 = vpop.xlane.xlu0 %5993  ;;  %v6164_v13 = vpop.permute.xlu1 %6163 }
0x1bb6   : > { %10014 = vpow2.f32 %v6012_v52  ;;  %v6186_v0 = vsel %vm962_vm1, %v6164_v13, 0 }
0x1bb9   : > { %v5988_v56 = vpop.xlane.xlu0 %5987  ;;  %v6162_v38 = vpop.permute.xlu1 %6161 }
0x1bba   : > { %v6183_v17 = vsel %vm962_vm1, %v6162_v38, 0  ;;  %v6002_v36 = vsub.f32 %v13095_v47, %v5988_v56 }
0x1bbd   : > { %v6166_v40 = vpop.permute.xlu0 %6165 }
0x1bbe   : > { %9532 = vmatprep.subr.msk.bf16.mxu0 %vm962_vm1, %v6166_v40  ;;  %v6189_v52 = vsel %vm962_vm1, %v6166_v40, 0 }
0x1bbf   : > { %v13129_v32 = vpop.eup %10008 }
0x1bc0   : > { %14625 = vst [vmem:[#allocation46_spill] sm:$0xff] %v13129_v32 }
0x1bc1   : > { %v13131_v12 = vpop.eup %10010  ;;  %v6152_v15 = vpop.permute.xlu0 %6151 }
0x1bc2   : > { %14626 = vst [vmem:[#allocation45_spill] sm:$0xff] %v13131_v12  ;;  %v13133_v54 = vpop.eup %10012  ;;  %v6046_v6 = vpack.c.bf16 %v13131_v12, %v13129_v32 }
0x1bc3   : > { %14627 = vst [vmem:[#allocation58_spill] sm:$0xff] %v13133_v54  ;;  %v13137_v63 = vpop.eup %10014 }
0x1bc4   : > { %14628 = vst [vmem:[#allocation52_spill] sm:$0xff] %v13137_v63  ;;  %v6047_v1 = vpack.c.bf16 %v13137_v63, %v13133_v54  ;;  %9308 = vmatprep.mubr.msk.bf16.mxu0 %vm1052_vm2, %v6046_v6  ;;  %v6004_v6 = vsub.f32 %v13091_v48, %v5994_v31 }
0x1bc5   : > { %v6156_v60 = vpop.permute.xlu0 %6155 }
0x1bc6   : > { %9309 = vmatmul.mubr.msk.bf16.vlgmr.msra.gmra.mxu0 %vm1052_vm2, %v6047_v1  ;;  %v6014_v1 = vmul.f32 1.442695, %v6002_v36  ;;  %v6018_v12 = vmul.f32 1.442695, %v6004_v6 }
0x1bc7   : > { %9317 = vmatpush3.bf16.xpose.msra.mxu0 %v6189_v52 }
0x1bc8   : > { %9533 = vmatprep.subr.msk.bf16.mxu0 %vm962_vm1, %v6164_v13  ;;  %10016 = vpow2.f32 %v6014_v1 }
0x1bc9   : > { %v6343_v50 = vpop.permute.xlu0 %6342 }
0x1bca   : > { %9332 = vmatprep.subr.bf16.mxu1 %v6343_v50 }
0x1bcb   : > { %9333 = vmatpush3.bf16.msra.mxu1 %v6343_v50 }
0x1bcf   : > { %9319 = vmatpush3.bf16.xpose.msra.mxu0 %v6186_v0 }
0x1bd0   : > { %9534 = vmatprep.subr.msk.bf16.mxu0 %vm962_vm1, %v6162_v38 }
0x1bd5   : > { %v13153_v31 = vpop.eup %10016 }
0x1bd6   : > { %14629 = vst [vmem:[#allocation51_spill] sm:$0xff] %v13153_v31 }
0x1bd7   : > { %9321 = vmatpush3.bf16.xpose.msra.mxu0 %v6183_v17 }
0x1be8   : > { %v5997_v9 = vpop.xlane.xlu1 %5996 }
0x1be9   : > { %v6005_v40 = vsub.f32 %v9299_v43, %v5997_v9 }
0x1beb   : > { %v6020_v52 = vmul.f32 1.442695, %v6005_v40 }
0x1bec   : > { %v5991_v63 = vpop.xlane.xlu1 %5990 }
0x1bed   : > { %v6003_v50 = vsub.f32 %v13112_v14, %v5991_v63  ;;  %10018 = vpow2.f32 %v6020_v52 }
0x1bef   : > { %v6016_v13 = vmul.f32 1.442695, %v6003_v50 }
0x1bf0   : > { %v6160_v0 = vpop.permute.xlu1 %6159 }
0x1bf1   : > { %10020 = vpow2.f32 %v6016_v13  ;;  %9535 = vmatprep.subr.msk.bf16.mxu0 %vm962_vm1, %v6160_v0  ;;  %v6180_v38 = vsel %vm962_vm1, %v6160_v0, 0 }
0x1bf2   : > { %10022 = vpow2.f32 %v6018_v12  ;;  %9323 = vmatpush3.bf16.xpose.msra.mxu0 %v6180_v38 }
0x1bf4   : > { %v6154_v56 = vpop.permute.xlu1 %6153 }
0x1bf8   : > { %v6158_v47 = vpop.permute.xlu1 %6157 }
0x1bfa   : > { %v13155_v43 = vpop.eup %10018 }
0x1bfb   : > { %14630 = vst [vmem:[#allocation50_spill] sm:$0xff] %v13155_v43 }
0x1bfc   : > { %v6341_v48 = vpop.permute.xlu1 %6340 }
0x1bfd   : > { %9334 = vmatprep.subr.bf16.mxu1 %v6341_v48 }
0x1bfe   : > { %v13157_v14 = vpop.eup %10020  ;;  %9335 = vmatpush3.bf16.msra.mxu1 %v6341_v48 }
0x1bff   : > { %14631 = vst [vmem:[#allocation49_spill] sm:$0xff] %v13157_v14  ;;  %v13159_v63 = vpop.eup %10022  ;;  %v6048_v17 = vpack.c.bf16 %v13157_v14, %v13153_v31 }
0x1c00   : > { %14632 = vst [vmem:[#allocation61_spill] sm:$0xff] %v13159_v63  ;;  %v6049_v12 = vpack.c.bf16 %v13155_v43, %v13159_v63 }
0x1c01   : > { %9312 = vmatprep.mubr.msk.bf16.mxu0 %vm1052_vm2, %v6048_v17 }
0x1c02   : > { %9313 = vmatmul.mubr.msk.bf16.gmra.mxu0 %vm1052_vm2, %v6049_v12 }
0x1c03   : > { %9324 = vmatprep.mubr.msk.bf16.mxu0 %vm962_vm1, %v6152_v15 }
0x1c0a   : > { %9325 = vmatmul.mubr.msk.bf16.vlgmr.msra.gmra.mxu0 %vm962_vm1, %v6154_v56 }
0x1c0b   : > { %9328 = vmatprep.mubr.msk.bf16.mxu0 %vm962_vm1, %v6156_v60 }
0x1c12   : > { %9329 = vmatmul.mubr.msk.bf16.gmra.mxu0 %vm962_vm1, %v6158_v47 }
0x1c86   : > { %v13171_v36 = vpop.f32.mrf.mxu0 }
0x1c87   : > { %14633 = vst [vmem:[#allocation62_spill] sm:$0xff] %v13171_v36 }
0x1c88   : > { %v13173_v9 = vpop.f32.mrf.mxu0 }
0x1c89   : > { %14634 = vst [vmem:[#allocation63_spill] sm:$0xff] %v13173_v9 }
0x1c8a   : > { %v13175_v40 = vpop.f32.mrf.mxu0 }
0x1c8b   : > { %14635 = vst [vmem:[#allocation64_spill] sm:$0xff] %v13175_v40 }
0x1c8c   : > { %v13177_v6 = vpop.f32.mrf.mxu0 }
0x1c8d   : > { %14636 = vst [vmem:[#allocation65_spill] sm:$0xff] %v13177_v6 }
0x1cc2   : > { %v13179_v1 = vpop.f32.mrf.mxu0 }
0x1cc3   : > { %14637 = vst [vmem:[#allocation66_spill] sm:$0xff] %v13179_v1 }
0x1cc4   : > { %v13181_v52 = vpop.f32.mrf.mxu0 }
0x1cc5   : > { %14638 = vst [vmem:[#allocation67_spill] sm:$0xff] %v13181_v52 }
0x1cc6   : > { %v13183_v50 = vpop.f32.mrf.mxu0 }
0x1cc7   : > { %14639 = vst [vmem:[#allocation68_spill] sm:$0xff] %v13183_v50 }
0x1cc8   : > { %v13185_v15 = vpop.f32.mrf.mxu0 }
0x1cc9   : > { %14640 = vst [vmem:[#allocation69_spill] sm:$0xff] %v13185_v15 }
0x1cca   : > { %v9326_v13 = vpop.f32.mrf.mxu0 }
0x1ccb   : > { %v6262_v60 = vsel %vm1052_vm2, %v9326_v13, -inf }
0x1ccc   : > { %6263 = vmax.xlane.f32.xlu0 %v6262_v60  ;;  %v6225_v0 = vpop.f32.mrf.mxu0 }
0x1ccd   : > { %v6256_v56 = vsel %vm1052_vm2, %v6225_v0, -inf }
0x1cce   : > { %v9327_v38 = vpop.f32.mrf.mxu0 }
0x1ccf   : > { %v6265_v17 = vsel %vm1052_vm2, %v9327_v38, -inf }
0x1cd0   : > { %6257 = vmax.xlane.f32.xlu0 %v6256_v56  ;;  %v6228_v47 = vpop.f32.mrf.mxu0 }
0x1cd1   : > { %v6259_v48 = vsel %vm1052_vm2, %v6228_v47, -inf }
0x1cd2   : > { %6260 = vmax.xlane.f32.xlu1 %v6259_v48  ;;  %v13195_v12 = vpop.f32.mrf.mxu0 }
0x1cd3   : > { %v6274_v48 = vsel %vm1052_vm2, %v13195_v12, -inf }
0x1cd4   : > { %6266 = vmax.xlane.f32.xlu0 %v6265_v17  ;;  %v13197_v60 = vpop.f32.mrf.mxu0 }
0x1cd5   : > { %v6268_v56 = vsel %vm1052_vm2, %v13197_v60, -inf }
0x1cd6   : > { %v13199_v9 = vpop.f32.mrf.mxu0 }
0x1cd7   : > { %v6277_v6 = vsel %vm1052_vm2, %v13199_v9, -inf }
0x1cd8   : > { %v13205_v17 = vpop.f32.mrf.mxu0 }
0x1cd9   : > { %v6271_v50 = vsel %vm1052_vm2, %v13205_v17, -inf }
0x1ce3   : > { %6457 = vrot.lane.b32.xlu1 %v12669_v24, %s10291_s21 }
0x1cea   : > { %6338 = vrot.lane.b32.xlu0 %v12987_v42, %s10292_s22 }
0x1d07   : > { %6269 = vmax.xlane.f32.xlu1 %v6268_v56 }
0x1d09   : > { %6275 = vmax.xlane.f32.xlu0 %v6274_v48 }
0x1d0b   : > { %6278 = vmax.xlane.f32.xlu1 %v6277_v6  ;;  %v6337_v6 = vpop.permute.xlu1 %6336 }
0x1d0d   : > { %6272 = vmax.xlane.f32.xlu0 %v6271_v50 }
0x1d0f   : > { %v6460_v56 = vpop.permute.xlu1 %6459 }
0x1d1c   : > { %6453 = vrot.lane.b32.xlu1 %v12655_v8, %s10291_s21 }
0x1d20   : > { %6447 = vrot.lane.b32.xlu1 %v12665_v41, %s10293_s23 }
0x1d23   : > { %6455 = vrot.lane.b32.xlu0 %v12663_v51, %s10291_s21 }
0x1d24   : > { %6451 = vrot.lane.b32.xlu1 %v12681_v46, %s10293_s23 }
0x1d27   : > { %6445 = vrot.lane.b32.xlu0 %v12657_v33, %s10293_s23 }
0x1d28   : > { %6630 = vrot.lane.b32.xlu1 %v12673_v62, %s10293_s23 }
0x1d2b   : > { %6449 = vrot.lane.b32.xlu0 %v12671_v30, %s10293_s23 }
0x1d2c   : > { %6626 = vrot.lane.b32.xlu1 %v12659_v45, %s10293_s23 }
0x1d2f   : > { %6632 = vrot.lane.b32.xlu0 %v12683_v55, %s10293_s23 }
0x1d30   : > { %6749 = vrot.lane.b32.xlu1 %v12679_v29, %s10294_s24 }
0x1d55   : > { %v6264_v50 = vpop.xlane.xlu0 %6263 }
0x1d56   : > { %v6282_v48 = vsub.f32 %v9326_v13, %v6264_v50 }
0x1d58   : > { %v6292_v43 = vmul.f32 1.442695, %v6282_v48 }
0x1d59   : > { %v6258_v1 = vpop.xlane.xlu0 %6257 }
0x1d5a   : > { %v6280_v15 = vsub.f32 %v6225_v0, %v6258_v1 }
0x1d5b   : > { %v6261_v52 = vpop.xlane.xlu1 %6260 }
0x1d5c   : > { %v6288_v40 = vmul.f32 1.442695, %v6280_v15  ;;  %v6281_v36 = vsub.f32 %v6228_v47, %v6261_v52 }
0x1d5d   : > { %v6267_v14 = vpop.xlane.xlu0 %6266 }
0x1d5e   : > { %v6290_v63 = vmul.f32 1.442695, %v6281_v36  ;;  %v6283_v21 = vsub.f32 %v9327_v38, %v6267_v14  ;;  %10024 = vpow2.f32 %v6288_v40 }
0x1d60   : > { %10026 = vpow2.f32 %v6290_v63  ;;  %v6294_v31 = vmul.f32 1.442695, %v6283_v21 }
0x1d61   : > { %10028 = vpow2.f32 %v6292_v43  ;;  %v6339_v54 = vpop.permute.xlu0 %6338 }
0x1d62   : > { %10030 = vpow2.f32 %v6294_v31  ;;  %9336 = vmatprep.subr.bf16.mxu1 %v6339_v54  ;;  %v6458_v31 = vpop.permute.xlu1 %6457 }
0x1d63   : > { %9337 = vmatpush3.bf16.msra.mxu1 %v6339_v54  ;;  %v6483_v54 = vsel %vm962_vm1, %v6460_v56, 0  ;;  %v6480_v43 = vsel %vm962_vm1, %v6458_v31, 0 }
0x1d64   : > { %9338 = vmatprep.subr.bf16.mxu1 %v6337_v6 }
0x1d67   : > { %9339 = vmatpush3.bf16.msra.mxu1 %v6337_v6 }
0x1d68   : > { %9536 = vmatprep.subr.msk.bf16.mxu1 %vm962_vm1, %v6460_v56 }
0x1d6b   : > { %v13232_v29 = vpop.eup %10024 }
0x1d6d   : > { %v13234_v1 = vpop.eup %10026 }
0x1d6e   : > { %v13236_v52 = vpop.eup %10028  ;;  %v6328_v14 = vpack.c.bf16 %v13234_v1, %v13232_v29 }
0x1d6f   : > { %v13240_v63 = vpop.eup %10030 }
0x1d70   : > { %v6329_v21 = vpack.c.bf16 %v13240_v63, %v13236_v52  ;;  %9340 = vmatprep.mubr.msk.bf16.mxu1 %vm1052_vm2, %v6328_v14 }
0x1d72   : > { %9341 = vmatmul.mubr.msk.bf16.vlgmr.msra.gmra.mxu1 %vm1052_vm2, %v6329_v21 }
0x1d73   : > { %9349 = vmatpush3.bf16.xpose.msra.mxu1 %v6483_v54 }
0x1d74   : > { %9537 = vmatprep.subr.msk.bf16.mxu1 %vm962_vm1, %v6458_v31 }
0x1d7b   : > { %9351 = vmatpush3.bf16.xpose.msra.mxu1 %v6480_v43 }
0x1d90   : > { %v6270_v36 = vpop.xlane.xlu1 %6269 }
0x1d91   : > { %v6284_v40 = vsub.f32 %v13197_v60, %v6270_v36 }
0x1d92   : > { %v6276_v15 = vpop.xlane.xlu0 %6275 }
0x1d93   : > { %v6286_v13 = vsub.f32 %v13195_v12, %v6276_v15  ;;  %v6296_v38 = vmul.f32 1.442695, %v6284_v40 }
0x1d94   : > { %v6279_v0 = vpop.xlane.xlu1 %6278 }
0x1d95   : > { %v6287_v47 = vsub.f32 %v13199_v9, %v6279_v0  ;;  %v6300_v48 = vmul.f32 1.442695, %v6286_v13  ;;  %10032 = vpow2.f32 %v6296_v38 }
0x1d96   : > { %v6273_v6 = vpop.xlane.xlu0 %6272 }
0x1d97   : > { %v6302_v50 = vmul.f32 1.442695, %v6287_v47  ;;  %v6285_v56 = vsub.f32 %v13205_v17, %v6273_v6 }
0x1d98   : > { %v6454_v14 = vpop.permute.xlu1 %6453 }
0x1d99   : > { %v6298_v21 = vmul.f32 1.442695, %v6285_v56  ;;  %10034 = vpow2.f32 %v6302_v50  ;;  %v6474_v17 = vsel %vm962_vm1, %v6454_v14, 0 }
0x1d9a   : > { %v6456_v54 = vpop.permute.xlu0 %6455 }
0x1d9b   : > { %10036 = vpow2.f32 %v6298_v21  ;;  %9538 = vmatprep.subr.msk.bf16.mxu1 %vm962_vm1, %v6456_v54  ;;  %v6477_v60 = vsel %vm962_vm1, %v6456_v54, 0 }
0x1d9c   : > { %10038 = vpow2.f32 %v6300_v48  ;;  %9353 = vmatpush3.bf16.xpose.msra.mxu1 %v6477_v60  ;;  %v6448_v12 = vpop.permute.xlu1 %6447 }
0x1d9d   : > { %9539 = vmatprep.subr.msk.bf16.mxu1 %vm962_vm1, %v6454_v14 }
0x1d9e   : > { %v6446_v9 = vpop.permute.xlu0 %6445 }
0x1da0   : > { %v6452_v31 = vpop.permute.xlu1 %6451 }
0x1da2   : > { %v6450_v43 = vpop.permute.xlu0 %6449  ;;  %v13257_v36 = vpop.eup %10032 }
0x1da4   : > { %9355 = vmatpush3.bf16.xpose.msra.mxu1 %v6474_v17  ;;  %v6631_v0 = vpop.permute.xlu1 %6630 }
0x1da6   : > { %v6633_v40 = vpop.permute.xlu0 %6632  ;;  %v13259_v15 = vpop.eup %10034 }
0x1da7   : > { %9364 = vmatprep.subr.bf16.mxu0 %v6633_v40 }
0x1da8   : > { %v13261_v13 = vpop.eup %10036  ;;  %9365 = vmatpush3.bf16.msra.mxu0 %v6633_v40 }
0x1da9   : > { %v13263_v38 = vpop.eup %10038  ;;  %9366 = vmatprep.subr.bf16.mxu0 %v6631_v0  ;;  %v6330_v47 = vpack.c.bf16 %v13261_v13, %v13257_v36 }
0x1daa   : > { %v6331_v6 = vpack.c.bf16 %v13259_v15, %v13263_v38 }
0x1dab   : > { %9344 = vmatprep.mubr.msk.bf16.mxu1 %vm1052_vm2, %v6330_v47 }
0x1dac   : > { %9345 = vmatmul.mubr.msk.bf16.gmra.mxu1 %vm1052_vm2, %v6331_v6  ;;  %9367 = vmatpush3.bf16.msra.mxu0 %v6631_v0 }
0x1dad   : > { %9356 = vmatprep.mubr.msk.bf16.mxu1 %vm962_vm1, %v6446_v9 }
0x1db4   : > { %9357 = vmatmul.mubr.msk.bf16.vlgmr.msra.gmra.mxu1 %vm962_vm1, %v6448_v12 }
0x1db5   : > { %9360 = vmatprep.mubr.msk.bf16.mxu1 %vm962_vm1, %v6450_v43 }
0x1dbc   : > { %9361 = vmatmul.mubr.msk.bf16.gmra.mxu1 %vm962_vm1, %v6452_v31 }
0x1e32   : > { %v13275_v50 = vpop.f32.mrf.mxu1 }
0x1e33   : > { %14641 = vst [vmem:[#allocation70_spill] sm:$0xff] %v13275_v50 }
0x1e34   : > { %v13277_v56 = vpop.f32.mrf.mxu1 }
0x1e35   : > { %14642 = vst [vmem:[#allocation71_spill] sm:$0xff] %v13277_v56 }
0x1e36   : > { %v13279_v48 = vpop.f32.mrf.mxu1 }
0x1e37   : > { %14643 = vst [vmem:[#allocation72_spill] sm:$0xff] %v13279_v48 }
0x1e38   : > { %v13281_v14 = vpop.f32.mrf.mxu1 }
0x1e39   : > { %14644 = vst [vmem:[#allocation73_spill] sm:$0xff] %v13281_v14 }
0x1e6c   : > { %v13283_v21 = vpop.f32.mrf.mxu1 }
0x1e6d   : > { %14645 = vst [vmem:[#allocation74_spill] sm:$0xff] %v13283_v21 }
0x1e6e   : > { %v13285_v54 = vpop.f32.mrf.mxu1 }
0x1e6f   : > { %14646 = vst [vmem:[#allocation75_spill] sm:$0xff] %v13285_v54 }
0x1e70   : > { %v13287_v60 = vpop.f32.mrf.mxu1 }
0x1e71   : > { %14647 = vst [vmem:[#allocation76_spill] sm:$0xff] %v13287_v60 }
0x1e72   : > { %v13289_v9 = vpop.f32.mrf.mxu1 }
0x1e73   : > { %14648 = vst [vmem:[#allocation77_spill] sm:$0xff] %v13289_v9 }
0x1e74   : > { %v9358_v12 = vpop.f32.mrf.mxu1 }
0x1e75   : > { %v6556_v43 = vsel %vm1052_vm2, %v9358_v12, -inf }
0x1e76   : > { %6557 = vmax.xlane.f32.xlu0 %v6556_v43  ;;  %v6519_v31 = vpop.f32.mrf.mxu1 }
0x1e77   : > { %v6550_v40 = vsel %vm1052_vm2, %v6519_v31, -inf }
0x1e78   : > { %v9359_v17 = vpop.f32.mrf.mxu1 }
0x1e79   : > { %v6559_v6 = vsel %vm1052_vm2, %v9359_v17, -inf }
0x1e7a   : > { %6551 = vmax.xlane.f32.xlu0 %v6550_v40  ;;  %v6522_v0 = vpop.f32.mrf.mxu1 }
0x1e7b   : > { %v6553_v47 = vsel %vm1052_vm2, %v6522_v0, -inf }
0x1e7c   : > { %6554 = vmax.xlane.f32.xlu1 %v6553_v47  ;;  %v13299_v60 = vpop.f32.mrf.mxu1 }
0x1e7d   : > { %v6568_v40 = vsel %vm1052_vm2, %v13299_v60, -inf }
0x1e7e   : > { %6560 = vmax.xlane.f32.xlu0 %v6559_v6  ;;  %v6535_v43 = vpop.f32.mrf.mxu1 }
0x1e7f   : > { %v6562_v9 = vsel %vm1052_vm2, %v6535_v43, -inf }
0x1e80   : > { %v9363_v21 = vpop.f32.mrf.mxu1 }
0x1e81   : > { %v6571_v6 = vsel %vm1052_vm2, %v9363_v21, -inf }
0x1e82   : > { %v6538_v47 = vpop.f32.mrf.mxu1 }
0x1e8d   : > { %6747 = vrot.lane.b32.xlu1 %v12669_v24, %s10294_s24  ;;  %v6565_v24 = vsel %vm1052_vm2, %v6538_v47, -inf }
0x1e94   : > { %6628 = vrot.lane.b32.xlu0 %v12987_v42, %s10293_s23 }
0x1eb1   : > { %6563 = vmax.xlane.f32.xlu1 %v6562_v9  ;;  %v6627_v9 = vpop.permute.xlu1 %6626 }
0x1eb3   : > { %6569 = vmax.xlane.f32.xlu0 %v6568_v40 }
0x1eb5   : > { %6572 = vmax.xlane.f32.xlu1 %v6571_v6  ;;  %v6750_v6 = vpop.permute.xlu1 %6749 }
0x1eb7   : > { %6566 = vmax.xlane.f32.xlu0 %v6565_v24 }
0x1ec6   : > { %6743 = vrot.lane.b32.xlu1 %v12655_v8, %s10294_s24 }
0x1eca   : > { %6737 = vrot.lane.b32.xlu1 %v12665_v41, %s14608_s18 }
0x1ecd   : > { %6745 = vrot.lane.b32.xlu0 %v12663_v51, %s10294_s24 }
0x1ece   : > { %6741 = vrot.lane.b32.xlu1 %v12681_v46, %s14608_s18 }
0x1ed1   : > { %6735 = vrot.lane.b32.xlu0 %v12657_v33, %s14608_s18 }
0x1ed5   : > { %6739 = vrot.lane.b32.xlu0 %v12671_v30, %s14608_s18 }
0x1eff   : > { %v6558_v40 = vpop.xlane.xlu0 %6557 }
0x1f00   : > { %v6576_v24 = vsub.f32 %v9358_v12, %v6558_v40 }
0x1f02   : > { %v6586_v14 = vmul.f32 1.442695, %v6576_v24 }
0x1f03   : > { %v6552_v8 = vpop.xlane.xlu0 %6551 }
0x1f04   : > { %v6574_v54 = vsub.f32 %v6519_v31, %v6552_v8 }
0x1f05   : > { %v6555_v48 = vpop.xlane.xlu1 %6554 }
0x1f06   : > { %v6582_v41 = vmul.f32 1.442695, %v6574_v54  ;;  %v6575_v50 = vsub.f32 %v6522_v0, %v6555_v48 }
0x1f07   : > { %v6561_v51 = vpop.xlane.xlu0 %6560 }
0x1f08   : > { %v6584_v56 = vmul.f32 1.442695, %v6575_v50  ;;  %v6577_v32 = vsub.f32 %v9359_v17, %v6561_v51  ;;  %10040 = vpow2.f32 %v6582_v41 }
0x1f09   : > { %v6748_v12 = vpop.permute.xlu1 %6747 }
0x1f0a   : > { %10042 = vpow2.f32 %v6584_v56  ;;  %v6588_v46 = vmul.f32 1.442695, %v6577_v32  ;;  %v6770_v31 = vsel %vm962_vm1, %v6748_v12, 0 }
0x1f0b   : > { %10044 = vpow2.f32 %v6586_v14  ;;  %v6629_v33 = vpop.permute.xlu0 %6628  ;;  %v6773_v14 = vsel %vm962_vm1, %v6750_v6, 0 }
0x1f0c   : > { %10046 = vpow2.f32 %v6588_v46  ;;  %9368 = vmatprep.subr.bf16.mxu0 %v6629_v33 }
0x1f0d   : > { %9369 = vmatpush3.bf16.msra.mxu0 %v6629_v33 }
0x1f0e   : > { %9370 = vmatprep.subr.bf16.mxu0 %v6627_v9 }
0x1f11   : > { %9371 = vmatpush3.bf16.msra.mxu0 %v6627_v9 }
0x1f12   : > { %9540 = vmatprep.subr.msk.bf16.mxu0 %vm962_vm1, %v6750_v6 }
0x1f15   : > { %v13319_v30 = vpop.eup %10040 }
0x1f17   : > { %v13321_v54 = vpop.eup %10042 }
0x1f18   : > { %v13323_v48 = vpop.eup %10044  ;;  %v6622_v50 = vpack.c.bf16 %v13321_v54, %v13319_v30 }
0x1f19   : > { %v13327_v56 = vpop.eup %10046 }
0x1f1a   : > { %v6623_v32 = vpack.c.bf16 %v13327_v56, %v13323_v48  ;;  %9372 = vmatprep.mubr.msk.bf16.mxu0 %vm1052_vm2, %v6622_v50 }
0x1f1c   : > { %9373 = vmatmul.mubr.msk.bf16.vlgmr.msra.gmra.mxu0 %vm1052_vm2, %v6623_v32 }
0x1f1d   : > { %9381 = vmatpush3.bf16.xpose.msra.mxu0 %v6773_v14 }
0x1f1e   : > { %9541 = vmatprep.subr.msk.bf16.mxu0 %vm962_vm1, %v6748_v12 }
0x1f25   : > { %9383 = vmatpush3.bf16.xpose.msra.mxu0 %v6770_v31 }
0x1f3a   : > { %v6564_v17 = vpop.xlane.xlu1 %6563 }
0x1f3b   : > { %v6578_v0 = vsub.f32 %v6535_v43, %v6564_v17 }
0x1f3c   : > { %v6570_v9 = vpop.xlane.xlu0 %6569 }
0x1f3d   : > { %v6580_v40 = vsub.f32 %v13299_v60, %v6570_v9  ;;  %v6590_v8 = vmul.f32 1.442695, %v6578_v0 }
0x1f3e   : > { %v6573_v24 = vpop.xlane.xlu1 %6572 }
0x1f3f   : > { %v6581_v41 = vsub.f32 %v9363_v21, %v6573_v24  ;;  %v6594_v50 = vmul.f32 1.442695, %v6580_v40  ;;  %10048 = vpow2.f32 %v6590_v8 }
0x1f40   : > { %v6567_v51 = vpop.xlane.xlu0 %6566 }
0x1f41   : > { %v6596_v46 = vmul.f32 1.442695, %v6581_v41  ;;  %v6579_v33 = vsub.f32 %v6538_v47, %v6567_v51 }
0x1f42   : > { %v6744_v43 = vpop.permute.xlu1 %6743 }
0x1f43   : > { %v6592_v6 = vmul.f32 1.442695, %v6579_v33  ;;  %10050 = vpow2.f32 %v6596_v46  ;;  %v6764_v21 = vsel %vm962_vm1, %v6744_v43, 0 }
0x1f44   : > { %v6746_v32 = vpop.permute.xlu0 %6745 }
0x1f45   : > { %10052 = vpow2.f32 %v6592_v6  ;;  %9542 = vmatprep.subr.msk.bf16.mxu0 %vm962_vm1, %v6746_v32  ;;  %v6767_v14 = vsel %vm962_vm1, %v6746_v32, 0 }
0x1f46   : > { %10054 = vpow2.f32 %v6594_v50  ;;  %9385 = vmatpush3.bf16.xpose.msra.mxu0 %v6767_v14  ;;  %v6738_v40 = vpop.permute.xlu1 %6737 }
0x1f47   : > { %9543 = vmatprep.subr.msk.bf16.mxu0 %vm962_vm1, %v6744_v43 }
0x1f48   : > { %v6736_v9 = vpop.permute.xlu0 %6735 }
0x1f4a   : > { %v6742_v8 = vpop.permute.xlu1 %6741 }
0x1f4c   : > { %v13341_v60 = vpop.eup %10048  ;;  %v6740_v24 = vpop.permute.xlu0 %6739 }
0x1f4e   : > { %9387 = vmatpush3.bf16.xpose.msra.mxu0 %v6764_v21 }
0x1f50   : > { %v13343_v47 = vpop.eup %10050 }
0x1f52   : > { %v13345_v12 = vpop.eup %10052 }
0x1f53   : > { %v13347_v31 = vpop.eup %10054  ;;  %v6624_v17 = vpack.c.bf16 %v13345_v12, %v13341_v60 }
0x1f54   : > { %v6625_v0 = vpack.c.bf16 %v13343_v47, %v13347_v31 }
0x1f55   : > { %9376 = vmatprep.mubr.msk.bf16.mxu0 %vm1052_vm2, %v6624_v17 }
0x1f56   : > { %9377 = vmatmul.mubr.msk.bf16.gmra.mxu0 %vm1052_vm2, %v6625_v0 }
0x1f57   : > { %9388 = vmatprep.mubr.msk.bf16.mxu0 %vm962_vm1, %v6736_v9 }
0x1f5e   : > { %9389 = vmatmul.mubr.msk.bf16.vlgmr.msra.gmra.mxu0 %vm962_vm1, %v6738_v40 }
0x1f5f   : > { %9392 = vmatprep.mubr.msk.bf16.mxu0 %vm962_vm1, %v6740_v24 }
0x1f66   : > { %9393 = vmatmul.mubr.msk.bf16.gmra.mxu0 %vm962_vm1, %v6742_v8 }
0x1fdc   : > { %v13359_v41 = vpop.f32.mrf.mxu0 }
0x1fde   : > { %v13361_v51 = vpop.f32.mrf.mxu0 }
0x1fe0   : > { %v13363_v46 = vpop.f32.mrf.mxu0 }
0x1fe2   : > { %v13365_v33 = vpop.f32.mrf.mxu0 }
0x2016   : > { %v13367_v50 = vpop.f32.mrf.mxu0 }
0x2017   : > { %14649 = vst [vmem:[#allocation78_spill] sm:$0xff] %v13367_v50 }
0x2018   : > { %v13369_v6 = vpop.f32.mrf.mxu0 }
0x2019   : > { %14650 = vst [vmem:[#allocation79_spill] sm:$0xff] %v13369_v6 }
0x201a   : > { %v13371_v32 = vpop.f32.mrf.mxu0 }
0x201c   : > { %v13373_v14 = vpop.f32.mrf.mxu0 }
0x201d   : > { %14651 = vst [vmem:[#allocation80_spill] sm:$0xff] %v13373_v14 }
0x201e   : > { %v13375_v43 = vpop.f32.mrf.mxu0 }
0x201f   : > { %v6846_v21 = vsel %vm1052_vm2, %v13375_v43, -inf }
0x2020   : > { %6847 = vmax.xlane.f32.xlu0 %v6846_v21  ;;  %v13379_v17 = vpop.f32.mrf.mxu0 }
0x2021   : > { %v6840_v9 = vsel %vm1052_vm2, %v13379_v17, -inf }
0x2022   : > { %v13381_v0 = vpop.f32.mrf.mxu0 }
0x2023   : > { %v6849_v8 = vsel %vm1052_vm2, %v13381_v0, -inf }
0x2024   : > { %6841 = vmax.xlane.f32.xlu0 %v6840_v9  ;;  %v13385_v40 = vpop.f32.mrf.mxu0 }
0x2025   : > { %v6843_v24 = vsel %vm1052_vm2, %v13385_v40, -inf }
0x2026   : > { %6844 = vmax.xlane.f32.xlu1 %v6843_v24  ;;  %v13391_v6 = vpop.f32.mrf.mxu0 }
0x2027   : > { %v6858_v21 = vsel %vm1052_vm2, %v13391_v6, -inf }
0x2028   : > { %6850 = vmax.xlane.f32.xlu0 %v6849_v8  ;;  %v13395_v14 = vpop.f32.mrf.mxu0 }
0x2029   : > { %v6852_v9 = vsel %vm1052_vm2, %v13395_v14, -inf }
0x202a   : > { %v13405_v24 = vpop.f32.mrf.mxu0 }
0x202b   : > { %v6861_v8 = vsel %vm1052_vm2, %v13405_v24, -inf }
0x202c   : > { %6859 = vmax.xlane.f32.xlu0 %v6858_v21  ;;  %v13409_v50 = vpop.f32.mrf.mxu0 }
0x202d   : > { %v6855_v21 = vsel %vm1052_vm2, %v13409_v50, -inf }
0x2030   : > { %6853 = vmax.xlane.f32.xlu0 %v6852_v9  ;;  %v5382_v9 = vsel %vm1052_vm2, %v12940_v20, 0.0  ;;  %v5106_v20 = vsel %vm1052_vm2, %v12851_v34, 0.0  ;;  %v5091_v34 = vsel %vm1052_vm2, %v12802_v22, 0.0  ;;  %v6598_v22 = vsel %vm1052_vm2, %v13319_v30, 0.0 }
0x2037   : > { %6920 = vrot.lane.b32.xlu1 %v12673_v62, %s14608_s18  ;;  %v5088_v62 = vsel %vm1052_vm2, %v12814_v49, 0.0  ;;  %v5672_v49 = vsel %vm1052_vm2, %v13028_v28, 0.0  ;;  %v5684_v28 = vsel %vm1052_vm2, %v13049_v3, 0.0  ;;  %v5391_v3 = vsel %vm1052_vm2, %v12948_v53, 0.0 }
0x2038   : > { %v6316_v53 = vsel %vm1052_vm2, %v13257_v36, 0.0  ;;  %v5109_v36 = vsel %vm1052_vm2, %v12847_v61, 0.0  ;;  %v6616_v61 = vsel %vm1052_vm2, %v13347_v31, 0.0 }
0x203b   : > { %6918 = vrot.lane.b32.xlu1 %v12987_v42, %s14608_s18  ;;  %v5094_v42 = vsel %vm1052_vm2, %v12826_v39, 0.0  ;;  %v5678_v39 = vsel %vm1052_vm2, %v13032_v4, 0.0  ;;  %v6310_v4 = vsel %vm1052_vm2, %v13236_v52, 0.0 }
0x2046   : > { %6922 = vrot.lane.b32.xlu0 %v12683_v55, %s14608_s18  ;;  %v5097_v55 = vsel %vm1052_vm2, %v12824_v11, 0.0  ;;  %v5100_v11 = vsel %vm1052_vm2, %v12845_v2, 0.0  ;;  %v5690_v2 = vsel %vm1052_vm2, %v13055_v26, 0.0  ;;  %v5675_v26 = vsel %vm1052_vm2, %v13030_v58, 0.0 }
0x2047   : > { %v6322_v58 = vsel %vm1052_vm2, %v13263_v38, 0.0 }
0x205f   : > { %6862 = vmax.xlane.f32.xlu1 %v6861_v8  ;;  %v5388_v8 = vsel %vm1052_vm2, %v12944_v57, 0.0  ;;  %v5400_v57 = vsel %vm1052_vm2, %v12972_v16, 0.0  ;;  %v5385_v16 = vsel %vm1052_vm2, %v12942_v27, 0.0  ;;  %v6604_v27 = vsel %vm1052_vm2, %v13323_v48, 0.0 }
0x2063   : > { %6856 = vmax.xlane.f32.xlu1 %v6855_v21  ;;  %v5103_v21 = vsel %vm1052_vm2, %v12849_v5, 0.0  ;;  %v6610_v5 = vsel %vm1052_vm2, %v13341_v60, 0.0  ;;  %v5403_v60 = vsel %vm1052_vm2, %v12968_v35, 0.0 }
0x2065   : > { %5089 = vadd.xlane.f32.xlu0 %v5088_v62 }
0x2069   : > { %5095 = vadd.xlane.f32.xlu0 %v5094_v42 }
0x206d   : > { %5098 = vadd.xlane.f32.xlu0 %v5097_v55 }
0x2071   : > { %5383 = vadd.xlane.f32.xlu0 %v5382_v9 }
0x2074   : > { %6916 = vrot.lane.b32.xlu1 %v12659_v45, %s14608_s18  ;;  %v5394_v45 = vsel %vm1052_vm2, %v12966_v59, 0.0  ;;  %v6304_v59 = vsel %vm1052_vm2, %v13232_v29, 0.0  ;;  %v5681_v29 = vsel %vm1052_vm2, %v13036_v19, 0.0 }
0x2075   : > { %5389 = vadd.xlane.f32.xlu0 %v5388_v8 }
0x2079   : > { %5673 = vadd.xlane.f32.xlu0 %v5672_v49 }
0x207d   : > { %5679 = vadd.xlane.f32.xlu0 %v5678_v39  ;;  %v4806_v39 = vsel %vm1052_vm2, %v12781_v44, 0.0  ;;  %v5693_v44 = vsel %vm1052_vm2, %v13051_v7, 0.0 }
0x2081   : > { %5101 = vadd.xlane.f32.xlu0 %v5100_v11 }
0x2085   : > { %5107 = vadd.xlane.f32.xlu0 %v5106_v20  ;;  %v5687_v20 = vsel %vm1052_vm2, %v13053_v10, 0.0  ;;  %v4818_v10 = vsel %vm1052_vm2, %v12806_v18, 0.0  ;;  %v6313_v18 = vsel %vm1052_vm2, %v13240_v63, 0.0 }
0x2089   : > { %5395 = vadd.xlane.f32.xlu0 %v5394_v45 }
0x208d   : > { %5401 = vadd.xlane.f32.xlu0 %v5400_v57 }
0x2091   : > { %5685 = vadd.xlane.f32.xlu0 %v5684_v28 }
0x2095   : > { %5691 = vadd.xlane.f32.xlu0 %v5690_v2 }
0x2098   : > { %5092 = vadd.xlane.f32.xlu1 %v5091_v34  ;;  %v6307_v34 = vsel %vm1052_vm2, %v13234_v1, 0.0  ;;  %v6601_v1 = vsel %vm1052_vm2, %v13321_v54, 0.0  ;;  %v4824_v54 = vsel %vm1052_vm2, %v12810_v23, 0.0 }
0x2099   : > { %6305 = vadd.xlane.f32.xlu0 %v6304_v59 }
0x209c   : > { %5386 = vadd.xlane.f32.xlu1 %v5385_v16 }
0x209d   : > { %6311 = vadd.xlane.f32.xlu0 %v6310_v4 }
0x20a0   : > { %5392 = vadd.xlane.f32.xlu1 %v5391_v3 }
0x20a1   : > { %6599 = vadd.xlane.f32.xlu0 %v6598_v22  ;;  %v6607_v22 = vsel %vm1052_vm2, %v13327_v56, 0.0  ;;  %v14652_v56 = vld [vmem:[#allocation46_spill] sm:$0xff] }
0x20a4   : > { %5676 = vadd.xlane.f32.xlu1 %v5675_v26  ;;  %v6319_v26 = vsel %vm1052_vm2, %v13261_v13, 0.0  ;;  %v6613_v13 = vsel %vm1052_vm2, %v13345_v12, 0.0 }
0x20a5   : > { %6605 = vadd.xlane.f32.xlu0 %v6604_v27 }
0x20a8   : > { %5682 = vadd.xlane.f32.xlu1 %v5681_v29  ;;  %v6325_v29 = vsel %vm1052_vm2, %v13259_v15, 0.0  ;;  %v14654_v15 = vld [vmem:[#allocation51_spill] sm:$0xff] }
0x20a9   : > { %v6848_v52 = vpop.xlane.xlu0 %6847  ;;  %6317 = vadd.xlane.f32.xlu0 %v6316_v53  ;;  %v6022_v53 = vsel %vm1052_vm2, %v14652_v56, 0.0 }
0x20aa   : > { %v6866_v30 = vsub.f32 %v13375_v43, %v6848_v52 }
0x20ac   : > { %5104 = vadd.xlane.f32.xlu1 %v5103_v21  ;;  %v6876_v62 = vmul.f32 1.442695, %v6866_v30  ;;  %v14653_v30 = vld [vmem:[#allocation58_spill] sm:$0xff]  ;;  %v6034_v21 = vsel %vm1052_vm2, %v14654_v15, 0.0 }
0x20ad   : > { %v6842_v48 = vpop.xlane.xlu0 %6841  ;;  %6323 = vadd.xlane.f32.xlu0 %v6322_v58  ;;  %v6028_v23 = vsel %vm1052_vm2, %v14653_v30, 0.0  ;;  %v14655_v58 = vld [vmem:[#allocation23_spill] sm:$0xff] }
0x20ae   : > { %v6864_v19 = vsub.f32 %v13379_v17, %v6842_v48  ;;  %10056 = vpow2.f32 %v6876_v62  ;;  %v5397_v17 = vsel %vm1052_vm2, %v12970_v25, 0.0  ;;  %v4809_v48 = vsel %vm1052_vm2, %v14655_v58, 0.0  ;;  %v14656_v62 = vld [vmem:[#allocation61_spill] sm:$0xff] }
0x20af   : > { %v6845_v42 = vpop.xlane.xlu1 %6844  ;;  %v6040_v12 = vsel %vm1052_vm2, %v14656_v62, 0.0  ;;  %v9582_v58 = vld [vmem:[%s14394_s4 + $0x38] sm:$0xff]  }
0x20b0   : > { %v6872_v55 = vmul.f32 1.442695, %v6864_v19  ;;  %v6865_v9 = vsub.f32 %v13385_v40, %v6845_v42  ;;  %5110 = vadd.xlane.f32.xlu1 %v5109_v36  ;;  %v14657_v19 = vld [vmem:[#allocation29_spill] sm:$0xff] }
0x20b1   : > { %v13472_v43 = vpop.xlane.xlu0 %6850  ;;  %6611 = vadd.xlane.f32.xlu0 %v6610_v5  ;;  %v4815_v42 = vsel %vm1052_vm2, %v14657_v19, 0.0 }
0x20b2   : > { %v6874_v38 = vmul.f32 1.442695, %v6865_v9  ;;  %10058 = vpow2.f32 %v6872_v55  ;;  %v6867_v27 = vsub.f32 %v13381_v0, %v13472_v43  ;;  %v6619_v0 = vsel %vm1052_vm2, %v13343_v47, 0.0  ;;  %v14658_v55 = vld [vmem:[#allocation17_spill] sm:$0xff] }
0x20b3   : > { %v6921_v45 = vpop.permute.xlu1 %6920  ;;  %v4821_v9 = vsel %vm1052_vm2, %v14658_v55, 0.0  ;;  %v14666_v55 = vld [vmem:[#allocation38_spill] sm:$0xff] }
0x20b4   : > { %10060 = vpow2.f32 %v6874_v38  ;;  %5398 = vadd.xlane.f32.xlu1 %v5397_v17  ;;  %v6878_v52 = vmul.f32 1.442695, %v6867_v27 }
0x20b5   : > { %v6860_v8 = vpop.xlane.xlu0 %6859  ;;  %6617 = vadd.xlane.f32.xlu0 %v6616_v61 }
0x20b6   : > { %v6870_v40 = vsub.f32 %v13391_v6, %v6860_v8  ;;  %v4812_v6 = vsel %vm1052_vm2, %v12792_v37, 0.0 }
0x20b7   : > { %v6919_v2 = vpop.permute.xlu1 %6918 }
0x20b8   : > { %v6884_v49 = vmul.f32 1.442695, %v6870_v40  ;;  %5404 = vadd.xlane.f32.xlu1 %v5403_v60 }
0x20b9   : > { %4807 = vadd.xlane.f32.xlu0 %v4806_v39  ;;  %v6854_v11 = vpop.xlane.xlu0 %6853 }
0x20ba   : > { %v6868_v25 = vsub.f32 %v13395_v14, %v6854_v11  ;;  %10062 = vpow2.f32 %v6884_v49  ;;  %v14659_v11 = vld [vmem:[#allocation31_spill] sm:$0xff] }
0x20bb   : > { %v13488_v57 = vpop.eup %10056 }
0x20bc   : > { %v6880_v31 = vmul.f32 1.442695, %v6868_v25  ;;  %5688 = vadd.xlane.f32.xlu1 %v5687_v20  ;;  %v6894_v7 = vsel %vm1052_vm2, %v13488_v57, 0.0  ;;  %v4827_v25 = vsel %vm1052_vm2, %v14659_v11, 0.0 }
0x20bd   : > { %4813 = vadd.xlane.f32.xlu0 %v4812_v6  ;;  %v6923_v35 = vpop.permute.xlu0 %6922 }
0x20be   : > { %9396 = vmatprep.subr.bf16.mxu1 %v6923_v35  ;;  %10064 = vpow2.f32 %v6880_v31  ;;  %v14660_v31 = vld [vmem:[#allocation45_spill] sm:$0xff] }
0x20bf   : > { %9397 = vmatpush3.bf16.msra.mxu1 %v6923_v35  ;;  %v10059_v14 = vpop.eup %10058  ;;  %10066 = vpow2.f32 %v6878_v52  ;;  %v6025_v6 = vsel %vm1052_vm2, %v14660_v31, 0.0 }
0x20c0   : > { %5694 = vadd.xlane.f32.xlu1 %v5693_v44  ;;  %9398 = vmatprep.subr.bf16.mxu1 %v6921_v45  ;;  %v6888_v59 = vsel %vm1052_vm2, %v10059_v14, 0.0 }
0x20c1   : > { %v13494_v28 = vpop.eup %10060  ;;  %4819 = vadd.xlane.f32.xlu0 %v4818_v10 }
0x20c2   : > { %v6912_v37 = vpack.c.bf16 %v13494_v28, %v10059_v14  ;;  %v6891_v39 = vsel %vm1052_vm2, %v13494_v28, 0.0 }
0x20c3   : > { %9399 = vmatpush3.bf16.msra.mxu1 %v6921_v45 }
0x20c4   : > { %6308 = vadd.xlane.f32.xlu1 %v6307_v34  ;;  %9400 = vmatprep.subr.bf16.mxu1 %v6919_v2 }
0x20c5   : > { %9404 = vmatprep.mubr.msk.bf16.mxu1 %vm1052_vm2, %v6912_v37  ;;  %6895 = vadd.xlane.f32.xlu0 %v6894_v7 }
0x20c7   : > { %9401 = vmatpush3.bf16.msra.mxu1 %v6919_v2  ;;  %v13505_v16 = vpop.eup %10062 }
0x20c8   : > { %6314 = vadd.xlane.f32.xlu1 %v6313_v18  ;;  %v6906_v4 = vsel %vm1052_vm2, %v13505_v16, 0.0 }
0x20c9   : > { %6889 = vadd.xlane.f32.xlu0 %v6888_v59  ;;  %v14662_v59 = vld [vmem:[#allocation49_spill] sm:$0xff] }
0x20cb   : > { %v13511_v3 = vpop.eup %10064 }
0x20cc   : > { %6602 = vadd.xlane.f32.xlu1 %v6601_v1  ;;  %v6900_v63 = vsel %vm1052_vm2, %v13511_v3, 0.0  ;;  %v10067_v5 = vpop.eup %10066  ;;  %v6037_v1 = vsel %vm1052_vm2, %v14662_v59, 0.0 }
0x20cd   : > { %6907 = vadd.xlane.f32.xlu0 %v6906_v4  ;;  %v6897_v40 = vsel %vm1052_vm2, %v10067_v5, 0.0  ;;  %v14663_v4 = vld [vmem:[#allocation50_spill] sm:$0xff] }
0x20d0   : > { %6608 = vadd.xlane.f32.xlu1 %v6607_v22 }
0x20d1   : > { %6901 = vadd.xlane.f32.xlu0 %v6900_v63 }
0x20d4   : > { %6320 = vadd.xlane.f32.xlu1 %v6319_v26 }
0x20d5   : > { %4825 = vadd.xlane.f32.xlu0 %v4824_v54 }
0x20d8   : > { %6326 = vadd.xlane.f32.xlu1 %v6325_v29  ;;  %v14664_v29 = vld [vmem:[#allocation40_spill] sm:$0xff] }
0x20d9   : > { %6023 = vadd.xlane.f32.xlu0 %v6022_v53  ;;  %v14665_v53 = vld [vmem:[#allocation44_spill] sm:$0xff] }
0x20dc   : > { %6614 = vadd.xlane.f32.xlu1 %v6613_v13 }
0x20dd   : > { %6029 = vadd.xlane.f32.xlu0 %v6028_v23 }
0x20e0   : > { %6620 = vadd.xlane.f32.xlu1 %v6619_v0 }
0x20e1   : > { %6035 = vadd.xlane.f32.xlu0 %v6034_v21 }
0x20e4   : > { %4810 = vadd.xlane.f32.xlu1 %v4809_v48 }
0x20e5   : > { %6041 = vadd.xlane.f32.xlu0 %v6040_v12  ;;  %v9583_v12 = vld [vmem:[%s14394_s4 + $0x30] sm:$0xff]  }
0x20e8   : > { %4816 = vadd.xlane.f32.xlu1 %v4815_v42  ;;  %v6863_v36 = vpop.xlane.xlu1 %6862 }
0x20e9   : > { %v6871_v47 = vsub.f32 %v13405_v24, %v6863_v36  ;;  %v6913_v24 = vpack.c.bf16 %v10067_v5, %v13488_v57  ;;  %v14661_v57 = vld [vmem:[#allocation52_spill] sm:$0xff]  ;;  %v14667_v5 = vld [vmem:[#allocation43_spill] sm:$0xff] }
0x20ea   : > { %v6031_v14 = vsel %vm1052_vm2, %v14661_v57, 0.0 }
0x20eb   : > { %v6886_v43 = vmul.f32 1.442695, %v6871_v47  ;;  %v9584_v47 = vld [vmem:[%s14394_s4 + $0x28] sm:$0xff]  }
0x20ec   : > { %4822 = vadd.xlane.f32.xlu1 %v4821_v9  ;;  %v6857_v38 = vpop.xlane.xlu1 %6856 }
0x20ed   : > { %v6869_v17 = vsub.f32 %v13409_v50, %v6857_v38  ;;  %10068 = vpow2.f32 %v6886_v43 }
0x20ee   : > { %v5090_v61 = vpop.xlane.xlu0 %5089 }
0x20ef   : > { %v6882_v8 = vmul.f32 1.442695, %v6869_v17 }
0x20f0   : > { %6898 = vadd.xlane.f32.xlu1 %v6897_v40  ;;  %v6917_v60 = vpop.permute.xlu1 %6916 }
0x20f1   : > { %10070 = vpow2.f32 %v6882_v8  ;;  %9402 = vmatprep.subr.bf16.mxu1 %v6917_v60 }
0x20f2   : > { %v5096_v49 = vpop.xlane.xlu0 %5095  ;;  %9403 = vmatpush3.bf16.msra.mxu1 %v6917_v60  ;;  %v9585_v60 = vld [vmem:[%s14394_s4 + $0x20] sm:$0xff]  }
0x20f3   : > { %9412 = vmatprep.subr.bf16.mxu1 %v9582_v58 }
0x20f4   : > { %6892 = vadd.xlane.f32.xlu1 %v6891_v39  ;;  %v14669_v39 = vld [vmem:[#allocation11_spill] sm:$0xff] }
0x20f5   : > { %9405 = vmatmul.mubr.msk.bf16.vlgmr.msra.gmra.mxu1 %vm1052_vm2, %v6913_v24 }
0x20f6   : > { %v5099_v50 = vpop.xlane.xlu0 %5098  ;;  %9413 = vmatpush3.bf16.msra.mxu1 %v9582_v58 }
0x20f7   : > { %10072 = vrcp.f32 %v5099_v50  ;;  %9414 = vmatprep.subr.bf16.mxu1 %v9583_v12 }
0x20f8   : > { %4828 = vadd.xlane.f32.xlu1 %v4827_v25  ;;  %10074 = vrcp.f32 %v5096_v49  ;;  %v14668_v49 = vld [vmem:[#allocation7_spill] sm:$0xff] }
0x20f9   : > { %10076 = vrcp.f32 %v5090_v61 }
0x20fa   : > { %v5384_v20 = vpop.xlane.xlu0 %5383  ;;  %v10069_v45 = vpop.eup %10068  ;;  %9415 = vmatpush3.bf16.msra.mxu1 %v9583_v12 }
0x20fb   : > { %v6915_v28 = vpack.c.bf16 %v10069_v45, %v13505_v16  ;;  %v6909_v2 = vsel %vm1052_vm2, %v10069_v45, 0.0  ;;  %9416 = vmatprep.subr.bf16.mxu1 %v9584_v47  ;;  %v14670_v45 = vld [vmem:[#allocation10_spill] sm:$0xff] }
0x20fc   : > { %6026 = vadd.xlane.f32.xlu1 %v6025_v6 }
0x20fe   : > { %v10071_v35 = vpop.eup %10070  ;;  %v5390_v44 = vpop.xlane.xlu0 %5389  ;;  %9417 = vmatpush3.bf16.msra.mxu1 %v9584_v47  ;;  %v14678_v47 = vld [vmem:[#allocation42_spill] sm:$0xff] }
0x20ff   : > { %v6914_v10 = vpack.c.bf16 %v10071_v35, %v13511_v3  ;;  %v6903_v7 = vsel %vm1052_vm2, %v10071_v35, 0.0  ;;  %v6043_v3 = vsel %vm1052_vm2, %v14663_v4, 0.0  ;;  %9418 = vmatprep.subr.bf16.mxu1 %v9585_v60 }
0x2100   : > { %6032 = vadd.xlane.f32.xlu1 %v6031_v14 }
0x2101   : > { %9408 = vmatprep.mubr.msk.bf16.mxu1 %vm1052_vm2, %v6914_v10 }
0x2102   : > { %v5674_v37 = vpop.xlane.xlu0 %5673  ;;  %9409 = vmatmul.mubr.msk.bf16.gmra.mxu1 %vm1052_vm2, %v6915_v28 }
0x2103   : > { %9419 = vmatpush3.bf16.msra.mxu1 %v9585_v60 }
0x2104   : > { %6910 = vadd.xlane.f32.xlu1 %v6909_v2  ;;  %v10073_v26 = vpop.eup %10072  ;;  %v14672_v2 = vld [vmem:[#allocation59_spill] sm:$0xff] }
0x2105   : > { %v10075_v54 = vpop.eup %10074  ;;  %v5220_v56 = vmul.f32 %v10073_v26, %v14664_v29  ;;  %v14674_v26 = vld [vmem:[#allocation53_spill] sm:$0xff] }
0x2106   : > { %v5680_v34 = vpop.xlane.xlu0 %5679  ;;  %v5219_v52 = vmul.f32 %v10075_v54, %v14665_v53  ;;  %v10077_v19 = vpop.eup %10076 }
0x2107   : > { %v5217_v9 = vmul.f32 %v10077_v19, %v14666_v55 }
0x2108   : > { %6904 = vadd.xlane.f32.xlu1 %v6903_v7  ;;  %v5226_v30 = vpack.c.bf16 %v5220_v56, %v5219_v52  ;;  %v14673_v7 = vld [vmem:[#allocation57_spill] sm:$0xff] }
0x210a   : > { %v5102_v18 = vpop.xlane.xlu0 %5101 }
0x210c   : > { %6038 = vadd.xlane.f32.xlu1 %v6037_v1 }
0x210e   : > { %v5108_v16 = vpop.xlane.xlu0 %5107 }
0x2110   : > { %6044 = vadd.xlane.f32.xlu1 %v6043_v3 }
0x2112   : > { %v13566_v22 = vpop.xlane.xlu0 %5395 }
0x2116   : > { %v13568_v63 = vpop.xlane.xlu0 %5401 }
0x211a   : > { %v13570_v27 = vpop.xlane.xlu0 %5685 }
0x211e   : > { %v13574_v13 = vpop.xlane.xlu0 %5691 }
0x2121   : > { %5815 = vrot.lane.b32.xlu1 %v5226_v30, %s10294_s24  ;;  %v5093_v23 = vpop.xlane.xlu1 %5092 }
0x2122   : > { %10078 = vrcp.f32 %v5093_v23  ;;  %v13577_v0 = vpop.xlane.xlu0 %6305 }
0x2123   : > { %10080 = vrcp.f32 %v5384_v20 }
0x2125   : > { %v5387_v15 = vpop.xlane.xlu1 %5386 }
0x2126   : > { %10082 = vrcp.f32 %v5387_v15  ;;  %v13579_v21 = vpop.xlane.xlu0 %6311  ;;  %v14676_v15 = vld [vmem:[#allocation6_spill] sm:$0xff] }
0x2127   : > { %10084 = vrcp.f32 %v5390_v44  ;;  %v14671_v44 = vld [vmem:[#allocation12_spill] sm:$0xff] }
0x2129   : > { %v5393_v48 = vpop.xlane.xlu1 %5392 }
0x212a   : > { %10086 = vrcp.f32 %v5393_v48  ;;  %v13584_v62 = vpop.xlane.xlu0 %6599 }
0x212b   : > { %10088 = vrcp.f32 %v5674_v37 }
0x212d   : > { %v5677_v42 = vpop.xlane.xlu1 %5676 }
0x212e   : > { %10090 = vrcp.f32 %v5677_v42  ;;  %v13594_v17 = vpop.xlane.xlu0 %6605 }
0x212f   : > { %v10079_v36 = vpop.eup %10078  ;;  %10092 = vrcp.f32 %v5680_v34 }
0x2130   : > { %v5218_v43 = vmul.f32 %v10079_v36, %v14667_v5  ;;  %v10081_v38 = vpop.eup %10080 }
0x2131   : > { %v5683_v61 = vpop.xlane.xlu1 %5682  ;;  %v5507_v24 = vmul.f32 %v10081_v38, %v14668_v49 }
0x2132   : > { %10094 = vrcp.f32 %v5683_v61  ;;  %v5225_v8 = vpack.c.bf16 %v5218_v43, %v5217_v9  ;;  %v13602_v6 = vpop.xlane.xlu0 %6317  ;;  %v14679_v9 = vld [vmem:[#allocation8_spill] sm:$0xff] }
0x2133   : > { %v10083_v40 = vpop.eup %10082  ;;  %10096 = vrcp.f32 %v5102_v18 }
0x2134   : > { %5813 = vrot.lane.b32.xlu0 %v5225_v8, %s10294_s24  ;;  %v5508_v50 = vmul.f32 %v10083_v40, %v14669_v39  ;;  %v10085_v11 = vpop.eup %10084  ;;  %v14680_v40 = vld [vmem:[#allocation2_spill] sm:$0xff] }
0x2135   : > { %v5105_v25 = vpop.xlane.xlu1 %5104  ;;  %v5509_v35 = vmul.f32 %v10085_v11, %v14670_v45 }
0x2136   : > { %10098 = vrcp.f32 %v5105_v25  ;;  %v5515_v20 = vpack.c.bf16 %v5508_v50, %v5507_v24  ;;  %v13611_v1 = vpop.xlane.xlu0 %6323 }
0x2137   : > { %v10087_v31 = vpop.eup %10086  ;;  %10100 = vrcp.f32 %v5108_v16 }
0x2138   : > { %5825 = vrot.lane.b32.xlu1 %v5515_v20, %s10291_s21  ;;  %v5510_v57 = vmul.f32 %v10087_v31, %v14671_v44  ;;  %v10089_v14 = vpop.eup %10088  ;;  %v14682_v20 = vld [vmem:[#allocation9_spill] sm:$0xff] }
0x2139   : > { %v5111_v10 = vpop.xlane.xlu1 %5110  ;;  %v5797_v34 = vmul.f32 %v10089_v14, %v14672_v2 }
0x213a   : > { %10102 = vrcp.f32 %v5111_v10  ;;  %v5516_v28 = vpack.c.bf16 %v5510_v57, %v5509_v35  ;;  %v13617_v23 = vpop.xlane.xlu0 %6611  ;;  %v14684_v10 = vld [vmem:[#allocation48_spill] sm:$0xff] }
0x213b   : > { %v10091_v37 = vpop.eup %10090  ;;  %10104 = vrcp.f32 %v13566_v22  ;;  %v14675_v22 = vld [vmem:[#allocation56_spill] sm:$0xff] }
0x213c   : > { %5827 = vrot.lane.b32.xlu1 %v5516_v28, %s10291_s21  ;;  %v5798_v18 = vmul.f32 %v10091_v37, %v14673_v7  ;;  %v10093_v59 = vpop.eup %10092  ;;  %v14685_v37 = vld [vmem:[#allocation60_spill] sm:$0xff] }
0x213d   : > { %v5399_v16 = vpop.xlane.xlu1 %5398  ;;  %v5799_v54 = vmul.f32 %v10093_v59, %v14674_v26 }
0x213e   : > { %10106 = vrcp.f32 %v5399_v16  ;;  %v5805_v4 = vpack.c.bf16 %v5798_v18, %v5797_v34  ;;  %v13627_v43 = vpop.xlane.xlu0 %6617  ;;  %v14686_v16 = vld [vmem:[#allocation54_spill] sm:$0xff] }
0x213f   : > { %v10095_v3 = vpop.eup %10094  ;;  %10108 = vrcp.f32 %v13568_v63  ;;  %v14677_v63 = vld [vmem:[#allocation5_spill] sm:$0xff] }
0x2140   : > { %5837 = vrot.lane.b32.xlu0 %v5805_v4, %s10290_s20  ;;  %v5800_v29 = vmul.f32 %v10095_v3, %v14675_v22  ;;  %v10097_v56 = vpop.eup %10096 }
0x2141   : > { %v5405_v53 = vpop.xlane.xlu1 %5404  ;;  %v5221_v58 = vmul.f32 %v10097_v56, %v14676_v15 }
0x2142   : > { %10110 = vrcp.f32 %v5405_v53  ;;  %v5806_v52 = vpack.c.bf16 %v5800_v29, %v5799_v54  ;;  %v13633_v25 = vpop.xlane.xlu0 %4807  ;;  %v14688_v53 = vld [vmem:[#allocation71_spill] sm:$0xff] }
0x2143   : > { %v10099_v30 = vpop.eup %10098  ;;  %10112 = vrcp.f32 %v13570_v27 }
0x2144   : > { %5839 = vrot.lane.b32.xlu1 %v5806_v52, %s10290_s20  ;;  %v5222_v48 = vmul.f32 %v10099_v30, %v14677_v63  ;;  %v10101_v12 = vpop.eup %10100 }
0x2145   : > { %v5689_v19 = vpop.xlane.xlu1 %5688  ;;  %v5223_v55 = vmul.f32 %v10101_v12, %v14678_v47  ;;  %v14690_v12 = vld [vmem:[#allocation70_spill] sm:$0xff] }
0x2146   : > { %10114 = vrcp.f32 %v5689_v19  ;;  %v5227_v42 = vpack.c.bf16 %v5222_v48, %v5221_v58  ;;  %v13643_v34 = vpop.xlane.xlu0 %4813 }
0x2147   : > { %v10103_v36 = vpop.eup %10102  ;;  %10116 = vrcp.f32 %v13574_v13  ;;  %v14681_v13 = vld [vmem:[#allocation55_spill] sm:$0xff] }
0x2148   : > { %5817 = vrot.lane.b32.xlu0 %v5227_v42, %s10294_s24  ;;  %v5224_v5 = vmul.f32 %v10103_v36, %v14679_v9  ;;  %v10105_v27 = vpop.eup %10104  ;;  %v14691_v42 = vld [vmem:[#allocation72_spill] sm:$0xff] }
0x2149   : > { %v5695_v38 = vpop.xlane.xlu1 %5694  ;;  %v5511_v60 = vmul.f32 %v10105_v27, %v14680_v40 }
0x214a   : > { %10118 = vrcp.f32 %v5695_v38  ;;  %v5228_v61 = vpack.c.bf16 %v5224_v5, %v5223_v55  ;;  %v13649_v56 = vpop.xlane.xlu0 %4819 }
0x214b   : > { %v10107_v8 = vpop.eup %10106  ;;  %10120 = vrcp.f32 %v13577_v0  ;;  %v14683_v0 = vld [vmem:[#allocation4_spill] sm:$0xff] }
0x214c   : > { %5819 = vrot.lane.b32.xlu1 %v5228_v61, %s10294_s24  ;;  %v5512_v49 = vmul.f32 %v10107_v8, %v14681_v13  ;;  %v10109_v24 = vpop.eup %10108 }
0x214d   : > { %v6309_v39 = vpop.xlane.xlu1 %6308  ;;  %v5513_v31 = vmul.f32 %v10109_v24, %v14682_v20  ;;  %v14693_v20 = vld [vmem:[#allocation77_spill] sm:$0xff] }
0x214e   : > { %10122 = vrcp.f32 %v6309_v39  ;;  %v5517_v50 = vpack.c.bf16 %v5512_v49, %v5511_v60  ;;  %v13659_v47 = vpop.xlane.xlu0 %6895 }
0x214f   : > { %v10111_v11 = vpop.eup %10110  ;;  %10124 = vrcp.f32 %v13579_v21 }
0x2150   : > { %5829 = vrot.lane.b32.xlu0 %v5517_v50, %s10291_s21  ;;  %v5514_v45 = vmul.f32 %v10111_v11, %v14683_v0  ;;  %v10113_v35 = vpop.eup %10112 }
0x2151   : > { %v6315_v44 = vpop.xlane.xlu1 %6314  ;;  %v5801_v28 = vmul.f32 %v10113_v35, %v14684_v10 }
0x2152   : > { %10126 = vrcp.f32 %v6315_v44  ;;  %v5518_v57 = vpack.c.bf16 %v5514_v45, %v5513_v31  ;;  %v13666_v60 = vpop.xlane.xlu0 %6889 }
0x2153   : > { %v10115_v14 = vpop.eup %10114  ;;  %10128 = vrcp.f32 %v13584_v62  ;;  %v14687_v62 = vld [vmem:[#allocation47_spill] sm:$0xff] }
0x2154   : > { %5831 = vrot.lane.b32.xlu1 %v5518_v57, %s10291_s21  ;;  %v5802_v2 = vmul.f32 %v10115_v14, %v14685_v37  ;;  %v10117_v21 = vpop.eup %10116  ;;  %v14695_v14 = vld [vmem:[#allocation76_spill] sm:$0xff] }
0x2155   : > { %v6603_v7 = vpop.xlane.xlu1 %6602  ;;  %v5803_v4 = vmul.f32 %v10117_v21, %v14686_v16 }
0x2156   : > { %10130 = vrcp.f32 %v6603_v7  ;;  %v5807_v18 = vpack.c.bf16 %v5802_v2, %v5801_v28  ;;  %v13676_v45 = vpop.xlane.xlu0 %6907 }
0x2157   : > { %v10119_v59 = vpop.eup %10118  ;;  %10132 = vrcp.f32 %v13594_v17  ;;  %v14689_v17 = vld [vmem:[#allocation73_spill] sm:$0xff] }
0x2158   : > { %5841 = vrot.lane.b32.xlu0 %v5807_v18, %s10290_s20  ;;  %v5804_v3 = vmul.f32 %v10119_v59, %v14687_v62  ;;  %v10121_v26 = vpop.eup %10120 }
0x2159   : > { %v6609_v54 = vpop.xlane.xlu1 %6608  ;;  %v6433_v52 = vmul.f32 %v10121_v26, %v14688_v53 }
0x215a   : > { %10134 = vrcp.f32 %v6609_v54  ;;  %v5808_v22 = vpack.c.bf16 %v5804_v3, %v5803_v4  ;;  %v13681_v2 = vpop.xlane.xlu0 %6901 }
0x215b   : > { %v10123_v29 = vpop.eup %10122  ;;  %10136 = vrcp.f32 %v13602_v6 }
0x215c   : > { %5843 = vrot.lane.b32.xlu1 %v5808_v22, %s10290_s20  ;;  %v6434_v30 = vmul.f32 %v10123_v29, %v14689_v17  ;;  %v10125_v15 = vpop.eup %10124 }
0x215d   : > { %v6321_v58 = vpop.xlane.xlu1 %6320  ;;  %v6435_v19 = vmul.f32 %v10125_v15, %v14690_v12  ;;  %v14696_v15 = vld [vmem:[#allocation62_spill] sm:$0xff] }
0x215e   : > { %10138 = vrcp.f32 %v6321_v58  ;;  %v6441_v63 = vpack.c.bf16 %v6434_v30, %v6433_v52  ;;  %v13686_v7 = vpop.xlane.xlu0 %4825 }
0x215f   : > { %v10127_v48 = vpop.eup %10126  ;;  %10140 = vrcp.f32 %v13611_v1 }
0x2160   : > { %7029 = vrot.lane.b32.xlu0 %v6441_v63, %s10294_s24  ;;  %v6436_v36 = vmul.f32 %v10127_v48, %v14691_v42  ;;  %v10129_v6 = vpop.eup %10128  ;;  %v14697_v63 = vld [vmem:[#allocation64_spill] sm:$0xff] }
0x2161   : > { %v6327_v55 = vpop.xlane.xlu1 %6326  ;;  %v6723_v27 = vmul.f32 %v10129_v6, %v13361_v51  ;;  %v14698_v6 = vld [vmem:[#allocation67_spill] sm:$0xff] }
0x2162   : > { %10142 = vrcp.f32 %v6327_v55  ;;  %v6442_v9 = vpack.c.bf16 %v6436_v36, %v6435_v19  ;;  %v13688_v16 = vpop.xlane.xlu0 %6023 }
0x2163   : > { %v10131_v5 = vpop.eup %10130 }
0x2164   : > { %7031 = vrot.lane.b32.xlu1 %v6442_v9, %s10294_s24  ;;  %v6724_v38 = vmul.f32 %v10131_v5, %v13365_v33  ;;  %v10133_v1 = vpop.eup %10132  ;;  %v14692_v33 = vld [vmem:[#allocation75_spill] sm:$0xff]  ;;  %v14699_v9 = vld [vmem:[#allocation69_spill] sm:$0xff] }
0x2165   : > { %v13664_v61 = vpop.xlane.xlu1 %6614  ;;  %v6725_v13 = vmul.f32 %v10133_v1, %v13359_v41  ;;  %v14694_v41 = vld [vmem:[#allocation74_spill] sm:$0xff] }
0x2166   : > { %v6731_v8 = vpack.c.bf16 %v6724_v38, %v6723_v27  ;;  %v6030_v62 = vpop.xlane.xlu0 %6029 }
0x2167   : > { %v10135_v40 = vpop.eup %10134  ;;  %10144 = vrcp.f32 %v6030_v62 }
0x2168   : > { %7041 = vrot.lane.b32.xlu0 %v6731_v8, %s10291_s21  ;;  %v6726_v49 = vmul.f32 %v10135_v40, %v13363_v46  ;;  %v10137_v24 = vpop.eup %10136  ;;  %v14700_v40 = vld [vmem:[#allocation66_spill] sm:$0xff] }
0x2169   : > { %v13671_v39 = vpop.xlane.xlu1 %6620  ;;  %v6437_v11 = vmul.f32 %v10137_v24, %v14692_v33 }
0x216a   : > { %v6732_v50 = vpack.c.bf16 %v6726_v49, %v6725_v13  ;;  %v6036_v22 = vpop.xlane.xlu0 %6035 }
0x216b   : > { %v10139_v51 = vpop.eup %10138 }
0x216c   : > { %7043 = vrot.lane.b32.xlu1 %v6732_v50, %s10291_s21  ;;  %v6438_v31 = vmul.f32 %v10139_v51, %v14693_v20  ;;  %v10141_v0 = vpop.eup %10140  ;;  %v14702_v51 = vld [vmem:[#allocation33_spill] sm:$0xff] }
0x216d   : > { %v4811_v35 = vpop.xlane.xlu1 %4810  ;;  %v6439_v46 = vmul.f32 %v10141_v0, %v14694_v41  ;;  %v14703_v20 = vld [vmem:[#allocation25_spill] sm:$0xff] }
0x216e   : > { %v6443_v44 = vpack.c.bf16 %v6438_v31, %v6437_v11  ;;  %v6042_v52 = vpop.xlane.xlu0 %6041 }
0x216f   : > { %v10143_v57 = vpop.eup %10142 }
0x2170   : > { %7033 = vrot.lane.b32.xlu0 %v6443_v44, %s10294_s24  ;;  %v6440_v10 = vmul.f32 %v10143_v57, %v14695_v14  ;;  %v14705_v57 = vld [vmem:[#allocation19_spill] sm:$0xff] }
0x2171   : > { %v4817_v28 = vpop.xlane.xlu1 %4816 }
0x2172   : > { %v6444_v37 = vpack.c.bf16 %v6440_v10, %v6439_v46 }
0x2174   : > { %7035 = vrot.lane.b32.xlu1 %v6444_v37, %s10294_s24  ;;  %v10145_v53 = vpop.eup %10144 }
0x2175   : > { %v13684_v21 = vpop.xlane.xlu1 %4822  ;;  %v13699_v58 = vmul.f32 %v10145_v53, %v14696_v15 }
0x2179   : > { %v6899_v18 = vpop.xlane.xlu1 %6898 }
0x217d   : > { %v6893_v59 = vpop.xlane.xlu1 %6892 }
0x2181   : > { %v13690_v4 = vpop.xlane.xlu1 %4828 }
0x2185   : > { %v13692_v3 = vpop.xlane.xlu1 %6026 }
0x2189   : > { %v6033_v26 = vpop.xlane.xlu1 %6032 }
0x218a   : > { %10146 = vrcp.f32 %v6033_v26 }
0x218b   : > { %10148 = vrcp.f32 %v6036_v22 }
0x218d   : > { %v13694_v54 = vpop.xlane.xlu1 %6910 }
0x2191   : > { %v13696_v29 = vpop.xlane.xlu1 %6904 }
0x2195   : > { %v6039_v17 = vpop.xlane.xlu1 %6038 }
0x2196   : > { %10150 = vrcp.f32 %v6039_v17 }
0x2197   : > { %v10147_v30 = vpop.eup %10146  ;;  %10152 = vrcp.f32 %v6042_v52 }
0x2198   : > { %v13702_v48 = vmul.f32 %v10147_v30, %v14697_v63  ;;  %v10149_v42 = vpop.eup %10148 }
0x2199   : > { %v6045_v12 = vpop.xlane.xlu1 %6044  ;;  %v13709_v55 = vmul.f32 %v10149_v42, %v14698_v6 }
0x219a   : > { %10154 = vrcp.f32 %v6045_v12  ;;  %v6144_v19 = vpack.c.bf16 %v13702_v48, %v13699_v58 }
0x219b   : > { %10156 = vrcp.f32 %v4811_v35  ;;  %v14704_v35 = vld [vmem:[#allocation27_spill] sm:$0xff] }
0x219c   : > { %10158 = vrcp.f32 %v13633_v25 }
0x219d   : > { %10160 = vrcp.f32 %v4817_v28  ;;  %v5816_v25 = vpop.permute.xlu1 %5815 }
0x219e   : > { %10162 = vrcp.f32 %v13643_v34  ;;  %v14701_v34 = vld [vmem:[#allocation68_spill] sm:$0xff] }
0x219f   : > { %10164 = vrcp.f32 %v13627_v43 }
0x21a0   : > { %10166 = vrcp.f32 %v13659_v47 }
0x21a1   : > { %10168 = vrcp.f32 %v13666_v60 }
0x21a2   : > { %10170 = vrcp.f32 %v13671_v39 }
0x21a3   : > { %v10151_v36 = vpop.eup %10150  ;;  %10172 = vrcp.f32 %v6899_v18 }
0x21a4   : > { %v13712_v5 = vmul.f32 %v10151_v36, %v14699_v9  ;;  %v10153_v27 = vpop.eup %10152  ;;  %10174 = vrcp.f32 %v13664_v61 }
0x21a5   : > { %v13718_v13 = vmul.f32 %v10153_v27, %v14700_v40  ;;  %10176 = vrcp.f32 %v6893_v59  ;;  %v14708_v40 = vld [vmem:[#allocation79_spill] sm:$0xff] }
0x21a6   : > { %v6145_v38 = vpack.c.bf16 %v13712_v5, %v13709_v55  ;;  %v5814_v47 = vpop.permute.xlu0 %5813  ;;  %10178 = vrcp.f32 %v13617_v23 }
0x21a7   : > { %v10155_v1 = vpop.eup %10154  ;;  %10180 = vrcp.f32 %v13684_v21 }
0x21a8   : > { %v10157_v8 = vpop.eup %10156  ;;  %v13721_v49 = vmul.f32 %v10155_v1, %v14701_v34  ;;  %10182 = vrcp.f32 %v13649_v56  ;;  %v14707_v1 = vld [vmem:[#allocation80_spill] sm:$0xff] }
0x21a9   : > { %v10159_v24 = vpop.eup %10158  ;;  %v4920_v33 = vmul.f32 %v10157_v8, %v14702_v51  ;;  %10184 = vrcp.f32 %v13676_v45 }
0x21aa   : > { %v6146_v50 = vpack.c.bf16 %v13721_v49, %v13718_v13  ;;  %v10161_v43 = vpop.eup %10160  ;;  %v5826_v11 = vpop.permute.xlu1 %5825  ;;  %v4919_v31 = vmul.f32 %v10159_v24, %v14703_v20  ;;  %10186 = vrcp.f32 %v13690_v4  ;;  %v14716_v13 = vld [vmem:[#allocation3_spill] sm:$0xff] }
0x21ab   : > { %v10163_v0 = vpop.eup %10162  ;;  %v4922_v44 = vmul.f32 %v10161_v43, %v14704_v35  ;;  %10188 = vrcp.f32 %v13686_v7  ;;  %v14709_v43 = vld [vmem:[#allocation41_spill] sm:$0xff] }
0x21ac   : > { %v4927_v60 = vpack.c.bf16 %v4920_v33, %v4919_v31  ;;  %v4921_v41 = vmul.f32 %v10163_v0, %v14705_v57  ;;  %v10165_v37 = vpop.eup %10164  ;;  %10190 = vrcp.f32 %v13694_v54  ;;  %v14706_v54 = vld [vmem:[#allocation78_spill] sm:$0xff] }
0x21ad   : > { %v10167_v59 = vpop.eup %10166  ;;  %10192 = vrcp.f32 %v13681_v2  ;;  %v6729_v27 = vmul.f32 %v10165_v37, %v14706_v54 }
0x21ae   : > { %v5847_v39 = vsel %vm962_vm1, %v4927_v60, %v5814_v47  ;;  %v5828_v14 = vpop.permute.xlu1 %5827  ;;  %v4928_v61 = vpack.c.bf16 %v4922_v44, %v4921_v41  ;;  %v10169_v22 = vpop.eup %10168  ;;  %10194 = vrcp.f32 %v13696_v29  ;;  %v14710_v47 = vld [vmem:[#allocation37_spill] sm:$0xff] }
0x21af   : > { %v5858_v46 = vsel %vm487_vm0, %v5847_v39, %v5826_v11  ;;  %v10171_v52 = vpop.eup %10170  ;;  %10196 = vrcp.f32 %v13692_v3 }
0x21b0   : > { %v5850_v23 = vsel %vm962_vm1, %v4928_v61, %v5816_v25  ;;  %v10173_v56 = vpop.eup %10172  ;;  %v6730_v7 = vmul.f32 %v10171_v52, %v13371_v32  ;;  %10198 = vrcp.f32 %v13688_v16 }
0x21b1   : > { %v5860_v62 = vsel %vm487_vm0, %v5850_v23, %v5828_v14  ;;  %v10175_v30 = vpop.eup %10174  ;;  %v14711_v14 = vld [vmem:[#allocation39_spill] sm:$0xff] }
0x21b2   : > { %v5838_v10 = vpop.permute.xlu0 %5837  ;;  %v10177_v63 = vpop.eup %10176  ;;  %v6728_v8 = vmul.f32 %v10175_v30, %v14707_v1  ;;  %v6734_v25 = vpack.c.bf16 %v6730_v7, %v6729_v27  ;;  %v14712_v23 = vld [vmem:[#allocation35_spill] sm:$0xff]  ;;  %v14713_v27 = vld [vmem:[#allocation65_spill] sm:$0xff] }
0x21b3   : > { %v5866_v28 = vsel %vm2160_vm3, %v5858_v46, %v5838_v10  ;;  %v10179_v6 = vpop.eup %10178 }
0x21b4   : > { %9420 = vmatprep.mubr.msk.bf16.mxu1 %vm1052_vm2, %v5866_v28  ;;  %v10181_v2 = vpop.eup %10180  ;;  %v6727_v29 = vmul.f32 %v10179_v6, %v14708_v40 }
0x21b5   : > { %v9406_v18 = vpop.f32.mrf.mxu1  ;;  %v10183_v34 = vpop.eup %10182  ;;  %v4924_v11 = vmul.f32 %v10181_v2, %v14709_v43 }
0x21b6   : > { %v5840_v26 = vpop.permute.xlu1 %5839  ;;  %v7015_v45 = vmul.f32 %v10167_v59, %v9406_v18  ;;  %v6733_v32 = vpack.c.bf16 %v6728_v8, %v6727_v29  ;;  %v10185_v33 = vpop.eup %10184  ;;  %v4923_v35 = vmul.f32 %v10183_v34, %v14710_v47  ;;  %v14714_v8 = vld [vmem:[#allocation63_spill] sm:$0xff] }
0x21b7   : > { %v5868_v21 = vsel %vm2160_vm3, %v5860_v62, %v5840_v26  ;;  %v6974_v53 = vpop.f32.mrf.mxu1  ;;  %v10187_v20 = vpop.eup %10186 }
0x21b8   : > { %9421 = vmatmul.mubr.msk.bf16.vlgmr.msra.gmra.mxu1 %vm1052_vm2, %v5868_v21  ;;  %v7013_v12 = vmul.f32 %v10169_v22, %v6974_v53  ;;  %v10189_v0 = vpop.eup %10188  ;;  %v4929_v46 = vpack.c.bf16 %v4924_v11, %v4923_v35  ;;  %v4926_v10 = vmul.f32 %v10187_v20, %v14711_v14  ;;  %v14717_v14 = vld [vmem:[#allocation22_spill] sm:$0xff] }
0x21b9   : > { %v9407_v17 = vpop.f32.mrf.mxu1  ;;  %v10191_v60 = vpop.eup %10190  ;;  %v4925_v18 = vmul.f32 %v10189_v0, %v14712_v23 }
0x21ba   : > { %v7016_v15 = vmul.f32 %v10173_v56, %v9407_v17  ;;  %v5818_v24 = vpop.permute.xlu0 %5817  ;;  %v10193_v39 = vpop.eup %10192 }
0x21bb   : > { %v6977_v4 = vpop.f32.mrf.mxu1  ;;  %v10195_v37 = vpop.eup %10194  ;;  %v5853_v62 = vsel %vm962_vm1, %v4929_v46, %v5818_v24  ;;  %v4930_v17 = vpack.c.bf16 %v4926_v10, %v4925_v18 }
0x21bc   : > { %v7022_v42 = vpack.c.bf16 %v7016_v15, %v7015_v45  ;;  %v7014_v36 = vmul.f32 %v10177_v63, %v6977_v4  ;;  %v10197_v7 = vpop.eup %10196 }
0x21bd   : > { %v6136_v1 = vmul.f32 %v10197_v7, %v14713_v27 }
0x21be   : > { %v7021_v9 = vpack.c.bf16 %v7014_v36, %v7013_v12  ;;  %7055 = vrot.lane.b32.xlu1 %v7022_v42, %s10290_s20  ;;  %v5820_v44 = vpop.permute.xlu1 %5819 }
0x21bf   : > { %v5856_v15 = vsel %vm962_vm1, %v4930_v17, %v5820_v44 }
0x21c0   : > { %7053 = vrot.lane.b32.xlu0 %v7021_v9, %s10290_s20  ;;  %v10199_v9 = vpop.eup %10198 }
0x21c1   : > { %v6135_v2 = vmul.f32 %v10199_v9, %v14714_v8 }
0x21c2   : > { %v9410_v51 = vpop.f32.mrf.mxu1  ;;  %7047 = vrot.lane.b32.xlu1 %v6734_v25, %s10291_s21  ;;  %v5830_v57 = vpop.permute.xlu0 %5829 }
0x21c3   : > { %v7019_v61 = vmul.f32 %v10185_v33, %v9410_v51  ;;  %v5862_v53 = vsel %vm487_vm0, %v5853_v62, %v5830_v57  ;;  %v6143_v29 = vpack.c.bf16 %v6136_v1, %v6135_v2 }
0x21c4   : > { %v6990_v31 = vpop.f32.mrf.mxu1  ;;  %7045 = vrot.lane.b32.xlu0 %v6733_v32, %s10291_s21  ;;  %s14307_s21 = scalar_lea.vmem %s14404_s14, %s14731_s25 }
0x21c5   : > { %v7017_v26 = vmul.f32 %v10193_v39, %v6990_v31 }
0x21c6   : > { %v9411_v41 = vpop.f32.mrf.mxu1  ;;  %v5832_v52 = vpop.permute.xlu1 %5831 }
0x21c7   : > { %v7020_v28 = vmul.f32 %v10191_v60, %v9411_v41  ;;  %v5864_v63 = vsel %vm487_vm0, %v5856_v15, %v5832_v52 }
0x21c8   : > { %v6993_v59 = vpop.f32.mrf.mxu1 }
0x21c9   : > { %v7024_v22 = vpack.c.bf16 %v7020_v28, %v7019_v61  ;;  %v7018_v21 = vmul.f32 %v10195_v37, %v6993_v59  ;;  %v14718_v61 = vld [vmem:[#allocation13_spill] sm:$0xff] }
0x21ca   : > { %v5842_v56 = vpop.permute.xlu0 %5841 }
0x21cb   : > { %v7023_v30 = vpack.c.bf16 %v7018_v21, %v7017_v26  ;;  %v5870_v45 = vsel %vm2160_vm3, %v5862_v53, %v5842_v56  ;;  %7059 = vrot.lane.b32.xlu1 %v7024_v22, %s10290_s20  ;;  %v14719_v53 = vld [vmem:[#allocation14_spill] sm:$0xff]  ;;  %v14720_v56 = vld [vmem:[#allocation24_spill] sm:$0xff] }
0x21cc   : > { %9424 = vmatprep.mubr.msk.bf16.mxu1 %vm1052_vm2, %v5870_v45 }
0x21cd   : > { %7057 = vrot.lane.b32.xlu0 %v7023_v30, %s10290_s20 }
0x21ce   : > { %v5844_v4 = vpop.permute.xlu1 %5843 }
0x21cf   : > { %v5872_v12 = vsel %vm2160_vm3, %v5864_v63, %v5844_v4  ;;  %v14721_v4 = vld [vmem:[#allocation30_spill] sm:$0xff] }
0x21d0   : > { %9425 = vmatmul.mubr.msk.bf16.gmra.mxu1 %vm1052_vm2, %v5872_v12 }
0x21d2   : > { %v7030_v36 = vpop.permute.xlu0 %7029 }
0x21d3   : > { %v7063_v34 = vsel %vm962_vm1, %v6143_v29, %v7030_v36  ;;  %v14724_v29 = vld [vmem:[#allocation32_spill] sm:$0xff] }
0x21d6   : > { %v7032_v42 = vpop.permute.xlu1 %7031 }
0x21d7   : > { %v7066_v16 = vsel %vm962_vm1, %v6144_v19, %v7032_v42  ;;  %v14722_v42 = vld [vmem:[#allocation16_spill] sm:$0xff] }
0x21da   : > { %v7042_v54 = vpop.permute.xlu0 %7041 }
0x21db   : > { %v7074_v3 = vsel %vm487_vm0, %v7063_v34, %v7042_v54 }
0x21de   : > { %v7044_v6 = vpop.permute.xlu1 %7043 }
0x21df   : > { %v7076_v32 = vsel %vm487_vm0, %v7066_v16, %v7044_v6 }
0x21e2   : > { %v7034_v40 = vpop.permute.xlu0 %7033 }
0x21e3   : > { %v7069_v58 = vsel %vm962_vm1, %v6145_v38, %v7034_v40  ;;  %v14715_v38 = vld [vmem:[#allocation15_spill] sm:$0xff] }
0x21e6   : > { %v7036_v25 = vpop.permute.xlu1 %7035 }
0x21e7   : > { %v7072_v19 = vsel %vm962_vm1, %v6146_v50, %v7036_v25  ;;  %v13806_v50 = vld [vmem:[%s14395_s5 + $0x1] ss:$0 sm:$0xff] }
0x21e8   : > { %v14723_v25 = vld [vmem:[#allocation18_spill] sm:$0xff] }
0x2230   : > { %v7056_v24 = vpop.permute.xlu1 %7055 }
0x2231   : > { %v7084_v43 = vsel %vm2160_vm3, %v7076_v32, %v7056_v24  ;;  %v14725_v32 = vld [vmem:[#allocation26_spill] sm:$0xff] }
0x2232   : > { %v7054_v51 = vpop.permute.xlu0 %7053 }
0x2233   : > { %v7082_v33 = vsel %vm2160_vm3, %v7074_v3, %v7054_v51 }
0x2234   : > { %9428 = vmatprep.mubr.msk.bf16.mxu1 %vm1052_vm2, %v7082_v33  ;;  %v7048_v11 = vpop.permute.xlu1 %7047 }
0x2235   : > { %9429 = vmatmul.mubr.msk.bf16.gmra.mxu1 %vm1052_vm2, %v7084_v43  ;;  %v7080_v47 = vsel %vm487_vm0, %v7072_v19, %v7048_v11  ;;  %v14726_v43 = vld [vmem:[#allocation20_spill] sm:$0xff] }
0x2236   : > { %v7046_v20 = vpop.permute.xlu0 %7045 }
0x2237   : > { %v7078_v31 = vsel %vm487_vm0, %v7069_v58, %v7046_v20 }
0x223d   : > { %v7060_v48 = vpop.permute.xlu1 %7059 }
0x223e   : > { %v7088_v44 = vsel %vm2160_vm3, %v7080_v47, %v7060_v48 }
0x223f   : > { %v7058_v0 = vpop.permute.xlu0 %7057 }
0x2240   : > { %v7086_v35 = vsel %vm2160_vm3, %v7078_v31, %v7058_v0 }
0x2241   : > { %9432 = vmatprep.mubr.msk.bf16.mxu1 %vm1052_vm2, %v7086_v35 }
0x2242   : > { %9433 = vmatmul.mubr.msk.bf16.gmra.mxu1 %vm1052_vm2, %v7088_v44  ;;  %v14727_v44 = vld [vmem:[#allocation34_spill] sm:$0xff] }
0x2278   : > { %v9422_v55 = vpop.f32.mrf.mxu1 }
0x2279   : > { %v7237_v60 = vadd.f32 %v9422_v55, %v14715_v38 }
0x227a   : > { %v7172_v5 = vpop.f32.mrf.mxu1 }
0x227b   : > { %v7235_v49 = vadd.f32 %v7172_v5, %v14716_v13  ;;  %v13812_v46 = vadd.f32 %v13806_v50, %v7237_v60  ;;  %v14728_v5 = vld [vmem:[#allocation28_spill] sm:$0xff] }
0x227c   : > { %v9423_v57 = vpop.f32.mrf.mxu1 }
0x227d   : > { %v13809_v41 = vadd.f32 %v13806_v50, %v7235_v49  ;;  %v7238_v10 = vadd.f32 %v9423_v57, %v14717_v14  ;;  %v7285_v59 = vsel %vm487_vm0, %v13812_v46, 0.0 }
0x227e   : > { %v7175_v39 = vpop.f32.mrf.mxu1 }
0x227f   : > { %v7236_v28 = vadd.f32 %v7175_v39, %v14718_v61  ;;  %v7279_v37 = vsel %vm487_vm0, %v13809_v41, 0.0  ;;  %v13822_v18 = vadd.f32 %v13806_v50, %v7238_v10  ;;  %v14729_v39 = vld [vmem:[#allocation21_spill] sm:$0xff]  ;;  %v14730_v10 = vld [vmem:[#allocation36_spill] sm:$0xff] }
0x2280   : > { %7280 = vadd.xlane.f32.xlu0 %v7279_v37 }
0x2281   : > { %v13819_v23 = vadd.f32 %v13806_v50, %v7236_v28  ;;  %v7288_v26 = vsel %vm487_vm0, %v13822_v18, 0.0 }
0x2283   : > { %v7282_v62 = vsel %vm487_vm0, %v13819_v23, 0.0 }
0x2284   : > { %7286 = vadd.xlane.f32.xlu0 %v7285_v59  ;;  %7283 = vadd.xlane.f32.xlu1 %v7282_v62 }
0x2288   : > { %7289 = vadd.xlane.f32.xlu0 %v7288_v26 }
0x2290   : > { %v9426_v22 = vpop.f32.mrf.mxu1 }
0x2291   : > { %v7241_v52 = vadd.f32 %v9426_v22, %v14719_v53 }
0x2292   : > { %v7188_v21 = vpop.f32.mrf.mxu1 }
0x2293   : > { %v7239_v17 = vadd.f32 %v7188_v21, %v14720_v56  ;;  %v13836_v63 = vadd.f32 %v13806_v50, %v7241_v52 }
0x2294   : > { %v9427_v30 = vpop.f32.mrf.mxu1 }
0x2295   : > { %v13833_v45 = vadd.f32 %v13806_v50, %v7239_v17  ;;  %v7242_v12 = vadd.f32 %v9427_v30, %v14721_v4  ;;  %v7297_v54 = vsel %vm487_vm0, %v13836_v63, 0.0 }
0x2296   : > { %v7191_v15 = vpop.f32.mrf.mxu1 }
0x2297   : > { %v7240_v36 = vadd.f32 %v7191_v15, %v14722_v42  ;;  %v7291_v7 = vsel %vm487_vm0, %v13833_v45, 0.0  ;;  %v13846_v9 = vadd.f32 %v13806_v50, %v7242_v12 }
0x2298   : > { %7292 = vadd.xlane.f32.xlu0 %v7291_v7 }
0x2299   : > { %v13843_v6 = vadd.f32 %v13806_v50, %v7240_v36  ;;  %v7300_v1 = vsel %vm487_vm0, %v13846_v9, 0.0 }
0x229b   : > { %v7294_v27 = vsel %vm487_vm0, %v13843_v6, 0.0 }
0x229c   : > { %7298 = vadd.xlane.f32.xlu0 %v7297_v54  ;;  %7295 = vadd.xlane.f32.xlu1 %v7294_v27 }
0x22a0   : > { %7301 = vadd.xlane.f32.xlu1 %v7300_v1 }
0x22f5   : > { %v9430_v8 = vpop.f32.mrf.mxu1 }
0x22f6   : > { %v7245_v40 = vadd.f32 %v9430_v8, %v14723_v25 }
0x22f7   : > { %v7204_v2 = vpop.f32.mrf.mxu1 }
0x22f8   : > { %v7243_v34 = vadd.f32 %v7204_v2, %v14724_v29  ;;  %v13860_v51 = vadd.f32 %v13806_v50, %v7245_v40 }
0x22f9   : > { %v9431_v24 = vpop.f32.mrf.mxu1 }
0x22fa   : > { %v13857_v16 = vadd.f32 %v13806_v50, %v7243_v34  ;;  %v7246_v33 = vadd.f32 %v9431_v24, %v14725_v32  ;;  %v7309_v19 = vsel %vm487_vm0, %v13860_v51, 0.0 }
0x22fb   : > { %v7207_v3 = vpop.f32.mrf.mxu1 }
0x22fc   : > { %v7244_v11 = vadd.f32 %v7207_v3, %v14726_v43  ;;  %v7303_v20 = vsel %vm487_vm0, %v13857_v16, 0.0  ;;  %v13870_v48 = vadd.f32 %v13806_v50, %v7246_v33 }
0x22fd   : > { %7304 = vadd.xlane.f32.xlu0 %v7303_v20 }
0x22fe   : > { %v13867_v58 = vadd.f32 %v13806_v50, %v7244_v11  ;;  %v7312_v35 = vsel %vm487_vm0, %v13870_v48, 0.0 }
0x2300   : > { %v7306_v31 = vsel %vm487_vm0, %v13867_v58, 0.0 }
0x2301   : > { %7310 = vadd.xlane.f32.xlu0 %v7309_v19  ;;  %7307 = vadd.xlane.f32.xlu1 %v7306_v31 }
0x2302   : > { %v9434_v0 = vpop.f32.mrf.mxu1 }
0x2303   : > { %v7249_v55 = vadd.f32 %v9434_v0, %v14727_v44 }
0x2304   : > { %v7220_v47 = vpop.f32.mrf.mxu1 }
0x2305   : > { %v7247_v38 = vadd.f32 %v7220_v47, %v14728_v5  ;;  %7313 = vadd.xlane.f32.xlu1 %v7312_v35  ;;  %v13884_v57 = vadd.f32 %v13806_v50, %v7249_v55 }
0x2306   : > { %v9435_v60 = vpop.f32.mrf.mxu1 }
0x2307   : > { %v13881_v13 = vadd.f32 %v13806_v50, %v7247_v38  ;;  %v7250_v14 = vadd.f32 %v9435_v60, %v14729_v39  ;;  %v7321_v52 = vsel %vm487_vm0, %v13884_v57, 0.0  ;;  %v9586_v39 = vld [vmem:[%s14398_s8 + $0x18] sm:$0xff]  }
0x2308   : > { %v7223_v49 = vpop.f32.mrf.mxu1  ;;  %9436 = vmatprep.subr.bf16.mxu0 %v9586_v39 }
0x2309   : > { %v7248_v61 = vadd.f32 %v7223_v49, %v14730_v10  ;;  %v7281_v28 = vpop.xlane.xlu0 %7280  ;;  %v7315_v37 = vsel %vm487_vm0, %v13881_v13, 0.0  ;;  %v13897_v22 = vadd.f32 %v13806_v50, %v7250_v14  ;;  %9437 = vmatpush3.bf16.msra.mxu0 %v9586_v39  ;;  %v9587_v14 = vld [vmem:[%s14398_s8 + $0x10] sm:$0xff]  }
0x230a   : > { %v7327_v59 = vmul.f32 0.03125, %v7281_v28  ;;  %7316 = vadd.xlane.f32.xlu0 %v7315_v37  ;;  %9438 = vmatprep.subr.bf16.mxu0 %v9587_v14 }
0x230b   : > { %v13891_v62 = vadd.f32 %v13806_v50, %v7248_v61  ;;  %v7324_v36 = vsel %vm487_vm0, %v13897_v22, 0.0 }
0x230c   : > { %v13894_v26 = vsub.f32 %v13809_v41, %v7327_v59 }
0x230d   : > { %v7287_v21 = vpop.xlane.xlu0 %7286  ;;  %v7284_v53 = vpop.xlane.xlu1 %7283  ;;  %v7318_v56 = vsel %vm487_vm0, %v13891_v62, 0.0  ;;  %9439 = vmatpush3.bf16.msra.mxu0 %v9587_v14 }
0x230e   : > { %v7329_v17 = vmul.f32 0.03125, %v7287_v21  ;;  %v7328_v30 = vmul.f32 0.03125, %v7284_v53  ;;  %7322 = vadd.xlane.f32.xlu0 %v7321_v52  ;;  %7319 = vadd.xlane.f32.xlu1 %v7318_v56  ;;  %v7359_v15 = vmul.f32 %v13894_v26, %v13894_v26 }
0x2310   : > { %v13906_v4 = vsub.f32 %v13812_v46, %v7329_v17  ;;  %v13909_v50 = vsub.f32 %v13819_v23, %v7328_v30  ;;  %v7375_v12 = vsel %vm487_vm0, %v7359_v15, 0.0 }
0x2311   : > { %v7290_v42 = vpop.xlane.xlu0 %7289 }
0x2312   : > { %v7330_v7 = vmul.f32 0.03125, %v7290_v42  ;;  %7376 = vadd.xlane.f32.xlu0 %v7375_v12  ;;  %7325 = vadd.xlane.f32.xlu1 %v7324_v36  ;;  %v7361_v54 = vmul.f32 %v13906_v4, %v13906_v4  ;;  %v7360_v27 = vmul.f32 %v13909_v50, %v13909_v50 }
0x2314   : > { %v13919_v1 = vsub.f32 %v13822_v18, %v7330_v7  ;;  %v7381_v8 = vsel %vm487_vm0, %v7361_v54, 0.0  ;;  %v7378_v2 = vsel %vm487_vm0, %v7360_v27, 0.0 }
0x2316   : > { %7382 = vadd.xlane.f32.xlu0 %v7381_v8  ;;  %7379 = vadd.xlane.f32.xlu1 %v7378_v2  ;;  %v7362_v25 = vmul.f32 %v13919_v1, %v13919_v1 }
0x2318   : > { %v7384_v40 = vsel %vm487_vm0, %v7362_v25, 0.0 }
0x231a   : > { %7385 = vadd.xlane.f32.xlu1 %v7384_v40 }
0x2321   : > { %v7293_v29 = vpop.xlane.xlu0 %7292 }
0x2322   : > { %v7331_v34 = vmul.f32 0.03125, %v7293_v29 }
0x2324   : > { %v13927_v24 = vsub.f32 %v13833_v45, %v7331_v34 }
0x2325   : > { %v7299_v3 = vpop.xlane.xlu0 %7298  ;;  %v7296_v32 = vpop.xlane.xlu1 %7295 }
0x2326   : > { %v7333_v33 = vmul.f32 0.03125, %v7299_v3  ;;  %v7332_v43 = vmul.f32 0.03125, %v7296_v32  ;;  %v7363_v11 = vmul.f32 %v13927_v24, %v13927_v24 }
0x2328   : > { %v13932_v20 = vsub.f32 %v13836_v63, %v7333_v33  ;;  %v13935_v19 = vsub.f32 %v13843_v6, %v7332_v43  ;;  %v7387_v31 = vsel %vm487_vm0, %v7363_v11, 0.0 }
0x2329   : > { %7388 = vadd.xlane.f32.xlu0 %v7387_v31  ;;  %v7302_v0 = vpop.xlane.xlu1 %7301 }
0x232a   : > { %v7334_v47 = vmul.f32 0.03125, %v7302_v0  ;;  %v7365_v35 = vmul.f32 %v13932_v20, %v13932_v20  ;;  %v7364_v44 = vmul.f32 %v13935_v19, %v13935_v19 }
0x232c   : > { %v13943_v55 = vsub.f32 %v13846_v9, %v7334_v47  ;;  %v7393_v5 = vsel %vm487_vm0, %v7365_v35, 0.0  ;;  %v7390_v38 = vsel %vm487_vm0, %v7364_v44, 0.0 }
0x232d   : > { %7394 = vadd.xlane.f32.xlu0 %v7393_v5  ;;  %7391 = vadd.xlane.f32.xlu1 %v7390_v38 }
0x232e   : > { %v7366_v60 = vmul.f32 %v13943_v55, %v13943_v55 }
0x2330   : > { %v7396_v49 = vsel %vm487_vm0, %v7366_v60, 0.0 }
0x2331   : > { %7397 = vadd.xlane.f32.xlu1 %v7396_v49 }
0x2386   : > { %v7305_v10 = vpop.xlane.xlu0 %7304 }
0x2387   : > { %v7335_v61 = vmul.f32 0.03125, %v7305_v10 }
0x2389   : > { %v13957_v28 = vsub.f32 %v13857_v16, %v7335_v61 }
0x238a   : > { %v7311_v37 = vpop.xlane.xlu0 %7310  ;;  %v7308_v59 = vpop.xlane.xlu1 %7307 }
0x238b   : > { %v7337_v21 = vmul.f32 0.03125, %v7311_v37  ;;  %v7336_v53 = vmul.f32 0.03125, %v7308_v59  ;;  %v7367_v52 = vmul.f32 %v13957_v28, %v13957_v28 }
0x238d   : > { %v13962_v56 = vsub.f32 %v13860_v51, %v7337_v21  ;;  %v13965_v17 = vsub.f32 %v13867_v58, %v7336_v53  ;;  %v7399_v30 = vsel %vm487_vm0, %v7367_v52, 0.0 }
0x238e   : > { %7400 = vadd.xlane.f32.xlu0 %v7399_v30  ;;  %v7314_v15 = vpop.xlane.xlu1 %7313 }
0x238f   : > { %v7338_v12 = vmul.f32 0.03125, %v7314_v15  ;;  %v7369_v42 = vmul.f32 %v13962_v56, %v13962_v56  ;;  %v7368_v36 = vmul.f32 %v13965_v17, %v13965_v17 }
0x2391   : > { %v13973_v7 = vsub.f32 %v13870_v48, %v7338_v12  ;;  %v7405_v54 = vsel %vm487_vm0, %v7369_v42, 0.0  ;;  %v7402_v27 = vsel %vm487_vm0, %v7368_v36, 0.0 }
0x2392   : > { %7406 = vadd.xlane.f32.xlu0 %v7405_v54  ;;  %7403 = vadd.xlane.f32.xlu1 %v7402_v27 }
0x2393   : > { %v7317_v8 = vpop.xlane.xlu0 %7316  ;;  %v7370_v2 = vmul.f32 %v13973_v7, %v13973_v7 }
0x2394   : > { %v7339_v25 = vmul.f32 0.03125, %v7317_v8  ;;  %v14008_v8 = vld [vmem:[%s14396_s6 + $0x1] ss:$0 sm:$0xff] }
0x2395   : > { %v7408_v40 = vsel %vm487_vm0, %v7370_v2, 0.0 }
0x2396   : > { %v13981_v29 = vsub.f32 %v13881_v13, %v7339_v25  ;;  %7409 = vadd.xlane.f32.xlu1 %v7408_v40 }
0x2397   : > { %v7323_v34 = vpop.xlane.xlu0 %7322  ;;  %v7320_v3 = vpop.xlane.xlu1 %7319 }
0x2398   : > { %v7341_v32 = vmul.f32 0.03125, %v7323_v34  ;;  %v7340_v33 = vmul.f32 0.03125, %v7320_v3  ;;  %v7371_v43 = vmul.f32 %v13981_v29, %v13981_v29 }
0x239a   : > { %v13986_v11 = vsub.f32 %v13884_v57, %v7341_v32  ;;  %v13989_v31 = vsub.f32 %v13891_v62, %v7340_v33  ;;  %v7411_v0 = vsel %vm487_vm0, %v7371_v43, 0.0  ;;  %v14015_v32 = vld [vmem:[%s14397_s7 + $0x1] ss:$0 sm:$0xff] }
0x239b   : > { %7412 = vadd.xlane.f32.xlu0 %v7411_v0  ;;  %v7377_v47 = vpop.xlane.xlu0 %7376  ;;  %v7326_v35 = vpop.xlane.xlu1 %7325 }
0x239c   : > { %v7423_v44 = vmul.f32 0.03125, %v7377_v47  ;;  %v7342_v5 = vmul.f32 0.03125, %v7326_v35  ;;  %v7373_v38 = vmul.f32 %v13986_v11, %v13986_v11  ;;  %v7372_v60 = vmul.f32 %v13989_v31, %v13989_v31 }
0x239e   : > { %v7439_v49 = vadd.f32 1e-05, %v7423_v44  ;;  %v13997_v39 = vsub.f32 %v13897_v22, %v7342_v5  ;;  %v7417_v14 = vsel %vm487_vm0, %v7373_v38, 0.0  ;;  %v7414_v10 = vsel %vm487_vm0, %v7372_v60, 0.0 }
0x239f   : > { %7418 = vadd.xlane.f32.xlu0 %v7417_v14  ;;  %v7383_v61 = vpop.xlane.xlu0 %7382  ;;  %7415 = vadd.xlane.f32.xlu1 %v7414_v10  ;;  %v7380_v37 = vpop.xlane.xlu1 %7379 }
0x23a0   : > { %10200 = vrsqrt.f32 %v7439_v49  ;;  %v7425_v59 = vmul.f32 0.03125, %v7383_v61  ;;  %v7424_v21 = vmul.f32 0.03125, %v7380_v37  ;;  %v7374_v53 = vmul.f32 %v13997_v39, %v13997_v39 }
0x23a2   : > { %v7441_v52 = vadd.f32 1e-05, %v7425_v59  ;;  %v7440_v30 = vadd.f32 1e-05, %v7424_v21  ;;  %v7420_v15 = vsel %vm487_vm0, %v7374_v53, 0.0 }
0x23a3   : > { %7421 = vadd.xlane.f32.xlu1 %v7420_v15  ;;  %v7386_v12 = vpop.xlane.xlu1 %7385 }
0x23a4   : > { %10202 = vrsqrt.f32 %v7441_v52  ;;  %v7426_v42 = vmul.f32 0.03125, %v7386_v12 }
0x23a5   : > { %10204 = vrsqrt.f32 %v7440_v30 }
0x23a6   : > { %v7442_v36 = vadd.f32 1e-05, %v7426_v42  ;;  %v9588_v42 = vld [vmem:[%s14400_s10 + $0x38] sm:$0xff]  }
0x23a7   : > { %9456 = vmatprep.subr.bf16.mxu1 %v9588_v42 }
0x23a8   : > { %10206 = vrsqrt.f32 %v7442_v36  ;;  %9457 = vmatpush3.bf16.msra.mxu1 %v9588_v42 }
0x23ad   : > { %v10201_v54 = vpop.eup %10200 }
0x23ae   : > { %v7471_v27 = vmul.f32 %v10201_v54, %v13894_v26 }
0x23b0   : > { %v7493_v3 = vmul.f32 %v14008_v8, %v7471_v27 }
0x23b1   : > { %v10203_v2 = vpop.eup %10202 }
0x23b2   : > { %v10205_v25 = vpop.eup %10204  ;;  %v7473_v40 = vmul.f32 %v10203_v2, %v13906_v4  ;;  %v7389_v34 = vpop.xlane.xlu0 %7388  ;;  %v7515_v38 = vadd.f32 %v14015_v32, %v7493_v3 }
0x23b3   : > { %v7427_v33 = vmul.f32 0.03125, %v7389_v34  ;;  %v7472_v26 = vmul.f32 %v10205_v25, %v13909_v50 }
0x23b4   : > { %v7495_v35 = vmul.f32 %v14008_v8, %v7473_v40 }
0x23b5   : > { %v10207_v43 = vpop.eup %10206  ;;  %v7443_v0 = vadd.f32 1e-05, %v7427_v33  ;;  %v7494_v47 = vmul.f32 %v14008_v8, %v7472_v26 }
0x23b6   : > { %v7474_v44 = vmul.f32 %v10207_v43, %v13919_v1  ;;  %v7395_v4 = vpop.xlane.xlu0 %7394  ;;  %v7392_v5 = vpop.xlane.xlu1 %7391  ;;  %v7517_v59 = vadd.f32 %v14015_v32, %v7495_v35  ;;  %v9590_v35 = vld [vmem:[%s14400_s10 + $0x28] sm:$0xff]  }
0x23b7   : > { %10208 = vrsqrt.f32 %v7443_v0  ;;  %v7429_v60 = vmul.f32 0.03125, %v7395_v4  ;;  %v7428_v49 = vmul.f32 0.03125, %v7392_v5  ;;  %v7516_v14 = vadd.f32 %v14015_v32, %v7494_v47 }
0x23b8   : > { %v7496_v10 = vmul.f32 %v14008_v8, %v7474_v44  ;;  %v9591_v44 = vld [vmem:[%s14400_s10 + $0x20] sm:$0xff]  }
0x23b9   : > { %v7445_v50 = vadd.f32 1e-05, %v7429_v60  ;;  %v7444_v61 = vadd.f32 1e-05, %v7428_v49  ;;  %v7531_v37 = vpack.c.bf16 %v7516_v14, %v7515_v38 }
0x23ba   : > { %v7518_v21 = vadd.f32 %v14015_v32, %v7496_v10  ;;  %v7398_v53 = vpop.xlane.xlu1 %7397 }
0x23bb   : > { %10210 = vrsqrt.f32 %v7445_v50  ;;  %9440 = vmatprep.mubr.msk.bf16.mxu0 %vm487_vm0, %v7531_v37  ;;  %v7430_v1 = vmul.f32 0.03125, %v7398_v53 }
0x23bc   : > { %v7532_v52 = vpack.c.bf16 %v7518_v21, %v7517_v59  ;;  %10212 = vrsqrt.f32 %v7444_v61 }
0x23bd   : > { %v7446_v30 = vadd.f32 1e-05, %v7430_v1 }
0x23be   : > { %9441 = vmatmul.mubr.msk.bf16.vlgmr.msra.gmra.mxu0 %vm487_vm0, %v7532_v52 }
0x23bf   : > { %10214 = vrsqrt.f32 %v7446_v30 }
0x23c4   : > { %v10209_v15 = vpop.eup %10208 }
0x23c5   : > { %v7475_v12 = vmul.f32 %v10209_v15, %v13927_v24 }
0x23c7   : > { %v7497_v25 = vmul.f32 %v14008_v8, %v7475_v12 }
0x23c8   : > { %v10211_v36 = vpop.eup %10210 }
0x23c9   : > { %v10213_v54 = vpop.eup %10212  ;;  %v7477_v27 = vmul.f32 %v10211_v36, %v13932_v20  ;;  %v7519_v33 = vadd.f32 %v14015_v32, %v7497_v25 }
0x23ca   : > { %v7476_v2 = vmul.f32 %v10213_v54, %v13935_v19 }
0x23cb   : > { %v7499_v24 = vmul.f32 %v14008_v8, %v7477_v27 }
0x23cc   : > { %v10215_v40 = vpop.eup %10214  ;;  %v7498_v34 = vmul.f32 %v14008_v8, %v7476_v2 }
0x23cd   : > { %v7478_v3 = vmul.f32 %v10215_v40, %v13943_v55  ;;  %v7521_v0 = vadd.f32 %v14015_v32, %v7499_v24  ;;  %v9589_v55 = vld [vmem:[%s14400_s10 + $0x30] sm:$0xff]  }
0x23ce   : > { %v7520_v26 = vadd.f32 %v14015_v32, %v7498_v34  ;;  %9458 = vmatprep.subr.bf16.mxu1 %v9589_v55 }
0x23cf   : > { %v7500_v43 = vmul.f32 %v14008_v8, %v7478_v3  ;;  %9459 = vmatpush3.bf16.msra.mxu1 %v9589_v55 }
0x23d0   : > { %v7533_v20 = vpack.c.bf16 %v7520_v26, %v7519_v33  ;;  %9460 = vmatprep.subr.bf16.mxu1 %v9590_v35 }
0x23d1   : > { %v7522_v19 = vadd.f32 %v14015_v32, %v7500_v43 }
0x23d2   : > { %9444 = vmatprep.mubr.msk.bf16.mxu0 %vm487_vm0, %v7533_v20 }
0x23d3   : > { %v7534_v47 = vpack.c.bf16 %v7522_v19, %v7521_v0  ;;  %9461 = vmatpush3.bf16.msra.mxu1 %v9590_v35 }
0x23d4   : > { %9462 = vmatprep.subr.bf16.mxu1 %v9591_v44 }
0x23d5   : > { %9445 = vmatmul.mubr.msk.bf16.gmra.mxu0 %vm487_vm0, %v7534_v47 }
0x23d7   : > { %9463 = vmatpush3.bf16.msra.mxu1 %v9591_v44 }
0x2417   : > { %v7401_v4 = vpop.xlane.xlu0 %7400 }
0x2418   : > { %v7431_v5 = vmul.f32 0.03125, %v7401_v4 }
0x241a   : > { %v7447_v38 = vadd.f32 1e-05, %v7431_v5 }
0x241b   : > { %v7407_v60 = vpop.xlane.xlu0 %7406  ;;  %v7404_v49 = vpop.xlane.xlu1 %7403 }
0x241c   : > { %10216 = vrsqrt.f32 %v7447_v38  ;;  %v7433_v14 = vmul.f32 0.03125, %v7407_v60  ;;  %v7432_v10 = vmul.f32 0.03125, %v7404_v49 }
0x241e   : > { %v7449_v50 = vadd.f32 1e-05, %v7433_v14  ;;  %v7448_v61 = vadd.f32 1e-05, %v7432_v10 }
0x241f   : > { %v7410_v37 = vpop.xlane.xlu1 %7409 }
0x2420   : > { %10218 = vrsqrt.f32 %v7449_v50  ;;  %v7434_v59 = vmul.f32 0.03125, %v7410_v37 }
0x2421   : > { %10220 = vrsqrt.f32 %v7448_v61 }
0x2422   : > { %v7450_v21 = vadd.f32 1e-05, %v7434_v59 }
0x2424   : > { %10222 = vrsqrt.f32 %v7450_v21  ;;  %v7413_v53 = vpop.xlane.xlu0 %7412 }
0x2425   : > { %v7435_v1 = vmul.f32 0.03125, %v7413_v53 }
0x2427   : > { %v7451_v52 = vadd.f32 1e-05, %v7435_v1 }
0x2428   : > { %v7419_v30 = vpop.xlane.xlu0 %7418  ;;  %v7416_v15 = vpop.xlane.xlu1 %7415 }
0x2429   : > { %v10217_v12 = vpop.eup %10216  ;;  %10224 = vrsqrt.f32 %v7451_v52  ;;  %v7437_v42 = vmul.f32 0.03125, %v7419_v30  ;;  %v7436_v36 = vmul.f32 0.03125, %v7416_v15  ;;  %v8469_v15 = vld [vmem:[%s14399_s9 + $0x1] ss:$0 sm:$0xff] }
0x242a   : > { %v7479_v2 = vmul.f32 %v10217_v12, %v13957_v28 }
0x242b   : > { %v7453_v54 = vadd.f32 1e-05, %v7437_v42  ;;  %v7452_v27 = vadd.f32 1e-05, %v7436_v36 }
0x242c   : > { %v7422_v25 = vpop.xlane.xlu1 %7421  ;;  %v7501_v43 = vmul.f32 %v14008_v8, %v7479_v2 }
0x242d   : > { %v10219_v40 = vpop.eup %10218  ;;  %10226 = vrsqrt.f32 %v7453_v54  ;;  %v7438_v34 = vmul.f32 0.03125, %v7422_v25 }
0x242e   : > { %v10221_v3 = vpop.eup %10220  ;;  %v7481_v24 = vmul.f32 %v10219_v40, %v13962_v56  ;;  %10228 = vrsqrt.f32 %v7452_v27  ;;  %v7523_v47 = vadd.f32 %v14015_v32, %v7501_v43 }
0x242f   : > { %v7454_v33 = vadd.f32 1e-05, %v7438_v34  ;;  %v7480_v26 = vmul.f32 %v10221_v3, %v13965_v17 }
0x2430   : > { %v7503_v28 = vmul.f32 %v14008_v8, %v7481_v24 }
0x2431   : > { %v10223_v20 = vpop.eup %10222  ;;  %10230 = vrsqrt.f32 %v7454_v33  ;;  %v7502_v0 = vmul.f32 %v14008_v8, %v7480_v26 }
0x2432   : > { %v7482_v19 = vmul.f32 %v10223_v20, %v13973_v7  ;;  %v7525_v17 = vadd.f32 %v14015_v32, %v7503_v28 }
0x2433   : > { %v7524_v55 = vadd.f32 %v14015_v32, %v7502_v0 }
0x2434   : > { %v7504_v56 = vmul.f32 %v14008_v8, %v7482_v19 }
0x2435   : > { %v7535_v35 = vpack.c.bf16 %v7524_v55, %v7523_v47 }
0x2436   : > { %v10225_v44 = vpop.eup %10224  ;;  %v7526_v4 = vadd.f32 %v14015_v32, %v7504_v56 }
0x2437   : > { %9448 = vmatprep.mubr.msk.bf16.mxu0 %vm487_vm0, %v7535_v35  ;;  %v7483_v38 = vmul.f32 %v10225_v44, %v13981_v29 }
0x2438   : > { %v7536_v5 = vpack.c.bf16 %v7526_v4, %v7525_v17 }
0x2439   : > { %v7505_v10 = vmul.f32 %v14008_v8, %v7483_v38 }
0x243a   : > { %v10227_v7 = vpop.eup %10226  ;;  %9449 = vmatmul.mubr.msk.bf16.gmra.mxu0 %vm487_vm0, %v7536_v5 }
0x243b   : > { %v10229_v60 = vpop.eup %10228  ;;  %v7485_v49 = vmul.f32 %v10227_v7, %v13986_v11  ;;  %v7527_v21 = vadd.f32 %v14015_v32, %v7505_v10 }
0x243c   : > { %v7484_v14 = vmul.f32 %v10229_v60, %v13989_v31 }
0x243d   : > { %v7507_v59 = vmul.f32 %v14008_v8, %v7485_v49 }
0x243e   : > { %v10231_v50 = vpop.eup %10230  ;;  %v7506_v61 = vmul.f32 %v14008_v8, %v7484_v14 }
0x243f   : > { %v7486_v37 = vmul.f32 %v10231_v50, %v13997_v39  ;;  %v7529_v11 = vadd.f32 %v14015_v32, %v7507_v59 }
0x2440   : > { %v7528_v29 = vadd.f32 %v14015_v32, %v7506_v61 }
0x2441   : > { %v7508_v53 = vmul.f32 %v14008_v8, %v7486_v37 }
0x2442   : > { %v7537_v1 = vpack.c.bf16 %v7528_v29, %v7527_v21 }
0x2443   : > { %v7530_v31 = vadd.f32 %v14015_v32, %v7508_v53 }
0x2444   : > { %9452 = vmatprep.mubr.msk.bf16.mxu0 %vm487_vm0, %v7537_v1 }
0x2445   : > { %v7538_v52 = vpack.c.bf16 %v7530_v31, %v7529_v11 }
0x2447   : > { %9453 = vmatmul.mubr.msk.bf16.gmra.mxu0 %vm487_vm0, %v7538_v52 }
0x247e   : > { %v9442_v30 = vpop.f32.mrf.mxu0 }
0x247f   : > { %v7631_v8 = vadd.f32 %v9442_v30, %v8469_v15 }
0x2480   : > { %v7622_v39 = vpop.f32.mrf.mxu0 }
0x2481   : > { %v7623_v42 = vadd.f32 %v8469_v15, %v7622_v39  ;;  %v7687_v40 = vmax.f32 %v7631_v8, 0.0 }
0x2482   : > { %v9443_v12 = vpop.f32.mrf.mxu0 }
0x2483   : > { %v7634_v36 = vadd.f32 %v9443_v12, %v8469_v15  ;;  %v7685_v25 = vmax.f32 %v7623_v42, 0.0 }
0x2484   : > { %v7625_v54 = vpop.f32.mrf.mxu0 }
0x2485   : > { %v7626_v27 = vadd.f32 %v8469_v15, %v7625_v54  ;;  %v7688_v2 = vmax.f32 %v7634_v36, 0.0 }
0x2487   : > { %v7686_v32 = vmax.f32 %v7626_v27, 0.0  ;;  %v7702_v3 = vpack.c.bf16 %v7688_v2, %v7687_v40 }
0x2489   : > { %v7701_v34 = vpack.c.bf16 %v7686_v32, %v7685_v25  ;;  %v14096_v32 = vld [vmem:[%s14401_s11 + $0x1] ss:$0 sm:$0xff] }
0x248b   : > { %9464 = vmatprep.mubr.msk.bf16.mxu1 %vm1052_vm2, %v7701_v34 }
0x248c   : > { %9465 = vmatmul.mubr.msk.bf16.vlgmr.msra.gmra.mxu1 %vm1052_vm2, %v7702_v3 }
0x2495   : > { %v9446_v24 = vpop.f32.mrf.mxu0 }
0x2496   : > { %v7647_v0 = vadd.f32 %v9446_v24, %v8469_v15 }
0x2497   : > { %v7638_v33 = vpop.f32.mrf.mxu0 }
0x2498   : > { %v7639_v43 = vadd.f32 %v8469_v15, %v7638_v33  ;;  %v7691_v35 = vmax.f32 %v7647_v0, 0.0 }
0x2499   : > { %v9447_v26 = vpop.f32.mrf.mxu0 }
0x249a   : > { %v7650_v20 = vadd.f32 %v9447_v26, %v8469_v15  ;;  %v7689_v55 = vmax.f32 %v7639_v43, 0.0 }
0x249b   : > { %v7641_v19 = vpop.f32.mrf.mxu0 }
0x249c   : > { %v7642_v28 = vadd.f32 %v8469_v15, %v7641_v19  ;;  %v7692_v47 = vmax.f32 %v7650_v20, 0.0 }
0x249e   : > { %v7690_v56 = vmax.f32 %v7642_v28, 0.0  ;;  %v7704_v17 = vpack.c.bf16 %v7692_v47, %v7691_v35 }
0x24a0   : > { %v7703_v44 = vpack.c.bf16 %v7690_v56, %v7689_v55 }
0x24a2   : > { %9468 = vmatprep.mubr.msk.bf16.mxu1 %vm1052_vm2, %v7703_v44 }
0x24a3   : > { %9469 = vmatmul.mubr.msk.bf16.gmra.mxu1 %vm1052_vm2, %v7704_v17 }
0x24fa   : > { %v9450_v4 = vpop.f32.mrf.mxu0 }
0x24fb   : > { %v7663_v49 = vadd.f32 %v9450_v4, %v8469_v15 }
0x24fc   : > { %v7654_v5 = vpop.f32.mrf.mxu0 }
0x24fd   : > { %v7655_v7 = vadd.f32 %v8469_v15, %v7654_v5  ;;  %v7695_v59 = vmax.f32 %v7663_v49, 0.0 }
0x24fe   : > { %v9451_v38 = vpop.f32.mrf.mxu0 }
0x24ff   : > { %v7666_v60 = vadd.f32 %v9451_v38, %v8469_v15  ;;  %v7693_v61 = vmax.f32 %v7655_v7, 0.0 }
0x2500   : > { %v7657_v14 = vpop.f32.mrf.mxu0 }
0x2501   : > { %v7658_v10 = vadd.f32 %v8469_v15, %v7657_v14  ;;  %v7696_v50 = vmax.f32 %v7666_v60, 0.0 }
0x2503   : > { %v7694_v37 = vmax.f32 %v7658_v10, 0.0  ;;  %v7706_v29 = vpack.c.bf16 %v7696_v50, %v7695_v59 }
0x2505   : > { %v7705_v21 = vpack.c.bf16 %v7694_v37, %v7693_v61 }
0x2507   : > { %v9454_v53 = vpop.f32.mrf.mxu0  ;;  %9472 = vmatprep.mubr.msk.bf16.mxu1 %vm1052_vm2, %v7705_v21 }
0x2508   : > { %9473 = vmatmul.mubr.msk.bf16.gmra.mxu1 %vm1052_vm2, %v7706_v29  ;;  %v7679_v30 = vadd.f32 %v9454_v53, %v8469_v15 }
0x2509   : > { %v7670_v1 = vpop.f32.mrf.mxu0 }
0x250a   : > { %v7671_v31 = vadd.f32 %v8469_v15, %v7670_v1  ;;  %v7699_v54 = vmax.f32 %v7679_v30, 0.0 }
0x250b   : > { %v9455_v11 = vpop.f32.mrf.mxu0 }
0x250c   : > { %v7682_v52 = vadd.f32 %v9455_v11, %v8469_v15  ;;  %v7697_v36 = vmax.f32 %v7671_v31, 0.0 }
0x250d   : > { %v7673_v39 = vpop.f32.mrf.mxu0 }
0x250e   : > { %v7674_v12 = vadd.f32 %v8469_v15, %v7673_v39  ;;  %v7700_v42 = vmax.f32 %v7682_v52, 0.0 }
0x2510   : > { %v7698_v8 = vmax.f32 %v7674_v12, 0.0  ;;  %v7708_v2 = vpack.c.bf16 %v7700_v42, %v7699_v54 }
0x2512   : > { %v7707_v27 = vpack.c.bf16 %v7698_v8, %v7697_v36 }
0x2514   : > { %9476 = vmatprep.mubr.msk.bf16.mxu1 %vm1052_vm2, %v7707_v27 }
0x2515   : > { %9477 = vmatmul.mubr.msk.bf16.gmra.mxu1 %vm1052_vm2, %v7708_v2 }
0x254c   : > { %v9466_v25 = vpop.f32.mrf.mxu1 }
0x254d   : > { %v7865_v40 = vadd.f32 %v9466_v25, %v13812_v46 }
0x254e   : > { %v7800_v34 = vpop.f32.mrf.mxu1 }
0x254f   : > { %v14100_v15 = vadd.f32 %v14096_v32, %v7865_v40  ;;  %v7863_v3 = vadd.f32 %v7800_v34, %v13809_v41 }
0x2550   : > { %v9467_v24 = vpop.f32.mrf.mxu1 }
0x2551   : > { %v14104_v33 = vadd.f32 %v14096_v32, %v7863_v3  ;;  %v7866_v26 = vadd.f32 %v9467_v24, %v13822_v18  ;;  %v7911_v43 = vsel %vm487_vm0, %v14100_v15, 0.0 }
0x2552   : > { %7912 = vadd.xlane.f32.xlu0 %v7911_v43  ;;  %v7803_v20 = vpop.f32.mrf.mxu1 }
0x2553   : > { %v14110_v0 = vadd.f32 %v14096_v32, %v7866_v26  ;;  %v7864_v46 = vadd.f32 %v7803_v20, %v13819_v23  ;;  %v7905_v41 = vsel %vm487_vm0, %v14104_v33, 0.0 }
0x2555   : > { %v14114_v19 = vadd.f32 %v14096_v32, %v7864_v46  ;;  %v7914_v28 = vsel %vm487_vm0, %v14110_v0, 0.0 }
0x2556   : > { %7906 = vadd.xlane.f32.xlu0 %v7905_v41  ;;  %7915 = vadd.xlane.f32.xlu1 %v7914_v28 }
0x2557   : > { %v7908_v18 = vsel %vm487_vm0, %v14114_v19, 0.0 }
0x255a   : > { %7909 = vadd.xlane.f32.xlu1 %v7908_v18 }
0x2563   : > { %v9470_v47 = vpop.f32.mrf.mxu1 }
0x2564   : > { %v7869_v55 = vadd.f32 %v9470_v47, %v13836_v63 }
0x2565   : > { %v7816_v56 = vpop.f32.mrf.mxu1 }
0x2566   : > { %v14124_v23 = vadd.f32 %v14096_v32, %v7869_v55  ;;  %v7867_v35 = vadd.f32 %v7816_v56, %v13833_v45 }
0x2567   : > { %v9471_v44 = vpop.f32.mrf.mxu1 }
0x2568   : > { %v14128_v17 = vadd.f32 %v14096_v32, %v7867_v35  ;;  %v7870_v4 = vadd.f32 %v9471_v44, %v13846_v9  ;;  %v7923_v5 = vsel %vm487_vm0, %v14124_v23, 0.0 }
0x2569   : > { %7924 = vadd.xlane.f32.xlu0 %v7923_v5  ;;  %v7819_v38 = vpop.f32.mrf.mxu1 }
0x256a   : > { %v14134_v7 = vadd.f32 %v14096_v32, %v7870_v4  ;;  %v7868_v63 = vadd.f32 %v7819_v38, %v13843_v6  ;;  %v7917_v45 = vsel %vm487_vm0, %v14128_v17, 0.0 }
0x256c   : > { %v14138_v60 = vadd.f32 %v14096_v32, %v7868_v63  ;;  %v7926_v49 = vsel %vm487_vm0, %v14134_v7, 0.0 }
0x256d   : > { %7918 = vadd.xlane.f32.xlu0 %v7917_v45  ;;  %7927 = vadd.xlane.f32.xlu1 %v7926_v49 }
0x256e   : > { %v7920_v9 = vsel %vm487_vm0, %v14138_v60, 0.0 }
0x2571   : > { %7921 = vadd.xlane.f32.xlu1 %v7920_v9 }
0x25c8   : > { %v9474_v14 = vpop.f32.mrf.mxu1 }
0x25c9   : > { %v7873_v10 = vadd.f32 %v9474_v14, %v13860_v51 }
0x25ca   : > { %v7832_v50 = vpop.f32.mrf.mxu1 }
0x25cb   : > { %v14148_v6 = vadd.f32 %v14096_v32, %v7873_v10  ;;  %v7871_v61 = vadd.f32 %v7832_v50, %v13857_v16 }
0x25cc   : > { %v9475_v37 = vpop.f32.mrf.mxu1 }
0x25cd   : > { %v14152_v59 = vadd.f32 %v14096_v32, %v7871_v61  ;;  %v7874_v21 = vadd.f32 %v9475_v37, %v13870_v48  ;;  %v7935_v29 = vsel %vm487_vm0, %v14148_v6, 0.0 }
0x25ce   : > { %7936 = vadd.xlane.f32.xlu0 %v7935_v29  ;;  %v7835_v53 = vpop.f32.mrf.mxu1 }
0x25cf   : > { %v14158_v1 = vadd.f32 %v14096_v32, %v7874_v21  ;;  %v7872_v51 = vadd.f32 %v7835_v53, %v13867_v58  ;;  %v7929_v16 = vsel %vm487_vm0, %v14152_v59, 0.0 }
0x25d1   : > { %v14162_v11 = vadd.f32 %v14096_v32, %v7872_v51  ;;  %v7938_v31 = vsel %vm487_vm0, %v14158_v1, 0.0 }
0x25d2   : > { %7930 = vadd.xlane.f32.xlu0 %v7929_v16  ;;  %7939 = vadd.xlane.f32.xlu1 %v7938_v31 }
0x25d3   : > { %v7932_v52 = vsel %vm487_vm0, %v14162_v11, 0.0 }
0x25d5   : > { %v9478_v48 = vpop.f32.mrf.mxu1 }
0x25d6   : > { %7933 = vadd.xlane.f32.xlu1 %v7932_v52  ;;  %v7877_v39 = vadd.f32 %v9478_v48, %v13884_v57 }
0x25d7   : > { %v7848_v30 = vpop.f32.mrf.mxu1 }
0x25d8   : > { %v7875_v58 = vadd.f32 %v7848_v30, %v13881_v13  ;;  %v14176_v54 = vadd.f32 %v14096_v32, %v7877_v39 }
0x25d9   : > { %v9479_v12 = vpop.f32.mrf.mxu1 }
0x25da   : > { %v14173_v42 = vadd.f32 %v14096_v32, %v7875_v58  ;;  %v7878_v27 = vadd.f32 %v9479_v12, %v13897_v22  ;;  %v7947_v26 = vsel %vm487_vm0, %v14176_v54, 0.0 }
0x25db   : > { %v7913_v36 = vpop.xlane.xlu0 %7912  ;;  %v7851_v8 = vpop.f32.mrf.mxu1 }
0x25dc   : > { %v7876_v2 = vadd.f32 %v7851_v8, %v13891_v62  ;;  %v7941_v25 = vsel %vm487_vm0, %v14173_v42, 0.0  ;;  %v7955_v57 = vmul.f32 0.03125, %v7913_v36  ;;  %v14186_v3 = vadd.f32 %v14096_v32, %v7878_v27 }
0x25dd   : > { %7942 = vadd.xlane.f32.xlu0 %v7941_v25 }
0x25de   : > { %v14183_v13 = vadd.f32 %v14096_v32, %v7876_v2  ;;  %v14193_v22 = vsub.f32 %v14100_v15, %v7955_v57  ;;  %v7950_v32 = vsel %vm487_vm0, %v14186_v3, 0.0 }
0x25df   : > { %v7907_v40 = vpop.xlane.xlu0 %7906  ;;  %v7916_v34 = vpop.xlane.xlu1 %7915 }
0x25e0   : > { %v7953_v24 = vmul.f32 0.03125, %v7907_v40  ;;  %v7944_v62 = vsel %vm487_vm0, %v14183_v13, 0.0  ;;  %v7956_v20 = vmul.f32 0.03125, %v7916_v34 }
0x25e1   : > { %7948 = vadd.xlane.f32.xlu0 %v7947_v26  ;;  %7945 = vadd.xlane.f32.xlu1 %v7944_v62 }
0x25e2   : > { %v14196_v43 = vsub.f32 %v14104_v33, %v7953_v24  ;;  %v14203_v18 = vsub.f32 %v14110_v0, %v7956_v20  ;;  %v7987_v33 = vmul.f32 %v14193_v22, %v14193_v22 }
0x25e3   : > { %v7910_v46 = vpop.xlane.xlu1 %7909 }
0x25e4   : > { %v7954_v41 = vmul.f32 0.03125, %v7910_v46  ;;  %v7985_v28 = vmul.f32 %v14196_v43, %v14196_v43  ;;  %v8007_v56 = vsel %vm487_vm0, %v7987_v33, 0.0  ;;  %v7988_v0 = vmul.f32 %v14203_v18, %v14203_v18 }
0x25e5   : > { %7951 = vadd.xlane.f32.xlu1 %v7950_v32 }
0x25e6   : > { %v14206_v47 = vsub.f32 %v14114_v19, %v7954_v41  ;;  %v8001_v15 = vsel %vm487_vm0, %v7985_v28, 0.0  ;;  %v8010_v19 = vsel %vm487_vm0, %v7988_v0, 0.0 }
0x25e7   : > { %8002 = vadd.xlane.f32.xlu0 %v8001_v15 }
0x25e8   : > { %v7986_v55 = vmul.f32 %v14206_v47, %v14206_v47 }
0x25ea   : > { %v8004_v35 = vsel %vm487_vm0, %v7986_v55, 0.0 }
0x25eb   : > { %8008 = vadd.xlane.f32.xlu0 %v8007_v56  ;;  %8005 = vadd.xlane.f32.xlu1 %v8004_v35 }
0x25ef   : > { %8011 = vadd.xlane.f32.xlu1 %v8010_v19 }
0x25f2   : > { %v7925_v44 = vpop.xlane.xlu0 %7924 }
0x25f3   : > { %v7959_v4 = vmul.f32 0.03125, %v7925_v44 }
0x25f5   : > { %v14219_v45 = vsub.f32 %v14124_v23, %v7959_v4 }
0x25f6   : > { %v7919_v5 = vpop.xlane.xlu0 %7918  ;;  %v7928_v38 = vpop.xlane.xlu1 %7927 }
0x25f7   : > { %v7957_v63 = vmul.f32 0.03125, %v7919_v5  ;;  %v7960_v9 = vmul.f32 0.03125, %v7928_v38  ;;  %v7991_v23 = vmul.f32 %v14219_v45, %v14219_v45 }
0x25f9   : > { %v14222_v49 = vsub.f32 %v14128_v17, %v7957_v63  ;;  %v14227_v61 = vsub.f32 %v14134_v7, %v7960_v9  ;;  %v8019_v29 = vsel %vm487_vm0, %v7991_v23, 0.0 }
0x25fa   : > { %v7922_v14 = vpop.xlane.xlu1 %7921 }
0x25fb   : > { %v7958_v10 = vmul.f32 0.03125, %v7922_v14  ;;  %v7989_v50 = vmul.f32 %v14222_v49, %v14222_v49  ;;  %v7992_v7 = vmul.f32 %v14227_v61, %v14227_v61 }
0x25fd   : > { %v14230_v37 = vsub.f32 %v14138_v60, %v7958_v10  ;;  %v8013_v21 = vsel %vm487_vm0, %v7989_v50, 0.0  ;;  %v8022_v60 = vsel %vm487_vm0, %v7992_v7, 0.0 }
0x25fe   : > { %8014 = vadd.xlane.f32.xlu0 %v8013_v21 }
0x25ff   : > { %v7990_v17 = vmul.f32 %v14230_v37, %v14230_v37 }
0x2601   : > { %v8016_v53 = vsel %vm487_vm0, %v7990_v17, 0.0 }
0x2602   : > { %8020 = vadd.xlane.f32.xlu0 %v8019_v29  ;;  %8017 = vadd.xlane.f32.xlu1 %v8016_v53  ;;  %v14293_v53 = vld [vmem:[%s14402_s12] ss:$0 sm:$0xff] }
0x2606   : > { %8023 = vadd.xlane.f32.xlu1 %v8022_v60  ;;  %v14299_v60 = vld [vmem:[%s14403_s13] ss:$0 sm:$0xff] }
0x2657   : > { %v7937_v51 = vpop.xlane.xlu0 %7936 }
0x2658   : > { %v7963_v16 = vmul.f32 0.03125, %v7937_v51 }
0x265a   : > { %v14243_v31 = vsub.f32 %v14148_v6, %v7963_v16 }
0x265b   : > { %v7931_v48 = vpop.xlane.xlu0 %7930  ;;  %v7940_v52 = vpop.xlane.xlu1 %7939 }
0x265c   : > { %v7961_v30 = vmul.f32 0.03125, %v7931_v48  ;;  %v7964_v39 = vmul.f32 0.03125, %v7940_v52  ;;  %v7995_v58 = vmul.f32 %v14243_v31, %v14243_v31 }
0x265e   : > { %v14248_v12 = vsub.f32 %v14152_v59, %v7961_v30  ;;  %v14251_v36 = vsub.f32 %v14158_v1, %v7964_v39  ;;  %v8031_v8 = vsel %vm487_vm0, %v7995_v58, 0.0 }
0x265f   : > { %8032 = vadd.xlane.f32.xlu0 %v8031_v8  ;;  %v7934_v27 = vpop.xlane.xlu1 %7933 }
0x2660   : > { %v7962_v2 = vmul.f32 0.03125, %v7934_v27  ;;  %v7993_v6 = vmul.f32 %v14248_v12, %v14248_v12  ;;  %v7996_v25 = vmul.f32 %v14251_v36, %v14251_v36 }
0x2662   : > { %v14259_v57 = vsub.f32 %v14162_v11, %v7962_v2  ;;  %v8025_v59 = vsel %vm487_vm0, %v7993_v6, 0.0  ;;  %v8034_v40 = vsel %vm487_vm0, %v7996_v25, 0.0 }
0x2663   : > { %8026 = vadd.xlane.f32.xlu0 %v8025_v59  ;;  %8035 = vadd.xlane.f32.xlu1 %v8034_v40 }
0x2664   : > { %v7994_v1 = vmul.f32 %v14259_v57, %v14259_v57 }
0x2666   : > { %v7943_v34 = vpop.xlane.xlu0 %7942  ;;  %v8028_v24 = vsel %vm487_vm0, %v7994_v1, 0.0 }
0x2667   : > { %v7965_v26 = vmul.f32 0.03125, %v7943_v34  ;;  %8029 = vadd.xlane.f32.xlu1 %v8028_v24 }
0x2669   : > { %v14267_v62 = vsub.f32 %v14173_v42, %v7965_v26 }
0x266a   : > { %v7949_v20 = vpop.xlane.xlu0 %7948  ;;  %v7946_v11 = vpop.xlane.xlu1 %7945 }
0x266b   : > { %v7967_v46 = vmul.f32 0.03125, %v7949_v20  ;;  %v7966_v41 = vmul.f32 0.03125, %v7946_v11  ;;  %v7997_v32 = vmul.f32 %v14267_v62, %v14267_v62 }
0x266d   : > { %v14272_v28 = vsub.f32 %v14176_v54, %v7967_v46  ;;  %v14275_v15 = vsub.f32 %v14183_v13, %v7966_v41  ;;  %v8037_v33 = vsel %vm487_vm0, %v7997_v32, 0.0 }
0x266e   : > { %8038 = vadd.xlane.f32.xlu0 %v8037_v33  ;;  %v7952_v55 = vpop.xlane.xlu1 %7951 }
0x266f   : > { %v7968_v56 = vmul.f32 0.03125, %v7952_v55  ;;  %v7999_v42 = vmul.f32 %v14272_v28, %v14272_v28  ;;  %v7998_v35 = vmul.f32 %v14275_v15, %v14275_v15 }
0x2670   : > { %v8003_v0 = vpop.xlane.xlu0 %8002 }
0x2671   : > { %v14283_v19 = vsub.f32 %v14186_v3, %v7968_v56  ;;  %v8049_v54 = vmul.f32 0.03125, %v8003_v0  ;;  %v8043_v44 = vsel %vm487_vm0, %v7999_v42, 0.0  ;;  %v8040_v13 = vsel %vm487_vm0, %v7998_v35, 0.0 }
0x2672   : > { %8044 = vadd.xlane.f32.xlu0 %v8043_v44  ;;  %8041 = vadd.xlane.f32.xlu1 %v8040_v13 }
0x2673   : > { %v8065_v4 = vadd.f32 1e-05, %v8049_v54  ;;  %v8000_v5 = vmul.f32 %v14283_v19, %v14283_v19 }
0x2674   : > { %v8009_v38 = vpop.xlane.xlu0 %8008  ;;  %v8006_v63 = vpop.xlane.xlu1 %8005 }
0x2675   : > { %10232 = vrsqrt.f32 %v8065_v4  ;;  %v8051_v9 = vmul.f32 0.03125, %v8009_v38  ;;  %v8050_v14 = vmul.f32 0.03125, %v8006_v63  ;;  %v8046_v10 = vsel %vm487_vm0, %v8000_v5, 0.0 }
0x2676   : > { %8047 = vadd.xlane.f32.xlu1 %v8046_v10 }
0x2677   : > { %v8067_v3 = vadd.f32 1e-05, %v8051_v9  ;;  %v8066_v50 = vadd.f32 1e-05, %v8050_v14 }
0x2678   : > { %v8012_v21 = vpop.xlane.xlu1 %8011 }
0x2679   : > { %10234 = vrsqrt.f32 %v8067_v3  ;;  %v8052_v23 = vmul.f32 0.03125, %v8012_v21 }
0x267a   : > { %10236 = vrsqrt.f32 %v8066_v50 }
0x267b   : > { %v8068_v17 = vadd.f32 1e-05, %v8052_v23 }
0x267d   : > { %10238 = vrsqrt.f32 %v8068_v17 }
0x2682   : > { %v10233_v29 = vpop.eup %10232 }
0x2683   : > { %v8097_v7 = vmul.f32 %v10233_v29, %v14196_v43 }
0x2685   : > { %v8119_v51 = vmul.f32 %v14293_v53, %v8097_v7 }
0x2686   : > { %v10235_v16 = vpop.eup %10234 }
0x2687   : > { %v10237_v48 = vpop.eup %10236  ;;  %v8141_v52 = vadd.f32 %v14299_v60, %v8119_v51  ;;  %v8099_v43 = vmul.f32 %v10235_v16, %v14193_v22  ;;  %v8015_v30 = vpop.xlane.xlu0 %8014 }
0x2688   : > { %v8098_v39 = vmul.f32 %v10237_v48, %v14206_v47  ;;  %v8053_v58 = vmul.f32 0.03125, %v8015_v30 }
0x2689   : > { %8157 = vst.msk [vmem:[%s14307_s21] sm:$0xff] %vm487_vm0, %v8141_v52  ;;  %v8121_v8 = vmul.f32 %v14293_v53, %v8099_v43 }
0x268a   : > { %v10239_v27 = vpop.eup %10238  ;;  %v8120_v2 = vmul.f32 %v14293_v53, %v8098_v39  ;;  %v8069_v6 = vadd.f32 1e-05, %v8053_v58 }
0x268b   : > { %v8143_v25 = vadd.f32 %v14299_v60, %v8121_v8  ;;  %v8100_v59 = vmul.f32 %v10239_v27, %v14203_v18  ;;  %v8021_v22 = vpop.xlane.xlu0 %8020  ;;  %v8018_v40 = vpop.xlane.xlu1 %8017 }
0x268c   : > { %v8142_v1 = vadd.f32 %v14299_v60, %v8120_v2  ;;  %10240 = vrsqrt.f32 %v8069_v6  ;;  %v8055_v47 = vmul.f32 0.03125, %v8021_v22  ;;  %v8054_v34 = vmul.f32 0.03125, %v8018_v40 }
0x268d   : > { %8159 = vst.msk [vmem:[%s14307_s21 + $0x10] sm:$0xff] %vm487_vm0, %v8143_v25  ;;  %v8122_v24 = vmul.f32 %v14293_v53, %v8100_v59 }
0x268e   : > { %8158 = vst.msk [vmem:[%s14307_s21 + $0x8] sm:$0xff] %vm487_vm0, %v8142_v1  ;;  %v8071_v26 = vadd.f32 1e-05, %v8055_v47  ;;  %v8070_v20 = vadd.f32 1e-05, %v8054_v34 }
0x268f   : > { %v8144_v11 = vadd.f32 %v14299_v60, %v8122_v24  ;;  %v8024_v18 = vpop.xlane.xlu1 %8023 }
0x2690   : > { %10242 = vrsqrt.f32 %v8071_v26  ;;  %v8056_v46 = vmul.f32 0.03125, %v8024_v18 }
0x2691   : > { %8160 = vst.msk [vmem:[%s14307_s21 + $0x18] sm:$0xff] %vm487_vm0, %v8144_v11  ;;  %10244 = vrsqrt.f32 %v8070_v20 }
0x2692   : > { %v8072_v41 = vadd.f32 1e-05, %v8056_v46 }
0x2694   : > { %10246 = vrsqrt.f32 %v8072_v41 }
0x2699   : > { %v10241_v32 = vpop.eup %10240 }
0x269a   : > { %v8101_v33 = vmul.f32 %v10241_v32, %v14222_v49 }
0x269c   : > { %v8123_v55 = vmul.f32 %v14293_v53, %v8101_v33 }
0x269d   : > { %v10243_v56 = vpop.eup %10242 }
0x269e   : > { %v10245_v42 = vpop.eup %10244  ;;  %v8145_v35 = vadd.f32 %v14299_v60, %v8123_v55  ;;  %v8103_v0 = vmul.f32 %v10243_v56, %v14219_v45 }
0x269f   : > { %v8102_v54 = vmul.f32 %v10245_v42, %v14230_v37 }
0x26a0   : > { %8161 = vst.msk [vmem:[%s14307_s21 + $0x20] sm:$0xff] %vm487_vm0, %v8145_v35  ;;  %v8125_v44 = vmul.f32 %v14293_v53, %v8103_v0 }
0x26a1   : > { %v10247_v13 = vpop.eup %10246  ;;  %v8124_v4 = vmul.f32 %v14293_v53, %v8102_v54 }
0x26a2   : > { %v8147_v49 = vadd.f32 %v14299_v60, %v8125_v44  ;;  %v8104_v5 = vmul.f32 %v10247_v13, %v14227_v61 }
0x26a3   : > { %v8146_v38 = vadd.f32 %v14299_v60, %v8124_v4 }
0x26a4   : > { %8163 = vst.msk [vmem:[%s14307_s21 + $0x30] sm:$0xff] %vm487_vm0, %v8147_v49  ;;  %v8126_v63 = vmul.f32 %v14293_v53, %v8104_v5 }
0x26a5   : > { %8162 = vst.msk [vmem:[%s14307_s21 + $0x28] sm:$0xff] %vm487_vm0, %v8146_v38 }
0x26a6   : > { %v8148_v45 = vadd.f32 %v14299_v60, %v8126_v63 }
0x26a8   : > { %8164 = vst.msk [vmem:[%s14307_s21 + $0x38] sm:$0xff] %vm487_vm0, %v8148_v45 }
0x26e8   : > { %v8033_v37 = vpop.xlane.xlu0 %8032 }
0x26e9   : > { %v8059_v9 = vmul.f32 0.03125, %v8033_v37 }
0x26eb   : > { %v8075_v14 = vadd.f32 1e-05, %v8059_v9 }
0x26ec   : > { %v8027_v10 = vpop.xlane.xlu0 %8026  ;;  %v8036_v3 = vpop.xlane.xlu1 %8035 }
0x26ed   : > { %10248 = vrsqrt.f32 %v8075_v14  ;;  %v8057_v50 = vmul.f32 0.03125, %v8027_v10  ;;  %v8060_v61 = vmul.f32 0.03125, %v8036_v3 }
0x26ef   : > { %v8073_v21 = vadd.f32 1e-05, %v8057_v50  ;;  %v8076_v23 = vadd.f32 1e-05, %v8060_v61 }
0x26f0   : > { %v8030_v17 = vpop.xlane.xlu1 %8029 }
0x26f1   : > { %10250 = vrsqrt.f32 %v8073_v21  ;;  %v8058_v29 = vmul.f32 0.03125, %v8030_v17 }
0x26f2   : > { %10252 = vrsqrt.f32 %v8076_v23 }
0x26f3   : > { %v8074_v7 = vadd.f32 1e-05, %v8058_v29 }
0x26f5   : > { %10254 = vrsqrt.f32 %v8074_v7 }
0x26f7   : > { %v8039_v51 = vpop.xlane.xlu0 %8038 }
0x26f8   : > { %v8061_v16 = vmul.f32 0.03125, %v8039_v51 }
0x26fa   : > { %v10249_v48 = vpop.eup %10248  ;;  %v8077_v52 = vadd.f32 1e-05, %v8061_v16 }
0x26fb   : > { %v8107_v43 = vmul.f32 %v10249_v48, %v14243_v31  ;;  %v8045_v30 = vpop.xlane.xlu0 %8044  ;;  %v8042_v39 = vpop.xlane.xlu1 %8041 }
0x26fc   : > { %10256 = vrsqrt.f32 %v8077_v52  ;;  %v8063_v58 = vmul.f32 0.03125, %v8045_v30  ;;  %v8062_v8 = vmul.f32 0.03125, %v8042_v39 }
0x26fd   : > { %v8129_v27 = vmul.f32 %v14293_v53, %v8107_v43 }
0x26fe   : > { %v10251_v2 = vpop.eup %10250  ;;  %v8079_v6 = vadd.f32 1e-05, %v8063_v58  ;;  %v8078_v25 = vadd.f32 1e-05, %v8062_v8 }
0x26ff   : > { %v10253_v59 = vpop.eup %10252  ;;  %v8151_v22 = vadd.f32 %v14299_v60, %v8129_v27  ;;  %v8105_v40 = vmul.f32 %v10251_v2, %v14248_v12  ;;  %v8048_v1 = vpop.xlane.xlu1 %8047 }
0x2700   : > { %v8108_v31 = vmul.f32 %v10253_v59, %v14251_v36  ;;  %10258 = vrsqrt.f32 %v8079_v6  ;;  %v8064_v47 = vmul.f32 0.03125, %v8048_v1 }
0x2701   : > { %8167 = vst.msk [vmem:[%s14307_s21 + $0x50] sm:$0xff] %vm487_vm0, %v8151_v22  ;;  %v8127_v34 = vmul.f32 %v14293_v53, %v8105_v40  ;;  %10260 = vrsqrt.f32 %v8078_v25 }
0x2702   : > { %v10255_v24 = vpop.eup %10254  ;;  %v8130_v26 = vmul.f32 %v14293_v53, %v8108_v31  ;;  %v8080_v20 = vadd.f32 1e-05, %v8064_v47 }
0x2703   : > { %v8149_v11 = vadd.f32 %v14299_v60, %v8127_v34  ;;  %v8106_v12 = vmul.f32 %v10255_v24, %v14259_v57 }
0x2704   : > { %v8152_v18 = vadd.f32 %v14299_v60, %v8130_v26  ;;  %10262 = vrsqrt.f32 %v8080_v20 }
0x2705   : > { %8165 = vst.msk [vmem:[%s14307_s21 + $0x40] sm:$0xff] %vm487_vm0, %v8149_v11  ;;  %v8128_v36 = vmul.f32 %v14293_v53, %v8106_v12 }
0x2706   : > { %8168 = vst.msk [vmem:[%s14307_s21 + $0x58] sm:$0xff] %vm487_vm0, %v8152_v18 }
0x2707   : > { %v8150_v46 = vadd.f32 %v14299_v60, %v8128_v36 }
0x2709   : > { %v10257_v41 = vpop.eup %10256  ;;  %8166 = vst.msk [vmem:[%s14307_s21 + $0x48] sm:$0xff] %vm487_vm0, %v8150_v46 }
0x270a   : > { %v8109_v32 = vmul.f32 %v10257_v41, %v14267_v62 }
0x270c   : > { %v8131_v57 = vmul.f32 %v14293_v53, %v8109_v32 }
0x270d   : > { %v10259_v33 = vpop.eup %10258 }
0x270e   : > { %v10261_v55 = vpop.eup %10260  ;;  %v8153_v56 = vadd.f32 %v14299_v60, %v8131_v57  ;;  %v8111_v42 = vmul.f32 %v10259_v33, %v14272_v28 }
0x270f   : > { %v8110_v35 = vmul.f32 %v10261_v55, %v14275_v15 }
0x2710   : > { %8169 = vst.msk [vmem:[%s14307_s21 + $0x60] sm:$0xff] %vm487_vm0, %v8153_v56  ;;  %v8133_v0 = vmul.f32 %v14293_v53, %v8111_v42 }
0x2711   : > { %v10263_v54 = vpop.eup %10262  ;;  %v8132_v44 = vmul.f32 %v14293_v53, %v8110_v35 }
0x2712   : > { %v8155_v62 = vadd.f32 %v14299_v60, %v8133_v0  ;;  %v8112_v13 = vmul.f32 %v10263_v54, %v14283_v19 }
0x2713   : > { %v8154_v4 = vadd.f32 %v14299_v60, %v8132_v44 }
0x2714   : > { %8171 = vst.msk [vmem:[%s14307_s21 + $0x70] sm:$0xff] %vm487_vm0, %v8155_v62  ;;  %v8134_v49 = vmul.f32 %v14293_v53, %v8112_v13 }
0x2715   : > { %8170 = vst.msk [vmem:[%s14307_s21 + $0x68] sm:$0xff] %vm487_vm0, %v8154_v4 }
0x2716   : > { %v8156_v28 = vadd.f32 %v14299_v60, %v8134_v49 }
0x2718   : > { %8172 = vst.msk [vmem:[%s14307_s21 + $0x78] sm:$0xff] %vm487_vm0, %v8156_v28 }
0x2719 PF: > { %s24_s29 = sadd.s32 1, %s10286_s29  }
0x271a   : > { %p21_p4 = scmp.ge.s32.totalorder %s24_s29, 4  }
0x271c   :  { %23 = sbr.rel (!%p21_p4) target bundleno = 1 (0x1), region = 117 }

</bundles_post_ra>
